<compile_context>
chip_gen: v7x
topology: tpu7x:2x2x1
jax: 0.10.0
libtpu: 0.0.40
codegen_flags: <defaults>
</compile_context>

<pallas_src>
import functools

import jax
import jax.numpy as jnp
import numpy as np
from jax import lax
from jax.experimental import pallas as pl
from jax.experimental.pallas import tpu as pltpu


def _bottleneck_kernel(x_ref, w1_ref, b1_ref, w2_ref, b2_ref, w3_ref, b3_ref,
                       mask_ref, o_ref, xp_ref, *, H, W, dilation, B_blk):
    """B_blk images per grid step.

    x_ref:    (B_blk, H*W, Cin)   bf16
    w1_ref:   (Cin, P)            bf16 (BN1 scale folded in)
    w2_ref:   (9, P, P)           bf16 (BN2 scale folded in), tap = kh*3 + kw
    w3_ref:   (P, Cout)           bf16 (BN3 scale folded in)
    b*_ref:   (1, C)              f32  (folded BN biases)
    mask_ref: (H*W, 2)            bf16 column-wrap masks (dw=-d, dw=+d)
    o_ref:    (B_blk, H*W, Cout)  bf16
    xp_ref:   (H*W + 2*pad, P)    bf16 VMEM scratch, pad = d*(W+1)
    """
    d = dilation
    HW = H * W
    Cin = x_ref.shape[-1]
    P = w1_ref.shape[1]
    pad = d * (W + 1)

    # Zero the halo rows (two tiny contiguous row blocks).  Unconditional per
    # step -> safe under megacore "parallel" sharding (no program_id==0 gate).
    xp_ref[0:pad, :] = jnp.zeros((pad, P), jnp.bfloat16)
    xp_ref[pad + HW:, :] = jnp.zeros((pad, P), jnp.bfloat16)

    # ---- conv1 (1x1) + bn1 bias + ReLU, batched over the image block -------
    x2d = x_ref[...].reshape(B_blk * HW, Cin)           # free merge of leading dims
    h1 = jnp.dot(x2d, w1_ref[...], preferred_element_type=jnp.float32)
    h1 = jnp.maximum(h1 + b1_ref[...], 0.0)             # (B_blk*HW, P) f32
    h1 = h1.astype(jnp.bfloat16)                        # single cast

    mask_l = mask_ref[:, 0:1]                           # valid where j >= d
    mask_r = mask_ref[:, 1:2]                           # valid where j < W-d
    col_masks = (mask_l, None, mask_r)                  # indexed by kw
    b2v = b2_ref[...]
    b3v = b3_ref[...]

    for b in range(B_blk):
        # ---- conv2 (3x3, stride 1, dilation d, padding d) + bn2 + ReLU -----
        # Tap (kh, kw) of the dilated 3x3 conv is a contiguous (HW, P)
        # row-slice of the row-padded buffer at offset (kh-1)*d*W + (kw-1)*d;
        # H-boundary pixels land in the zeroed halo, W-boundary wrap is killed
        # by the per-kw column mask.  Nine accumulated K=P dots, no im2col.
        xp_ref[pad:pad + HW, :] = h1[b * HW:(b + 1) * HW]
        acc = None
        for kh in range(3):
            for kw in range(3):
                off = (kh - 1) * d * W + (kw - 1) * d
                v = xp_ref[pad + off:pad + off + HW, :]        # (HW, P) bf16
                m = col_masks[kw]
                if m is not None:
                    v = v * m
                t = jnp.dot(v, w2_ref[kh * 3 + kw],
                            preferred_element_type=jnp.float32)
                acc = t if acc is None else acc + t
        h2 = jnp.maximum(acc + b2v, 0.0)                       # (HW, P) f32
        h2 = h2.astype(jnp.bfloat16)                           # single cast

        # ---- conv3 (1x1) + bn3 bias + identity residual + ReLU -------------
        h3 = jnp.dot(h2, w3_ref[...], preferred_element_type=jnp.float32)
        h3 = h3 + b3v                                          # (HW, Cout) f32
        res = x_ref[b].astype(jnp.float32)
        # TODO(synk): downsample branch (strided 1x1 conv + BN on x) when
        # stride != 1 or inplanes != 4*planes; identity residual only here.
        o_ref[b] = jnp.maximum(h3 + res, 0.0).astype(jnp.bfloat16)


def _fold_params(params):
    """Fold eval-mode BN scales into conv weights; cast weights to bf16."""
    w1, s1, b1, w2, s2, b2, w3, s3, b3 = params
    P = w1.shape[1]
    w1f = (w1 * s1).astype(jnp.bfloat16)                        # (Cin, P)
    w2f = (w2 * s2.reshape(1, 1, 1, P)).astype(jnp.bfloat16)    # (3,3,P,P)
    w2f = w2f.reshape(9, P, P)                                  # tap-major
    w3f = (w3 * s3).astype(jnp.bfloat16)                        # (P, Cout)
    return w1f, b1, w2f, b2, w3f, b3


def bottleneck_pallas(x_nhwc, params, *, stride=1, dilation=1,
                      images_per_step=2):
    N, H, W, Cin = x_nhwc.shape
    w1f, b1, w2f, b2, w3f, b3 = _fold_params(params)
    P = w1f.shape[2] if False else w1f.shape[1]
    Cout = w3f.shape[1]
    # Identity residual requires downsample=None semantics.
    assert stride == 1 and Cin == Cout, (
        "identity-residual Bottleneck only (downsample=None => stride == 1 "
        "and inplanes == 4*planes)")
    assert 1 <= dilation < min(H, W)

    B_blk = images_per_step if N % images_per_step == 0 else 1
    pad = dilation * (W + 1)

    x_flat = x_nhwc.astype(jnp.bfloat16).reshape(N, H * W, Cin)

    # Column-wrap masks for the kw=0 / kw=2 taps (depend only on output j).
    j = jnp.arange(H * W, dtype=jnp.int32) % W
    masks = jnp.stack([j >= dilation, j < W - dilation],
                      axis=1).astype(jnp.bfloat16)              # (HW, 2)

    kernel = functools.partial(_bottleneck_kernel, H=H, W=W,
                               dilation=dilation, B_blk=B_blk)

    def full_spec(a):
        nd = a.ndim
        return pl.BlockSpec(a.shape, lambda n, _nd=nd: (0,) * _nd)

    out_flat = pl.pallas_call(
        kernel,
        out_shape=jax.ShapeDtypeStruct((N, H * W, Cout), jnp.bfloat16),
        grid_spec=pltpu.PrefetchScalarGridSpec(
            num_scalar_prefetch=0,
            grid=(N // B_blk,),
            in_specs=[
                pl.BlockSpec((B_blk, H * W, Cin), lambda n: (n, 0, 0)),
                full_spec(w1f), full_spec(b1),
                full_spec(w2f), full_spec(b2),
                full_spec(w3f), full_spec(b3),
                full_spec(masks),
            ],
            out_specs=pl.BlockSpec((B_blk, H * W, Cout), lambda n: (n, 0, 0)),
            scratch_shapes=[
                pltpu.VMEM((H * W + 2 * pad, P), jnp.bfloat16),
            ],
        ),
        compiler_params=pltpu.CompilerParams(
            dimension_semantics=("parallel",),
            vmem_limit_bytes=32 * 1024 * 1024),
    )(x_flat, w1f, b1, w2f, b2, w3f, b3, masks)

    return out_flat.reshape(N, H, W, Cout)


def bottleneck_ref(x_nhwc, params, *, dilation=1):
    """Pure-JAX NHWC reference mirroring the kernel's mixed precision
    (bf16-rounded input / folded weights / inter-stage activations, f32
    accumulation and epilogue).  Returns f32; caller rounds to bf16."""
    w1f, b1, w2f, b2, w3f, b3 = _fold_params(params)
    P = w1f.shape[1]
    d = dilation
    dn = ("NHWC", "HWIO", "NHWC")

    x = x_nhwc.astype(jnp.bfloat16).astype(jnp.float32)
    w1 = w1f.astype(jnp.float32)[None, None]
    w2 = w2f.astype(jnp.float32).reshape(3, 3, P, P)
    w3 = w3f.astype(jnp.float32)[None, None]

    h = lax.conv_general_dilated(x, w1, (1, 1), "VALID", dimension_numbers=dn)
    h = jnp.maximum(h + b1, 0.0)
    h = h.astype(jnp.bfloat16).astype(jnp.float32)
    h = lax.conv_general_dilated(h, w2, (1, 1), ((d, d), (d, d)),
                                 rhs_dilation=(d, d), dimension_numbers=dn)
    h = jnp.maximum(h + b2, 0.0)
    h = h.astype(jnp.bfloat16).astype(jnp.float32)
    h = lax.conv_general_dilated(h, w3, (1, 1), "VALID", dimension_numbers=dn)
    h = h + b3
    return jnp.maximum(h + x, 0.0)


def make_params(key, inplanes, planes):
    """Deterministic conv weights + folded eval-mode BatchNorm params.

    Conv weights are in HWIO / IO layout (transposed from PyTorch OIHW);
    BN is eval-mode (running stats), reduced to per-channel scale + bias.
    """
    ks = jax.random.split(key, 12)
    eps = 1e-5

    def bn(kg, kb, km, kv, c):
        gamma = 1.0 + 0.1 * jax.random.normal(kg, (c,), jnp.float32)
        beta = 0.1 * jax.random.normal(kb, (c,), jnp.float32)
        mean = 0.1 * jax.random.normal(km, (c,), jnp.float32)
        var = jnp.abs(jax.random.normal(kv, (c,), jnp.float32)) + 0.5
        scale = gamma / jnp.sqrt(var + eps)
        bias = beta - mean * scale
        return scale.reshape(1, c), bias.reshape(1, c)

    w1 = 0.1 * jax.random.normal(ks[0], (inplanes, planes), jnp.float32)
    w2 = 0.1 * jax.random.normal(ks[1], (3, 3, planes, planes), jnp.float32)
    w3 = 0.1 * jax.random.normal(ks[2], (planes, 4 * planes), jnp.float32)
    s1, b1 = bn(ks[3], ks[4], ks[5], ks[6], planes)
    s2, b2 = bn(ks[7], ks[8], ks[9], ks[10], planes)
    s3, b3 = bn(ks[11], ks[3], ks[7], ks[0], 4 * planes)
    return (w1, s1, b1, w2, s2, b2, w3, s3, b3)


if __name__ == "__main__":
    key = jax.random.PRNGKey(0)
    k_x, k_p = jax.random.split(key)

    # Small but lane-dense sizes: Cin = Cout = 4*planes = 128 (identity
    # residual, downsample=None, stride=1), planes = 32.  N=4 with 2 images
    # per grid step -> grid=(2,) (keeps both v7x TensorCores busy).
    N, planes, H, W = 4, 32, 16, 16
    inplanes = 4 * planes
    dilation = 1

    x_nchw = jax.random.normal(k_x, (N, inplanes, H, W), jnp.float32)
    x_nhwc = jnp.transpose(x_nchw, (0, 2, 3, 1))  # NCHW -> NHWC for the kernel

    params = make_params(k_p, inplanes, planes)

    out = bottleneck_pallas(x_nhwc, params, stride=1, dilation=dilation,
                            images_per_step=2)
    out = jax.block_until_ready(out)

    ref = bottleneck_ref(x_nhwc, params, dilation=dilation)
    ref_bf16 = ref.astype(jnp.bfloat16).astype(jnp.float32)
    np.testing.assert_allclose(np.asarray(out.astype(jnp.float32)),
                               np.asarray(ref_bf16), rtol=2e-2, atol=2e-2)
    print("KERNEL_OK")
</pallas_src>

<mosaic_0001>
module attributes {stable_mosaic.version = 11 : i64} {
  func.func @_bottleneck_kernel(%arg0: i32, %arg1: memref<2x256x128xbf16, #tpu.memory_space<vmem>>, %arg2: memref<128x32xbf16, #tpu.memory_space<vmem>>, %arg3: memref<1x32xf32, #tpu.memory_space<vmem>>, %arg4: memref<9x32x32xbf16, #tpu.memory_space<vmem>>, %arg5: memref<1x32xf32, #tpu.memory_space<vmem>>, %arg6: memref<32x128xbf16, #tpu.memory_space<vmem>>, %arg7: memref<1x128xf32, #tpu.memory_space<vmem>>, %arg8: memref<256x2xbf16, #tpu.memory_space<vmem>>, %arg9: memref<2x256x128xbf16, #tpu.memory_space<vmem>>, %arg10: memref<290x32xbf16, #tpu.memory_space<vmem>>) attributes {dimension_semantics = [#tpu.dimension_semantics<parallel>], iteration_bounds = array<i64: 2>, scalar_prefetch = 0 : i64, scratch_operands = 1 : i64, tpu.core_type = #tpu.core_type<tc>, window_params = [{transform_indices = @transform_0, window_bounds = array<i64: 2, 256, 128>}, {pipeline_mode = #tpu.pipeline_mode<synchronous>, transform_indices = @transform_1, window_bounds = array<i64: 128, 32>}, {pipeline_mode = #tpu.pipeline_mode<synchronous>, transform_indices = @transform_2, window_bounds = array<i64: 1, 32>}, {pipeline_mode = #tpu.pipeline_mode<synchronous>, transform_indices = @transform_3, window_bounds = array<i64: 9, 32, 32>}, {pipeline_mode = #tpu.pipeline_mode<synchronous>, transform_indices = @transform_4, window_bounds = array<i64: 1, 32>}, {pipeline_mode = #tpu.pipeline_mode<synchronous>, transform_indices = @transform_5, window_bounds = array<i64: 32, 128>}, {pipeline_mode = #tpu.pipeline_mode<synchronous>, transform_indices = @transform_6, window_bounds = array<i64: 1, 128>}, {pipeline_mode = #tpu.pipeline_mode<synchronous>, transform_indices = @transform_7, window_bounds = array<i64: 256, 2>}, {transform_indices = @transform_8, window_bounds = array<i64: 2, 256, 128>}]} {
    %cst = arith.constant 0.000000e+00 : bf16
    %0 = vector.broadcast %cst : bf16 to vector<17x32xbf16>
    %c0 = arith.constant 0 : index
    %c0_0 = arith.constant 0 : index
    %1 = vector.load %arg10[%c0, %c0_0] : memref<290x32xbf16, #tpu.memory_space<vmem>>, vector<17x32xbf16>
    tpu.vector_store %arg10[%c0, %c0_0], %0 {strides = array<i32>} : memref<290x32xbf16, #tpu.memory_space<vmem>>, vector<17x32xbf16>,
    %cst_1 = arith.constant 0.000000e+00 : bf16
    %2 = vector.broadcast %cst_1 : bf16 to vector<17x32xbf16>
    %c273 = arith.constant 273 : index
    %c0_2 = arith.constant 0 : index
    %3 = vector.load %arg10[%c273, %c0_2] : memref<290x32xbf16, #tpu.memory_space<vmem>>, vector<17x32xbf16>
    tpu.vector_store %arg10[%c273, %c0_2], %2 {strides = array<i32>} : memref<290x32xbf16, #tpu.memory_space<vmem>>, vector<17x32xbf16>,
    %c0_3 = arith.constant 0 : index
    %c0_4 = arith.constant 0 : index
    %c0_5 = arith.constant 0 : index
    %4 = vector.load %arg1[%c0_3, %c0_4, %c0_5] : memref<2x256x128xbf16, #tpu.memory_space<vmem>>, vector<2x256x128xbf16>
    %5 = vector.shape_cast %4 : vector<2x256x128xbf16> to vector<512x128xbf16>
    %c0_6 = arith.constant 0 : index
    %c0_7 = arith.constant 0 : index
    %6 = vector.load %arg2[%c0_6, %c0_7] : memref<128x32xbf16, #tpu.memory_space<vmem>>, vector<128x32xbf16>
    %cst_8 = arith.constant dense<0.000000e+00> : vector<512x32xf32>
    %7 = tpu.matmul %5, %6, %cst_8 {dimension_numbers = #tpu.dot_dimension_numbers<[1], [0], [0], [1], [0, 0, 1, 1], [], []>} : vector<512x128xbf16>, vector<128x32xbf16>, vector<512x32xf32> -> vector<512x32xf32>
    %c0_9 = arith.constant 0 : index
    %c0_10 = arith.constant 0 : index
    %8 = vector.load %arg3[%c0_9, %c0_10] : memref<1x32xf32, #tpu.memory_space<vmem>>, vector<1x32xf32>
    %9 = vector.broadcast %8 : vector<1x32xf32> to vector<512x32xf32>
    %10 = arith.addf %7, %9 : vector<512x32xf32>
    %cst_11 = arith.constant 0.000000e+00 : f32
    %11 = vector.broadcast %cst_11 : f32 to vector<512x32xf32>
    %12 = arith.maximumf %10, %11 : vector<512x32xf32>
    %13 = arith.truncf %12 : vector<512x32xf32> to vector<512x32xbf16>
    %c0_12 = arith.constant 0 : index
    %c0_13 = arith.constant 0 : index
    %14 = vector.load %arg8[%c0_12, %c0_13] : memref<256x2xbf16, #tpu.memory_space<vmem>>, vector<256x1xbf16>
    %c0_14 = arith.constant 0 : index
    %c1 = arith.constant 1 : index
    %15 = vector.load %arg8[%c0_14, %c1] : memref<256x2xbf16, #tpu.memory_space<vmem>>, vector<256x1xbf16>
    %c0_15 = arith.constant 0 : index
    %c0_16 = arith.constant 0 : index
    %16 = vector.load %arg5[%c0_15, %c0_16] : memref<1x32xf32, #tpu.memory_space<vmem>>, vector<1x32xf32>
    %c0_17 = arith.constant 0 : index
    %c0_18 = arith.constant 0 : index
    %17 = vector.load %arg7[%c0_17, %c0_18] : memref<1x128xf32, #tpu.memory_space<vmem>>, vector<1x128xf32>
    %18 = vector.extract_strided_slice %13 {offsets = [0, 0], sizes = [256, 32], strides = [1, 1]} : vector<512x32xbf16> to vector<256x32xbf16>
    %c17 = arith.constant 17 : index
    %c0_19 = arith.constant 0 : index
    %19 = vector.load %arg10[%c17, %c0_19] : memref<290x32xbf16, #tpu.memory_space<vmem>>, vector<256x32xbf16>
    tpu.vector_store %arg10[%c17, %c0_19], %18 {strides = array<i32>} : memref<290x32xbf16, #tpu.memory_space<vmem>>, vector<256x32xbf16>,
    %c0_20 = arith.constant 0 : index
    %c0_21 = arith.constant 0 : index
    %20 = vector.load %arg10[%c0_20, %c0_21] : memref<290x32xbf16, #tpu.memory_space<vmem>>, vector<256x32xbf16>
    %21 = vector.broadcast %14 : vector<256x1xbf16> to vector<256x32xbf16>
    %22 = arith.mulf %20, %21 : vector<256x32xbf16>
    %c0_22 = arith.constant 0 : index
    %c0_23 = arith.constant 0 : index
    %c0_24 = arith.constant 0 : index
    %23 = vector.load %arg4[%c0_22, %c0_23, %c0_24] : memref<9x32x32xbf16, #tpu.memory_space<vmem>>, vector<1x32x32xbf16>
    %24 = vector.shape_cast %23 : vector<1x32x32xbf16> to vector<32x32xbf16>
    %cst_25 = arith.constant dense<0.000000e+00> : vector<256x32xf32>
    %25 = tpu.matmul %22, %24, %cst_25 {dimension_numbers = #tpu.dot_dimension_numbers<[1], [0], [0], [1], [0, 0, 1, 1], [], []>} : vector<256x32xbf16>, vector<32x32xbf16>, vector<256x32xf32> -> vector<256x32xf32>
    %c1_26 = arith.constant 1 : index
    %c0_27 = arith.constant 0 : index
    %26 = vector.load %arg10[%c1_26, %c0_27] : memref<290x32xbf16, #tpu.memory_space<vmem>>, vector<256x32xbf16>
    %c1_28 = arith.constant 1 : index
    %c0_29 = arith.constant 0 : index
    %c0_30 = arith.constant 0 : index
    %27 = vector.load %arg4[%c1_28, %c0_29, %c0_30] : memref<9x32x32xbf16, #tpu.memory_space<vmem>>, vector<1x32x32xbf16>
    %28 = vector.shape_cast %27 : vector<1x32x32xbf16> to vector<32x32xbf16>
    %cst_31 = arith.constant dense<0.000000e+00> : vector<256x32xf32>
    %29 = tpu.matmul %26, %28, %cst_31 {dimension_numbers = #tpu.dot_dimension_numbers<[1], [0], [0], [1], [0, 0, 1, 1], [], []>} : vector<256x32xbf16>, vector<32x32xbf16>, vector<256x32xf32> -> vector<256x32xf32>
    %30 = arith.addf %25, %29 : vector<256x32xf32>
    %c2 = arith.constant 2 : index
    %c0_32 = arith.constant 0 : index
    %31 = vector.load %arg10[%c2, %c0_32] : memref<290x32xbf16, #tpu.memory_space<vmem>>, vector<256x32xbf16>
    %32 = vector.broadcast %15 : vector<256x1xbf16> to vector<256x32xbf16>
    %33 = arith.mulf %31, %32 : vector<256x32xbf16>
    %c2_33 = arith.constant 2 : index
    %c0_34 = arith.constant 0 : index
    %c0_35 = arith.constant 0 : index
    %34 = vector.load %arg4[%c2_33, %c0_34, %c0_35] : memref<9x32x32xbf16, #tpu.memory_space<vmem>>, vector<1x32x32xbf16>
    %35 = vector.shape_cast %34 : vector<1x32x32xbf16> to vector<32x32xbf16>
    %cst_36 = arith.constant dense<0.000000e+00> : vector<256x32xf32>
    %36 = tpu.matmul %33, %35, %cst_36 {dimension_numbers = #tpu.dot_dimension_numbers<[1], [0], [0], [1], [0, 0, 1, 1], [], []>} : vector<256x32xbf16>, vector<32x32xbf16>, vector<256x32xf32> -> vector<256x32xf32>
    %37 = arith.addf %30, %36 : vector<256x32xf32>
    %c16 = arith.constant 16 : index
    %c0_37 = arith.constant 0 : index
    %38 = vector.load %arg10[%c16, %c0_37] : memref<290x32xbf16, #tpu.memory_space<vmem>>, vector<256x32xbf16>
    %39 = vector.broadcast %14 : vector<256x1xbf16> to vector<256x32xbf16>
    %40 = arith.mulf %38, %39 : vector<256x32xbf16>
    %c3 = arith.constant 3 : index
    %c0_38 = arith.constant 0 : index
    %c0_39 = arith.constant 0 : index
    %41 = vector.load %arg4[%c3, %c0_38, %c0_39] : memref<9x32x32xbf16, #tpu.memory_space<vmem>>, vector<1x32x32xbf16>
    %42 = vector.shape_cast %41 : vector<1x32x32xbf16> to vector<32x32xbf16>
    %cst_40 = arith.constant dense<0.000000e+00> : vector<256x32xf32>
    %43 = tpu.matmul %40, %42, %cst_40 {dimension_numbers = #tpu.dot_dimension_numbers<[1], [0], [0], [1], [0, 0, 1, 1], [], []>} : vector<256x32xbf16>, vector<32x32xbf16>, vector<256x32xf32> -> vector<256x32xf32>
    %44 = arith.addf %37, %43 : vector<256x32xf32>
    %c17_41 = arith.constant 17 : index
    %c0_42 = arith.constant 0 : index
    %45 = vector.load %arg10[%c17_41, %c0_42] : memref<290x32xbf16, #tpu.memory_space<vmem>>, vector<256x32xbf16>
    %c4 = arith.constant 4 : index
    %c0_43 = arith.constant 0 : index
    %c0_44 = arith.constant 0 : index
    %46 = vector.load %arg4[%c4, %c0_43, %c0_44] : memref<9x32x32xbf16, #tpu.memory_space<vmem>>, vector<1x32x32xbf16>
    %47 = vector.shape_cast %46 : vector<1x32x32xbf16> to vector<32x32xbf16>
    %cst_45 = arith.constant dense<0.000000e+00> : vector<256x32xf32>
    %48 = tpu.matmul %45, %47, %cst_45 {dimension_numbers = #tpu.dot_dimension_numbers<[1], [0], [0], [1], [0, 0, 1, 1], [], []>} : vector<256x32xbf16>, vector<32x32xbf16>, vector<256x32xf32> -> vector<256x32xf32>
    %49 = arith.addf %44, %48 : vector<256x32xf32>
    %c18 = arith.constant 18 : index
    %c0_46 = arith.constant 0 : index
    %50 = vector.load %arg10[%c18, %c0_46] : memref<290x32xbf16, #tpu.memory_space<vmem>>, vector<256x32xbf16>
    %51 = vector.broadcast %15 : vector<256x1xbf16> to vector<256x32xbf16>
    %52 = arith.mulf %50, %51 : vector<256x32xbf16>
    %c5 = arith.constant 5 : index
    %c0_47 = arith.constant 0 : index
    %c0_48 = arith.constant 0 : index
    %53 = vector.load %arg4[%c5, %c0_47, %c0_48] : memref<9x32x32xbf16, #tpu.memory_space<vmem>>, vector<1x32x32xbf16>
    %54 = vector.shape_cast %53 : vector<1x32x32xbf16> to vector<32x32xbf16>
    %cst_49 = arith.constant dense<0.000000e+00> : vector<256x32xf32>
    %55 = tpu.matmul %52, %54, %cst_49 {dimension_numbers = #tpu.dot_dimension_numbers<[1], [0], [0], [1], [0, 0, 1, 1], [], []>} : vector<256x32xbf16>, vector<32x32xbf16>, vector<256x32xf32> -> vector<256x32xf32>
    %56 = arith.addf %49, %55 : vector<256x32xf32>
    %c32 = arith.constant 32 : index
    %c0_50 = arith.constant 0 : index
    %57 = vector.load %arg10[%c32, %c0_50] : memref<290x32xbf16, #tpu.memory_space<vmem>>, vector<256x32xbf16>
    %58 = vector.broadcast %14 : vector<256x1xbf16> to vector<256x32xbf16>
    %59 = arith.mulf %57, %58 : vector<256x32xbf16>
    %c6 = arith.constant 6 : index
    %c0_51 = arith.constant 0 : index
    %c0_52 = arith.constant 0 : index
    %60 = vector.load %arg4[%c6, %c0_51, %c0_52] : memref<9x32x32xbf16, #tpu.memory_space<vmem>>, vector<1x32x32xbf16>
    %61 = vector.shape_cast %60 : vector<1x32x32xbf16> to vector<32x32xbf16>
    %cst_53 = arith.constant dense<0.000000e+00> : vector<256x32xf32>
    %62 = tpu.matmul %59, %61, %cst_53 {dimension_numbers = #tpu.dot_dimension_numbers<[1], [0], [0], [1], [0, 0, 1, 1], [], []>} : vector<256x32xbf16>, vector<32x32xbf16>, vector<256x32xf32> -> vector<256x32xf32>
    %63 = arith.addf %56, %62 : vector<256x32xf32>
    %c33 = arith.constant 33 : index
    %c0_54 = arith.constant 0 : index
    %64 = vector.load %arg10[%c33, %c0_54] : memref<290x32xbf16, #tpu.memory_space<vmem>>, vector<256x32xbf16>
    %c7 = arith.constant 7 : index
    %c0_55 = arith.constant 0 : index
    %c0_56 = arith.constant 0 : index
    %65 = vector.load %arg4[%c7, %c0_55, %c0_56] : memref<9x32x32xbf16, #tpu.memory_space<vmem>>, vector<1x32x32xbf16>
    %66 = vector.shape_cast %65 : vector<1x32x32xbf16> to vector<32x32xbf16>
    %cst_57 = arith.constant dense<0.000000e+00> : vector<256x32xf32>
    %67 = tpu.matmul %64, %66, %cst_57 {dimension_numbers = #tpu.dot_dimension_numbers<[1], [0], [0], [1], [0, 0, 1, 1], [], []>} : vector<256x32xbf16>, vector<32x32xbf16>, vector<256x32xf32> -> vector<256x32xf32>
    %68 = arith.addf %63, %67 : vector<256x32xf32>
    %c34 = arith.constant 34 : index
    %c0_58 = arith.constant 0 : index
    %69 = vector.load %arg10[%c34, %c0_58] : memref<290x32xbf16, #tpu.memory_space<vmem>>, vector<256x32xbf16>
    %70 = vector.broadcast %15 : vector<256x1xbf16> to vector<256x32xbf16>
    %71 = arith.mulf %69, %70 : vector<256x32xbf16>
    %c8 = arith.constant 8 : index
    %c0_59 = arith.constant 0 : index
    %c0_60 = arith.constant 0 : index
    %72 = vector.load %arg4[%c8, %c0_59, %c0_60] : memref<9x32x32xbf16, #tpu.memory_space<vmem>>, vector<1x32x32xbf16>
    %73 = vector.shape_cast %72 : vector<1x32x32xbf16> to vector<32x32xbf16>
    %cst_61 = arith.constant dense<0.000000e+00> : vector<256x32xf32>
    %74 = tpu.matmul %71, %73, %cst_61 {dimension_numbers = #tpu.dot_dimension_numbers<[1], [0], [0], [1], [0, 0, 1, 1], [], []>} : vector<256x32xbf16>, vector<32x32xbf16>, vector<256x32xf32> -> vector<256x32xf32>
    %75 = arith.addf %68, %74 : vector<256x32xf32>
    %76 = vector.broadcast %16 : vector<1x32xf32> to vector<256x32xf32>
    %77 = arith.addf %75, %76 : vector<256x32xf32>
    %cst_62 = arith.constant 0.000000e+00 : f32
    %78 = vector.broadcast %cst_62 : f32 to vector<256x32xf32>
    %79 = arith.maximumf %77, %78 : vector<256x32xf32>
    %80 = arith.truncf %79 : vector<256x32xf32> to vector<256x32xbf16>
    %c0_63 = arith.constant 0 : index
    %c0_64 = arith.constant 0 : index
    %81 = vector.load %arg6[%c0_63, %c0_64] : memref<32x128xbf16, #tpu.memory_space<vmem>>, vector<32x128xbf16>
    %cst_65 = arith.constant dense<0.000000e+00> : vector<256x128xf32>
    %82 = tpu.matmul %80, %81, %cst_65 {dimension_numbers = #tpu.dot_dimension_numbers<[1], [0], [0], [1], [0, 0, 1, 1], [], []>} : vector<256x32xbf16>, vector<32x128xbf16>, vector<256x128xf32> -> vector<256x128xf32>
    %83 = vector.broadcast %17 : vector<1x128xf32> to vector<256x128xf32>
    %84 = arith.addf %82, %83 : vector<256x128xf32>
    %c0_66 = arith.constant 0 : index
    %c0_67 = arith.constant 0 : index
    %c0_68 = arith.constant 0 : index
    %85 = vector.load %arg1[%c0_66, %c0_67, %c0_68] : memref<2x256x128xbf16, #tpu.memory_space<vmem>>, vector<1x256x128xbf16>
    %86 = vector.shape_cast %85 : vector<1x256x128xbf16> to vector<256x128xbf16>
    %87 = arith.extf %86 : vector<256x128xbf16> to vector<256x128xf32>
    %88 = arith.addf %84, %87 : vector<256x128xf32>
    %cst_69 = arith.constant 0.000000e+00 : f32
    %89 = vector.broadcast %cst_69 : f32 to vector<256x128xf32>
    %90 = arith.maximumf %88, %89 : vector<256x128xf32>
    %91 = arith.truncf %90 : vector<256x128xf32> to vector<256x128xbf16>
    %c0_70 = arith.constant 0 : index
    %c0_71 = arith.constant 0 : index
    %c0_72 = arith.constant 0 : index
    %92 = vector.load %arg9[%c0_70, %c0_71, %c0_72] : memref<2x256x128xbf16, #tpu.memory_space<vmem>>, vector<1x256x128xbf16>
    %93 = vector.shape_cast %92 : vector<1x256x128xbf16> to vector<256x128xbf16>
    %94 = vector.shape_cast %91 : vector<256x128xbf16> to vector<1x256x128xbf16>
    tpu.vector_store %arg9[%c0_70, %c0_71, %c0_72], %94 {strides = array<i32>} : memref<2x256x128xbf16, #tpu.memory_space<vmem>>, vector<1x256x128xbf16>,
    %95 = vector.extract_strided_slice %13 {offsets = [256, 0], sizes = [256, 32], strides = [1, 1]} : vector<512x32xbf16> to vector<256x32xbf16>
    %c17_73 = arith.constant 17 : index
    %c0_74 = arith.constant 0 : index
    %96 = vector.load %arg10[%c17_73, %c0_74] : memref<290x32xbf16, #tpu.memory_space<vmem>>, vector<256x32xbf16>
    tpu.vector_store %arg10[%c17_73, %c0_74], %95 {strides = array<i32>} : memref<290x32xbf16, #tpu.memory_space<vmem>>, vector<256x32xbf16>,
    %c0_75 = arith.constant 0 : index
    %c0_76 = arith.constant 0 : index
    %97 = vector.load %arg10[%c0_75, %c0_76] : memref<290x32xbf16, #tpu.memory_space<vmem>>, vector<256x32xbf16>
    %98 = vector.broadcast %14 : vector<256x1xbf16> to vector<256x32xbf16>
    %99 = arith.mulf %97, %98 : vector<256x32xbf16>
    %c0_77 = arith.constant 0 : index
    %c0_78 = arith.constant 0 : index
    %c0_79 = arith.constant 0 : index
    %100 = vector.load %arg4[%c0_77, %c0_78, %c0_79] : memref<9x32x32xbf16, #tpu.memory_space<vmem>>, vector<1x32x32xbf16>
    %101 = vector.shape_cast %100 : vector<1x32x32xbf16> to vector<32x32xbf16>
    %cst_80 = arith.constant dense<0.000000e+00> : vector<256x32xf32>
    %102 = tpu.matmul %99, %101, %cst_80 {dimension_numbers = #tpu.dot_dimension_numbers<[1], [0], [0], [1], [0, 0, 1, 1], [], []>} : vector<256x32xbf16>, vector<32x32xbf16>, vector<256x32xf32> -> vector<256x32xf32>
    %c1_81 = arith.constant 1 : index
    %c0_82 = arith.constant 0 : index
    %103 = vector.load %arg10[%c1_81, %c0_82] : memref<290x32xbf16, #tpu.memory_space<vmem>>, vector<256x32xbf16>
    %c1_83 = arith.constant 1 : index
    %c0_84 = arith.constant 0 : index
    %c0_85 = arith.constant 0 : index
    %104 = vector.load %arg4[%c1_83, %c0_84, %c0_85] : memref<9x32x32xbf16, #tpu.memory_space<vmem>>, vector<1x32x32xbf16>
    %105 = vector.shape_cast %104 : vector<1x32x32xbf16> to vector<32x32xbf16>
    %cst_86 = arith.constant dense<0.000000e+00> : vector<256x32xf32>
    %106 = tpu.matmul %103, %105, %cst_86 {dimension_numbers = #tpu.dot_dimension_numbers<[1], [0], [0], [1], [0, 0, 1, 1], [], []>} : vector<256x32xbf16>, vector<32x32xbf16>, vector<256x32xf32> -> vector<256x32xf32>
    %107 = arith.addf %102, %106 : vector<256x32xf32>
    %c2_87 = arith.constant 2 : index
    %c0_88 = arith.constant 0 : index
    %108 = vector.load %arg10[%c2_87, %c0_88] : memref<290x32xbf16, #tpu.memory_space<vmem>>, vector<256x32xbf16>
    %109 = vector.broadcast %15 : vector<256x1xbf16> to vector<256x32xbf16>
    %110 = arith.mulf %108, %109 : vector<256x32xbf16>
    %c2_89 = arith.constant 2 : index
    %c0_90 = arith.constant 0 : index
    %c0_91 = arith.constant 0 : index
    %111 = vector.load %arg4[%c2_89, %c0_90, %c0_91] : memref<9x32x32xbf16, #tpu.memory_space<vmem>>, vector<1x32x32xbf16>
    %112 = vector.shape_cast %111 : vector<1x32x32xbf16> to vector<32x32xbf16>
    %cst_92 = arith.constant dense<0.000000e+00> : vector<256x32xf32>
    %113 = tpu.matmul %110, %112, %cst_92 {dimension_numbers = #tpu.dot_dimension_numbers<[1], [0], [0], [1], [0, 0, 1, 1], [], []>} : vector<256x32xbf16>, vector<32x32xbf16>, vector<256x32xf32> -> vector<256x32xf32>
    %114 = arith.addf %107, %113 : vector<256x32xf32>
    %c16_93 = arith.constant 16 : index
    %c0_94 = arith.constant 0 : index
    %115 = vector.load %arg10[%c16_93, %c0_94] : memref<290x32xbf16, #tpu.memory_space<vmem>>, vector<256x32xbf16>
    %116 = vector.broadcast %14 : vector<256x1xbf16> to vector<256x32xbf16>
    %117 = arith.mulf %115, %116 : vector<256x32xbf16>
    %c3_95 = arith.constant 3 : index
    %c0_96 = arith.constant 0 : index
    %c0_97 = arith.constant 0 : index
    %118 = vector.load %arg4[%c3_95, %c0_96, %c0_97] : memref<9x32x32xbf16, #tpu.memory_space<vmem>>, vector<1x32x32xbf16>
    %119 = vector.shape_cast %118 : vector<1x32x32xbf16> to vector<32x32xbf16>
    %cst_98 = arith.constant dense<0.000000e+00> : vector<256x32xf32>
    %120 = tpu.matmul %117, %119, %cst_98 {dimension_numbers = #tpu.dot_dimension_numbers<[1], [0], [0], [1], [0, 0, 1, 1], [], []>} : vector<256x32xbf16>, vector<32x32xbf16>, vector<256x32xf32> -> vector<256x32xf32>
    %121 = arith.addf %114, %120 : vector<256x32xf32>
    %c17_99 = arith.constant 17 : index
    %c0_100 = arith.constant 0 : index
    %122 = vector.load %arg10[%c17_99, %c0_100] : memref<290x32xbf16, #tpu.memory_space<vmem>>, vector<256x32xbf16>
    %c4_101 = arith.constant 4 : index
    %c0_102 = arith.constant 0 : index
    %c0_103 = arith.constant 0 : index
    %123 = vector.load %arg4[%c4_101, %c0_102, %c0_103] : memref<9x32x32xbf16, #tpu.memory_space<vmem>>, vector<1x32x32xbf16>
    %124 = vector.shape_cast %123 : vector<1x32x32xbf16> to vector<32x32xbf16>
    %cst_104 = arith.constant dense<0.000000e+00> : vector<256x32xf32>
    %125 = tpu.matmul %122, %124, %cst_104 {dimension_numbers = #tpu.dot_dimension_numbers<[1], [0], [0], [1], [0, 0, 1, 1], [], []>} : vector<256x32xbf16>, vector<32x32xbf16>, vector<256x32xf32> -> vector<256x32xf32>
    %126 = arith.addf %121, %125 : vector<256x32xf32>
    %c18_105 = arith.constant 18 : index
    %c0_106 = arith.constant 0 : index
    %127 = vector.load %arg10[%c18_105, %c0_106] : memref<290x32xbf16, #tpu.memory_space<vmem>>, vector<256x32xbf16>
    %128 = vector.broadcast %15 : vector<256x1xbf16> to vector<256x32xbf16>
    %129 = arith.mulf %127, %128 : vector<256x32xbf16>
    %c5_107 = arith.constant 5 : index
    %c0_108 = arith.constant 0 : index
    %c0_109 = arith.constant 0 : index
    %130 = vector.load %arg4[%c5_107, %c0_108, %c0_109] : memref<9x32x32xbf16, #tpu.memory_space<vmem>>, vector<1x32x32xbf16>
    %131 = vector.shape_cast %130 : vector<1x32x32xbf16> to vector<32x32xbf16>
    %cst_110 = arith.constant dense<0.000000e+00> : vector<256x32xf32>
    %132 = tpu.matmul %129, %131, %cst_110 {dimension_numbers = #tpu.dot_dimension_numbers<[1], [0], [0], [1], [0, 0, 1, 1], [], []>} : vector<256x32xbf16>, vector<32x32xbf16>, vector<256x32xf32> -> vector<256x32xf32>
    %133 = arith.addf %126, %132 : vector<256x32xf32>
    %c32_111 = arith.constant 32 : index
    %c0_112 = arith.constant 0 : index
    %134 = vector.load %arg10[%c32_111, %c0_112] : memref<290x32xbf16, #tpu.memory_space<vmem>>, vector<256x32xbf16>
    %135 = vector.broadcast %14 : vector<256x1xbf16> to vector<256x32xbf16>
    %136 = arith.mulf %134, %135 : vector<256x32xbf16>
    %c6_113 = arith.constant 6 : index
    %c0_114 = arith.constant 0 : index
    %c0_115 = arith.constant 0 : index
    %137 = vector.load %arg4[%c6_113, %c0_114, %c0_115] : memref<9x32x32xbf16, #tpu.memory_space<vmem>>, vector<1x32x32xbf16>
    %138 = vector.shape_cast %137 : vector<1x32x32xbf16> to vector<32x32xbf16>
    %cst_116 = arith.constant dense<0.000000e+00> : vector<256x32xf32>
    %139 = tpu.matmul %136, %138, %cst_116 {dimension_numbers = #tpu.dot_dimension_numbers<[1], [0], [0], [1], [0, 0, 1, 1], [], []>} : vector<256x32xbf16>, vector<32x32xbf16>, vector<256x32xf32> -> vector<256x32xf32>
    %140 = arith.addf %133, %139 : vector<256x32xf32>
    %c33_117 = arith.constant 33 : index
    %c0_118 = arith.constant 0 : index
    %141 = vector.load %arg10[%c33_117, %c0_118] : memref<290x32xbf16, #tpu.memory_space<vmem>>, vector<256x32xbf16>
    %c7_119 = arith.constant 7 : index
    %c0_120 = arith.constant 0 : index
    %c0_121 = arith.constant 0 : index
    %142 = vector.load %arg4[%c7_119, %c0_120, %c0_121] : memref<9x32x32xbf16, #tpu.memory_space<vmem>>, vector<1x32x32xbf16>
    %143 = vector.shape_cast %142 : vector<1x32x32xbf16> to vector<32x32xbf16>
    %cst_122 = arith.constant dense<0.000000e+00> : vector<256x32xf32>
    %144 = tpu.matmul %141, %143, %cst_122 {dimension_numbers = #tpu.dot_dimension_numbers<[1], [0], [0], [1], [0, 0, 1, 1], [], []>} : vector<256x32xbf16>, vector<32x32xbf16>, vector<256x32xf32> -> vector<256x32xf32>
    %145 = arith.addf %140, %144 : vector<256x32xf32>
    %c34_123 = arith.constant 34 : index
    %c0_124 = arith.constant 0 : index
    %146 = vector.load %arg10[%c34_123, %c0_124] : memref<290x32xbf16, #tpu.memory_space<vmem>>, vector<256x32xbf16>
    %147 = vector.broadcast %15 : vector<256x1xbf16> to vector<256x32xbf16>
    %148 = arith.mulf %146, %147 : vector<256x32xbf16>
    %c8_125 = arith.constant 8 : index
    %c0_126 = arith.constant 0 : index
    %c0_127 = arith.constant 0 : index
    %149 = vector.load %arg4[%c8_125, %c0_126, %c0_127] : memref<9x32x32xbf16, #tpu.memory_space<vmem>>, vector<1x32x32xbf16>
    %150 = vector.shape_cast %149 : vector<1x32x32xbf16> to vector<32x32xbf16>
    %cst_128 = arith.constant dense<0.000000e+00> : vector<256x32xf32>
    %151 = tpu.matmul %148, %150, %cst_128 {dimension_numbers = #tpu.dot_dimension_numbers<[1], [0], [0], [1], [0, 0, 1, 1], [], []>} : vector<256x32xbf16>, vector<32x32xbf16>, vector<256x32xf32> -> vector<256x32xf32>
    %152 = arith.addf %145, %151 : vector<256x32xf32>
    %153 = vector.broadcast %16 : vector<1x32xf32> to vector<256x32xf32>
    %154 = arith.addf %152, %153 : vector<256x32xf32>
    %cst_129 = arith.constant 0.000000e+00 : f32
    %155 = vector.broadcast %cst_129 : f32 to vector<256x32xf32>
    %156 = arith.maximumf %154, %155 : vector<256x32xf32>
    %157 = arith.truncf %156 : vector<256x32xf32> to vector<256x32xbf16>
    %c0_130 = arith.constant 0 : index
    %c0_131 = arith.constant 0 : index
    %158 = vector.load %arg6[%c0_130, %c0_131] : memref<32x128xbf16, #tpu.memory_space<vmem>>, vector<32x128xbf16>
    %cst_132 = arith.constant dense<0.000000e+00> : vector<256x128xf32>
    %159 = tpu.matmul %157, %158, %cst_132 {dimension_numbers = #tpu.dot_dimension_numbers<[1], [0], [0], [1], [0, 0, 1, 1], [], []>} : vector<256x32xbf16>, vector<32x128xbf16>, vector<256x128xf32> -> vector<256x128xf32>
    %160 = vector.broadcast %17 : vector<1x128xf32> to vector<256x128xf32>
    %161 = arith.addf %159, %160 : vector<256x128xf32>
    %c1_133 = arith.constant 1 : index
    %c0_134 = arith.constant 0 : index
    %c0_135 = arith.constant 0 : index
    %162 = vector.load %arg1[%c1_133, %c0_134, %c0_135] : memref<2x256x128xbf16, #tpu.memory_space<vmem>>, vector<1x256x128xbf16>
    %163 = vector.shape_cast %162 : vector<1x256x128xbf16> to vector<256x128xbf16>
    %164 = arith.extf %163 : vector<256x128xbf16> to vector<256x128xf32>
    %165 = arith.addf %161, %164 : vector<256x128xf32>
    %cst_136 = arith.constant 0.000000e+00 : f32
    %166 = vector.broadcast %cst_136 : f32 to vector<256x128xf32>
    %167 = arith.maximumf %165, %166 : vector<256x128xf32>
    %168 = arith.truncf %167 : vector<256x128xf32> to vector<256x128xbf16>
    %c1_137 = arith.constant 1 : index
    %c0_138 = arith.constant 0 : index
    %c0_139 = arith.constant 0 : index
    %169 = vector.load %arg9[%c1_137, %c0_138, %c0_139] : memref<2x256x128xbf16, #tpu.memory_space<vmem>>, vector<1x256x128xbf16>
    %170 = vector.shape_cast %169 : vector<1x256x128xbf16> to vector<256x128xbf16>
    %171 = vector.shape_cast %168 : vector<256x128xbf16> to vector<1x256x128xbf16>
    tpu.vector_store %arg9[%c1_137, %c0_138, %c0_139], %171 {strides = array<i32>} : memref<2x256x128xbf16, #tpu.memory_space<vmem>>, vector<1x256x128xbf16>,
    return
  }
  func.func @transform_0(%arg0: i32) -> (i32, i32, i32) {
    %c0_i32 = arith.constant 0 : i32
    %c0_i32_0 = arith.constant 0 : i32
    %c0_i32_1 = arith.constant 0 : i32
    return %arg0, %c0_i32, %c0_i32_0 : i32, i32, i32
  }
  func.func @transform_1(%arg0: i32) -> (i32, i32) {
    %c0_i32 = arith.constant 0 : i32
    %c0_i32_0 = arith.constant 0 : i32
    %c0_i32_1 = arith.constant 0 : i32
    return %c0_i32, %c0_i32_0 : i32, i32
  }
  func.func @transform_2(%arg0: i32) -> (i32, i32) {
    %c0_i32 = arith.constant 0 : i32
    %c0_i32_0 = arith.constant 0 : i32
    %c0_i32_1 = arith.constant 0 : i32
    return %c0_i32, %c0_i32_0 : i32, i32
  }
  func.func @transform_3(%arg0: i32) -> (i32, i32, i32) {
    %c0_i32 = arith.constant 0 : i32
    %c0_i32_0 = arith.constant 0 : i32
    %c0_i32_1 = arith.constant 0 : i32
    %c0_i32_2 = arith.constant 0 : i32
    return %c0_i32, %c0_i32_0, %c0_i32_1 : i32, i32, i32
  }
  func.func @transform_4(%arg0: i32) -> (i32, i32) {
    %c0_i32 = arith.constant 0 : i32
    %c0_i32_0 = arith.constant 0 : i32
    %c0_i32_1 = arith.constant 0 : i32
    return %c0_i32, %c0_i32_0 : i32, i32
  }
  func.func @transform_5(%arg0: i32) -> (i32, i32) {
    %c0_i32 = arith.constant 0 : i32
    %c0_i32_0 = arith.constant 0 : i32
    %c0_i32_1 = arith.constant 0 : i32
    return %c0_i32, %c0_i32_0 : i32, i32
  }
  func.func @transform_6(%arg0: i32) -> (i32, i32) {
    %c0_i32 = arith.constant 0 : i32
    %c0_i32_0 = arith.constant 0 : i32
    %c0_i32_1 = arith.constant 0 : i32
    return %c0_i32, %c0_i32_0 : i32, i32
  }
  func.func @transform_7(%arg0: i32) -> (i32, i32) {
    %c0_i32 = arith.constant 0 : i32
    %c0_i32_0 = arith.constant 0 : i32
    %c0_i32_1 = arith.constant 0 : i32
    return %c0_i32, %c0_i32_0 : i32, i32
  }
  func.func @transform_8(%arg0: i32) -> (i32, i32, i32) {
    %c0_i32 = arith.constant 0 : i32
    %c0_i32_0 = arith.constant 0 : i32
    %c0_i32_1 = arith.constant 0 : i32
    return %arg0, %c0_i32, %c0_i32_0 : i32, i32, i32
  }
}

</mosaic_0001>

<bundles_post_ra>
// kernel: tpu_custom_call.1
= control target key start
LH: loop header
LB: loop body
LE: loop exit
PB: predicated region body
PF: predicated region fallthrough
CT: control target
= control target key end

     0   :  { %13 = vsyncpa [#allocation4], 0  ;;  %s19741_s0 = inlined_call_operand.hbm [shape: bf16[4,256,128], index: 0, kind: input, shape index: {}]   ;;  %s19742_s1 = inlined_call_operand.vmem [shape: bf16[128,32], index: 1, kind: input, shape index: {}]   ;;  %s19743_s2 = inlined_call_operand.vmem [shape: f32[1,32], index: 2, kind: input, shape index: {}]   ;;  %s19744_s3 = inlined_call_operand.vmem [shape: bf16[9,32,32], index: 3, kind: input, shape index: {}]   ;;  %s19745_s4 = inlined_call_operand.vmem [shape: f32[1,32], index: 4, kind: input, shape index: {}]   ;;  %s19746_s5 = inlined_call_operand.vmem [shape: bf16[32,128], index: 5, kind: input, shape index: {}]   ;;  %s19747_s6 = inlined_call_operand.vmem [shape: f32[1,128], index: 6, kind: input, shape index: {}]   ;;  %s19748_s7 = inlined_call_operand.vmem [shape: bf16[256,2], index: 7, kind: input, shape index: {}]   ;;  %s19749_s8 = inlined_call_operand.hbm [shape: bf16[4,256,128], index: 8, kind: output, shape index: {}]  }
   0x1   :  { %15 = vsyncpa [#allocation4 + $0x1], 0 }
   0x2   :  { %16 = vsyncpa [#allocation5], 0 }
   0x3   :  { %18 = vsyncpa [#allocation5 + $0x1], 0  ;;  %s15556_s27 = smov 0   ;;  %s15558_s28 = smov 0  }
   0x4   :  { %s15560_s29 = smov 0   ;;  %s15562_s30 = smov 0  }
   0x5 LB: > { %s15577_s9 = sadd.s32 4294967295, %s15500_s30   ;;  %s11884_s10 = sadd.s32 4294967294, %s15500_s30   ;;  %s15500_s30 = sphi %s15562_s30, %s20859_s30   ;;  %s15496_s29 = sphi %s15560_s29, %s20858_s29   ;;  %s15492_s28 = sphi %s15558_s28, %s20857_s28   ;;  %s15488_s27 = sphi %s15556_s27, %s20856_s27  }
   0x6   : > { %s15581_s11 = sadd.s32 1, %s15500_s30   ;;  %s31_s12 = sadd.s32 1, %s15496_s29 }
   0x7   : > { %s28_s13 = ssub.s32 %s15500_s30, %s15581_s11  ;;  %p38_p0 = scmp.ne.s32.totalorder %s15496_s29, %s15492_s28 }
   0x8   : > { %p29_p1 = scmp.eq.s32.totalorder %s28_s13, 0  ;;  %p39_p2 = scmp.eq.s32.totalorder %s15500_s30, 0 }
   0x9   : > { %p44_p3 = scmp.ne.s32.totalorder %s15492_s28, %s15488_s27  ;;  %p45_p4 = scmp.eq.s32.totalorder %s15577_s9, 0 }
   0xa   : > { %s15593_s14 = scalar_select %p29_p1, %s15496_s29, %s31_s12  }
   0xb   : > { %p15595_p5 = por %p39_p2, %p38_p0  ;;  %p15599_p6 = por %p45_p4, %p44_p3 }
   0xc   : > { %p215_p7 = scmp.eq.s32.totalorder %s15577_s9, 1  ;;  %p221_p8 = scmp.eq.s32.totalorder %s11884_s10, 1 }
   0xd   : > { %p15081_p10 = scmp.lt.s32.totalorder %s15500_s30, 2  ;;  %s262_s19 = sand.u32 1, %s15496_s29  }
   0xe   : > { %p15606_p11 = por %p215_p7, %p38_p0  ;;  %p15610_p12 = por %p221_p8, %p44_p3 }
   0xf   : > { %s12860_s20 = sshll.u32 %s15500_s30, 12  ;;  %s11887_s21 = sshll.u32 %s262_s19, 8 }
  0x10   : > { %s19972_s17 = scalar_select %p15606_p11, 1, 0 }
  0x11   : > { %s19973_s18 = scalar_select %p15610_p12, 1, 0 }
  0x12   : > { %s15619_s24 = scalar_lea.hbm %s19741_s0, %s12860_s20  ;;  %s266_s25 = scalar_lea.vmem [#allocation3], %s11887_s21 }
  0x13   : > { %s274_s26 = sshll.u32 %s266_s25, 4  ;;  %p15623_p13 = pnand %p15081_p10, %p15595_p5  ;;  %s15627_s26 = int_to_ptr.vmem [resolvable:$true] %s274_s26 }
  0x14   : > { %s15629_s12 = scalar_lea.sflag [#allocation4], %s262_s19  ;;  %s15404_s13 = scalar_lea.hbm %s15619_s24, 4096 }
  0x15   : > { %p15405_p0 = scmp.ne.s32.totalorder %s15619_s24, %s15404_s13  ;;  %p15406_p1 = pneg %p15623_p13 }
  0x16   : > { %s15409_s21 = scalar_lea.hbm %s19741_s0, 8192  ;;  %p15410_p4 = scmp.lt.u32.totalorder %s15619_s24, %s19741_s0 }
  0x17   : > { %p15407_p2 = pnand %p15406_p1, %p15405_p0  ;;  %p15411_p5 = scmp.lt.u32.totalorder %s15409_s21, %s15404_s13 }
  0x18   : > { %p15413_p8 = scmp.lt.u32.totalorder %s15404_s13, %s15619_s24 }
  0x19   : > { %p15408_p3 = pneg %p15407_p2  ;;  %p15412_p7 = por %p15411_p5, %p15410_p4 }
  0x1b   : > { %p15414_p10 = por %p15413_p8, %p15412_p7 }
  0x1d   : > { %p15415_p9 = pnand %p15414_p10, %p15408_p3 }
  0x1f   : > { %15418 = shalt.err (!%p15415_p9)
}
  0x20   : > { %s15419_s19 = scalar_lea.vmem %s15627_s26, 4096  ;;  %s15502_s25 = smov [#allocation3]  }
  0x21   : > { %p15420_p0 = scmp.ne.s32.totalorder %s15627_s26, %s15419_s19  ;;  %s15424_s20 = sshll.u32 %s15502_s25, 4  ;;  %s15425_s20 = int_to_ptr.vmem [resolvable:$false] %s15424_s20 }
  0x22   : > { %s15426_s15 = scalar_lea.vmem %s15425_s20, 8192  ;;  %p15427_p11 = scmp.lt.s32.totalorder %s15627_s26, %s15425_s20 }
  0x23   : > { %p15422_p2 = pnand %p15420_p0, %p15406_p1  ;;  %p15428_p4 = scmp.lt.s32.totalorder %s15426_s15, %s15419_s19 }
  0x25   : > { %p15423_p12 = pneg %p15422_p2  ;;  %p15429_p5 = por %p15428_p4, %p15427_p11 }
  0x27   : > { %p15430_p7 = pnand %p15429_p5, %p15423_p12 }
  0x29   : > { %15433 = shalt.err (!%p15430_p7)
}
  0x2a   : > { %s15503_s13 = smov 64   ;;  %s15504_s21 = smov 4  }
  0x2b   : > { %15076 = dma.hbm_to_vmem [thread:$0]  (!%p15623_p13), %s15619_s24, 4096, %s15627_s26, %s15629_s12, %s15503_s13, %s15503_s13, %s15504_s21  }
  0x2c   : > { %p11891_p9 = scmp.ge.s32.totalorder %s15500_s30, 1  ;;  %p282_p1 = scmp.lt.s32.totalorder %s15500_s30, 3 }
  0x2e   : > { %p283_p3 = pnand %p11891_p9, %p282_p1 }
  0x30   : > { %286 = sbr.rel (%p283_p3) target bundleno = 2333 (0x91d), region = 52 }
  0x37   : > { %s15660_s22 = sand.u32 1, %s15492_s28  }
  0x38   : > { %s11892_s23 = sshll.u32 %s15660_s22, 8  ;;  %s289_s19 = scalar_lea.sflag [#allocation4], %s15660_s22 }
  0x39   : > { %s15666_s25 = scalar_lea.vmem [#allocation3], %s11892_s23 }
  0x3a   : > { %15479 = dma.done.wait (%p15599_p6), %s289_s19, 4096  }
  0x3b   : > { %15481 = vsyncadd (%p15599_p6), %s289_s19, 4294963200  ;;  %vm331_vm0 = vcmask 253952   ;;  %vm328_vm1 = vcmask 257024   ;;  %v15505_v0 = vmov 0   ;;  %v15128_v1 = vld [vmem:[%s19742_s1] sm:$0xff]   ;;  %v15129_v2 = vld [vmem:[%s19742_s1 + $0x8] sm:$0xff]  }
  0x3c   : > { %15123 = vset.pattern.permute.xlu1 %v15505_v0  ;;  %329 = vst.msk [vmem:[#allocation2] sm:$0xf] %vm328_vm1, %v15505_v0  ;;  %330 = vst.msk [vmem:[#allocation2 + $0x4] sm:$0xf] %vm328_vm1, %v15505_v0  ;;  %15122 = vset.pattern.permute.xlu0 %v15505_v0  ;;  %v15130_v3 = vld [vmem:[%s19742_s1 + $0x10] sm:$0xff]   ;;  %v15131_v4 = vld [vmem:[%s19742_s1 + $0x18] sm:$0xff]  }
  0x3d   : > { %343 = vst.msk [vmem:[#allocation2 + $0x8c] sm:$0xf] %vm328_vm1, %v15505_v0  ;;  %13741 = vmatprep.subr.bf16.mxu0 %v15128_v1  ;;  %14541 = vmatprep.subr.bf16.mxu1 %v15128_v1  ;;  %v15136_v5 = vld [vmem:[%s15666_s25] sm:$0xff]   ;;  %v15132_v7 = vld [vmem:[%s19742_s1 + $0x20] sm:$0xff]   ;;  %v15133_v8 = vld [vmem:[%s19742_s1 + $0x28] sm:$0xff]   ;;  %vm2249_vm9 = vcmask 261120  }
  0x3e   : > { %345 = vst.msk [vmem:[#allocation2 + $0x90] sm:$0x1] %vm331_vm0, %v15505_v0  ;;  %13742 = vmatpush3.bf16.msra.mxu0 %v15128_v1  ;;  %14549 = vmatpush3.bf16.msra.mxu1 %v15128_v1  ;;  %v15139_v6 = vld [vmem:[%s15666_s25 + $0x80] sm:$0xff]   ;;  %v15705_v9 = vld [vmem:[%s19748_s7 + $0x8] sm:$0xf]  ;;  %v15137_v16 = vld [vmem:[%s15666_s25 + $0x8] sm:$0xff]  }
  0x3f   : > { %13743 = vmatprep.subr.bf16.mxu0 %v15129_v2  ;;  %14542 = vmatprep.subr.bf16.mxu1 %v15129_v2  ;;  %v15134_v10 = vld [vmem:[%s19742_s1 + $0x30] sm:$0xff]   ;;  %v15714_v11 = vld [vmem:[%s19748_s7 + $0xc] sm:$0xf]  ;;  %v15719_v12 = vld [vmem:[%s19748_s7] sm:$0xf]  ;;  %vm3145_vm10 = vcmask 1040384  }
  0x40   : > { %13757 = vmatprep.mubr.bf16.mxu0 %v15136_v5  ;;  %13789 = vmatprep.mubr.bf16.mxu1 %v15139_v6  ;;  %v15135_v13 = vld [vmem:[%s19742_s1 + $0x38] sm:$0xff]   ;;  %v15729_v14 = vld [vmem:[%s19748_s7 + $0x14] sm:$0xf]  ;;  %v15734_v15 = vld [vmem:[%s19748_s7 + $0x4] sm:$0xf]  ;;  %vm3146_vm11 = vcmask 1044484  }
  0x41   : > { %1589 = vperm.xlu1 %15123, %v15705_v9   ;;  %1565 = vperm.xlu0 %15122, %v15719_v12   ;;  %v15141_v17 = vld [vmem:[%s15666_s25 + $0x88] sm:$0xff]   ;;  %v15138_v18 = vld [vmem:[%s15666_s25 + $0x10] sm:$0xff]   ;;  %v15749_v20 = vld [vmem:[%s19748_s7 + $0x10] sm:$0xf]  ;;  %vm332_vm2 = vsmask.f32 256 }
  0x42   : > { %13744 = vmatpush3.bf16.msra.mxu0 %v15129_v2  ;;  %14550 = vmatpush3.bf16.msra.mxu1 %v15129_v2  ;;  %v15743_v19 = vld [vmem:[%s19748_s7 + $0x1c] sm:$0xf]  ;;  %v15143_v21 = vld [vmem:[%s15666_s25 + $0x90] sm:$0xff]   ;;  %v15762_v23 = vld [vmem:[%s19748_s7 + $0x18] sm:$0xf]  ;;  %vm3397_vm13 = vcmask 1046528  }
  0x43   : > { %13745 = vmatprep.subr.bf16.mxu0 %v15130_v3  ;;  %14543 = vmatprep.subr.bf16.mxu1 %v15130_v3  ;;  %v15756_v22 = vld [vmem:[%s19748_s7 + $0x24] sm:$0xf]  ;;  %v15140_v24 = vld [vmem:[%s15666_s25 + $0x18] sm:$0xff]   ;;  %v15142_v25 = vld [vmem:[%s15666_s25 + $0x20] sm:$0xff]   ;;  %vm338_vm4 = vsmask.f32 7938 }
  0x44   : > { %v15145_v26 = vld [vmem:[%s15666_s25 + $0x98] sm:$0xff]   ;;  %v15777_v28 = vld [vmem:[%s19748_s7 + $0x20] sm:$0xf]  ;;  %v15147_v29 = vld [vmem:[%s15666_s25 + $0xa0] sm:$0xff]   ;;  %vm1172_vm6 = vsmask.f32 4368 }
  0x45   : > { %1601 = vperm.xlu1 %15123, %v15714_v11   ;;  %1577 = vperm.xlu0 %15122, %v15734_v15   ;;  %v15772_v27 = vld [vmem:[%s19748_s7 + $0x2c] sm:$0xf]  ;;  %v15784_v30 = vld [vmem:[%s19748_s7 + $0x34] sm:$0xf]  ;;  %v15790_v31 = vld [vmem:[%s19748_s7 + $0x28] sm:$0xf] }
  0x46   : > { %13746 = vmatpush3.bf16.msra.mxu0 %v15130_v3  ;;  %14551 = vmatpush3.bf16.msra.mxu1 %v15130_v3  ;;  %v15144_v32 = vld [vmem:[%s15666_s25 + $0x28] sm:$0xff]   ;;  %v15804_v35 = vld [vmem:[%s19748_s7 + $0x30] sm:$0xf]  ;;  %v15146_v36 = vld [vmem:[%s15666_s25 + $0x30] sm:$0xff]   ;;  %vm2104_vm8 = vsmask.f32 7424 }
  0x47   : > { %13747 = vmatprep.subr.bf16.mxu0 %v15131_v4  ;;  %14544 = vmatprep.subr.bf16.mxu1 %v15131_v4  ;;  %v15149_v33 = vld [vmem:[%s15666_s25 + $0xa8] sm:$0xff]   ;;  %v15151_v37 = vld [vmem:[%s15666_s25 + $0xb0] sm:$0xff]   ;;  %v15818_v39 = vld [vmem:[%s19748_s7 + $0x38] sm:$0xf]  ;;  %s19210_s21 = scalar_lea.vmem [#allocation6], %s11892_s23  ;;  %p20853_p11 = scmp.ne.s32.totalorder %s19972_s17, 0 }
  0x48   : > { %v15799_v34 = vld [vmem:[%s19748_s7 + $0x3c] sm:$0xf]  ;;  %v15813_v38 = vld [vmem:[%s19748_s7 + $0x44] sm:$0xf]  ;;  %v15168_v40 = vld [vmem:[%s19744_s3 + $0x10] sm:$0xff]   ;;  %s11811_s12 = sshll.u32 %s19210_s21, 4  ;;  %s19695_s12 = int_to_ptr.vmem [resolvable:$true] %s11811_s12 }
  0x49   : > { %1625 = vperm.xlu1 %15123, %v15729_v14   ;;  %1613 = vperm.xlu0 %15122, %v15749_v20   ;;  %v15148_v41 = vld [vmem:[%s15666_s25 + $0x38] sm:$0xff]   ;;  %v15833_v44 = vld [vmem:[%s19748_s7 + $0x40] sm:$0xf]  ;;  %v15150_v45 = vld [vmem:[%s15666_s25 + $0x40] sm:$0xff]   ;;  %s15434_s23 = scalar_lea.vmem %s19695_s12, 4096  ;;  %s15508_s19 = smov [#allocation6]  }
  0x4a   : > { %13748 = vmatpush3.bf16.msra.mxu0 %v15131_v4  ;;  %14552 = vmatpush3.bf16.msra.mxu1 %v15131_v4  ;;  %v15153_v42 = vld [vmem:[%s15666_s25 + $0xb8] sm:$0xff]   ;;  %v15155_v46 = vld [vmem:[%s15666_s25 + $0xc0] sm:$0xff]   ;;  %v15847_v48 = vld [vmem:[%s19748_s7 + $0x48] sm:$0xf]  ;;  %p15435_p6 = scmp.ne.s32.totalorder %s19695_s12, %s15434_s23  ;;  %s15438_s16 = sshll.u32 %s15508_s19, 4  ;;  %s15439_s16 = int_to_ptr.vmem [resolvable:$false] %s15438_s16 }
  0x4b   : > { %13749 = vmatprep.subr.bf16.mxu0 %v15132_v7  ;;  %14545 = vmatprep.subr.bf16.mxu1 %v15132_v7  ;;  %v15828_v43 = vld [vmem:[%s19748_s7 + $0x4c] sm:$0xf]  ;;  %v15842_v47 = vld [vmem:[%s19748_s7 + $0x54] sm:$0xf]  ;;  %v15152_v49 = vld [vmem:[%s15666_s25 + $0x48] sm:$0xff]   ;;  %s15440_s24 = scalar_lea.vmem %s15439_s16, 8192  ;;  %p15441_p8 = scmp.lt.s32.totalorder %s19695_s12, %s15439_s16 }
  0x4c   : > { %v15157_v50 = vld [vmem:[%s15666_s25 + $0xc8] sm:$0xff]   ;;  %v15861_v52 = vld [vmem:[%s19748_s7 + $0x50] sm:$0xf]  ;;  %v15154_v53 = vld [vmem:[%s15666_s25 + $0x50] sm:$0xff]   ;;  %p15436_p12 = pnand %p15435_p6, %p20853_p11  ;;  %p15442_p10 = scmp.lt.s32.totalorder %s15440_s24, %s15434_s23 }
  0x4d   : > { %1649 = vperm.xlu1 %15123, %v15743_v19   ;;  %1637 = vperm.xlu0 %15122, %v15762_v23   ;;  %v15856_v51 = vld [vmem:[%s19748_s7 + $0x5c] sm:$0xf]  ;;  %v15159_v54 = vld [vmem:[%s15666_s25 + $0xd0] sm:$0xff]   ;;  %v15875_v56 = vld [vmem:[%s19748_s7 + $0x58] sm:$0xf] }
  0x4e   : > { %13750 = vmatpush3.bf16.msra.mxu0 %v15132_v7  ;;  %14553 = vmatpush3.bf16.msra.mxu1 %v15132_v7  ;;  %v15870_v55 = vld [vmem:[%s19748_s7 + $0x64] sm:$0xf]  ;;  %v15156_v57 = vld [vmem:[%s15666_s25 + $0x58] sm:$0xff]   ;;  %v15889_v60 = vld [vmem:[%s19748_s7 + $0x60] sm:$0xf]  ;;  %v15506_v7 = vmov 1   ;;  %p15437_p13 = pneg %p15436_p12  ;;  %p15443_p0 = por %p15442_p10, %p15441_p8 }
  0x4f   : > { %13751 = vmatprep.subr.bf16.mxu0 %v15133_v8  ;;  %14546 = vmatprep.subr.bf16.mxu1 %v15133_v8  ;;  %v15161_v58 = vld [vmem:[%s15666_s25 + $0xd8] sm:$0xff]   ;;  %v15158_v61 = vld [vmem:[%s15666_s25 + $0x60] sm:$0xff]   ;;  %v15903_v1 = vld [vmem:[%s19748_s7 + $0x68] sm:$0xf] }
  0x50   : > { %v15884_v59 = vld [vmem:[%s19748_s7 + $0x6c] sm:$0xf]  ;;  %v15163_v62 = vld [vmem:[%s15666_s25 + $0xe0] sm:$0xff]   ;;  %v15160_v2 = vld [vmem:[%s15666_s25 + $0x68] sm:$0xff]   ;;  %p15444_p2 = pnand %p15443_p0, %p15437_p13 }
  0x51   : > { %1673 = vperm.xlu1 %15123, %v15756_v22   ;;  %1661 = vperm.xlu0 %15122, %v15777_v28   ;;  %v15898_v63 = vld [vmem:[%s19748_s7 + $0x74] sm:$0xf]  ;;  %v15165_v3 = vld [vmem:[%s15666_s25 + $0xe8] sm:$0xff]   ;;  %v15914_v4 = vld [vmem:[%s19748_s7 + $0x70] sm:$0xf] }
  0x52   : > { %13752 = vmatpush3.bf16.msra.mxu0 %v15133_v8  ;;  %14554 = vmatpush3.bf16.msra.mxu1 %v15133_v8  ;;  %v15162_v5 = vld [vmem:[%s15666_s25 + $0x70] sm:$0xff]   ;;  %v1088_v8 = vld [vmem:[%s19748_s7 + $0x78] sm:$0xf]  ;;  %vm15946_vm3 = vmand %vm331_vm0, %vm332_vm2 }
  0x53   : > { %13753 = vmatprep.subr.bf16.mxu0 %v15134_v10  ;;  %14547 = vmatprep.subr.bf16.mxu1 %v15134_v10  ;;  %v15166_v6 = vld [vmem:[%s15666_s25 + $0xf0] sm:$0xff]   ;;  %vm15957_vm5 = vmand %vm328_vm1, %vm338_vm4 }
  0x54   : > { %vm16030_vm7 = vmor %vm332_vm2, %vm1172_vm6 }
  0x55   : > { %1697 = vperm.xlu1 %15123, %v15772_v27   ;;  %1685 = vperm.xlu0 %15122, %v15790_v31   ;;  %vm17356_vm12 = vmor %vm3145_vm10, %vm3146_vm11 }
  0x56   : > { %13754 = vmatpush3.bf16.msra.mxu0 %v15134_v10  ;;  %14555 = vmatpush3.bf16.msra.mxu1 %v15134_v10  ;;  %v15164_v10 = vld [vmem:[%s15666_s25 + $0x78] sm:$0xff]  }
  0x57   : > { %13755 = vmatprep.subr.bf16.mxu0 %v15135_v13  ;;  %14548 = vmatprep.subr.bf16.mxu1 %v15135_v13 }
  0x59   : > { %1721 = vperm.xlu1 %15123, %v15784_v30   ;;  %1709 = vperm.xlu0 %15122, %v15804_v35  }
  0x5a   : > { %13756 = vmatpush3.bf16.msra.mxu0 %v15135_v13  ;;  %14556 = vmatpush3.bf16.msra.mxu1 %v15135_v13  ;;  %v15167_v13 = vld [vmem:[%s15666_s25 + $0xf8] sm:$0xff]  }
  0x5b   : > { %13821 = vmatprep.subr.bf16.mxu1 %v15168_v40 }
  0x5d   : > { %13758 = vmatmul.mubr.bf16.vlgmr.msra.gmra.mrb[0].mxu0 %v15137_v16  ;;  %13790 = vmatmul.mubr.bf16.vlgmr.msra.gmra.mrb[0].mxu1 %v15141_v17  ;;  %v1089_v16 = vld [vmem:[%s19748_s7 + $0x7c] sm:$0xf] }
  0x5e   : > { %13761 = vmatprep.mubr.bf16.mxu0 %v15138_v18  ;;  %13793 = vmatprep.mubr.bf16.mxu1 %v15143_v21  ;;  %v15169_v17 = vld [vmem:[%s19744_s3 + $0x18] sm:$0xff]   ;;  %v15979_v18 = vld [vmem:[%s19744_s3] sm:$0xff]  }
  0x5f   : > { %1745 = vperm.xlu1 %15123, %v15799_v34   ;;  %1733 = vperm.xlu0 %15122, %v15818_v39   ;;  %v15989_v21 = vld [vmem:[%s19743_s2] ss:$0 sm:$0xff] }
  0x60   : > { %13822 = vmatpush3.bf16.msra.mxu1 %v15168_v40 }
  0x61   : > { %13823 = vmatprep.subr.bf16.mxu1 %v15169_v17 }
  0x63   : > { %1769 = vperm.xlu1 %15123, %v15813_v38   ;;  %1757 = vperm.xlu0 %15122, %v15833_v44  }
  0x64   : > { %13824 = vmatpush3.bf16.msra.mxu1 %v15169_v17 }
  0x65   : > { %13762 = vmatmul.mubr.bf16.gmra.mrb[4].mxu0 %v15140_v24  ;;  %13794 = vmatmul.mubr.bf16.gmra.mrb[4].mxu1 %v15145_v26 }
  0x66   : > { %13765 = vmatprep.mubr.bf16.mxu0 %v15142_v25  ;;  %13797 = vmatprep.mubr.bf16.mxu1 %v15147_v29 }
  0x67   : > { %1793 = vperm.xlu1 %15123, %v15828_v43   ;;  %1781 = vperm.xlu0 %15122, %v15847_v48  }
  0x68   : > { %13857 = vmatprep.subr.bf16.mxu1 %v15979_v18 }
  0x6b   : > { %1817 = vperm.xlu1 %15123, %v15842_v47   ;;  %1805 = vperm.xlu0 %15122, %v15861_v52  }
  0x6d   : > { %13766 = vmatmul.mubr.bf16.gmra.mrb[8].mxu0 %v15144_v32  ;;  %13798 = vmatmul.mubr.bf16.gmra.mrb[8].mxu1 %v15149_v33 }
  0x6e   : > { %13769 = vmatprep.mubr.bf16.mxu0 %v15146_v36  ;;  %13801 = vmatprep.mubr.bf16.mxu1 %v15151_v37 }
  0x6f   : > { %1841 = vperm.xlu1 %15123, %v15856_v51   ;;  %1829 = vperm.xlu0 %15122, %v15875_v56  }
  0x73   : > { %1865 = vperm.xlu1 %15123, %v15870_v55   ;;  %1853 = vperm.xlu0 %15122, %v15889_v60  }
  0x75   : > { %13770 = vmatmul.mubr.bf16.gmra.mrb[12].mxu0 %v15148_v41  ;;  %13802 = vmatmul.mubr.bf16.gmra.mrb[12].mxu1 %v15153_v42 }
  0x76   : > { %13773 = vmatprep.mubr.bf16.mxu0 %v15150_v45  ;;  %13805 = vmatprep.mubr.bf16.mxu1 %v15155_v46 }
  0x77   : > { %1889 = vperm.xlu1 %15123, %v15884_v59   ;;  %1877 = vperm.xlu0 %15122, %v15903_v1  }
  0x7b   : > { %1913 = vperm.xlu1 %15123, %v15898_v63   ;;  %1901 = vperm.xlu0 %15122, %v15914_v4  }
  0x7d   : > { %13774 = vmatmul.mubr.bf16.gmra.mrb[16].mxu0 %v15152_v49  ;;  %13806 = vmatmul.mubr.bf16.gmra.mrb[16].mxu1 %v15157_v50 }
  0x7e   : > { %13777 = vmatprep.mubr.bf16.mxu0 %v15154_v53  ;;  %13809 = vmatprep.mubr.bf16.mxu1 %v15159_v54 }
  0x7f   : > { %15124 = vset.pattern.permute.xlu1 %v15506_v7  ;;  %1925 = vperm.xlu0 %15122, %v1088_v8  }
  0x80   : > { %2773 = vperm.xlu1 %15124, %v15734_v15  }
  0x83   : > { %15125 = vset.pattern.permute.xlu0 %v15506_v7 }
  0x84   : > { %2784 = vperm.xlu1 %15124, %v15705_v9   ;;  %2762 = vperm.xlu0 %15125, %v15719_v12   ;;  %v334_v9 = vld [vmem:[#allocation2 + $0x8] sm:$0x1] }
  0x85   : > { %13778 = vmatmul.mubr.bf16.gmra.mrb[20].mxu0 %v15156_v57  ;;  %13810 = vmatmul.mubr.bf16.gmra.mrb[20].mxu1 %v15161_v58  ;;  %v340_v12 = vld [vmem:[#allocation2 + $0x88] sm:$0xf] }
  0x86   : > { %13781 = vmatprep.mubr.bf16.mxu0 %v15158_v61  ;;  %13813 = vmatprep.mubr.bf16.mxu1 %v15163_v62  ;;  %v341_v15 = vsel %vm15957_vm5, 0, %v340_v12 }
  0x87   : > { %342 = vst [vmem:[#allocation2 + $0x88] sm:$0xf] %v341_v15 }
  0x88   : > { %15126 = vset.pattern.permute.xlu1 %v15505_v0  ;;  %2806 = vperm.xlu0 %15125, %v15749_v20   ;;  %v19975_v0 = vmov 0 }
  0x89   : > { %1937 = vperm.xlu1 %15126, %v1089_v16   ;;  %v19976_v0 = vsel %vm15946_vm3, 4294967295, %v19975_v0 }
  0x8a   : > { %19977 = vst [vmem:[#allocation9_spill] sm:$0xff] %v19976_v0 }
  0x8c   : > { %2839 = vperm.xlu0 %15125, %v15743_v19  }
  0x8d   : > { %13782 = vmatmul.mubr.bf16.gmra.mrb[24].mxu0 %v15160_v2  ;;  %13814 = vmatmul.mubr.bf16.gmra.mrb[24].mxu1 %v15165_v3 }
  0x8e   : > { %13785 = vmatprep.mubr.bf16.mxu0 %v15162_v5  ;;  %13817 = vmatprep.mubr.bf16.mxu1 %v15166_v6 }
  0x8f   : > { %15127 = vset.pattern.permute.xlu1 %v15506_v7 }
  0x90   : > { %2795 = vperm.xlu1 %15127, %v15714_v11   ;;  %2861 = vperm.xlu0 %15125, %v15756_v22   ;;  %v335_v11 = vsel %vm15946_vm3, 0, %v334_v9 }
  0x91   : > { %336 = vst [vmem:[#allocation2 + $0x8] sm:$0x1] %v335_v11 }
  0x94   : > { %2817 = vperm.xlu1 %15127, %v15729_v14   ;;  %2883 = vperm.xlu0 %15125, %v15772_v27  }
  0x95   : > { %13786 = vmatmul.mubr.bf16.gmra.mrb[28].mxu0 %v15164_v10  ;;  %13818 = vmatmul.mubr.bf16.gmra.mrb[28].mxu1 %v15167_v13 }
  0x98   : > { %2828 = vperm.xlu1 %15127, %v15762_v23   ;;  %2905 = vperm.xlu0 %15125, %v15784_v30  }
  0x9c   : > { %2850 = vperm.xlu1 %15127, %v15777_v28   ;;  %2927 = vperm.xlu0 %15125, %v15799_v34  }
  0xa0   : > { %2872 = vperm.xlu1 %15127, %v15790_v31   ;;  %2949 = vperm.xlu0 %15125, %v15813_v38  }
  0xa4   : > { %2894 = vperm.xlu1 %15127, %v15804_v35   ;;  %2971 = vperm.xlu0 %15125, %v15828_v43  }
  0xa8   : > { %2916 = vperm.xlu1 %15127, %v15818_v39   ;;  %2993 = vperm.xlu0 %15125, %v15842_v47  }
  0xac   : > { %2938 = vperm.xlu1 %15127, %v15833_v44   ;;  %3015 = vperm.xlu0 %15125, %v15856_v51  }
  0xb0   : > { %2960 = vperm.xlu1 %15127, %v15847_v48   ;;  %3037 = vperm.xlu0 %15125, %v15870_v55  }
  0xb4   : > { %2982 = vperm.xlu1 %15127, %v15861_v52   ;;  %3059 = vperm.xlu0 %15125, %v15884_v59  }
  0xb8   : > { %3004 = vperm.xlu1 %15127, %v15875_v56   ;;  %3081 = vperm.xlu0 %15125, %v15898_v63  }
  0xbc   : > { %3026 = vperm.xlu1 %15127, %v15889_v60   ;;  %3103 = vperm.xlu0 %15125, %v1089_v16   ;;  %v1494_v60 = vld [vmem:[#allocation2 + $0x8] sm:$0xf] }
  0xc0   : > { %3048 = vperm.xlu1 %15127, %v15903_v1   ;;  %v15982_v19 = vpop.permute.xlu1 %1589  ;;  %v16007_v48 = vpop.permute.xlu0 %1565 }
  0xc1   : > { %19982 = vst [vmem:[#allocation12_spill] sm:$0xff] %v16007_v48 }
  0xc4   : > { %3070 = vperm.xlu1 %15127, %v15914_v4   ;;  %v15984_v20 = vpop.permute.xlu1 %1601 }
  0xc5   : > { %19980 = vst [vmem:[#allocation10_spill] sm:$0xff] %v15984_v20 }
  0xc8   : > { %3092 = vperm.xlu1 %15127, %v1088_v8   ;;  %v15991_v22 = vpop.permute.xlu1 %1625 }
  0xc9   : > { %19981 = vst [vmem:[#allocation11_spill] sm:$0xff] %v15991_v22 }
  0xcc   : > { %v16009_v49 = vpop.permute.xlu1 %1649 }
  0xcd   : > { %19983 = vst [vmem:[#allocation13_spill] sm:$0xff] %v16009_v49 }
 0x130   : > { %v13759_v23 = vpop.f32.mrb[0].mxu0  ;;  %v13791_v24 = vpop.f32.mrb[0].mxu1 }
 0x131   : > { %v716_v25 = vadd.f32 %v13759_v23, %v15989_v21  ;;  %v707_v26 = vpop.f32.mrb[1].mxu0  ;;  %v844_v27 = vadd.f32 %v13791_v24, %v15989_v21  ;;  %v835_v28 = vpop.f32.mrb[1].mxu1 }
 0x132   : > { %v708_v29 = vadd.f32 %v15989_v21, %v707_v26  ;;  %v13760_v30 = vpop.f32.mrb[2].mxu0  ;;  %v836_v31 = vadd.f32 %v15989_v21, %v835_v28  ;;  %v13792_v32 = vpop.f32.mrb[2].mxu1 }
 0x133   : > { %v964_v33 = vmax.f32 %v716_v25, 0.0  ;;  %v719_v34 = vadd.f32 %v13760_v30, %v15989_v21  ;;  %v710_v35 = vpop.f32.mrb[3].mxu0  ;;  %v996_v36 = vmax.f32 %v844_v27, 0.0  ;;  %v15999_v37 = vadd.f32 %v13792_v32, %v15989_v21  ;;  %v838_v38 = vpop.f32.mrb[3].mxu1 }
 0x134   : > { %v962_v39 = vmax.f32 %v708_v29, 0.0  ;;  %v711_v40 = vadd.f32 %v15989_v21, %v710_v35  ;;  %v994_v41 = vmax.f32 %v836_v31, 0.0  ;;  %v16005_v45 = vadd.f32 %v15989_v21, %v838_v38  ;;  %v1984_v35 = vld [vmem:[#allocation2 + $0x4] sm:$0xf] }
 0x135   : > { %v12863_v42 = vpack.c.bf16 %v964_v33, %v964_v33  ;;  %v965_v43 = vmax.f32 %v719_v34, 0.0  ;;  %v16002_v44 = vpack.c.bf16 %v996_v36, %v996_v36  ;;  %v997_v52 = vmax.f32 %v15999_v37, 0.0  ;;  %v1983_v34 = vld [vmem:[#allocation2] sm:$0xf]  ;;  %v16040_v36 = vpop.permute.xlu0 %1577  ;;  %v16042_v37 = vpop.permute.xlu1 %1673 }
 0x136   : > { %v12861_v46 = vpack.c.bf16 %v962_v39, %v962_v39  ;;  %v963_v47 = vmax.f32 %v711_v40, 0.0  ;;  %v16013_v57 = vpack.c.bf16 %v994_v41, %v994_v41  ;;  %v995_v1 = vmax.f32 %v16005_v45, 0.0  ;;  %19986 = vst [vmem:[#allocation14_spill] sm:$0xff] %v16040_v36  ;;  %19987 = vst [vmem:[#allocation15_spill] sm:$0xff] %v16042_v37 }
 0x137   : > { %v1192_v50 = vshrl.u32 %v12863_v42, 16  ;;  %v12864_v51 = vpack.c.bf16 %v965_v43, %v965_v43  ;;  %v7019_v56 = vshrl.u32 %v16002_v44, 16  ;;  %v1195_v3 = vshll.u32 %v12863_v42, 16 }
 0x138   : > { %v1175_v53 = vshrl.u32 %v12861_v46, 16  ;;  %v12862_v54 = vpack.c.bf16 %v963_v47, %v963_v47  ;;  %v13763_v55 = vpop.f32.mrb[4].mxu0  ;;  %v16015_v58 = vpop.f32.mrb[4].mxu1  ;;  %v1178_v5 = vshll.u32 %v12861_v46, 16  ;;  %v7022_v9 = vshll.u32 %v16002_v44, 16 }
 0x139   : > { %v1194_v59 = vrot.slane %v1192_v50, 7  ;;  %v1201_v61 = vshrl.u32 %v12864_v51, 16  ;;  %v732_v62 = vadd.f32 %v13763_v55, %v15989_v21  ;;  %v723_v63 = vpop.f32.mrb[5].mxu0  ;;  %v16019_v2 = vpop.f32.mrb[5].mxu1  ;;  %v1204_v13 = vshll.u32 %v12864_v51, 16 }
 0x13a   : > { %v1177_v4 = vrot.slane %v1175_v53, 7  ;;  %v1183_v6 = vshrl.u32 %v12862_v54, 16  ;;  %v13764_v7 = vpop.f32.mrb[6].mxu0  ;;  %v16021_v8 = vpop.f32.mrb[6].mxu1  ;;  %v1186_v24 = vshll.u32 %v12862_v54, 16  ;;  %v16034_v25 = vrot.slane %v7019_v56, 7 }
 0x13b   : > { %v16023_v10 = vrot.slane %v1201_v61, 7  ;;  %v968_v16 = vmax.f32 %v732_v62, 0.0  ;;  %v726_v11 = vpop.f32.mrb[7].mxu0  ;;  %v16026_v12 = vpop.f32.mrb[7].mxu1  ;;  %v1197_v26 = vor.u32 %v1195_v3, %v1194_v59  ;;  %v1199_v27 = vrot.slane %v1194_v59, 4 }
 0x13c   : > { %v1180_v17 = vor.u32 %v1178_v5, %v1177_v4  ;;  %v1185_v23 = vrot.slane %v1183_v6, 7  ;;  %v1181_v28 = vrot.slane %v1177_v4, 4  ;;  %v724_v33 = vadd.f32 %v15989_v21, %v723_v63 }
 0x13d   : > { %v1206_v29 = vor.u32 %v1204_v13, %v16023_v10  ;;  %v16046_v39 = vpack.c.bf16 %v968_v16, %v968_v16  ;;  %v7002_v43 = vshrl.u32 %v16013_v57, 16  ;;  %v735_v46 = vadd.f32 %v13764_v7, %v15989_v21 }
 0x13e   : > { %v1495_v30 = vsel %vm15957_vm5, %v1180_v17, %v1494_v60  ;;  %v1188_v31 = vor.u32 %v1186_v24, %v1185_v23  ;;  %v1190_v32 = vrot.slane %v1185_v23, 4  ;;  %v966_v42 = vmax.f32 %v724_v33, 0.0 }
 0x13f   : > { %1496 = vst [vmem:[#allocation2 + $0x8] sm:$0xf] %v1495_v30  ;;  %v1207_v38 = vsel %vm16030_vm7, %v1199_v27, %v1206_v29  ;;  %v12928_v47 = vpack.c.bf16 %v997_v52, %v997_v52  ;;  %v16059_v51 = vcombine.low %v1983_v34, %v1984_v35  ;;  %v7024_v54 = vor.u32 %v7022_v9, %v16034_v25  ;;  %v16078_v30 = vpop.permute.xlu0 %1613 }
 0x140   : > { %1499 = vst.msk [vmem:[#allocation2 + $0x14] sm:$0xf] %vm328_vm1, %v1207_v38  ;;  %v1189_v40 = vsel %vm16030_vm7, %v1181_v28, %v1188_v31  ;;  %v1198_v41 = vsel %vm16030_vm7, %v1190_v32, %v1197_v26  ;;  %v13767_v44 = vpop.f32.mrb[8].mxu0  ;;  %v16054_v45 = vpop.f32.mrb[8].mxu1  ;;  %v12865_v55 = vpack.c.bf16 %v966_v42, %v966_v42  ;;  %v727_v56 = vadd.f32 %v15989_v21, %v726_v11 }
 0x141   : > { %1497 = vst.msk [vmem:[#allocation2 + $0xc] sm:$0xf] %vm328_vm1, %v1189_v40  ;;  %1498 = vst.msk [vmem:[#allocation2 + $0x10] sm:$0xf] %vm328_vm1, %v1198_v41  ;;  %v739_v50 = vpop.f32.mrb[9].mxu0  ;;  %v16061_v53 = vpop.f32.mrb[9].mxu1  ;;  %v12926_v59 = vpack.c.bf16 %v995_v1, %v995_v1  ;;  %v748_v3 = vadd.f32 %v13767_v44, %v15989_v21 }
 0x142   : > { %v13768_v60 = vpop.f32.mrb[10].mxu0  ;;  %v16065_v61 = vpop.f32.mrb[10].mxu1  ;;  %v1208_v62 = vrot.slane %v16023_v10, 4  ;;  %v1228_v63 = vshrl.u32 %v16046_v39, 16  ;;  %v7026_v52 = vrot.slane %v16034_v25, 4  ;;  %v1210_v6 = vshrl.u32 %v12865_v55, 16 }
 0x143   : > { %v742_v4 = vpop.f32.mrb[11].mxu0  ;;  %v16071_v5 = vpop.f32.mrb[11].mxu1  ;;  %v16073_v7 = vrot.slane %v7002_v43, 7  ;;  %v969_v13 = vmax.f32 %v735_v46, 0.0  ;;  %v7028_v16 = vshrl.u32 %v12928_v47, 16  ;;  %v1213_v1 = vshll.u32 %v12865_v55, 16 }
 0x144   : > { %v7031_v9 = vshll.u32 %v12928_v47, 16  ;;  %v967_v11 = vmax.f32 %v727_v56, 0.0  ;;  %v7010_v17 = vshrl.u32 %v12926_v59, 16  ;;  %v1212_v23 = vrot.slane %v1210_v6, 7  ;;  %19988 = vst [vmem:[#allocation16_spill] sm:$0xff] %v16078_v30  ;;  %v16081_v38 = vpop.permute.xlu1 %1697 }
 0x145   : > { %v12868_v10 = vpack.c.bf16 %v969_v13, %v969_v13  ;;  %v16075_v24 = vrot.slane %v7028_v16, 7  ;;  %v7013_v26 = vshll.u32 %v12926_v59, 16  ;;  %v1231_v25 = vshll.u32 %v16046_v39, 16  ;;  %19989 = vst [vmem:[#allocation17_spill] sm:$0xff] %v16081_v38 }
 0x146   : > { %v12866_v27 = vpack.c.bf16 %v967_v11, %v967_v11  ;;  %v7012_v28 = vrot.slane %v7010_v17, 7  ;;  %v972_v29 = vmax.f32 %v748_v3, 0.0  ;;  %v1230_v31 = vrot.slane %v1228_v63, 7 }
 0x147   : > { %v1215_v32 = vor.u32 %v1213_v1, %v1212_v23  ;;  %v7008_v33 = vrot.slane %v16073_v7, 4  ;;  %v1237_v34 = vshrl.u32 %v12868_v10, 16  ;;  %v1240_v40 = vshll.u32 %v12868_v10, 16 }
 0x148   : > { %v13771_v35 = vpop.f32.mrb[12].mxu0  ;;  %v7033_v41 = vor.u32 %v7031_v9, %v16075_v24  ;;  %v1219_v42 = vshrl.u32 %v12866_v27, 16  ;;  %v740_v43 = vadd.f32 %v15989_v21, %v739_v50  ;;  %v7015_v47 = vor.u32 %v7013_v26, %v7012_v28  ;;  %v16089_v59 = vpop.f32.mrb[12].mxu1 }
 0x149   : > { %v755_v39 = vpop.f32.mrb[13].mxu0  ;;  %v1216_v44 = vsel %vm16030_vm7, %v1208_v62, %v1215_v32  ;;  %v16087_v46 = vrot.slane %v1237_v34, 7  ;;  %v7017_v55 = vrot.slane %v7012_v28, 4  ;;  %v1222_v6 = vshll.u32 %v12866_v27, 16  ;;  %v16100_v62 = vpop.f32.mrb[13].mxu1 }
 0x14a   : > { %v13772_v56 = vpop.f32.mrb[14].mxu0  ;;  %1500 = vst.msk [vmem:[#allocation2 + $0x18] sm:$0xf] %vm328_vm1, %v1216_v44  ;;  %v16094_v63 = vsel %vm16030_vm7, %v7026_v52, %v7033_v41  ;;  %v1221_v3 = vrot.slane %v1219_v42, 7  ;;  %v16096_v50 = vpack.c.bf16 %v972_v29, %v972_v29  ;;  %v1235_v16 = vrot.slane %v1230_v31, 4  ;;  %v16111_v52 = vpop.f32.mrb[14].mxu1 }
 0x14b   : > { %19990 = vst [vmem:[#allocation18_spill] sm:$0xff] %v16094_v63  ;;  %v16098_v13 = vpop.f32.mrb[15].mxu0  ;;  %v1242_v1 = vor.u32 %v1240_v40, %v16087_v46  ;;  %v16105_v9 = vsel %vm16030_vm7, %v7008_v33, %v7015_v47  ;;  %v16109_v11 = vsel %vm16030_vm7, %v7017_v55, %v7024_v54  ;;  %v1233_v17 = vor.u32 %v1231_v25, %v1230_v31  ;;  %v16113_v28 = vpop.f32.mrb[15].mxu1 }
 0x14c   : > { %19991 = vst [vmem:[#allocation19_spill] sm:$0xff] %v16109_v11  ;;  %v1217_v10 = vrot.slane %v1212_v23, 4  ;;  %v1224_v26 = vor.u32 %v1222_v6, %v1221_v3  ;;  %v1226_v27 = vrot.slane %v1221_v3, 4  ;;  %v970_v32 = vmax.f32 %v740_v43, 0.0  ;;  %v16119_v40 = vpop.permute.xlu0 %1637  ;;  %v16121_v54 = vpop.permute.xlu1 %1721 }
 0x14d   : > { %v1243_v29 = vsel %vm16030_vm7, %v1235_v16, %v1242_v1  ;;  %v751_v34 = vadd.f32 %v13768_v60, %v15989_v21  ;;  %v743_v33 = vadd.f32 %v15989_v21, %v742_v4  ;;  %19992 = vst [vmem:[#allocation20_spill] sm:$0xff] %v16119_v40  ;;  %19993 = vst [vmem:[#allocation21_spill] sm:$0xff] %v16121_v54  ;;  %v1264_v31 = vshrl.u32 %v16096_v50, 16 }
 0x14e   : > { %1503 = vst.msk [vmem:[#allocation2 + $0x24] sm:$0xf] %vm328_vm1, %v1243_v29  ;;  %v1225_v23 = vsel %vm16030_vm7, %v1217_v10, %v1224_v26  ;;  %v1234_v25 = vsel %vm16030_vm7, %v1226_v27, %v1233_v17  ;;  %v764_v41 = vadd.f32 %v13771_v35, %v15989_v21  ;;  %v12869_v60 = vpack.c.bf16 %v970_v32, %v970_v32 }
 0x14f   : > { %1501 = vst.msk [vmem:[#allocation2 + $0x1c] sm:$0xf] %vm328_vm1, %v1225_v23  ;;  %1502 = vst.msk [vmem:[#allocation2 + $0x20] sm:$0xf] %vm328_vm1, %v1234_v25  ;;  %v973_v4 = vmax.f32 %v751_v34, 0.0  ;;  %v971_v42 = vmax.f32 %v743_v33, 0.0  ;;  %v756_v43 = vadd.f32 %v15989_v21, %v755_v39  ;;  %v767_v3 = vadd.f32 %v13772_v56, %v15989_v21 }
 0x150   : > { %v16133_v44 = vpop.f32.mrb[16].mxu0  ;;  %v16135_v47 = vpop.f32.mrb[16].mxu1  ;;  %v976_v55 = vmax.f32 %v764_v41, 0.0  ;;  %v1246_v35 = vshrl.u32 %v12869_v60, 16  ;;  %v2108_v10 = vshll.u32 %v16059_v51, 16  ;;  %v1266_v39 = vrot.slane %v1264_v31, 7 }
 0x151   : > { %v16138_v6 = vpop.f32.mrb[17].mxu0  ;;  %v16140_v16 = vpop.f32.mrb[17].mxu1  ;;  %v12872_v1 = vpack.c.bf16 %v973_v4, %v973_v4  ;;  %v12870_v17 = vpack.c.bf16 %v971_v42, %v971_v42  ;;  %v974_v32 = vmax.f32 %v756_v43, 0.0  ;;  %v977_v34 = vmax.f32 %v767_v3, 0.0 }
 0x152   : > { %v16143_v26 = vpop.f32.mrb[18].mxu0  ;;  %v16145_v27 = vpop.f32.mrb[18].mxu1  ;;  %v16147_v29 = vpack.c.bf16 %v976_v55, %v976_v55  ;;  %v1248_v23 = vrot.slane %v1246_v35, 7  ;;  %v1249_v25 = vshll.u32 %v12869_v60, 16  ;;  %v1244_v42 = vrot.slane %v16087_v46, 4 }
 0x153   : > { %v16149_v33 = vpop.f32.mrb[19].mxu0  ;;  %v16151_v56 = vpop.f32.mrb[19].mxu1  ;;  %v1273_v41 = vshrl.u32 %v12872_v1, 16  ;;  %v1255_v4 = vshrl.u32 %v12870_v17, 16  ;;  %v1267_v11 = vshll.u32 %v16096_v50, 16  ;;  %v12873_v63 = vpack.c.bf16 %v974_v32, %v974_v32 }
 0x154   : > { %v1300_v0 = vshrl.u32 %v16147_v29, 16  ;;  %v1251_v31 = vor.u32 %v1249_v25, %v1248_v23  ;;  %v1276_v54 = vshll.u32 %v12872_v1, 16  ;;  %v16156_v3 = vpop.permute.xlu0 %1661  ;;  %v1258_v40 = vshll.u32 %v12870_v17, 16  ;;  %v16159_v35 = vpop.permute.xlu1 %1745  ;;  %v16163_v32 = vld [vmem:[#allocation2 + $0xc] sm:$0xf] }
 0x155   : > { %v1275_v55 = vrot.slane %v1273_v41, 7  ;;  %v1257_v43 = vrot.slane %v1255_v4, 7  ;;  %19994 = vst [vmem:[#allocation22_spill] sm:$0xff] %v16156_v3  ;;  %v1282_v38 = vshrl.u32 %v12873_v63, 16  ;;  %v12876_v37 = vpack.c.bf16 %v977_v34, %v977_v34  ;;  %19995 = vst [vmem:[#allocation23_spill] sm:$0xff] %v16159_v35 }
 0x156   : > { %v2106_v60 = vshrl.u32 %v16059_v51, 16  ;;  %v1269_v30 = vor.u32 %v1267_v11, %v1266_v39  ;;  %v1271_v46 = vrot.slane %v1266_v39, 4  ;;  %v1252_v50 = vsel %vm16030_vm7, %v1244_v42, %v1251_v31  ;;  %19996 = vst [vmem:[#allocation24_spill] sm:$0xff] %v16163_v32 }
 0x157   : > { %v1278_v36 = vor.u32 %v1276_v54, %v1275_v55  ;;  %v1253_v1 = vrot.slane %v1248_v23, 4  ;;  %1504 = vst.msk [vmem:[#allocation2 + $0x28] sm:$0xf] %vm328_vm1, %v1252_v50  ;;  %v1260_v17 = vor.u32 %v1258_v40, %v1257_v43  ;;  %v1262_v41 = vrot.slane %v1257_v43, 4 }
 0x158   : > { %v16165_v25 = vpop.f32.mrb[20].mxu0  ;;  %v1302_v34 = vrot.slane %v1300_v0, 7  ;;  %v16170_v51 = vpop.f32.mrb[20].mxu1  ;;  %v16174_v39 = vrot.slane %v1282_v38, 7  ;;  %v1285_v54 = vshll.u32 %v12873_v63, 16  ;;  %v1309_v42 = vshrl.u32 %v12876_v37, 16 }
 0x159   : > { %v16168_v4 = vpop.f32.mrb[21].mxu0  ;;  %v1279_v11 = vsel %vm16030_vm7, %v1271_v46, %v1278_v36  ;;  %v16178_v35 = vpop.f32.mrb[21].mxu1  ;;  %v1261_v0 = vsel %vm16030_vm7, %v1253_v1, %v1260_v17  ;;  %v1270_v40 = vsel %vm16030_vm7, %v1262_v41, %v1269_v30  ;;  %v759_v23 = vadd.f32 %v15989_v21, %v16098_v13  ;;  %v16196_v17 = vld [vmem:[#allocation2 + $0x8] sm:$0xf] }
 0x15a   : > { %v16176_v31 = vpop.f32.mrb[22].mxu0  ;;  %1507 = vst.msk [vmem:[#allocation2 + $0x34] sm:$0xf] %vm328_vm1, %v1279_v11  ;;  %v2110_v36 = vrot.slane %v2108_v10, 1  ;;  %v16189_v63 = vpop.f32.mrb[22].mxu1  ;;  %v1280_v43 = vrot.slane %v1275_v55, 4  ;;  %v1287_v46 = vor.u32 %v1285_v54, %v16174_v39  ;;  %v780_v10 = vadd.f32 %v16133_v44, %v15989_v21 }
 0x15b   : > { %v16187_v38 = vpop.f32.mrb[23].mxu0  ;;  %1505 = vst.msk [vmem:[#allocation2 + $0x2c] sm:$0xf] %vm328_vm1, %v1261_v0  ;;  %1506 = vst.msk [vmem:[#allocation2 + $0x30] sm:$0xf] %vm328_vm1, %v1270_v40  ;;  %v16194_v50 = vrot.slane %v1309_v42, 7  ;;  %v860_v55 = vadd.f32 %v16015_v58, %v15989_v21  ;;  %v11972_v41 = vcombine.low %v16196_v17, %v16163_v32  ;;  %v16209_v42 = vpop.permute.xlu0 %1685 }
 0x15c   : > { %v1312_v1 = vshll.u32 %v12876_v37, 16  ;;  %19997 = vst [vmem:[#allocation25_spill] sm:$0xff] %v16196_v17  ;;  %v16198_v30 = vpop.f32.mrb[23].mxu1  ;;  %v975_v13 = vmax.f32 %v759_v23, 0.0  ;;  %v1307_v11 = vrot.slane %v1302_v34, 4  ;;  %v1288_v54 = vsel %vm16030_vm7, %v1280_v43, %v1287_v46  ;;  %19998 = vst [vmem:[#allocation26_spill] sm:$0xff] %v16209_v42  ;;  %v16211_v0 = vpop.permute.xlu1 %1769 }
 0x15d   : > { %19999 = vst [vmem:[#allocation27_spill] sm:$0xff] %v16211_v0  ;;  %1508 = vst.msk [vmem:[#allocation2 + $0x38] sm:$0xf] %vm328_vm1, %v1288_v54  ;;  %v980_v44 = vmax.f32 %v780_v10, 0.0  ;;  %v1000_v23 = vmax.f32 %v860_v55, 0.0  ;;  %v2113_v3 = vshll.u32 %v11972_v41, 16  ;;  %v2111_v17 = vor.u32 %v2110_v36, %v2106_v60 }
 0x15e   : > { %v1314_v37 = vor.u32 %v1312_v1, %v16194_v50  ;;  %v12874_v40 = vpack.c.bf16 %v975_v13, %v975_v13  ;;  %v1303_v46 = vshll.u32 %v16147_v29, 16  ;;  %v772_v60 = vadd.f32 %v15989_v21, %v16138_v6 }
 0x15f   : > { %v16222_v0 = vpack.c.bf16 %v980_v44, %v980_v44  ;;  %v16224_v13 = vpack.c.bf16 %v1000_v23, %v1000_v23  ;;  %v852_v36 = vadd.f32 %v15989_v21, %v16019_v2  ;;  %v1289_v42 = vrot.slane %v16174_v39, 4 }
 0x160   : > { %v1315_v58 = vsel %vm16030_vm7, %v1307_v11, %v1314_v37  ;;  %v16216_v32 = vpop.f32.mrb[24].mxu0  ;;  %v16218_v43 = vpop.f32.mrb[24].mxu1  ;;  %v1291_v1 = vshrl.u32 %v12874_v40, 16  ;;  %v2115_v11 = vrot.slane %v2113_v3, 1  ;;  %v1305_v44 = vor.u32 %v1303_v46, %v1302_v34  ;;  %v16248_v34 = vld [vmem:[#allocation2 + $0x10] sm:$0xf] }
 0x161   : > { %1511 = vst.msk [vmem:[#allocation2 + $0x44] sm:$0xf] %vm328_vm1, %v1315_v58  ;;  %v16226_v10 = vpop.f32.mrb[25].mxu0  ;;  %v16228_v55 = vpop.f32.mrb[25].mxu1  ;;  %v1294_v58 = vshll.u32 %v12874_v40, 16  ;;  %v7055_v3 = vshrl.u32 %v16224_v13, 16  ;;  %v783_v46 = vadd.f32 %v16143_v26, %v15989_v21 }
 0x162   : > { %20000 = vst [vmem:[#allocation28_spill] sm:$0xff] %v16228_v55  ;;  %v16234_v29 = vpop.f32.mrb[26].mxu0  ;;  %v16236_v54 = vpop.f32.mrb[26].mxu1  ;;  %v1293_v23 = vrot.slane %v1291_v1, 7  ;;  %v2116_v49 = vsel %vm2104_vm8, %v2111_v17, %v2115_v11  ;;  %v978_v22 = vmax.f32 %v772_v60, 0.0  ;;  %v2117_v20 = vshrl.u32 %v11972_v41, 16 }
 0x163   : > { %20001 = vst [vmem:[#allocation29_spill] sm:$0xff] %v16236_v54  ;;  %v16242_v6 = vpop.f32.mrb[27].mxu0  ;;  %v16244_v55 = vpop.f32.mrb[27].mxu1  ;;  %v1336_v54 = vshrl.u32 %v16222_v0, 16  ;;  %13825 = vmatprep.mubr.msk.bf16.mxu1 %vm2249_vm9, %v2116_v49  ;;  %20003 = vst [vmem:[#allocation31_spill] sm:$0xff] %v16248_v34  ;;  %v998_v39 = vmax.f32 %v852_v36, 0.0  ;;  %v863_v17 = vadd.f32 %v16021_v8, %v15989_v21 }
 0x164   : > { %20002 = vst [vmem:[#allocation30_spill] sm:$0xff] %v16244_v55  ;;  %v1296_v2 = vor.u32 %v1294_v58, %v1293_v23  ;;  %v1298_v48 = vrot.slane %v1293_v23, 4  ;;  %v12877_v40 = vpack.c.bf16 %v978_v22, %v978_v22  ;;  %v16254_v1 = vld [vmem:[#allocation2 + $0x14] sm:$0xf]  ;;  %v16256_v60 = vpop.permute.xlu0 %1709  ;;  %v1316_v23 = vrot.slane %v16194_v50, 4  ;;  %v16264_v36 = vpop.permute.xlu1 %1793 }
 0x165   : > { %20004 = vst [vmem:[#allocation32_spill] sm:$0xff] %v16254_v1  ;;  %20005 = vst [vmem:[#allocation33_spill] sm:$0xff] %v16256_v60  ;;  %v1339_v22 = vshll.u32 %v16222_v0, 16  ;;  %v16268_v8 = vrot.slane %v7055_v3, 7  ;;  %v2119_v58 = vor.u32 %v2117_v20, %v2115_v11  ;;  %v1001_v60 = vmax.f32 %v863_v17, 0.0 }
 0x166   : > { %v1297_v41 = vsel %vm16030_vm7, %v1289_v42, %v1296_v2  ;;  %v1306_v49 = vsel %vm16030_vm7, %v1298_v48, %v1305_v44  ;;  %20006 = vst [vmem:[#allocation34_spill] sm:$0xff] %v16264_v36  ;;  %v1318_v50 = vshrl.u32 %v12877_v40, 16  ;;  %v12929_v42 = vpack.c.bf16 %v998_v39, %v998_v39 }
 0x167   : > { %1509 = vst.msk [vmem:[#allocation2 + $0x3c] sm:$0xf] %vm328_vm1, %v1297_v41  ;;  %1510 = vst.msk [vmem:[#allocation2 + $0x40] sm:$0xf] %vm328_vm1, %v1306_v49  ;;  %v981_v2 = vmax.f32 %v783_v46, 0.0  ;;  %v16275_v48 = vcombine.low %v16248_v34, %v16254_v1  ;;  %v1338_v41 = vrot.slane %v1336_v54, 7  ;;  %v775_v20 = vadd.f32 %v15989_v21, %v16149_v33 }
 0x168   : > { %v16271_v37 = vpop.f32.mrb[28].mxu0  ;;  %v16279_v44 = vpop.f32.mrb[28].mxu1  ;;  %v16281_v3 = vrot.slane %v1318_v50, 7  ;;  %v1321_v49 = vshll.u32 %v12877_v40, 16  ;;  %v7037_v46 = vshrl.u32 %v12929_v42, 16  ;;  %v7040_v17 = vshll.u32 %v12929_v42, 16 }
 0x169   : > { %v16277_v0 = vpop.f32.mrb[29].mxu0  ;;  %20008 = vst [vmem:[#allocation36_spill] sm:$0xff] %v16279_v44  ;;  %v16287_v39 = vpop.f32.mrb[29].mxu1  ;;  %v12880_v26 = vpack.c.bf16 %v981_v2, %v981_v2  ;;  %v12932_v1 = vpack.c.bf16 %v1001_v60, %v1001_v60  ;;  %v2121_v50 = vshll.u32 %v16275_v48, 16  ;;  %v979_v40 = vmax.f32 %v775_v20, 0.0 }
 0x16a   : > { %20007 = vst [vmem:[#allocation35_spill] sm:$0xff] %v16277_v0  ;;  %v16285_v11 = vpop.f32.mrb[30].mxu0  ;;  %20010 = vst [vmem:[#allocation38_spill] sm:$0xff] %v16287_v39  ;;  %v16291_v36 = vpop.f32.mrb[30].mxu1  ;;  %v1323_v54 = vor.u32 %v1321_v49, %v16281_v3  ;;  %v855_v33 = vadd.f32 %v15989_v21, %v16026_v12  ;;  %v7062_v39 = vrot.slane %v16268_v8, 4  ;;  %v16300_v55 = vrot.slane %v7037_v46, 7 }
 0x16b   : > { %20009 = vst [vmem:[#allocation37_spill] sm:$0xff] %v16285_v11  ;;  %v16289_v34 = vpop.f32.mrb[31].mxu0  ;;  %20012 = vst [vmem:[#allocation40_spill] sm:$0xff] %v16291_v36  ;;  %v16297_v44 = vpop.f32.mrb[31].mxu1  ;;  %v1345_v42 = vshrl.u32 %v12880_v26, 16  ;;  %v7064_v60 = vshrl.u32 %v12932_v1, 16  ;;  %v12878_v49 = vpack.c.bf16 %v979_v40, %v979_v40 }
 0x16c   : > { %20011 = vst [vmem:[#allocation39_spill] sm:$0xff] %v16289_v34  ;;  %20013 = vst [vmem:[#allocation41_spill] sm:$0xff] %v16297_v44  ;;  %v1324_v2 = vsel %vm16030_vm7, %v1316_v23, %v1323_v54  ;;  %v7067_v36 = vshll.u32 %v12932_v1, 16  ;;  %v16304_v34 = vrot.slane %v2121_v50, 1  ;;  %v7042_v20 = vor.u32 %v7040_v17, %v16300_v55  ;;  %v15180_v46 = vld [vmem:[%s19744_s3 + $0x8] sm:$0xff]   ;;  %v16315_v0 = vpop.permute.xlu0 %1733  ;;  %v16317_v23 = vpop.permute.xlu1 %1817 }
 0x16d   : > { %1512 = vst.msk [vmem:[#allocation2 + $0x48] sm:$0xf] %vm328_vm1, %v1324_v2  ;;  %v16308_v12 = vrot.slane %v1345_v42, 7  ;;  %v1348_v44 = vshll.u32 %v12880_v26, 16  ;;  %v16310_v11 = vrot.slane %v7064_v60, 7  ;;  %20014 = vst [vmem:[#allocation42_spill] sm:$0xff] %v16317_v23  ;;  %v1341_v1 = vor.u32 %v1339_v22, %v1338_v41 }
 0x16e   : > { %v2124_v54 = vsel %vm2104_vm8, %v2119_v58, %v16304_v34  ;;  %v1327_v50 = vshrl.u32 %v12878_v49, 16  ;;  %v999_v40 = vmax.f32 %v855_v33, 0.0  ;;  %v1343_v17 = vrot.slane %v1338_v41, 4 }
 0x16f   : > { %v20015_v42 = vrot.slane %v16075_v24, 4  ;;  %v1350_v60 = vor.u32 %v1348_v44, %v16308_v12  ;;  %v7069_v2 = vor.u32 %v7067_v36, %v16310_v11  ;;  %13826 = vmatmul.mubr.msk.bf16.vlgmr.msra.gmra.mrb[32].mxu1 %vm2249_vm9, %v2124_v54  ;;  %v1325_v22 = vrot.slane %v16281_v3, 4 }
 0x170   : > { %13858 = vmatpush3.bf16.msra.mxu1 %v15979_v18  ;;  %v1329_v58 = vrot.slane %v1327_v50, 7  ;;  %v1330_v23 = vshll.u32 %v12878_v49, 16  ;;  %v12930_v33 = vpack.c.bf16 %v999_v40, %v999_v40  ;;  %v876_v44 = vadd.f32 %v16054_v45, %v15989_v21  ;;  %v16349_v45 = vpop.permute.xlu1 %1841 }
 0x171   : > { %v16325_v26 = vsel %vm16030_vm7, %v20015_v42, %v7042_v20  ;;  %v1351_v24 = vsel %vm16030_vm7, %v1343_v17, %v1350_v60  ;;  %v16336_v41 = vsel %vm16030_vm7, %v7062_v39, %v7069_v2  ;;  %v868_v36 = vadd.f32 %v15989_v21, %v16061_v53  ;;  %13859 = vmatprep.subr.bf16.mxu1 %v15180_v46  ;;  %v16347_v42 = vpop.permute.xlu0 %1757 }
 0x172   : > { %1515 = vst.msk [vmem:[#allocation2 + $0x54] sm:$0xf] %vm328_vm1, %v1351_v24  ;;  %v1332_v18 = vor.u32 %v1330_v23, %v1329_v58  ;;  %v1334_v3 = vrot.slane %v1329_v58, 4  ;;  %v7046_v49 = vshrl.u32 %v12930_v33, 16  ;;  %v7049_v20 = vshll.u32 %v12930_v33, 16 }
 0x173   : > { %v20016_v54 = vshll.u32 %v16224_v13, 16  ;;  %v7044_v39 = vrot.slane %v16300_v55, 4  ;;  %v1004_v40 = vmax.f32 %v876_v44, 0.0  ;;  %v1002_v17 = vmax.f32 %v868_v36, 0.0 }
 0x174   : > { %v1333_v53 = vsel %vm16030_vm7, %v1325_v22, %v1332_v18  ;;  %v1342_v23 = vsel %vm16030_vm7, %v1334_v3, %v1341_v1  ;;  %v7048_v60 = vrot.slane %v7046_v49, 7  ;;  %v879_v2 = vadd.f32 %v16065_v61, %v15989_v21  ;;  %13860 = vmatpush3.bf16.msra.mxu1 %v15180_v46 }
 0x175   : > { %v7060_v50 = vor.u32 %v20016_v54, %v16268_v8  ;;  %1513 = vst.msk [vmem:[#allocation2 + $0x4c] sm:$0xf] %vm328_vm1, %v1333_v53  ;;  %1514 = vst.msk [vmem:[#allocation2 + $0x50] sm:$0xf] %vm328_vm1, %v1342_v23  ;;  %v12935_v13 = vpack.c.bf16 %v1004_v40, %v1004_v40  ;;  %v12933_v55 = vpack.c.bf16 %v1002_v17, %v1002_v17  ;;  %v7071_v24 = vrot.slane %v16310_v11, 4  ;;  %v15188_v11 = vld [vmem:[%s19744_s3 + $0x20] sm:$0xff]   ;;  %v16375_v40 = vpop.permute.xlu0 %1781 }
 0x176   : > { %v871_v8 = vadd.f32 %v15989_v21, %v16071_v5  ;;  %v7051_v58 = vor.u32 %v7049_v20, %v7048_v60  ;;  %v7053_v33 = vrot.slane %v7048_v60, 4  ;;  %v1005_v22 = vmax.f32 %v879_v2, 0.0  ;;  %v16381_v2 = vld [vmem:[#allocation2 + $0x1c] sm:$0xf]  ;;  %13893 = vmatprep.subr.bf16.mxu1 %v15188_v11 }
 0x177   : > { %v7091_v1 = vshrl.u32 %v12935_v13, 16  ;;  %v7073_v44 = vshrl.u32 %v12933_v55, 16  ;;  %v7076_v36 = vshll.u32 %v12933_v55, 16  ;;  %v7094_v5 = vshll.u32 %v12935_v13, 16  ;;  %20018 = vst [vmem:[#allocation44_spill] sm:$0xff] %v16381_v2 }
 0x178   : > { %v16364_v61 = vsel %vm16030_vm7, %v7044_v39, %v7051_v58  ;;  %v16368_v46 = vsel %vm16030_vm7, %v7053_v33, %v7060_v50  ;;  %v12936_v18 = vpack.c.bf16 %v1005_v22, %v1005_v22  ;;  %v1003_v3 = vmax.f32 %v871_v8, 0.0  ;;  %v16377_v39 = vpop.permute.xlu1 %1865 }
 0x179   : > { %v7093_v49 = vrot.slane %v7091_v1, 7  ;;  %v7075_v20 = vrot.slane %v7073_v44, 7  ;;  %v796_v54 = vadd.f32 %v16165_v25, %v15989_v21  ;;  %20017 = vst [vmem:[#allocation43_spill] sm:$0xff] %v16377_v39  ;;  %v892_v23 = vadd.f32 %v16089_v59, %v15989_v21  ;;  %v16389_v44 = vld [vmem:[#allocation2 + $0x18] sm:$0xf] }
 0x17a   : > { %v7100_v17 = vshrl.u32 %v12936_v18, 16  ;;  %v7103_v53 = vshll.u32 %v12936_v18, 16  ;;  %v12934_v50 = vpack.c.bf16 %v1003_v3, %v1003_v3  ;;  %20019 = vst [vmem:[#allocation45_spill] sm:$0xff] %v16389_v44  ;;  %v11974_v3 = vcombine.low %v16389_v44, %v16381_v2 }
 0x17b   : > { %v7078_v60 = vor.u32 %v7076_v36, %v7075_v20  ;;  %v7098_v13 = vrot.slane %v7093_v49, 4  ;;  %v7096_v58 = vor.u32 %v7094_v5, %v7093_v49  ;;  %v984_v22 = vmax.f32 %v796_v54, 0.0  ;;  %v16401_v5 = vpop.permute.xlu0 %1805 }
 0x17c   : > { %v16383_v25 = vrot.slane %v7100_v17, 7  ;;  %v7082_v55 = vshrl.u32 %v12934_v50, 16  ;;  %v7085_v8 = vshll.u32 %v12934_v50, 16  ;;  %v1008_v1 = vmax.f32 %v892_v23, 0.0  ;;  %v16403_v54 = vpop.permute.xlu1 %1889 }
 0x17d   : > { %v16387_v33 = vsel %vm16030_vm7, %v7071_v24, %v7078_v60  ;;  %v7080_v18 = vrot.slane %v7075_v20, 4  ;;  %v16394_v11 = vpack.c.bf16 %v984_v22, %v984_v22  ;;  %v2125_v49 = vshrl.u32 %v16275_v48, 16  ;;  %20020 = vst [vmem:[#allocation46_spill] sm:$0xff] %v16403_v54 }
 0x17e   : > { %v7105_v59 = vor.u32 %v7103_v53, %v16383_v25  ;;  %v7084_v36 = vrot.slane %v7082_v55, 7  ;;  %v16396_v17 = vpack.c.bf16 %v1008_v1, %v1008_v1  ;;  %v788_v24 = vadd.f32 %v15989_v21, %v16168_v4 }
 0x17f   : > { %v2129_v23 = vshll.u32 %v11974_v3, 16  ;;  %v2127_v4 = vor.u32 %v2125_v49, %v16304_v34  ;;  %v16429_v34 = vld [vmem:[#allocation2 + $0x24] sm:$0xf]  ;;  %v7005_v49 = vshll.u32 %v16013_v57, 16  ;;  %v2133_v57 = vshrl.u32 %v11974_v3, 16 }
 0x180   : > { %v16407_v20 = vsel %vm16030_vm7, %v7098_v13, %v7105_v59  ;;  %v7087_v53 = vor.u32 %v7085_v8, %v7084_v36  ;;  %v7089_v50 = vrot.slane %v7084_v36, 4  ;;  %v7127_v22 = vshrl.u32 %v16396_v17, 16  ;;  %v16427_v36 = vld [vmem:[#allocation2 + $0x20] sm:$0xf]  ;;  %20023 = vst [vmem:[#allocation49_spill] sm:$0xff] %v16429_v34 }
 0x181   : > { %20021 = vst [vmem:[#allocation47_spill] sm:$0xff] %v16407_v20  ;;  %v2131_v55 = vrot.slane %v2129_v23, 1  ;;  %v982_v1 = vmax.f32 %v788_v24, 0.0  ;;  %v884_v13 = vadd.f32 %v15989_v21, %v16100_v62  ;;  %v1372_v8 = vshrl.u32 %v16394_v11, 16  ;;  %20022 = vst [vmem:[#allocation48_spill] sm:$0xff] %v16427_v36  ;;  %v16434_v62 = vpop.permute.xlu0 %1829 }
 0x182   : > { %v16411_v60 = vsel %vm16030_vm7, %v7080_v18, %v7087_v53  ;;  %v16415_v48 = vsel %vm16030_vm7, %v7089_v50, %v7096_v58  ;;  %v799_v18 = vadd.f32 %v16176_v31, %v15989_v21  ;;  %v895_v58 = vadd.f32 %v16111_v52, %v15989_v21  ;;  %20024 = vst [vmem:[#allocation50_spill] sm:$0xff] %v16434_v62  ;;  %v16436_v53 = vpop.permute.xlu1 %1913 }
 0x183   : > { %v2132_v59 = vsel %vm2104_vm8, %v2127_v4, %v2131_v55  ;;  %v1352_v24 = vrot.slane %v16308_v12, 4  ;;  %20025 = vst [vmem:[#allocation51_spill] sm:$0xff] %v16436_v53  ;;  %v7107_v50 = vrot.slane %v16383_v25, 4  ;;  %v12881_v31 = vpack.c.bf16 %v982_v1, %v982_v1 }
 0x184   : > { %13829 = vmatprep.mubr.msk.bf16.mxu1 %vm2249_vm9, %v2132_v59  ;;  %v1006_v23 = vmax.f32 %v884_v13, 0.0  ;;  %v985_v4 = vmax.f32 %v799_v18, 0.0  ;;  %v7129_v52 = vrot.slane %v7127_v22, 7  ;;  %v1009_v44 = vmax.f32 %v895_v58, 0.0 }
 0x185   : > { %v16441_v2 = vcombine.low %v16427_v36, %v16429_v34  ;;  %v1374_v54 = vrot.slane %v1372_v8, 7  ;;  %v1354_v12 = vshrl.u32 %v12881_v31, 16  ;;  %v791_v59 = vadd.f32 %v15989_v21, %v16187_v38  ;;  %v16448_v8 = vpop.permute.xlu0 %1853 }
 0x186   : > { %v12937_v39 = vpack.c.bf16 %v1006_v23, %v1006_v23  ;;  %v1357_v62 = vshll.u32 %v12881_v31, 16  ;;  %v12884_v53 = vpack.c.bf16 %v985_v4, %v985_v4  ;;  %v12940_v20 = vpack.c.bf16 %v1009_v44, %v1009_v44  ;;  %20026 = vst [vmem:[#allocation52_spill] sm:$0xff] %v16448_v8  ;;  %v16450_v23 = vpop.permute.xlu1 %2773  ;;  %v16457_v4 = vld [vmem:[#allocation2 + $0xc] sm:$0xf] }
 0x187   : > { %v2135_v25 = vor.u32 %v2133_v57, %v2131_v55  ;;  %v16445_v1 = vrot.slane %v1354_v12, 7  ;;  %v2137_v18 = vshll.u32 %v16441_v2, 16  ;;  %v7134_v58 = vrot.slane %v7129_v52, 4  ;;  %20027 = vst [vmem:[#allocation53_spill] sm:$0xff] %v16450_v23  ;;  %20028 = vst [vmem:[#allocation54_spill] sm:$0xff] %v16457_v4 }
 0x188   : > { %v7109_v13 = vshrl.u32 %v12937_v39, 16  ;;  %v7112_v22 = vshll.u32 %v12937_v39, 16  ;;  %v1381_v34 = vshrl.u32 %v12884_v53, 16  ;;  %v7136_v36 = vshrl.u32 %v12940_v20, 16  ;;  %v16465_v8 = vld [vmem:[#allocation2 + $0xc] sm:$0xf] }
 0x189   : > { %v7139_v3 = vshll.u32 %v12940_v20, 16  ;;  %v1359_v38 = vor.u32 %v1357_v62, %v16445_v1  ;;  %v1384_v44 = vshll.u32 %v12884_v53, 16  ;;  %v16455_v55 = vrot.slane %v2137_v18, 1  ;;  %20029 = vst [vmem:[#allocation55_spill] sm:$0xff] %v16465_v8 }
 0x18a   : > { %v16453_v31 = vrot.slane %v7109_v13, 7  ;;  %v16459_v39 = vrot.slane %v1381_v34, 7  ;;  %v16461_v57 = vrot.slane %v7136_v36, 7  ;;  %v983_v12 = vmax.f32 %v791_v59, 0.0  ;;  %v7321_v13 = vld [vmem:[#allocation2 + $0x8] sm:$0xf] }
 0x18b   : > { %v887_v20 = vadd.f32 %v15989_v21, %v16113_v28  ;;  %v16468_v23 = vor.u32 %v7005_v49, %v16073_v7  ;;  %v1360_v62 = vsel %vm16030_vm7, %v1352_v24, %v1359_v38  ;;  %v2140_v34 = vsel %vm2104_vm8, %v2135_v25, %v16455_v55  ;;  %v16480_v7 = vld [vmem:[#allocation2 + $0xc] sm:$0xf] }
 0x18c   : > { %v7114_v53 = vor.u32 %v7112_v22, %v16453_v31  ;;  %v1379_v36 = vrot.slane %v1374_v54, 4  ;;  %v7130_v59 = vshll.u32 %v16396_v17, 16  ;;  %1516 = vst.msk [vmem:[#allocation2 + $0x58] sm:$0xf] %vm328_vm1, %v1360_v62  ;;  %v1386_v28 = vor.u32 %v1384_v44, %v16459_v39  ;;  %13830 = vmatmul.mubr.msk.bf16.gmra.mrb[36].mxu1 %vm2249_vm9, %v2140_v34  ;;  %20030 = vst [vmem:[#allocation56_spill] sm:$0xff] %v16480_v7  ;;  %v16501_v44 = vpop.permute.xlu1 %2784 }
 0x18d   : > { %v7141_v18 = vor.u32 %v7139_v3, %v16461_v57  ;;  %v1375_v49 = vshll.u32 %v16394_v11, 16  ;;  %v12882_v25 = vpack.c.bf16 %v983_v12, %v983_v12  ;;  %v1007_v22 = vmax.f32 %v887_v20, 0.0  ;;  %7324 = vst.msk [vmem:[#allocation2 + $0xc] sm:$0xf] %vm328_vm1, %v16105_v9  ;;  %20031 = vst [vmem:[#allocation57_spill] sm:$0xff] %v16501_v44 }
 0x18e   : > { %v16485_v24 = vsel %vm16030_vm7, %v7107_v50, %v7114_v53  ;;  %v1387_v17 = vsel %vm16030_vm7, %v1379_v36, %v1386_v28  ;;  %v908_v38 = vadd.f32 %v16135_v47, %v15989_v21  ;;  %v900_v11 = vadd.f32 %v15989_v21, %v16140_v16  ;;  %v16499_v50 = vpop.permute.xlu0 %1877  ;;  %v16510_v21 = vld [vmem:[%s19743_s2] ss:$0 sm:$0xff] }
 0x18f   : > { %v16493_v3 = vsel %vm16030_vm7, %v7134_v58, %v7141_v18  ;;  %v7322_v9 = vsel %vm15957_vm5, %v16468_v23, %v7321_v13  ;;  %v1377_v12 = vor.u32 %v1375_v49, %v1374_v54  ;;  %1519 = vst.msk [vmem:[#allocation2 + $0x64] sm:$0xf] %vm328_vm1, %v1387_v17  ;;  %v1363_v20 = vshrl.u32 %v12882_v25, 16  ;;  %v16518_v18 = vld [vmem:[#allocation2 + $0x8] sm:$0xf] }
 0x190   : > { %v12938_v58 = vpack.c.bf16 %v1007_v22, %v1007_v22  ;;  %v7132_v62 = vor.u32 %v7130_v59, %v7129_v52  ;;  %v1012_v53 = vmax.f32 %v908_v38, 0.0  ;;  %v1010_v34 = vmax.f32 %v900_v11, 0.0  ;;  %v16516_v59 = vld [vmem:[#allocation2 + $0x8] sm:$0xf]  ;;  %20033 = vst [vmem:[#allocation59_spill] sm:$0xff] %v16518_v18 }
 0x191   : > { %v911_v47 = vadd.f32 %v16510_v21, %v16145_v27  ;;  %v1365_v16 = vrot.slane %v1363_v20, 7  ;;  %v1366_v36 = vshll.u32 %v12882_v25, 16  ;;  %v1361_v54 = vrot.slane %v16445_v1, 4  ;;  %20032 = vst [vmem:[#allocation58_spill] sm:$0xff] %v16516_v59  ;;  %v16520_v11 = vld [vmem:[#allocation2 + $0x8] sm:$0xf]  ;;  %v16524_v1 = vpop.permute.xlu1 %1937 }
 0x192   : > { %v7118_v14 = vshrl.u32 %v12938_v58, 16  ;;  %v7121_v23 = vshll.u32 %v12938_v58, 16  ;;  %v7116_v13 = vrot.slane %v16453_v31, 4  ;;  %v12943_v28 = vpack.c.bf16 %v1012_v53, %v1012_v53  ;;  %20034 = vst [vmem:[#allocation60_spill] sm:$0xff] %v16520_v11  ;;  %v16522_v58 = vpop.permute.xlu0 %1901 }
 0x193   : > { %v12941_v52 = vpack.c.bf16 %v1010_v34, %v1010_v34  ;;  %v1368_v49 = vor.u32 %v1366_v36, %v1365_v16  ;;  %v1370_v22 = vrot.slane %v1365_v16, 4  ;;  %v1013_v38 = vmax.f32 %v911_v47, 0.0  ;;  %v16530_v16 = vld [vmem:[#allocation2 + $0x8] sm:$0xe] }
 0x194   : > { %v7120_v17 = vrot.slane %v7118_v14, 7  ;;  %v7163_v27 = vshrl.u32 %v12943_v28, 16  ;;  %20035 = vst [vmem:[#allocation61_spill] sm:$0xff] %v16530_v16  ;;  %v7143_v47 = vrot.slane %v16461_v57, 4  ;;  %7323 = vst [vmem:[#allocation2 + $0x8] sm:$0xf] %v7322_v9  ;;  %v804_v16 = vadd.f32 %v16510_v21, %v16226_v10 }
 0x195   : > { %v7145_v25 = vshrl.u32 %v12941_v52, 16  ;;  %v7148_v20 = vshll.u32 %v12941_v52, 16  ;;  %v1369_v31 = vsel %vm16030_vm7, %v1361_v54, %v1368_v49  ;;  %v1378_v53 = vsel %vm16030_vm7, %v1370_v22, %v1377_v12  ;;  %v16545_v57 = vld [vmem:[#allocation2 + $0x2c] sm:$0xf]  ;;  %v16547_v9 = vld [vmem:[#allocation2 + $0x28] sm:$0xf] }
 0x196   : > { %v7123_v34 = vor.u32 %v7121_v23, %v7120_v17  ;;  %v7125_v36 = vrot.slane %v7120_v17, 4  ;;  %1517 = vst.msk [vmem:[#allocation2 + $0x5c] sm:$0xf] %vm328_vm1, %v1369_v31  ;;  %1518 = vst.msk [vmem:[#allocation2 + $0x60] sm:$0xf] %vm328_vm1, %v1378_v53  ;;  %v7165_v14 = vrot.slane %v7163_v27, 7  ;;  %v12944_v23 = vpack.c.bf16 %v1013_v38, %v1013_v38 }
 0x197   : > { %v7147_v52 = vrot.slane %v7145_v25, 7  ;;  %v903_v54 = vadd.f32 %v16510_v21, %v16151_v56  ;;  %20036 = vst [vmem:[#allocation62_spill] sm:$0xff] %v16545_v57  ;;  %v7166_v22 = vshll.u32 %v12943_v28, 16  ;;  %20037 = vst [vmem:[#allocation63_spill] sm:$0xff] %v16547_v9  ;;  %v924_v38 = vadd.f32 %v16510_v21, %v16170_v51  ;;  %v16561_v28 = vpop.permute.xlu1 %2795 }
 0x198   : > { %v16537_v11 = vsel %vm16030_vm7, %v7116_v13, %v7123_v34  ;;  %v16541_v12 = vsel %vm16030_vm7, %v7125_v36, %v7132_v62  ;;  %v7172_v17 = vshrl.u32 %v12944_v23, 16  ;;  %v7175_v27 = vshll.u32 %v12944_v23, 16  ;;  %20038 = vst [vmem:[#allocation64_spill] sm:$0xff] %v16561_v28 }
 0x199   : > { %v7150_v49 = vor.u32 %v7148_v20, %v7147_v52  ;;  %v1011_v25 = vmax.f32 %v903_v54, 0.0  ;;  %v812_v62 = vadd.f32 %v16510_v21, %v16216_v32  ;;  %v11976_v56 = vcombine.low %v16547_v9, %v16545_v57  ;;  %v16559_v20 = vpop.permute.xlu0 %1925 }
 0x19a   : > { %v7170_v31 = vrot.slane %v7165_v14, 4  ;;  %v16563_v53 = vrot.slane %v7172_v17, 7  ;;  %v2141_v23 = vshrl.u32 %v16441_v2, 16  ;;  %v7168_v7 = vor.u32 %v7166_v22, %v7165_v14 }
 0x19b   : > { %v16551_v13 = vsel %vm16030_vm7, %v7143_v47, %v7150_v49  ;;  %v12942_v34 = vpack.c.bf16 %v1011_v25, %v1011_v25  ;;  %v988_v36 = vmax.f32 %v812_v62, 0.0  ;;  %v1016_v47 = vmax.f32 %v924_v38, 0.0  ;;  %v16582_v10 = vpop.permute.xlu1 %2817 }
 0x19c   : > { %v2145_v54 = vshll.u32 %v11976_v56, 16  ;;  %v7177_v32 = vor.u32 %v7175_v27, %v16563_v53  ;;  %v7152_v18 = vrot.slane %v7147_v52, 4  ;;  %v2143_v62 = vor.u32 %v2141_v23, %v16455_v55  ;;  %20040 = vst [vmem:[#allocation66_spill] sm:$0xff] %v16582_v10 }
 0x19d   : > { %v7154_v49 = vshrl.u32 %v12942_v34, 16  ;;  %v7157_v51 = vshll.u32 %v12942_v34, 16  ;;  %v16569_v8 = vpack.c.bf16 %v988_v36, %v988_v36  ;;  %v15507_v38 = vmov 839922192   ;;  %v16580_v57 = vpop.permute.xlu0 %2762 }
 0x19e   : > { %v16573_v17 = vsel %vm16030_vm7, %v7170_v31, %v7177_v32  ;;  %v2147_v2 = vrot.slane %v2145_v54, 1  ;;  %v16576_v9 = vunpack.c.l.s4 %v15507_v38  ;;  %v1571_v27 = vlaneseq  ;;  %20039 = vst [vmem:[#allocation65_spill] sm:$0xff] %v16580_v57 }
 0x19f   : > { %v7156_v25 = vrot.slane %v7154_v49, 7  ;;  %v16578_v34 = vpack.c.bf16 %v1016_v47, %v1016_v47  ;;  %v986_v31 = vmax.f32 %v804_v16, 0.0  ;;  %v1408_v36 = vshrl.u32 %v16569_v8, 16  ;;  %v16599_v16 = vld [vmem:[#allocation2 + $0x30] sm:$0xf] }
 0x1a0   : > { %v2148_v22 = vsel %vm2104_vm8, %v2143_v62, %v2147_v2  ;;  %v916_v55 = vadd.f32 %v16510_v21, %v16178_v35  ;;  %v815_v32 = vadd.f32 %v16510_v21, %v16234_v29  ;;  %20041 = vst [vmem:[#allocation67_spill] sm:$0xff] %v16599_v16  ;;  %v16601_v49 = vld [vmem:[#allocation2 + $0x34] sm:$0xf]  ;;  %v1388_v35 = vrot.slane %v16459_v39, 4 }
 0x1a1   : > { %v7159_v14 = vor.u32 %v7157_v51, %v7156_v25  ;;  %v7161_v52 = vrot.slane %v7156_v25, 4  ;;  %13833 = vmatprep.mubr.msk.bf16.mxu1 %vm2249_vm9, %v2148_v22  ;;  %v12885_v54 = vpack.c.bf16 %v986_v31, %v986_v31  ;;  %20042 = vst [vmem:[#allocation68_spill] sm:$0xff] %v16601_v49  ;;  %v1570_v51 = vunpack.c.0.s8 %v16576_v9  ;;  %v16613_v31 = vpop.permute.xlu0 %2806  ;;  %v16615_v9 = vpop.permute.xlu1 %2828 }
 0x1a2   : > { %v1572_v25 = vshrl.u32 %v1571_v27, 7  ;;  %v7199_v62 = vshrl.u32 %v16578_v34, 16  ;;  %v16611_v29 = vcombine.low %v16599_v16, %v16601_v49  ;;  %v2149_v22 = vshrl.u32 %v11976_v56, 16  ;;  %20043 = vst [vmem:[#allocation69_spill] sm:$0xff] %v16613_v31  ;;  %20044 = vst [vmem:[#allocation70_spill] sm:$0xff] %v16615_v9 }
 0x1a3   : > { %v16591_v47 = vsel %vm16030_vm7, %v7152_v18, %v7159_v14  ;;  %v16595_v23 = vsel %vm16030_vm7, %v7161_v52, %v7168_v7  ;;  %v7179_v18 = vrot.slane %v16563_v53, 4  ;;  %v1390_v38 = vshrl.u32 %v12885_v54, 16 }
 0x1a4   : > { %v1014_v7 = vmax.f32 %v916_v55, 0.0  ;;  %v989_v14 = vmax.f32 %v815_v32, 0.0  ;;  %v927_v52 = vadd.f32 %v16510_v21, %v16189_v63  ;;  %v1410_v39 = vrot.slane %v1408_v36, 7 }
 0x1a5   : > { %v16617_v27 = vrot.slane %v1390_v38, 7  ;;  %v1393_v53 = vshll.u32 %v12885_v54, 16  ;;  %v2151_v32 = vor.u32 %v2149_v22, %v2147_v2  ;;  %v2153_v28 = vshll.u32 %v16611_v29, 16  ;;  %v16623_v36 = vpop.permute.xlu0 %2839 }
 0x1a6   : > { %v12945_v10 = vpack.c.bf16 %v1014_v7, %v1014_v7  ;;  %v12888_v57 = vpack.c.bf16 %v989_v14, %v989_v14  ;;  %v1017_v55 = vmax.f32 %v927_v52, 0.0  ;;  %v7201_v63 = vrot.slane %v7199_v62, 7  ;;  %20045 = vst [vmem:[#allocation71_spill] sm:$0xff] %v16623_v36  ;;  %v16636_v14 = vpop.permute.xlu1 %2850 }
 0x1a7   : > { %v1395_v44 = vor.u32 %v1393_v53, %v16617_v27  ;;  %v16621_v4 = vrot.slane %v2153_v28, 1  ;;  %v807_v2 = vadd.f32 %v16510_v21, %v16242_v6  ;;  %v919_v62 = vadd.f32 %v16510_v21, %v16198_v30  ;;  %20046 = vst [vmem:[#allocation72_spill] sm:$0xff] %v16636_v14  ;;  %v20073_v14 = vld [vmem:[#allocation15_spill] sm:$0xff] }
 0x1a8   : > { %v7181_v49 = vshrl.u32 %v12945_v10, 16  ;;  %v7184_v16 = vshll.u32 %v12945_v10, 16  ;;  %v1417_v56 = vshrl.u32 %v12888_v57, 16  ;;  %v1420_v59 = vshll.u32 %v12888_v57, 16 }
 0x1a9   : > { %v12948_v31 = vpack.c.bf16 %v1017_v55, %v1017_v55  ;;  %v1396_v54 = vsel %vm16030_vm7, %v1388_v35, %v1395_v44  ;;  %v2156_v28 = vsel %vm2104_vm8, %v2151_v32, %v16621_v4  ;;  %v7202_v44 = vshll.u32 %v16578_v34, 16 }
 0x1aa   : > { %v7183_v38 = vrot.slane %v7181_v49, 7  ;;  %1520 = vst.msk [vmem:[#allocation2 + $0x68] sm:$0xf] %vm328_vm1, %v1396_v54  ;;  %v16632_v10 = vrot.slane %v1417_v56, 7  ;;  %13834 = vmatmul.mubr.msk.bf16.gmra.mrb[40].mxu1 %vm2249_vm9, %v2156_v28  ;;  %v987_v6 = vmax.f32 %v807_v2, 0.0  ;;  %v1015_v35 = vmax.f32 %v919_v62, 0.0  ;;  %v16652_v54 = vpop.permute.xlu0 %2861 }
 0x1ab   : > { %v7208_v57 = vshrl.u32 %v12948_v31, 16  ;;  %v7211_v7 = vshll.u32 %v12948_v31, 16  ;;  %v1415_v52 = vrot.slane %v1410_v39, 4  ;;  %v7206_v30 = vrot.slane %v7201_v63, 4  ;;  %20048 = vst [vmem:[#allocation74_spill] sm:$0xff] %v16652_v54  ;;  %v20078_v54 = vld [vmem:[#allocation20_spill] sm:$0xff] }
 0x1ac   : > { %v7186_v49 = vor.u32 %v7184_v16, %v7183_v38  ;;  %v1422_v22 = vor.u32 %v1420_v59, %v16632_v10  ;;  %v12886_v55 = vpack.c.bf16 %v987_v6, %v987_v6  ;;  %v12946_v32 = vpack.c.bf16 %v1015_v35, %v1015_v35 }
 0x1ad   : > { %v16641_v53 = vrot.slane %v7208_v57, 7  ;;  %v16650_v56 = vsub.s32 %v1570_v51, %v1572_v25  ;;  %v16655_v57 = vld [vmem:[#allocation2 + $0x3c] sm:$0xf]  ;;  %v7204_v28 = vor.u32 %v7202_v44, %v7201_v63 }
 0x1ae   : > { %v16645_v31 = vsel %vm16030_vm7, %v7179_v18, %v7186_v49  ;;  %v1423_v34 = vsel %vm16030_vm7, %v1415_v52, %v1422_v22  ;;  %v1399_v59 = vshrl.u32 %v12886_v55, 16  ;;  %v7190_v2 = vshrl.u32 %v12946_v32, 16  ;;  %20049 = vst [vmem:[#allocation75_spill] sm:$0xff] %v16655_v57  ;;  %v16666_v22 = vld [vmem:[#allocation2 + $0x38] sm:$0xf] }
 0x1af   : > { %v7213_v16 = vor.u32 %v7211_v7, %v16641_v53  ;;  %20047 = vst [vmem:[#allocation73_spill] sm:$0xff] %v16650_v56  ;;  %1523 = vst.msk [vmem:[#allocation2 + $0x74] sm:$0xf] %vm328_vm1, %v1423_v34  ;;  %v7193_v62 = vshll.u32 %v12946_v32, 16  ;;  %v1411_v18 = vshll.u32 %v16569_v8, 16  ;;  %v7188_v49 = vrot.slane %v7183_v38, 4  ;;  %v16662_v7 = vpop.permute.xlu1 %2872 }
 0x1b0   : > { %20050 = vst [vmem:[#allocation76_spill] sm:$0xff] %v16662_v7  ;;  %v1401_v51 = vrot.slane %v1399_v59, 7  ;;  %v1402_v25 = vshll.u32 %v12886_v55, 16  ;;  %v7192_v35 = vrot.slane %v7190_v2, 7  ;;  %v828_v52 = vadd.f32 %v16510_v21, %v16271_v37  ;;  %20051 = vst [vmem:[#allocation77_spill] sm:$0xff] %v16666_v22  ;;  %v20072_v7 = vld [vmem:[#allocation29_spill] sm:$0xff] }
 0x1b1   : > { %v16660_v6 = vsel %vm16030_vm7, %v7206_v30, %v7213_v16  ;;  %v1413_v32 = vor.u32 %v1411_v18, %v1410_v39  ;;  %v1397_v34 = vrot.slane %v16617_v27, 4  ;;  %v940_v8 = vadd.f32 %v16510_v21, %v16218_v43  ;;  %v16679_v39 = vpop.permute.xlu0 %2883 }
 0x1b2   : > { %v16673_v63 = vcombine.low %v16666_v22, %v16655_v57  ;;  %v1404_v38 = vor.u32 %v1402_v25, %v1401_v51  ;;  %v1406_v44 = vrot.slane %v1401_v51, 4  ;;  %v7195_v30 = vor.u32 %v7193_v62, %v7192_v35  ;;  %20053 = vst [vmem:[#allocation79_spill] sm:$0xff] %v16679_v39 }
 0x1b3   : > { %v7197_v55 = vrot.slane %v7192_v35, 4  ;;  %v16677_v16 = vrot.slane %v15982_v19, %v16650_v56  ;;  %v992_v37 = vmax.f32 %v828_v52, 0.0  ;;  %v1020_v59 = vmax.f32 %v940_v8, 0.0  ;;  %v20056_v19 = vld [vmem:[#allocation10_spill] sm:$0xff] }
 0x1b4   : > { %v1405_v27 = vsel %vm16030_vm7, %v1397_v34, %v1404_v38  ;;  %v1414_v43 = vsel %vm16030_vm7, %v1406_v44, %v1413_v32  ;;  %v16687_v2 = vsel %vm16030_vm7, %v7188_v49, %v7195_v30  ;;  %v16695_v18 = vrot.slane %v20056_v19, %v16650_v56  ;;  %v20058_v49 = vld [vmem:[#allocation12_spill] sm:$0xff]  ;;  %v20061_v34 = vld [vmem:[#allocation35_spill] sm:$0xff] }
 0x1b5   : > { %20052 = vst [vmem:[#allocation78_spill] sm:$0xff] %v16677_v16  ;;  %20054 = vst [vmem:[#allocation80_spill] sm:$0xff] %v16687_v2  ;;  %v16691_v62 = vsel %vm16030_vm7, %v7197_v55, %v7204_v28  ;;  %v16699_v51 = vpack.c.bf16 %v992_v37, %v992_v37  ;;  %v16701_v25 = vpack.c.bf16 %v1020_v59, %v1020_v59  ;;  %v2157_v35 = vshrl.u32 %v16611_v29, 16  ;;  %v16708_v28 = vpop.permute.xlu1 %2894  ;;  %v20062_v38 = vld [vmem:[#allocation28_spill] sm:$0xff]  ;;  %v20063_v30 = vld [vmem:[#allocation11_spill] sm:$0xff] }
 0x1b6   : > { %20055 = vst [vmem:[#allocation81_spill] sm:$0xff] %v16691_v62  ;;  %20057 = vst [vmem:[#allocation10_spill] sm:$0xff] %v16695_v18  ;;  %v16706_v52 = vrot.slane %v20058_v49, %v16650_v56  ;;  %v2161_v32 = vshll.u32 %v16673_v63, 16  ;;  %v820_v8 = vadd.f32 %v16510_v21, %v20061_v34  ;;  %v932_v44 = vadd.f32 %v16510_v21, %v20062_v38  ;;  %v20065_v29 = vld [vmem:[#allocation13_spill] sm:$0xff]  ;;  %v20067_v59 = vld [vmem:[#allocation14_spill] sm:$0xff] }
 0x1b7   : > { %1521 = vst.msk [vmem:[#allocation2 + $0x6c] sm:$0xf] %vm328_vm1, %v1405_v27  ;;  %1522 = vst.msk [vmem:[#allocation2 + $0x70] sm:$0xf] %vm328_vm1, %v1414_v43  ;;  %v16717_v55 = vrot.slane %v20063_v30, %v16650_v56  ;;  %v16721_v37 = vrot.slane %v20065_v29, %v16650_v56  ;;  %v16725_v27 = vrot.slane %v20067_v59, %v16650_v56  ;;  %v7235_v19 = vshrl.u32 %v16701_v25, 16  ;;  %v20069_v38 = vld [vmem:[#allocation16_spill] sm:$0xff] }
 0x1b8   : > { %20059 = vst [vmem:[#allocation12_spill] sm:$0xff] %v16706_v52  ;;  %20060 = vst [vmem:[#allocation82_spill] sm:$0xff] %v16708_v28  ;;  %v2159_v43 = vor.u32 %v2157_v35, %v16621_v4  ;;  %v2163_v49 = vrot.slane %v2161_v32, 1  ;;  %v990_v34 = vmax.f32 %v820_v8, 0.0  ;;  %v1018_v22 = vmax.f32 %v932_v44, 0.0  ;;  %v20071_v28 = vld [vmem:[#allocation37_spill] sm:$0xff]  ;;  %v16742_v35 = vpop.permute.xlu0 %2905 }
 0x1b9   : > { %20064 = vst [vmem:[#allocation35_spill] sm:$0xff] %v16717_v55  ;;  %20066 = vst [vmem:[#allocation28_spill] sm:$0xff] %v16721_v37  ;;  %v16731_v57 = vrot.slane %v20069_v38, %v16650_v56  ;;  %v1444_v30 = vshrl.u32 %v16699_v51, 16  ;;  %v831_v29 = vadd.f32 %v16510_v21, %v20071_v28  ;;  %v943_v59 = vadd.f32 %v16510_v21, %v20072_v7  ;;  %v20076_v38 = vld [vmem:[#allocation17_spill] sm:$0xff]  ;;  %v20080_v7 = vld [vmem:[#allocation22_spill] sm:$0xff] }
 0x1ba   : > { %20068 = vst [vmem:[#allocation11_spill] sm:$0xff] %v16725_v27  ;;  %v16740_v4 = vrot.slane %v20073_v14, %v16650_v56  ;;  %20075 = vst [vmem:[#allocation16_spill] sm:$0xff] %v16742_v35  ;;  %v2164_v32 = vsel %vm2104_vm8, %v2159_v43, %v2163_v49  ;;  %v12889_v8 = vpack.c.bf16 %v990_v34, %v990_v34  ;;  %v1424_v14 = vrot.slane %v16632_v10, 4  ;;  %v16759_v35 = vld [vmem:[#allocation2 + $0x40] sm:$0xf]  ;;  %v20085_v16 = vld [vmem:[#allocation39_spill] sm:$0xff] }
 0x1bb   : > { %20070 = vst [vmem:[#allocation13_spill] sm:$0xff] %v16731_v57  ;;  %v12949_v44 = vpack.c.bf16 %v1018_v22, %v1018_v22  ;;  %v16747_v39 = vrot.slane %v20076_v38, %v16650_v56  ;;  %v16751_v28 = vrot.slane %v20078_v54, %v16650_v56  ;;  %v16755_v36 = vrot.slane %v20080_v7, %v16650_v56  ;;  %v16761_v43 = vld [vmem:[#allocation2 + $0x44] sm:$0xf]  ;;  %v16763_v22 = vpop.permute.xlu1 %2916  ;;  %v20086_v55 = vld [vmem:[#allocation30_spill] sm:$0xff] }
 0x1bc   : > { %20074 = vst [vmem:[#allocation14_spill] sm:$0xff] %v16740_v4  ;;  %13837 = vmatprep.mubr.msk.bf16.mxu1 %vm2249_vm9, %v2164_v32  ;;  %20082 = vst [vmem:[#allocation17_spill] sm:$0xff] %v16759_v35  ;;  %v16765_v34 = vrot.slane %v7235_v19, 7  ;;  %v1426_v38 = vshrl.u32 %v12889_v8, 16  ;;  %v16768_v4 = vrot.slane %v1444_v30, 7  ;;  %v993_v7 = vmax.f32 %v831_v29, 0.0  ;;  %v16782_v30 = vpop.permute.xlu0 %2927 }
 0x1bd   : > { %20077 = vst [vmem:[#allocation37_spill] sm:$0xff] %v16747_v39  ;;  %20079 = vst [vmem:[#allocation29_spill] sm:$0xff] %v16751_v28  ;;  %v7217_v9 = vshrl.u32 %v12949_v44, 16  ;;  %v7220_v54 = vshll.u32 %v12949_v44, 16  ;;  %v7215_v39 = vrot.slane %v16641_v53, 4  ;;  %v1429_v32 = vshll.u32 %v12889_v8, 16 }
 0x1be   : > { %20081 = vst [vmem:[#allocation15_spill] sm:$0xff] %v16755_v36  ;;  %20083 = vst [vmem:[#allocation20_spill] sm:$0xff] %v16761_v43  ;;  %v1021_v36 = vmax.f32 %v943_v59, 0.0  ;;  %v16770_v10 = vrot.slane %v1426_v38, 7  ;;  %v16776_v37 = vcombine.low %v16759_v35, %v16761_v43  ;;  %v12892_v19 = vpack.c.bf16 %v993_v7, %v993_v7  ;;  %v16788_v38 = vld [vmem:[#allocation2 + $0x14] sm:$0xf] }
 0x1bf   : > { %20084 = vst [vmem:[#allocation22_spill] sm:$0xff] %v16763_v22  ;;  %v16772_v28 = vrot.slane %v7217_v9, 7  ;;  %v823_v44 = vadd.f32 %v16510_v21, %v20085_v16  ;;  %v935_v53 = vadd.f32 %v16510_v21, %v20086_v55  ;;  %v7242_v29 = vrot.slane %v16765_v34, 4  ;;  %20087 = vst [vmem:[#allocation39_spill] sm:$0xff] %v16788_v38  ;;  %v16790_v16 = vld [vmem:[#allocation2 + $0x14] sm:$0xf]  ;;  %v16792_v57 = vpop.permute.xlu1 %2938 }
 0x1c0   : > { %v12952_v22 = vpack.c.bf16 %v1021_v36, %v1021_v36  ;;  %v1431_v59 = vor.u32 %v1429_v32, %v16770_v10  ;;  %v2165_v8 = vshrl.u32 %v16673_v63, 16  ;;  %v1453_v7 = vshrl.u32 %v12892_v19, 16  ;;  %20088 = vst [vmem:[#allocation30_spill] sm:$0xff] %v16790_v16  ;;  %v16801_v38 = vld [vmem:[#allocation2 + $0x14] sm:$0xf] }
 0x1c1   : > { %v7222_v9 = vor.u32 %v7220_v54, %v16772_v28  ;;  %v1456_v36 = vshll.u32 %v12892_v19, 16  ;;  %v1528_v54 = vld [vmem:[#allocation2 + $0x88] sm:$0x1]  ;;  %v2169_v63 = vshll.u32 %v16776_v37, 16  ;;  %20090 = vst [vmem:[#allocation84_spill] sm:$0xff] %v16801_v38 }
 0x1c2   : > { %v7244_v43 = vshrl.u32 %v12952_v22, 16  ;;  %v7247_v35 = vshll.u32 %v12952_v22, 16  ;;  %v1432_v55 = vsel %vm16030_vm7, %v1424_v14, %v1431_v59  ;;  %v2167_v18 = vor.u32 %v2165_v8, %v2163_v49  ;;  %v16803_v19 = vld [vmem:[#allocation2 + $0x14] sm:$0xf]  ;;  %v16805_v22 = vld [vmem:[#allocation2 + $0x20] sm:$0xf] }
 0x1c3   : > { %v16798_v32 = vsel %vm16030_vm7, %v7215_v39, %v7222_v9  ;;  %20091 = vst [vmem:[#allocation85_spill] sm:$0xff] %v16803_v19  ;;  %20092 = vst [vmem:[#allocation86_spill] sm:$0xff] %v16805_v22  ;;  %v1455_v16 = vrot.slane %v1453_v7, 7  ;;  %v991_v14 = vmax.f32 %v823_v44, 0.0  ;;  %v1019_v59 = vmax.f32 %v935_v53, 0.0  ;;  %v20095_v49 = vld [vmem:[#allocation21_spill] sm:$0xff] }
 0x1c4   : > { %20089 = vst [vmem:[#allocation83_spill] sm:$0xff] %v16798_v32  ;;  %1524 = vst.msk [vmem:[#allocation2 + $0x78] sm:$0xf] %vm328_vm1, %v1432_v55  ;;  %v16808_v62 = vrot.slane %v7244_v43, 7  ;;  %v16810_v2 = vld [vmem:[#allocation2 + $0x20] sm:$0xf]  ;;  %v16816_v9 = vrot.slane %v20095_v49, %v16650_v56 }
 0x1c5   : > { %20093 = vst [vmem:[#allocation87_spill] sm:$0xff] %v16810_v2  ;;  %v16812_v39 = vld [vmem:[#allocation2 + $0x20] sm:$0xf]  ;;  %v16822_v22 = vld [vmem:[#allocation2 + $0x18] sm:$0xf]  ;;  %v7238_v7 = vshll.u32 %v16701_v25, 16 }
 0x1c6   : > { %20094 = vst [vmem:[#allocation88_spill] sm:$0xff] %v16812_v39  ;;  %20096 = vst [vmem:[#allocation21_spill] sm:$0xff] %v16816_v9  ;;  %v20097_v8 = vld [vmem:[#allocation26_spill] sm:$0xff]  ;;  %v16825_v43 = vrot.slane %v2169_v63, 1  ;;  %v16827_v44 = vld [vmem:[#allocation2 + $0x18] sm:$0xf]  ;;  %v7249_v63 = vor.u32 %v7247_v35, %v16808_v62 }
 0x1c7   : > { %v16820_v19 = vrot.slane %v20097_v8, %v16650_v56  ;;  %20099 = vst [vmem:[#allocation89_spill] sm:$0xff] %v16822_v22  ;;  %v16829_v53 = vld [vmem:[#allocation2 + $0x1c] sm:$0xf]  ;;  %v16831_v55 = vld [vmem:[#allocation2 + $0x18] sm:$0xf]  ;;  %v1451_v22 = vrot.slane %v16768_v4, 4 }
 0x1c8   : > { %20100 = vst [vmem:[#allocation90_spill] sm:$0xff] %v16831_v55  ;;  %v16833_v38 = vld [vmem:[#allocation2 + $0x1c] sm:$0xf]  ;;  %v16837_v39 = vld [vmem:[#allocation2 + $0x20] sm:$0xf]  ;;  %v1460_v25 = vrot.slane %v1455_v16, 4 }
 0x1c9   : > { %20098 = vst [vmem:[#allocation26_spill] sm:$0xff] %v16820_v19  ;;  %20101 = vst [vmem:[#allocation91_spill] sm:$0xff] %v16833_v38  ;;  %v16835_v49 = vld [vmem:[#allocation2 + $0x1c] sm:$0xf]  ;;  %v16839_v8 = vld [vmem:[#allocation2 + $0x14] sm:$0xf]  ;;  %v1458_v19 = vor.u32 %v1456_v36, %v1455_v16  ;;  %v12890_v36 = vpack.c.bf16 %v991_v14, %v991_v14  ;;  %v12950_v16 = vpack.c.bf16 %v1019_v59, %v1019_v59 }
 0x1ca   : > { %20102 = vst [vmem:[#allocation92_spill] sm:$0xff] %v16835_v49  ;;  %20103 = vst [vmem:[#allocation93_spill] sm:$0xff] %v16837_v39  ;;  %v16843_v9 = vld [vmem:[#allocation2 + $0x18] sm:$0xf]  ;;  %v16845_v2 = vld [vmem:[#allocation2 + $0x20] sm:$0xf]  ;;  %v16853_v39 = vpop.permute.xlu0 %2949  ;;  %v16875_v14 = vsel %vm16030_vm7, %v7242_v29, %v7249_v63  ;;  %v7240_v63 = vor.u32 %v7238_v7, %v16765_v34 }
 0x1cb   : > { %20104 = vst [vmem:[#allocation94_spill] sm:$0xff] %v16839_v8  ;;  %20105 = vst [vmem:[#allocation95_spill] sm:$0xff] %v16843_v9  ;;  %v20107_v32 = vld [vmem:[#allocation18_spill] sm:$0xff]  ;;  %v20108_v38 = vld [vmem:[#allocation23_spill] sm:$0xff]  ;;  %v2172_v8 = vsel %vm2104_vm8, %v2167_v18, %v16825_v43  ;;  %v1529_v18 = vsel %vm15946_vm3, %v1460_v25, %v1528_v54  ;;  %v1435_v29 = vshrl.u32 %v12890_v36, 16  ;;  %v7226_v54 = vshrl.u32 %v12950_v16, 16 }
 0x1cc   : > { %20106 = vst [vmem:[#allocation96_spill] sm:$0xff] %v16845_v2  ;;  %7326 = vst.msk [vmem:[#allocation2 + $0x14] sm:$0xf] %vm328_vm1, %v20107_v32  ;;  %v16851_v49 = vrot.slane %v20108_v38, %v16650_v56  ;;  %v16857_v55 = vld [vmem:[#allocation2 + $0x1c] sm:$0xf]  ;;  %v20113_v32 = vld [vmem:[#allocation33_spill] sm:$0xff]  ;;  %v1459_v2 = vsel %vm16030_vm7, %v1451_v22, %v1458_v19  ;;  %13838 = vmatmul.mubr.msk.bf16.gmra.mrb[44].mxu1 %vm2249_vm9, %v2172_v8  ;;  %v16888_v22 = vpop.permute.xlu1 %2960  ;;  %v2958_v15 = vrot.slane %v16853_v39, %v16650_v56 }
 0x1cd   : > { %20110 = vst [vmem:[#allocation23_spill] sm:$0xff] %v16857_v55  ;;  %7329 = vst.msk [vmem:[#allocation2 + $0x20] sm:$0xf] %vm328_vm1, %v16368_v46  ;;  %v16861_v35 = vld [vmem:[#allocation2 + $0x18] sm:$0xf]  ;;  %v16867_v38 = vrot.slane %v20113_v32, %v16650_v56  ;;  %v20118_v59 = vld [vmem:[#allocation27_spill] sm:$0xff] }
 0x1ce   : > { %20109 = vst [vmem:[#allocation18_spill] sm:$0xff] %v16851_v49  ;;  %20111 = vst [vmem:[#allocation97_spill] sm:$0xff] %v16861_v35  ;;  %v16863_v9 = vld [vmem:[#allocation2 + $0x1c] sm:$0xf]  ;;  %v16878_v46 = vld [vmem:[#allocation2 + $0x4c] sm:$0xf]  ;;  %v16886_v19 = vrot.slane %v20118_v59, %v16650_v56 }
 0x1cf   : > { %20112 = vst [vmem:[#allocation98_spill] sm:$0xff] %v16863_v9  ;;  %20114 = vst [vmem:[#allocation33_spill] sm:$0xff] %v16867_v38  ;;  %v7229_v8 = vshll.u32 %v12950_v16, 16  ;;  %v1447_v25 = vshll.u32 %v16699_v51, 16  ;;  %v1438_v32 = vshll.u32 %v12890_v36, 16  ;;  %v1437_v35 = vrot.slane %v1435_v29, 7 }
 0x1d0   : > { %20116 = vst [vmem:[#allocation9_spill] sm:$0xff] %v16875_v14  ;;  %20117 = vst [vmem:[#allocation99_spill] sm:$0xff] %v16878_v46  ;;  %v7228_v59 = vrot.slane %v7226_v54, 7  ;;  %v20121_v9 = vld [vmem:[#allocation36_spill] sm:$0xff]  ;;  %v20122_v16 = vld [vmem:[#allocation34_spill] sm:$0xff]  ;;  %v1433_v7 = vrot.slane %v16770_v10, 4  ;;  %v16918_v54 = vpop.permute.xlu0 %2971 }
 0x1d1   : > { %7327 = vst.msk [vmem:[#allocation2 + $0x18] sm:$0xf] %vm328_vm1, %v16325_v26  ;;  %7328 = vst.msk [vmem:[#allocation2 + $0x1c] sm:$0xf] %vm328_vm1, %v16364_v61  ;;  %v7224_v26 = vrot.slane %v16772_v28, 4  ;;  %v956_v55 = vadd.f32 %v16510_v21, %v20121_v9  ;;  %v16904_v51 = vrot.slane %v20122_v16, %v16650_v56  ;;  %v16908_v28 = vrot.slane %v16315_v0, %v16650_v56 }
 0x1d2   : > { %20119 = vst [vmem:[#allocation27_spill] sm:$0xff] %v16886_v19  ;;  %1527 = vst.msk [vmem:[#allocation2 + $0x84] sm:$0xf] %vm328_vm1, %v1459_v2  ;;  %v16894_v61 = vld [vmem:[#allocation2 + $0x48] sm:$0xf]  ;;  %v1449_v34 = vor.u32 %v1447_v25, %v16768_v4  ;;  %v1440_v19 = vor.u32 %v1438_v32, %v1437_v35  ;;  %v7231_v16 = vor.u32 %v7229_v8, %v7228_v59  ;;  %v2173_v4 = vshrl.u32 %v16776_v37, 16 }
 0x1d3   : > { %1530 = vst [vmem:[#allocation2 + $0x88] sm:$0x1] %v1529_v18  ;;  %20120 = vst [vmem:[#allocation100_spill] sm:$0xff] %v16894_v61  ;;  %v11980_v2 = vcombine.low %v16894_v61, %v16878_v46  ;;  %v16900_v18 = vld [vmem:[#allocation2 + $0x10] sm:$0xf]  ;;  %v1442_v46 = vrot.slane %v1437_v35, 4 }
 0x1d4   : > { %20123 = vst [vmem:[#allocation36_spill] sm:$0xff] %v16904_v51  ;;  %20124 = vst [vmem:[#allocation34_spill] sm:$0xff] %v16908_v28  ;;  %v16912_v36 = vld [vmem:[#allocation2 + $0x54] sm:$0xf]  ;;  %v16914_v9 = vld [vmem:[#allocation2 + $0x10] sm:$0xf]  ;;  %v1441_v35 = vsel %vm16030_vm7, %v1433_v7, %v1440_v19  ;;  %v16937_v32 = vsel %vm16030_vm7, %v7224_v26, %v7231_v16  ;;  %v2175_v19 = vor.u32 %v2173_v4, %v16825_v43 }
 0x1d5   : > { %20125 = vst [vmem:[#allocation101_spill] sm:$0xff] %v16912_v36  ;;  %20126 = vst [vmem:[#allocation102_spill] sm:$0xff] %v16914_v9  ;;  %v16916_v29 = vld [vmem:[#allocation2 + $0x10] sm:$0xf]  ;;  %v7233_v51 = vrot.slane %v7228_v59, 4  ;;  %v1024_v28 = vmax.f32 %v956_v55, 0.0  ;;  %v1450_v8 = vsel %vm16030_vm7, %v1442_v46, %v1449_v34 }
 0x1d6   : > { %20127 = vst [vmem:[#allocation103_spill] sm:$0xff] %v16916_v29  ;;  %v16920_v61 = vld [vmem:[#allocation2 + $0x10] sm:$0xf]  ;;  %v2177_v10 = vshll.u32 %v11980_v2, 16  ;;  %v20130_v25 = vld [vmem:[#allocation38_spill] sm:$0xff]  ;;  %v16929_v29 = vpop.permute.xlu1 %2982  ;;  %20132 = vst [vmem:[#allocation106_spill] sm:$0xff] %v16937_v32 }
 0x1d7   : > { %20128 = vst [vmem:[#allocation104_spill] sm:$0xff] %v16920_v61  ;;  %v16922_v0 = vld [vmem:[#allocation2 + $0x10] sm:$0xf]  ;;  %v948_v38 = vadd.f32 %v16510_v21, %v20130_v25  ;;  %v16941_v37 = vsel %vm16030_vm7, %v7233_v51, %v7240_v63  ;;  %1525 = vst.msk [vmem:[#allocation2 + $0x7c] sm:$0xf] %vm328_vm1, %v1441_v35  ;;  %v12955_v59 = vpack.c.bf16 %v1024_v28, %v1024_v28  ;;  %v20135_v34 = vld [vmem:[#allocation19_spill] sm:$0xff] }
 0x1d8   : > { %20129 = vst [vmem:[#allocation105_spill] sm:$0xff] %v16922_v0  ;;  %v16927_v9 = vld [vmem:[#allocation2 + $0x50] sm:$0xf]  ;;  %20133 = vst [vmem:[#allocation107_spill] sm:$0xff] %v16941_v37  ;;  %v2179_v7 = vrot.slane %v2177_v10, 1  ;;  %v2181_v16 = vshrl.u32 %v11980_v2, 16  ;;  %v16973_v2 = vrot.slane %v16347_v42, %v16650_v56 }
 0x1d9   : > { %20131 = vst [vmem:[#allocation38_spill] sm:$0xff] %v16927_v9  ;;  %v16943_v55 = vld [vmem:[#allocation2 + $0x10] sm:$0xe]  ;;  %1526 = vst.msk [vmem:[#allocation2 + $0x80] sm:$0xf] %vm328_vm1, %v1450_v8  ;;  %v1022_v25 = vmax.f32 %v948_v38, 0.0  ;;  %v16956_v51 = vcombine.low %v16927_v9, %v16912_v36  ;;  %v2936_v38 = vrot.slane %v16782_v30, %v16650_v56 }
 0x1da   : > { %20134 = vst [vmem:[#allocation108_spill] sm:$0xff] %v16943_v55  ;;  %v16948_v46 = vld [vmem:[#allocation2 + $0x24] sm:$0xf]  ;;  %7325 = vst.msk [vmem:[#allocation2 + $0x10] sm:$0xf] %vm328_vm1, %v20135_v34  ;;  %v20136_v26 = vld [vmem:[#allocation40_spill] sm:$0xff]  ;;  %v2180_v10 = vsel %vm2104_vm8, %v2175_v19, %v2179_v7  ;;  %v2183_v0 = vor.u32 %v2181_v16, %v2179_v7  ;;  %v2947_v19 = vrot.slane %v16792_v57, %v16650_v56  ;;  %v16983_v61 = vpop.permute.xlu1 %3004 }
 0x1db   : > { %v959_v63 = vadd.f32 %v16510_v21, %v20136_v26  ;;  %v20137_v35 = vld [vmem:[#allocation41_spill] sm:$0xff]  ;;  %v16960_v8 = vld [vmem:[#allocation2 + $0x24] sm:$0xf]  ;;  %v7271_v4 = vshrl.u32 %v12955_v59, 16  ;;  %v12953_v34 = vpack.c.bf16 %v1022_v25, %v1022_v25  ;;  %20142 = vst [vmem:[#allocation110_spill] sm:$0xff] %v16973_v2  ;;  %13841 = vmatprep.mubr.msk.bf16.mxu1 %vm2249_vm9, %v2180_v10  ;;  %v2185_v30 = vshll.u32 %v16956_v51, 16 }
 0x1dc   : > { %v951_v28 = vadd.f32 %v16510_v21, %v20137_v35  ;;  %20138 = vst [vmem:[#allocation19_spill] sm:$0xff] %v16960_v8  ;;  %v16962_v43 = vld [vmem:[#allocation2 + $0x24] sm:$0xf]  ;;  %v16975_v21 = vpop.permute.xlu0 %2993  ;;  %v16985_v10 = vrot.slane %v2936_v38, 7  ;;  %v7251_v7 = vrot.slane %v16808_v62, 4 }
 0x1dd   : > { %20139 = vst [vmem:[#allocation40_spill] sm:$0xff] %v16962_v43  ;;  %v16967_v26 = vld [vmem:[#allocation2 + $0x24] sm:$0xf]  ;;  %v1025_v35 = vmax.f32 %v959_v63, 0.0  ;;  %v7253_v25 = vshrl.u32 %v12953_v34, 16  ;;  %v7273_v42 = vrot.slane %v7271_v4, 7 }
 0x1de   : > { %20140 = vst [vmem:[#allocation41_spill] sm:$0xff] %v16967_v26  ;;  %v16969_v55 = vld [vmem:[#allocation2 + $0x24] sm:$0xf]  ;;  %v1023_v26 = vmax.f32 %v951_v28, 0.0  ;;  %v7274_v43 = vshll.u32 %v12955_v59, 16  ;;  %v2187_v2 = vrot.slane %v2185_v30, 1 }
 0x1df   : > { %20141 = vst [vmem:[#allocation109_spill] sm:$0xff] %v16969_v55  ;;  %7330 = vst.msk [vmem:[#allocation2 + $0x24] sm:$0xf] %vm328_vm1, %v16336_v41  ;;  %v7256_v55 = vshll.u32 %v12953_v34, 16  ;;  %v12956_v8 = vpack.c.bf16 %v1025_v35, %v1025_v35  ;;  %v7255_v63 = vrot.slane %v7253_v25, 7  ;;  %v2969_v41 = vrot.slane %v16888_v22, %v16650_v56 }
 0x1e0   : > { %20143 = vst [vmem:[#allocation111_spill] sm:$0xff] %v16985_v10  ;;  %v12954_v16 = vpack.c.bf16 %v1023_v26, %v1023_v26  ;;  %v16988_v36 = vld [vmem:[#allocation2 + $0x5c] sm:$0xf]  ;;  %v2188_v28 = vsel %vm2104_vm8, %v2183_v0, %v2187_v2  ;;  %v16993_v9 = vld [vmem:[#allocation2 + $0x60] sm:$0xf]  ;;  %v16997_v4 = vrot.slane %v2947_v19, 7  ;;  %v17002_v30 = vpop.permute.xlu0 %3015  ;;  %v7276_v22 = vor.u32 %v7274_v43, %v7273_v42 }
 0x1e1   : > { %20144 = vst [vmem:[#allocation112_spill] sm:$0xff] %v16988_v36  ;;  %v7280_v57 = vshrl.u32 %v12956_v8, 16  ;;  %v7283_v34 = vshll.u32 %v12956_v8, 16  ;;  %20145 = vst [vmem:[#allocation113_spill] sm:$0xff] %v16993_v9  ;;  %v16995_v59 = vld [vmem:[#allocation2 + $0x64] sm:$0xf]  ;;  %v7258_v38 = vor.u32 %v7256_v55, %v7255_v63  ;;  %13842 = vmatmul.mubr.msk.bf16.gmra.mrb[48].mxu1 %vm2249_vm9, %v2188_v28 }
 0x1e2   : > { %20146 = vst [vmem:[#allocation114_spill] sm:$0xff] %v16995_v59  ;;  %v7262_v62 = vshrl.u32 %v12954_v16, 16  ;;  %v7265_v26 = vshll.u32 %v12954_v16, 16  ;;  %v17000_v35 = vld [vmem:[#allocation2 + $0x58] sm:$0xf]  ;;  %v7278_v25 = vrot.slane %v7273_v42, 4  ;;  %v17020_v43 = vcombine.low %v16993_v9, %v16995_v59 }
 0x1e3   : > { %20147 = vst [vmem:[#allocation115_spill] sm:$0xff] %v17000_v35  ;;  %v17004_v8 = vrot.slane %v7280_v57, 7  ;;  %v11982_v0 = vcombine.low %v17000_v35, %v16988_v36  ;;  %v17008_v37 = vld [vmem:[#allocation2 + $0x28] sm:$0xf]  ;;  %v17016_v16 = vsel %vm16030_vm7, %v7251_v7, %v7258_v38  ;;  %v7260_v28 = vrot.slane %v7255_v63, 4  ;;  %v17036_v63 = vpop.permute.xlu1 %3026 }
 0x1e4   : > { %20148 = vst [vmem:[#allocation116_spill] sm:$0xff] %v17008_v37  ;;  %v17010_v19 = vld [vmem:[#allocation2 + $0x28] sm:$0xf]  ;;  %20151 = vst [vmem:[#allocation119_spill] sm:$0xff] %v17016_v16  ;;  %v7264_v32 = vrot.slane %v7262_v62, 7  ;;  %v17034_v7 = vrot.slane %v2969_v41, 7 }
 0x1e5   : > { %20149 = vst [vmem:[#allocation117_spill] sm:$0xff] %v17010_v19  ;;  %v17012_v55 = vld [vmem:[#allocation2 + $0x28] sm:$0xf]  ;;  %v17022_v42 = vld [vmem:[#allocation2 + $0x6c] sm:$0xf]  ;;  %v7285_v38 = vor.u32 %v7283_v34, %v17004_v8  ;;  %v2189_v62 = vshrl.u32 %v16956_v51, 16 }
 0x1e6   : > { %20150 = vst [vmem:[#allocation118_spill] sm:$0xff] %v17012_v55  ;;  %v17024_v57 = vld [vmem:[#allocation2 + $0x2c] sm:$0xf]  ;;  %v20155_v55 = vld [vmem:[#allocation42_spill] sm:$0xff]  ;;  %v17040_v16 = vld [vmem:[#allocation2 + $0x70] sm:$0xf]  ;;  %v7267_v34 = vor.u32 %v7265_v26, %v7264_v32 }
 0x1e7   : > { %20152 = vst [vmem:[#allocation120_spill] sm:$0xff] %v17024_v57  ;;  %v17026_v36 = vld [vmem:[#allocation2 + $0x2c] sm:$0xf]  ;;  %v17032_v19 = vrot.slane %v20155_v55, %v16650_v56  ;;  %v17042_v59 = vld [vmem:[#allocation2 + $0x74] sm:$0xf]  ;;  %v7269_v51 = vrot.slane %v7264_v32, 4 }
 0x1e8   : > { %20153 = vst [vmem:[#allocation121_spill] sm:$0xff] %v17026_v36  ;;  %v17028_v37 = vld [vmem:[#allocation2 + $0x2c] sm:$0xf]  ;;  %v17044_v9 = vld [vmem:[#allocation2 + $0x30] sm:$0xf]  ;;  %v2193_v35 = vshll.u32 %v11982_v0, 16 }
 0x1e9   : > { %20154 = vst [vmem:[#allocation122_spill] sm:$0xff] %v17028_v37  ;;  %20156 = vst [vmem:[#allocation42_spill] sm:$0xff] %v17032_v19  ;;  %v17046_v36 = vld [vmem:[#allocation2 + $0x30] sm:$0xf]  ;;  %v17050_v55 = vld [vmem:[#allocation2 + $0x28] sm:$0xf]  ;;  %v17056_v19 = vrot.slane %v16375_v40, %v16650_v56 }
 0x1ea   : > { %20157 = vst [vmem:[#allocation123_spill] sm:$0xff] %v17046_v36  ;;  %v17048_v37 = vld [vmem:[#allocation2 + $0x30] sm:$0xf]  ;;  %20159 = vst [vmem:[#allocation125_spill] sm:$0xff] %v17050_v55  ;;  %v17052_v41 = vld [vmem:[#allocation2 + $0x28] sm:$0xf]  ;;  %v2191_v55 = vor.u32 %v2189_v62, %v2187_v2  ;;  %v17088_v2 = vsel %vm16030_vm7, %v7269_v51, %v7276_v22 }
 0x1eb   : > { %20158 = vst [vmem:[#allocation124_spill] sm:$0xff] %v17048_v37  ;;  %20160 = vst [vmem:[#allocation126_spill] sm:$0xff] %v17052_v41  ;;  %v17058_v57 = vld [vmem:[#allocation2 + $0x2c] sm:$0xf]  ;;  %v2980_v37 = vrot.slane %v16918_v54, %v16650_v56  ;;  %v17068_v41 = vsel %vm16030_vm7, %v7278_v25, %v7285_v38  ;;  %v2197_v40 = vshrl.u32 %v11982_v0, 16  ;;  %v17084_v54 = vsel %vm16030_vm7, %v7260_v28, %v7267_v34 }
 0x1ec   : > { %20161 = vst [vmem:[#allocation127_spill] sm:$0xff] %v17056_v19  ;;  %20162 = vst [vmem:[#allocation128_spill] sm:$0xff] %v17058_v57  ;;  %v17060_v14 = vld [vmem:[#allocation2 + $0x2c] sm:$0xf]  ;;  %v17070_v19 = vld [vmem:[#allocation2 + $0x34] sm:$0xf]  ;;  %v17103_v28 = vrot.slane %v16401_v5, %v16650_v56 }
 0x1ed   : > { %20163 = vst [vmem:[#allocation129_spill] sm:$0xff] %v17060_v14  ;;  %7331 = vst.msk [vmem:[#allocation2 + $0x28] sm:$0xf] %vm328_vm1, %v16387_v33  ;;  %v17072_v32 = vld [vmem:[#allocation2 + $0x34] sm:$0xf]  ;;  %v2195_v25 = vrot.slane %v2193_v35, 1  ;;  %v17107_v35 = vpop.permute.xlu0 %3037 }
 0x1ee   : > { %20164 = vst [vmem:[#allocation130_spill] sm:$0xff] %v17072_v32  ;;  %v17074_v26 = vld [vmem:[#allocation2 + $0x34] sm:$0xf]  ;;  %v17076_v57 = vld [vmem:[#allocation2 + $0x30] sm:$0xf]  ;;  %v2201_v0 = vshll.u32 %v17020_v43, 16 }
 0x1ef   : > { %20165 = vst [vmem:[#allocation131_spill] sm:$0xff] %v17074_v26  ;;  %20166 = vst [vmem:[#allocation132_spill] sm:$0xff] %v17076_v57  ;;  %v17080_v33 = vld [vmem:[#allocation2 + $0x30] sm:$0xf]  ;;  %v17091_v38 = vld [vmem:[#allocation2 + $0x68] sm:$0xf]  ;;  %v2196_v14 = vsel %vm2104_vm8, %v2191_v55, %v2195_v25  ;;  %v2199_v39 = vor.u32 %v2197_v40, %v2195_v25  ;;  %v11985_v26 = vcombine.low %v17040_v16, %v17042_v59  ;;  %v17142_v25 = vpop.permute.xlu1 %3048 }
 0x1f0   : > { %7332 = vst.msk [vmem:[#allocation2 + $0x2c] sm:$0xf] %vm328_vm1, %v16411_v60  ;;  %20167 = vst [vmem:[#allocation133_spill] sm:$0xff] %v17080_v33  ;;  %v17093_v62 = vld [vmem:[#allocation2 + $0x7c] sm:$0xf]  ;;  %v17099_v60 = vrot.slane %v16349_v45, %v16650_v56  ;;  %v11984_v22 = vcombine.low %v17091_v38, %v17022_v42  ;;  %v2203_v57 = vrot.slane %v2201_v0, 1  ;;  %13845 = vmatprep.mubr.msk.bf16.mxu1 %vm2249_vm9, %v2196_v14 }
 0x1f1   : > { %7333 = vst.msk [vmem:[#allocation2 + $0x30] sm:$0xf] %vm328_vm1, %v16415_v48  ;;  %20169 = vst [vmem:[#allocation135_spill] sm:$0xff] %v17103_v28  ;;  %v17111_v34 = vld [vmem:[#allocation2 + $0x78] sm:$0xf]  ;;  %v20181_v55 = vld [vmem:[#allocation43_spill] sm:$0xff]  ;;  %v2991_v14 = vrot.slane %v16929_v29, %v16650_v56 }
 0x1f2   : > { %20168 = vst [vmem:[#allocation134_spill] sm:$0xff] %v17099_v60  ;;  %v17113_v51 = vld [vmem:[#allocation2 + $0x38] sm:$0xf]  ;;  %v17119_v33 = vld [vmem:[#allocation2 + $0x34] sm:$0xf]  ;;  %v17140_v40 = vrot.slane %v20181_v55, %v16650_v56  ;;  %v2205_v0 = vshrl.u32 %v17020_v43, 16  ;;  %v2204_v43 = vsel %vm2104_vm8, %v2199_v39, %v2203_v57 }
 0x1f3   : > { %20170 = vst [vmem:[#allocation136_spill] sm:$0xff] %v17113_v51  ;;  %v17115_v48 = vld [vmem:[#allocation2 + $0x38] sm:$0xf]  ;;  %20173 = vst [vmem:[#allocation139_spill] sm:$0xff] %v17119_v33  ;;  %v17121_v5 = vld [vmem:[#allocation2 + $0x34] sm:$0xf]  ;;  %13846 = vmatmul.mubr.msk.bf16.gmra.mrb[52].mxu1 %vm2249_vm9, %v2204_v43 }
 0x1f4   : > { %20171 = vst [vmem:[#allocation137_spill] sm:$0xff] %v17115_v48  ;;  %v17117_v45 = vld [vmem:[#allocation2 + $0x38] sm:$0xf]  ;;  %20174 = vst [vmem:[#allocation140_spill] sm:$0xff] %v17121_v5  ;;  %v17126_v60 = vld [vmem:[#allocation2 + $0x44] sm:$0xf] }
 0x1f5   : > { %20172 = vst [vmem:[#allocation138_spill] sm:$0xff] %v17117_v45  ;;  %20175 = vst [vmem:[#allocation141_spill] sm:$0xff] %v17126_v60  ;;  %v17128_v28 = vld [vmem:[#allocation2 + $0x44] sm:$0xf]  ;;  %v17132_v48 = vld [vmem:[#allocation2 + $0x38] sm:$0xf] }
 0x1f6   : > { %20176 = vst [vmem:[#allocation142_spill] sm:$0xff] %v17128_v28  ;;  %v17130_v32 = vld [vmem:[#allocation2 + $0x44] sm:$0xf]  ;;  %20178 = vst [vmem:[#allocation144_spill] sm:$0xff] %v17132_v48  ;;  %v2209_v5 = vshll.u32 %v11984_v22, 16  ;;  %v2217_v36 = vshll.u32 %v11985_v26, 16 }
 0x1f7   : > { %20177 = vst [vmem:[#allocation143_spill] sm:$0xff] %v17130_v32  ;;  %v17134_v45 = vld [vmem:[#allocation2 + $0x44] sm:$0xf]  ;;  %v17148_v32 = vcombine.low %v17111_v34, %v17093_v62  ;;  %v17150_v48 = vld [vmem:[#allocation2 + $0x3c] sm:$0xf] }
 0x1f8   : > { %20179 = vst [vmem:[#allocation145_spill] sm:$0xff] %v17134_v45  ;;  %v20180_v33 = vld [vmem:[#allocation47_spill] sm:$0xff]  ;;  %20183 = vst [vmem:[#allocation43_spill] sm:$0xff] %v17150_v48  ;;  %v17152_v45 = vld [vmem:[#allocation2 + $0x3c] sm:$0xf]  ;;  %v2211_v29 = vrot.slane %v2209_v5, 1 }
 0x1f9   : > { %7334 = vst.msk [vmem:[#allocation2 + $0x34] sm:$0xf] %vm328_vm1, %v20180_v33  ;;  %20182 = vst [vmem:[#allocation47_spill] sm:$0xff] %v17140_v40  ;;  %v17154_v33 = vld [vmem:[#allocation2 + $0x3c] sm:$0xf]  ;;  %v17160_v40 = vrot.slane %v2980_v37, 7  ;;  %v2207_v37 = vor.u32 %v2205_v0, %v2203_v57 }
 0x1fa   : > { %20184 = vst [vmem:[#allocation146_spill] sm:$0xff] %v17152_v45  ;;  %20185 = vst [vmem:[#allocation147_spill] sm:$0xff] %v17154_v33  ;;  %v17156_v28 = vld [vmem:[#allocation2 + $0x3c] sm:$0xf]  ;;  %v17158_v55 = vld [vmem:[#allocation2 + $0x38] sm:$0xf] }
 0x1fb   : > { %20186 = vst [vmem:[#allocation148_spill] sm:$0xff] %v17156_v28  ;;  %20187 = vst [vmem:[#allocation149_spill] sm:$0xff] %v17158_v55  ;;  %v17165_v60 = vld [vmem:[#allocation2 + $0x80] sm:$0x1]  ;;  %v17175_v55 = vld [vmem:[#allocation2 + $0x44] sm:$0xf] }
 0x1fc   : > { %v17167_v51 = vld [vmem:[#allocation2 + $0x40] sm:$0xf]  ;;  %7335 = vst.msk [vmem:[#allocation2 + $0x38] sm:$0xf] %vm328_vm1, %v16485_v24  ;;  %20190 = vst [vmem:[#allocation152_spill] sm:$0xff] %v17175_v55  ;;  %v2213_v28 = vshrl.u32 %v11984_v22, 16  ;;  %v3013_v24 = vrot.slane %v16983_v61, %v16650_v56  ;;  %v17195_v22 = vpop.permute.xlu0 %3059  ;;  %v11987_v0 = vcombine.low %v17165_v60, %v17165_v60 }
 0x1fd   : > { %v17169_v48 = vld [vmem:[#allocation2 + $0x40] sm:$0xf]  ;;  %v2225_v39 = vshll.u32 %v17148_v32, 16  ;;  %v17179_v33 = vld [vmem:[#allocation2 + $0x3c] sm:$0xf]  ;;  %v2219_v55 = vrot.slane %v2217_v36, 1 }
 0x1fe   : > { %20188 = vst [vmem:[#allocation150_spill] sm:$0xff] %v17169_v48  ;;  %v17171_v45 = vld [vmem:[#allocation2 + $0x40] sm:$0xf]  ;;  %20191 = vst [vmem:[#allocation153_spill] sm:$0xff] %v17179_v33  ;;  %v17183_v48 = vrot.slane %v2958_v15, 7  ;;  %v2215_v15 = vor.u32 %v2213_v28, %v2211_v29  ;;  %v2221_v5 = vshrl.u32 %v11985_v26, 16 }
 0x1ff   : > { %20189 = vst [vmem:[#allocation151_spill] sm:$0xff] %v17171_v45  ;;  %7338 = vst.msk [vmem:[#allocation2 + $0x44] sm:$0xf] %vm328_vm1, %v16493_v3  ;;  %v3002_v45 = vrot.slane %v16975_v21, %v16650_v56  ;;  %v17189_v43 = vld [vmem:[#allocation2 + $0x40] sm:$0xf]  ;;  %v2212_v3 = vsel %vm2104_vm8, %v2207_v37, %v2211_v29  ;;  %v2227_v21 = vrot.slane %v2225_v39, 1  ;;  %v17210_v37 = vpop.permute.xlu1 %3070 }
 0x200   : > { %20192 = vst [vmem:[#allocation154_spill] sm:$0xff] %v17189_v43  ;;  %7336 = vst.msk [vmem:[#allocation2 + $0x3c] sm:$0xf] %vm328_vm1, %v16537_v11  ;;  %v17193_v57 = vld [vmem:[#allocation2 + $0x40] sm:$0xf]  ;;  %13849 = vmatprep.mubr.msk.bf16.mxu1 %vm2249_vm9, %v2212_v3  ;;  %v17208_v26 = vrot.slane %v2991_v14, 7 }
 0x201   : > { %20193 = vst [vmem:[#allocation155_spill] sm:$0xff] %v17193_v57  ;;  %7337 = vst.msk [vmem:[#allocation2 + $0x40] sm:$0xf] %vm328_vm1, %v16541_v12  ;;  %v2223_v12 = vor.u32 %v2221_v5, %v2219_v55  ;;  %v17212_v29 = vld [vmem:[#allocation2 + $0x48] sm:$0xf]  ;;  %v20196_v11 = vld [vmem:[#allocation50_spill] sm:$0xff]  ;;  %v2220_v57 = vsel %vm2104_vm8, %v2215_v15, %v2219_v55 }
 0x202   : > { %20194 = vst [vmem:[#allocation156_spill] sm:$0xff] %v17212_v29  ;;  %v17214_v39 = vld [vmem:[#allocation2 + $0x48] sm:$0xf]  ;;  %v17218_v36 = vrot.slane %v20196_v11, %v16650_v56  ;;  %v17220_v3 = vrot.slane %v3002_v45, 7  ;;  %v17222_v61 = vrot.slane %v3013_v24, 7  ;;  %v20202_v43 = vld [vmem:[#allocation46_spill] sm:$0xff]  ;;  %v3024_v24 = vrot.slane %v17002_v30, %v16650_v56  ;;  %13850 = vmatmul.mubr.msk.bf16.gmra.mrb[56].mxu1 %vm2249_vm9, %v2220_v57 }
 0x203   : > { %20195 = vst [vmem:[#allocation157_spill] sm:$0xff] %v17214_v39  ;;  %v17225_v28 = vld [vmem:[#allocation2 + $0x54] sm:$0xf]  ;;  %v17229_v33 = vld [vmem:[#allocation2 + $0x48] sm:$0xf]  ;;  %v17235_v29 = vrot.slane %v20202_v43, %v16650_v56  ;;  %v20204_v11 = vld [vmem:[#allocation52_spill] sm:$0xff]  ;;  %v2228_v55 = vsel %vm2104_vm8, %v2223_v12, %v2227_v21 }
 0x204   : > { %20197 = vst [vmem:[#allocation50_spill] sm:$0xff] %v17218_v36  ;;  %20198 = vst [vmem:[#allocation158_spill] sm:$0xff] %v17225_v28  ;;  %v17227_v14 = vld [vmem:[#allocation2 + $0x54] sm:$0xf]  ;;  %v17239_v45 = vrot.slane %v20204_v11, %v16650_v56  ;;  %v17244_v15 = vld [vmem:[#allocation2] sm:$0xf]  ;;  %13853 = vmatprep.mubr.msk.bf16.mxu1 %vm2249_vm9, %v2228_v55 }
 0x205   : > { %20199 = vst [vmem:[#allocation159_spill] sm:$0xff] %v17227_v14  ;;  %20200 = vst [vmem:[#allocation160_spill] sm:$0xff] %v17229_v33  ;;  %v17231_v5 = vld [vmem:[#allocation2 + $0x54] sm:$0xf]  ;;  %v17246_v28 = vld [vmem:[#allocation2 + $0x4] sm:$0xf] }
 0x206   : > { %20201 = vst [vmem:[#allocation161_spill] sm:$0xff] %v17231_v5  ;;  %20203 = vst [vmem:[#allocation46_spill] sm:$0xff] %v17235_v29  ;;  %v17248_v33 = vld [vmem:[#allocation2 + $0x4c] sm:$0xf]  ;;  %v17250_v5 = vld [vmem:[#allocation2 + $0x50] sm:$0xf] }
 0x207   : > { %20205 = vst [vmem:[#allocation52_spill] sm:$0xff] %v17239_v45  ;;  %20206 = vst [vmem:[#allocation162_spill] sm:$0xff] %v17248_v33  ;;  %v17252_v36 = vld [vmem:[#allocation2 + $0x4c] sm:$0xf]  ;;  %v17254_v43 = vld [vmem:[#allocation2 + $0x50] sm:$0xf] }
 0x208   : > { %20207 = vst [vmem:[#allocation163_spill] sm:$0xff] %v17250_v5  ;;  %20208 = vst [vmem:[#allocation164_spill] sm:$0xff] %v17254_v43  ;;  %v17256_v29 = vld [vmem:[#allocation2 + $0x4c] sm:$0xf]  ;;  %v17258_v11 = vld [vmem:[#allocation2 + $0x50] sm:$0xf]  ;;  %v17272_v5 = vrot.slane %v16499_v50, %v16650_v56  ;;  %v3035_v50 = vrot.slane %v17036_v63, %v16650_v56  ;;  %v3068_v63 = vrot.slane %v17195_v22, %v16650_v56 }
 0x209   : > { %20209 = vst [vmem:[#allocation165_spill] sm:$0xff] %v17256_v29  ;;  %20210 = vst [vmem:[#allocation166_spill] sm:$0xff] %v17258_v11  ;;  %v17260_v45 = vld [vmem:[#allocation2 + $0x48] sm:$0xf]  ;;  %v17262_v30 = vld [vmem:[#allocation2 + $0x54] sm:$0xf]  ;;  %v3046_v22 = vrot.slane %v17107_v35, %v16650_v56 }
 0x20a   : > { %20211 = vst [vmem:[#allocation167_spill] sm:$0xff] %v17260_v45  ;;  %20212 = vst [vmem:[#allocation168_spill] sm:$0xff] %v17262_v30  ;;  %v17264_v12 = vld [vmem:[#allocation2 + $0x48] sm:$0xf]  ;;  %v2229_v33 = vshrl.u32 %v17148_v32, 16  ;;  %v2233_v43 = vshll.u32 %v11987_v0, 16  ;;  %v3057_v32 = vrot.slane %v17142_v25, %v16650_v56  ;;  %v3082_v0 = vpop.permute.xlu0 %3081  ;;  %v3079_v25 = vrot.slane %v17210_v37, %v16650_v56 }
 0x20b   : > { %20213 = vst [vmem:[#allocation169_spill] sm:$0xff] %v17264_v12  ;;  %v20214_v14 = vld [vmem:[#allocation51_spill] sm:$0xff]  ;;  %20216 = vst [vmem:[#allocation170_spill] sm:$0xff] %v17272_v5  ;;  %v17275_v29 = vld [vmem:[#allocation2 + $0x4c] sm:$0xf]  ;;  %v17331_v35 = vrot.slane %v3035_v50, 7 }
 0x20c   : > { %v17268_v39 = vrot.slane %v20214_v14, %v16650_v56  ;;  %20217 = vst [vmem:[#allocation171_spill] sm:$0xff] %v17275_v29  ;;  %7339 = vst.msk [vmem:[#allocation2 + $0x48] sm:$0xf] %vm328_vm1, %v16551_v13  ;;  %v17279_v45 = vld [vmem:[#allocation2 + $0x54] sm:$0xf]  ;;  %v17285_v14 = vrot.slane %v16522_v58, %v16650_v56  ;;  %v3093_v29 = vpop.permute.xlu1 %3092  ;;  %v3209_v58 = vrot.slane %v17208_v26, 4  ;;  %v2231_v57 = vor.u32 %v2229_v33, %v2227_v21 }
 0x20d   : > { %20218 = vst [vmem:[#allocation172_spill] sm:$0xff] %v17279_v45  ;;  %v17292_v13 = vld [vmem:[#allocation2 + $0x50] sm:$0xf]  ;;  %v17294_v45 = vld [vmem:[#allocation2 + $0x4c] sm:$0xf]  ;;  %v3101_v37 = vrot.slane %v3093_v29, %v16650_v56  ;;  %v1947_v33 = vmul.bf16 %v16706_v52, %v17244_v15  ;;  %v17333_v29 = vrot.slane %v3057_v32, 7 }
 0x20e   : > { %20215 = vst [vmem:[#allocation51_spill] sm:$0xff] %v17268_v39  ;;  %20220 = vst [vmem:[#allocation173_spill] sm:$0xff] %v17285_v14  ;;  %v17296_v11 = vld [vmem:[#allocation2 + $0x50] sm:$0xf]  ;;  %v17321_v21 = vld [vmem:[#allocation2 + $0x64] sm:$0xf]  ;;  %v3104_v15 = vpop.permute.xlu0 %3103 }
 0x20f   : > { %20221 = vst [vmem:[#allocation174_spill] sm:$0xff] %v17292_v13  ;;  %20222 = vst [vmem:[#allocation175_spill] sm:$0xff] %v17294_v45  ;;  %v2235_v45 = vrot.slane %v2233_v43, 1  ;;  %v17325_v55 = vld [vmem:[#allocation2 + $0x64] sm:$0xf]  ;;  %v3090_v43 = vrot.slane %v3082_v0, %v16650_v56  ;;  %v20235_v0 = vmov 0 }
 0x210   : > { %20223 = vst [vmem:[#allocation176_spill] sm:$0xff] %v17296_v11  ;;  %7342 = vst.msk [vmem:[#allocation2 + $0x54] sm:$0xf] %vm328_vm1, %v16573_v17  ;;  %v17312_v11 = vrot.slane %v3024_v24, 7  ;;  %v17329_v24 = vrot.slane %v16559_v20, %v16650_v56  ;;  %v17336_v17 = vld [vmem:[#allocation2 + $0x58] sm:$0xf] }
 0x211   : > { %7340 = vst.msk [vmem:[#allocation2 + $0x4c] sm:$0xf] %vm328_vm1, %v16591_v47  ;;  %7341 = vst.msk [vmem:[#allocation2 + $0x50] sm:$0xf] %vm328_vm1, %v16595_v23  ;;  %v1948_v47 = vmul.bf16 %v16725_v27, %v17246_v28  ;;  %v17323_v23 = vld [vmem:[#allocation2 + $0x64] sm:$0xf]  ;;  %v17362_v27 = vrot.slane %v16524_v1, %v16650_v56 }
 0x212   : > { %20224 = vst [vmem:[#allocation177_spill] sm:$0xff] %v17321_v21  ;;  %20225 = vst [vmem:[#allocation178_spill] sm:$0xff] %v17323_v23  ;;  %v17338_v28 = vld [vmem:[#allocation2 + $0x5c] sm:$0xf]  ;;  %v17340_v30 = vld [vmem:[#allocation2 + $0x60] sm:$0xf] }
 0x213   : > { %20226 = vst [vmem:[#allocation179_spill] sm:$0xff] %v17325_v55  ;;  %20227 = vst [vmem:[#allocation180_spill] sm:$0xff] %v17329_v24  ;;  %v17342_v13 = vld [vmem:[#allocation2 + $0x58] sm:$0xf]  ;;  %v17344_v55 = vld [vmem:[#allocation2 + $0x5c] sm:$0xf] }
 0x214   : > { %20228 = vst [vmem:[#allocation181_spill] sm:$0xff] %v17336_v17  ;;  %20229 = vst [vmem:[#allocation182_spill] sm:$0xff] %v17338_v28  ;;  %v17346_v52 = vld [vmem:[#allocation2 + $0x60] sm:$0xf]  ;;  %v17348_v20 = vld [vmem:[#allocation2 + $0x58] sm:$0xf] }
 0x215   : > { %20230 = vst [vmem:[#allocation183_spill] sm:$0xff] %v17340_v30  ;;  %20231 = vst [vmem:[#allocation184_spill] sm:$0xff] %v17346_v52  ;;  %v17350_v50 = vld [vmem:[#allocation2 + $0x5c] sm:$0xf]  ;;  %v17352_v32 = vld [vmem:[#allocation2 + $0x60] sm:$0xf] }
 0x216   : > { %20232 = vst [vmem:[#allocation185_spill] sm:$0xff] %v17348_v20  ;;  %20233 = vst [vmem:[#allocation186_spill] sm:$0xff] %v17350_v50  ;;  %v20236_v0 = vsel %vm17356_vm12, 4294967295, %v20235_v0  ;;  %v17364_v17 = vrot.slane %v3068_v63, 7  ;;  %v17366_v21 = vrot.slane %v3079_v25, 7  ;;  %v2236_v20 = vsel %vm2104_vm8, %v2231_v57, %v2235_v45  ;;  %v20264_v24 = vld [vmem:[#allocation35_spill] sm:$0xff] }
 0x217   : > { %20234 = vst [vmem:[#allocation187_spill] sm:$0xff] %v17352_v32  ;;  %20237 = vst [vmem:[#allocation188_spill] sm:$0xff] %v20236_v0  ;;  %v17369_v30 = vld [vmem:[#allocation2 + $0x58] sm:$0xf]  ;;  %v17371_v50 = vld [vmem:[#allocation2 + $0x64] sm:$0xf]  ;;  %13854 = vmatmul.mubr.msk.bf16.gmra.mrb[60].mxu1 %vm2249_vm9, %v2236_v20 }
 0x218   : > { %20238 = vst [vmem:[#allocation189_spill] sm:$0xff] %v17362_v27  ;;  %20239 = vst [vmem:[#allocation190_spill] sm:$0xff] %v17369_v30  ;;  %v20241_v32 = vrot.slane %v16985_v10, 4  ;;  %v20243_v1 = vrot.slane %v16997_v4, 4  ;;  %v20245_v45 = vrot.slane %v17183_v48, 4  ;;  %v20247_v57 = vrot.slane %v17034_v7, 4 }
 0x219   : > { %20240 = vst [vmem:[#allocation191_spill] sm:$0xff] %v17371_v50  ;;  %v17401_v30 = vld [vmem:[#allocation2 + $0x5c] sm:$0xf]  ;;  %v3222_v50 = vrot.slane %v3046_v22, 7  ;;  %v17407_v10 = vrot.slane %v3101_v37, 7  ;;  %v17424_v22 = vsel %vm17356_vm12, %v3209_v58, %v17220_v3  ;;  %v3218_v37 = vrot.slane %v17312_v11, 4 }
 0x21a   : > { %v17378_v28 = vsel %vm17356_vm12, %v20241_v32, %v16997_v4  ;;  %v17385_v63 = vsel %vm17356_vm12, %v20243_v1, %v17183_v48  ;;  %v17392_v25 = vsel %vm17356_vm12, %v20245_v45, %v17034_v7  ;;  %v17399_v32 = vsel %vm17356_vm12, %v20247_v57, %v17160_v40  ;;  %20249 = vst [vmem:[#allocation196_spill] sm:$0xff] %v17401_v30  ;;  %v17403_v4 = vld [vmem:[#allocation2 + $0x60] sm:$0xf]  ;;  %v17405_v1 = vld [vmem:[#allocation2 + $0x58] sm:$0xf]  ;;  %v20318_v0 = vld [vmem:[#allocation112_spill] sm:$0xff] }
 0x21b   : > { %20242 = vst [vmem:[#allocation192_spill] sm:$0xff] %v17378_v28  ;;  %20244 = vst [vmem:[#allocation193_spill] sm:$0xff] %v17385_v63  ;;  %v3112_v48 = vrot.slane %v3104_v15, %v16650_v56  ;;  %v12006_v45 = vcombine.low %v1947_v33, %v1948_v47  ;;  %v17412_v7 = vld [vmem:[#allocation2 + $0x64] sm:$0xf]  ;;  %v20253_v57 = vrot.slane %v17160_v40, 4  ;;  %v3234_v33 = vrot.slane %v3090_v43, 7 }
 0x21c   : > { %20246 = vst [vmem:[#allocation194_spill] sm:$0xff] %v17392_v25  ;;  %20248 = vst [vmem:[#allocation195_spill] sm:$0xff] %v17399_v32  ;;  %v17430_v47 = vld [vmem:[#allocation2 + $0x60] sm:$0xf]  ;;  %v3221_v40 = vrot.slane %v17331_v35, 4  ;;  %v3227_v15 = vrot.slane %v17333_v29, 4 }
 0x21d   : > { %20250 = vst [vmem:[#allocation197_spill] sm:$0xff] %v17403_v4  ;;  %20251 = vst [vmem:[#allocation198_spill] sm:$0xff] %v17405_v1  ;;  %v17419_v30 = vsel %vm17356_vm12, %v20253_v57, %v17208_v26  ;;  %v3224_v26 = vrot.slane %v3222_v50, 4  ;;  %v3230_v58 = vrot.slane %v17364_v17, 4  ;;  %13861 = vmatprep.mubr.msk.bf16.mxu1 %vm2249_vm9, %v12006_v45  ;;  %v20258_v57 = vld [vmem:[#allocation80_spill] sm:$0xff]  ;;  %v20259_v43 = vld [vmem:[#allocation81_spill] sm:$0xff] }
 0x21e   : > { %7343 = vst.msk [vmem:[#allocation2 + $0x58] sm:$0xf] %vm328_vm1, %v16645_v31  ;;  %20252 = vst [vmem:[#allocation199_spill] sm:$0xff] %v17412_v7  ;;  %v17428_v31 = vld [vmem:[#allocation2 + $0x5c] sm:$0xf]  ;;  %v3233_v20 = vrot.slane %v17366_v21, 4 }
 0x21f   : > { %20254 = vst [vmem:[#allocation200_spill] sm:$0xff] %v17419_v30  ;;  %20255 = vst [vmem:[#allocation201_spill] sm:$0xff] %v17424_v22  ;;  %v20260_v7 = vld [vmem:[#allocation54_spill] sm:$0xff]  ;;  %v3239_v4 = vrot.slane %v17407_v10, 4  ;;  %v3240_v12 = vrot.slane %v3112_v48, 7  ;;  %v20262_v27 = vld [vmem:[#allocation13_spill] sm:$0xff] }
 0x220   : > { %20256 = vst [vmem:[#allocation202_spill] sm:$0xff] %v17428_v31  ;;  %20257 = vst [vmem:[#allocation203_spill] sm:$0xff] %v17430_v47  ;;  %v3236_v47 = vrot.slane %v3234_v33, 4  ;;  %v20261_v1 = vld [vmem:[#allocation10_spill] sm:$0xff]  ;;  %v1951_v45 = vmul.bf16 %v20262_v27, %v16900_v18  ;;  %v20263_v56 = vld [vmem:[#allocation39_spill] sm:$0xff]  ;;  %v20267_v14 = vrot.slane %v17220_v3, 4 }
 0x221   : > { %7346 = vst.msk [vmem:[#allocation2 + $0x64] sm:$0xf] %vm328_vm1, %v16660_v6  ;;  %7344 = vst.msk [vmem:[#allocation2 + $0x5c] sm:$0xf] %vm328_vm1, %v20258_v57  ;;  %v7287_v6 = vrot.slane %v17004_v8, 4  ;;  %v1950_v31 = vmul.bf16 %v20261_v1, %v20260_v7  ;;  %v1952_v57 = vmul.bf16 %v20264_v24, %v20263_v56  ;;  %v20269_v48 = vrot.slane %v17222_v61, 4 }
 0x222   : > { %7345 = vst.msk [vmem:[#allocation2 + $0x60] sm:$0xf] %vm328_vm1, %v20259_v43  ;;  %v17451_v39 = vld [vmem:[#allocation2 + $0x74] sm:$0xf]  ;;  %v17460_v8 = vsel %vm17356_vm12, %v20267_v14, %v17222_v61  ;;  %v7355_v7 = vld [vmem:[#allocation2 + $0x88] sm:$0x1] }
 0x223   : > { %20265 = vst [vmem:[#allocation80_spill] sm:$0xff] %v17451_v39  ;;  %v17453_v43 = vld [vmem:[#allocation2 + $0x74] sm:$0xf]  ;;  %20268 = vst [vmem:[#allocation54_spill] sm:$0xff] %v17460_v8  ;;  %v17467_v18 = vsel %vm17356_vm12, %v20269_v48, %v17312_v11  ;;  %v20271_v56 = vld [vmem:[#allocation58_spill] sm:$0xff] }
 0x224   : > { %20266 = vst [vmem:[#allocation81_spill] sm:$0xff] %v17453_v43  ;;  %20270 = vst [vmem:[#allocation39_spill] sm:$0xff] %v17467_v18  ;;  %v20272_v1 = vld [vmem:[#allocation78_spill] sm:$0xff]  ;;  %v20273_v43 = vld [vmem:[#allocation28_spill] sm:$0xff] }
 0x225   : > { %v1949_v39 = vmul.bf16 %v20272_v1, %v20271_v56  ;;  %v1954_v5 = vmul.bf16 %v20273_v43, %v16829_v53  ;;  %v17476_v3 = vld [vmem:[%s19744_s3 + $0x28] sm:$0xff]   ;;  %v17482_v61 = vld [vmem:[#allocation2 + $0x70] sm:$0xf]  ;;  %v17494_v43 = vld [vmem:[#allocation2 + $0x74] sm:$0xf]  ;;  %v17499_v1 = vsel %vm17356_vm12, %v3218_v37, %v17331_v35 }
 0x226   : > { %v17478_v14 = vld [vmem:[#allocation2 + $0x68] sm:$0xf]  ;;  %v17480_v23 = vld [vmem:[#allocation2 + $0x6c] sm:$0xf]  ;;  %20276 = vst [vmem:[#allocation205_spill] sm:$0xff] %v17482_v61  ;;  %20279 = vst [vmem:[#allocation208_spill] sm:$0xff] %v17494_v43  ;;  %v17508_v61 = vsel %vm17356_vm12, %v3224_v26, %v17333_v29  ;;  %v17528_v29 = vsel %vm17356_vm12, %v3233_v20, %v3234_v33 }
 0x227   : > { %20274 = vst [vmem:[#allocation58_spill] sm:$0xff] %v17478_v14  ;;  %20275 = vst [vmem:[#allocation204_spill] sm:$0xff] %v17480_v23  ;;  %v17484_v11 = vld [vmem:[#allocation2 + $0x68] sm:$0xf]  ;;  %v17486_v48 = vld [vmem:[#allocation2 + $0x6c] sm:$0xf]  ;;  %v17503_v14 = vsel %vm17356_vm12, %v3221_v40, %v3222_v50  ;;  %v17513_v23 = vsel %vm17356_vm12, %v3227_v15, %v17364_v17  ;;  %v17524_v50 = vsel %vm17356_vm12, %v3230_v58, %v17366_v21 }
 0x228   : > { %v17488_v52 = vld [vmem:[#allocation2 + $0x70] sm:$0xf]  ;;  %v17490_v56 = vld [vmem:[#allocation2 + $0x68] sm:$0xf]  ;;  %v17492_v53 = vld [vmem:[#allocation2 + $0x6c] sm:$0xf]  ;;  %v12007_v37 = vcombine.low %v1949_v39, %v1950_v31  ;;  %v17545_v21 = vsel %vm17356_vm12, %v3236_v47, %v17407_v10  ;;  %v17549_v39 = vsel %vm17356_vm12, %v3239_v4, %v3240_v12 }
 0x229   : > { %20277 = vst [vmem:[#allocation206_spill] sm:$0xff] %v17490_v56  ;;  %20278 = vst [vmem:[#allocation207_spill] sm:$0xff] %v17492_v53  ;;  %v17515_v43 = vld [vmem:[#allocation2 + $0x70] sm:$0xf]  ;;  %v17517_v56 = vld [vmem:[#allocation2 + $0x68] sm:$0xf] }
 0x22a   : > { %20280 = vst [vmem:[#allocation209_spill] sm:$0xff] %v17499_v1  ;;  %20281 = vst [vmem:[#allocation210_spill] sm:$0xff] %v17503_v14  ;;  %v17519_v35 = vld [vmem:[#allocation2 + $0x74] sm:$0xf]  ;;  %v17532_v26 = vld [vmem:[#allocation2 + $0x6c] sm:$0xf]  ;;  %13862 = vmatmul.mubr.msk.bf16.vlgmr.msra.gmra.mrb[32].mxu1 %vm2249_vm9, %v12007_v37 }
 0x22b   : > { %20282 = vst [vmem:[#allocation211_spill] sm:$0xff] %v17508_v61  ;;  %20283 = vst [vmem:[#allocation212_spill] sm:$0xff] %v17513_v23  ;;  %v20289_v40 = vld [vmem:[#allocation29_spill] sm:$0xff]  ;;  %v17534_v15 = vld [vmem:[#allocation2 + $0x70] sm:$0xf] }
 0x22c   : > { %20284 = vst [vmem:[#allocation213_spill] sm:$0xff] %v17515_v43  ;;  %20285 = vst [vmem:[#allocation214_spill] sm:$0xff] %v17517_v56  ;;  %v1953_v17 = vmul.bf16 %v20289_v40, %v16827_v44  ;;  %v17536_v56 = vld [vmem:[#allocation2 + $0x68] sm:$0xf]  ;;  %v12008_v44 = vcombine.low %v1951_v45, %v1952_v57  ;;  %v17553_v31 = vld [vmem:[#allocation2 + $0x74] sm:$0xf] }
 0x22d   : > { %20286 = vst [vmem:[#allocation215_spill] sm:$0xff] %v17519_v35  ;;  %20287 = vst [vmem:[#allocation216_spill] sm:$0xff] %v17524_v50  ;;  %v17540_v35 = vsel %vm15946_vm3, %v7287_v6, %v7355_v7  ;;  %v20295_v33 = vld [vmem:[#allocation83_spill] sm:$0xff]  ;;  %v20299_v10 = vld [vmem:[#allocation14_spill] sm:$0xff] }
 0x22e   : > { %20288 = vst [vmem:[#allocation217_spill] sm:$0xff] %v17528_v29  ;;  %20290 = vst [vmem:[#allocation218_spill] sm:$0xff] %v17532_v26  ;;  %v17556_v49 = vcombine.low %v1953_v17, %v1954_v5  ;;  %v20297_v58 = vld [vmem:[#allocation87_spill] sm:$0xff]  ;;  %v1956_v47 = vmul.bf16 %v20299_v10, %v16948_v46  ;;  %v20300_v7 = vld [vmem:[#allocation17_spill] sm:$0xff]  ;;  %13865 = vmatprep.mubr.msk.bf16.mxu1 %vm2249_vm9, %v12008_v44 }
 0x22f   : > { %20291 = vst [vmem:[#allocation219_spill] sm:$0xff] %v17534_v15  ;;  %20292 = vst [vmem:[#allocation220_spill] sm:$0xff] %v17536_v56  ;;  %v20298_v20 = vld [vmem:[#allocation15_spill] sm:$0xff]  ;;  %v3292_v4 = vmul.bf16 %v17378_v28, %v20300_v7  ;;  %v17564_v56 = vld [vmem:[#allocation2 + $0x6c] sm:$0xf] }
 0x230   : > { %20293 = vst [vmem:[#allocation221_spill] sm:$0xff] %v17545_v21  ;;  %20294 = vst [vmem:[#allocation222_spill] sm:$0xff] %v17549_v39  ;;  %v1955_v6 = vmul.bf16 %v20298_v20, %v20297_v58  ;;  %v17566_v45 = vld [vmem:[#allocation2 + $0x70] sm:$0xf]  ;;  %v20303_v57 = vld [vmem:[#allocation9_spill] sm:$0xff] }
 0x231   : > { %7347 = vst.msk [vmem:[#allocation2 + $0x68] sm:$0xf] %vm328_vm1, %v20295_v33  ;;  %20296 = vst [vmem:[#allocation83_spill] sm:$0xff] %v17553_v31  ;;  %v17570_v33 = vrot.slane %v3240_v12, 4  ;;  %v15308_v5 = vld [vmem:[%s19744_s3 + $0x20] sm:$0xff]   ;;  %v20305_v46 = vld [vmem:[#allocation120_spill] sm:$0xff] }
 0x232   : > { %20301 = vst [vmem:[#allocation87_spill] sm:$0xff] %v17564_v56  ;;  %20302 = vst [vmem:[#allocation17_spill] sm:$0xff] %v17566_v45  ;;  %13894 = vmatpush3.bf16.msra.mxu1 %v15308_v5  ;;  %v20306_v37 = vld [vmem:[#allocation37_spill] sm:$0xff]  ;;  %v20308_v12 = vld [vmem:[#allocation20_spill] sm:$0xff] }
 0x233   : > { %7350 = vst.msk [vmem:[#allocation2 + $0x74] sm:$0xf] %vm328_vm1, %v20303_v57  ;;  %20304 = vst [vmem:[#allocation9_spill] sm:$0xff] %v17570_v33  ;;  %v20307_v58 = vld [vmem:[#allocation33_spill] sm:$0xff]  ;;  %v3293_v57 = vmul.bf16 %v17385_v63, %v20308_v12  ;;  %v20309_v31 = vld [vmem:[#allocation106_spill] sm:$0xff]  ;;  %13895 = vmatprep.subr.bf16.mxu1 %v17476_v3  ;;  %13866 = vmatmul.mubr.msk.bf16.gmra.mrb[36].mxu1 %vm2249_vm9, %v17556_v49 }
 0x234   : > { %v17583_v45 = vld [vmem:[%s19744_s3 + $0x30] sm:$0xff]   ;;  %7348 = vst.msk [vmem:[#allocation2 + $0x6c] sm:$0xf] %vm328_vm1, %v20309_v31  ;;  %v20310_v5 = vld [vmem:[#allocation107_spill] sm:$0xff]  ;;  %v17594_v7 = vld [vmem:[#allocation2 + $0x78] sm:$0xf] }
 0x235   : > { %7349 = vst.msk [vmem:[#allocation2 + $0x70] sm:$0xf] %vm328_vm1, %v20310_v5  ;;  %v20311_v44 = vld [vmem:[#allocation21_spill] sm:$0xff]  ;;  %20312 = vst [vmem:[#allocation120_spill] sm:$0xff] %v17594_v7  ;;  %v20313_v56 = vld [vmem:[#allocation100_spill] sm:$0xff]  ;;  %v17606_v5 = vcombine.low %v3292_v4, %v3293_v57 }
 0x236   : > { %v3294_v15 = vmul.bf16 %v17392_v25, %v20313_v56  ;;  %v20314_v26 = vld [vmem:[#allocation99_spill] sm:$0xff]  ;;  %v20315_v12 = vld [vmem:[#allocation38_spill] sm:$0xff]  ;;  %v17602_v31 = vld [vmem:[#allocation2 + $0x78] sm:$0xf]  ;;  %v3299_v56 = vmul.bf16 %v17467_v18, %v20318_v0  ;;  %13896 = vmatpush3.bf16.msra.mxu1 %v17476_v3  ;;  %v3304_v3 = vmul.bf16 %v17524_v50, %v17040_v16 }
 0x237   : > { %v3295_v28 = vmul.bf16 %v17399_v32, %v20314_v26  ;;  %v3296_v63 = vmul.bf16 %v17419_v30, %v20315_v12  ;;  %v17604_v40 = vld [vmem:[#allocation2 + $0x78] sm:$0xf]  ;;  %v20317_v53 = vld [vmem:[#allocation115_spill] sm:$0xff]  ;;  %v17620_v30 = vld [vmem:[#allocation2 + $0x7c] sm:$0xf]  ;;  %13929 = vmatprep.subr.bf16.mxu1 %v17583_v45  ;;  %v20334_v16 = vrot.slane %v17606_v5, 1 }
 0x238   : > { %v20316_v17 = vld [vmem:[#allocation101_spill] sm:$0xff]  ;;  %v3298_v7 = vmul.bf16 %v17460_v8, %v20317_v53  ;;  %v17614_v25 = vld [vmem:[#allocation2 + $0x84] sm:$0xf]  ;;  %v17618_v12 = vld [vmem:[#allocation2 + $0x88] sm:$0x1]  ;;  %20321 = vst [vmem:[#allocation107_spill] sm:$0xff] %v17620_v30 }
 0x239   : > { %v3297_v43 = vmul.bf16 %v17424_v22, %v20316_v17  ;;  %v17616_v26 = vld [vmem:[#allocation2 + $0x84] sm:$0xf]  ;;  %20320 = vst [vmem:[#allocation106_spill] sm:$0xff] %v17618_v12  ;;  %v12053_v4 = vcombine.low %v3294_v15, %v3295_v28  ;;  %v20322_v57 = vld [vmem:[#allocation113_spill] sm:$0xff]  ;;  %v20323_v17 = vld [vmem:[#allocation114_spill] sm:$0xff] }
 0x23a   : > { %20319 = vst [vmem:[#allocation20_spill] sm:$0xff] %v17616_v26  ;;  %v3300_v32 = vmul.bf16 %v17499_v1, %v20322_v57  ;;  %v3301_v22 = vmul.bf16 %v17503_v14, %v20323_v17  ;;  %v17626_v53 = vld [vmem:[#allocation2 + $0x7c] sm:$0xf]  ;;  %v17628_v8 = vld [vmem:[#allocation2 + $0x80] sm:$0xf]  ;;  %v12055_v57 = vcombine.low %v3298_v7, %v3299_v56  ;;  %v3302_v17 = vmul.bf16 %v17508_v61, %v17091_v38 }
 0x23b   : > { %v17630_v0 = vld [vmem:[#allocation2 + $0x7c] sm:$0xf]  ;;  %v17632_v18 = vld [vmem:[#allocation2 + $0x80] sm:$0xf]  ;;  %v17634_v26 = vld [vmem:[#allocation2 + $0x78] sm:$0xf]  ;;  %v12054_v15 = vcombine.low %v3296_v63, %v3297_v43  ;;  %v12010_v43 = vcombine.low %v1955_v6, %v1956_v47  ;;  %v3305_v56 = vmul.bf16 %v17528_v29, %v17042_v59  ;;  %v3306_v59 = vmul.bf16 %v17545_v21, %v17111_v34 }
 0x23c   : > { %20324 = vst [vmem:[#allocation100_spill] sm:$0xff] %v17632_v18  ;;  %20325 = vst [vmem:[#allocation99_spill] sm:$0xff] %v17634_v26  ;;  %v17636_v12 = vld [vmem:[#allocation2 + $0x84] sm:$0xf]  ;;  %v17642_v14 = vld [vmem:[#allocation2 + $0x7c] sm:$0xf]  ;;  %v12056_v18 = vcombine.low %v3300_v32, %v3301_v22  ;;  %v3303_v26 = vmul.bf16 %v17513_v23, %v17022_v42  ;;  %v3307_v34 = vmul.bf16 %v17549_v39, %v17093_v62 }
 0x23d   : > { %20326 = vst [vmem:[#allocation38_spill] sm:$0xff] %v17636_v12  ;;  %20327 = vst [vmem:[#allocation101_spill] sm:$0xff] %v17642_v14  ;;  %v17644_v1 = vld [vmem:[#allocation2 + $0x88] sm:$0xf]  ;;  %v3415_v30 = vrot.slane %v12053_v4, 1  ;;  %v3417_v38 = vrot.slane %v12054_v15, 1  ;;  %13869 = vmatprep.mubr.msk.bf16.mxu1 %vm2249_vm9, %v12010_v43 }
 0x23e   : > { %20328 = vst [vmem:[#allocation115_spill] sm:$0xff] %v17644_v1  ;;  %v17651_v28 = vld [vmem:[#allocation2 + $0x80] sm:$0xf]  ;;  %v17653_v63 = vld [vmem:[#allocation2 + $0x78] sm:$0xf]  ;;  %v3419_v7 = vrot.slane %v12055_v57, 1  ;;  %v12057_v47 = vcombine.low %v3302_v17, %v3303_v26  ;;  %v12058_v26 = vcombine.low %v3304_v3, %v3305_v56  ;;  %v3308_v17 = vmul.bf16 %v17570_v33, %v17165_v60 }
 0x23f   : > { %20329 = vst [vmem:[#allocation112_spill] sm:$0xff] %v17651_v28  ;;  %20330 = vst [vmem:[#allocation113_spill] sm:$0xff] %v17653_v63  ;;  %v20331_v1 = vld [vmem:[#allocation119_spill] sm:$0xff]  ;;  %v17668_v42 = vsel %vm3397_vm13, %v20334_v16, %v3415_v30  ;;  %v3421_v6 = vrot.slane %v12056_v18, 1  ;;  %v17672_v4 = vld [vmem:[#allocation2 + $0x7c] sm:$0xf]  ;;  %v17681_v49 = vsel %vm3397_vm13, %v3415_v30, %v3417_v38 }
 0x240   : > { %7351 = vst.msk [vmem:[#allocation2 + $0x78] sm:$0xf] %vm328_vm1, %v20331_v1  ;;  %v17659_v32 = vld [vmem:[#allocation2 + $0x84] sm:$0xf]  ;;  %v17661_v22 = vld [vmem:[#allocation2 + $0x88] sm:$0xf]  ;;  %v17684_v18 = vsel %vm3397_vm13, %v3417_v38, %v3419_v7 }
 0x241   : > { %20332 = vst [vmem:[#allocation114_spill] sm:$0xff] %v17659_v32  ;;  %20333 = vst [vmem:[#allocation119_spill] sm:$0xff] %v17661_v22  ;;  %v17674_v1 = vld [vmem:[#allocation2 + $0x80] sm:$0xf]  ;;  %v17695_v57 = vsel %vm3397_vm13, %v3419_v7, %v3421_v6  ;;  %v3423_v30 = vrot.slane %v12057_v47, 1  ;;  %v20339_v3 = vld [vmem:[#allocation116_spill] sm:$0xff]  ;;  %v12060_v47 = vcombine.low %v3308_v17, %v3308_v17 }
 0x242   : > { %20335 = vst [vmem:[#allocation223_spill] sm:$0xff] %v17672_v4  ;;  %20336 = vst [vmem:[#allocation224_spill] sm:$0xff] %v17674_v1  ;;  %v20340_v43 = vld [vmem:[#allocation26_spill] sm:$0xff]  ;;  %v20341_v62 = vld [vmem:[#allocation136_spill] sm:$0xff]  ;;  %v12059_v1 = vcombine.low %v3306_v59, %v3307_v34 }
 0x243   : > { %7354 = vst.msk [vmem:[#allocation2 + $0x84] sm:$0xf] %vm328_vm1, %v17068_v41  ;;  %7357 = vst [vmem:[#allocation2 + $0x88] sm:$0x1] %v17540_v35  ;;  %v20337_v41 = vld [vmem:[#allocation43_spill] sm:$0xff]  ;;  %v20338_v35 = vld [vmem:[#allocation18_spill] sm:$0xff]  ;;  %v1957_v38 = vmul.bf16 %v20340_v43, %v20339_v3  ;;  %v17708_v7 = vsel %vm3397_vm13, %v3421_v6, %v3423_v30  ;;  %v20350_v6 = vmul.bf16 %v20307_v58, %v17044_v9 }
 0x244   : > { %7352 = vst.msk [vmem:[#allocation2 + $0x7c] sm:$0xf] %vm328_vm1, %v17084_v54  ;;  %7353 = vst.msk [vmem:[#allocation2 + $0x80] sm:$0xf] %vm328_vm1, %v17088_v2  ;;  %v1962_v15 = vmul.bf16 %v20338_v35, %v20337_v41  ;;  %v20342_v56 = vld [vmem:[#allocation34_spill] sm:$0xff]  ;;  %v3425_v54 = vrot.slane %v12058_v26, 1 }
 0x245   : > { %v1961_v16 = vmul.bf16 %v20342_v56, %v20341_v62  ;;  %v20343_v2 = vld [vmem:[#allocation110_spill] sm:$0xff]  ;;  %v20344_v63 = vld [vmem:[#allocation141_spill] sm:$0xff]  ;;  %v20345_v41 = vld [vmem:[#allocation27_spill] sm:$0xff]  ;;  %v3427_v12 = vrot.slane %v12059_v1, 1  ;;  %v3429_v62 = vrot.slane %v12060_v47, 1 }
 0x246   : > { %v1963_v32 = vmul.bf16 %v20343_v2, %v17167_v51  ;;  %v1964_v4 = vmul.bf16 %v20345_v41, %v20344_v63  ;;  %v17711_v60 = vsel %vm3397_vm13, %v3423_v30, %v3425_v54  ;;  %v20346_v3 = vld [vmem:[#allocation90_spill] sm:$0xff]  ;;  %v20347_v26 = vld [vmem:[#allocation91_spill] sm:$0xff]  ;;  %v20348_v51 = vmul.bf16 %v20306_v37, %v20305_v46  ;;  %v20354_v46 = vld [vmem:[#allocation121_spill] sm:$0xff] }
 0x247   : > { %v3720_v28 = vmul.bf16 %v20346_v3, %v20262_v27  ;;  %v3721_v59 = vmul.bf16 %v20347_v26, %v20264_v24  ;;  %v20349_v63 = vmul.bf16 %v20311_v44, %v17070_v19  ;;  %v12013_v30 = vcombine.low %v1961_v16, %v1962_v15  ;;  %v20353_v26 = vld [vmem:[#allocation117_spill] sm:$0xff]  ;;  %v20356_v9 = vld [vmem:[#allocation123_spill] sm:$0xff]  ;;  %v20357_v16 = vld [vmem:[#allocation130_spill] sm:$0xff] }
 0x248   : > { %v12011_v34 = vcombine.low %v1957_v38, %v20348_v51  ;;  %v17727_v1 = vsel %vm3397_vm13, %v3425_v54, %v3427_v12  ;;  %v3724_v14 = vmul.bf16 %v20353_v26, %v20298_v20  ;;  %v3725_v38 = vmul.bf16 %v20354_v46, %v20299_v10  ;;  %v20359_v47 = vld [vmem:[#allocation137_spill] sm:$0xff] }
 0x249   : > { %v12012_v17 = vcombine.low %v20350_v6, %v20349_v63  ;;  %20351 = vst [vmem:[#allocation43_spill] sm:$0xff] %v17727_v1  ;;  %v17729_v3 = vcombine.low %v3720_v28, %v3721_v59  ;;  %v12014_v19 = vcombine.low %v1963_v32, %v1964_v4  ;;  %v17737_v51 = vsel %vm3397_vm13, %v3427_v12, %v3429_v62  ;;  %v20360_v63 = vld [vmem:[#allocation146_spill] sm:$0xff]  ;;  %v20364_v26 = vld [vmem:[#allocation157_spill] sm:$0xff] }
 0x24a   : > { %13870 = vmatmul.mubr.msk.bf16.gmra.mrb[40].mxu1 %vm2249_vm9, %v12011_v34  ;;  %20355 = vst [vmem:[#allocation136_spill] sm:$0xff] %v17737_v51  ;;  %v3726_v15 = vmul.bf16 %v20356_v9, %v20340_v43  ;;  %v3727_v54 = vmul.bf16 %v20357_v16, %v20306_v37  ;;  %v17744_v28 = vcombine.low %v3724_v14, %v3725_v38  ;;  %v20361_v32 = vld [vmem:[#allocation150_spill] sm:$0xff]  ;;  %v20366_v38 = vld [vmem:[#allocation127_spill] sm:$0xff]  ;;  %v20367_v9 = vld [vmem:[#allocation164_spill] sm:$0xff] }
 0x24b   : > { %20352 = vst [vmem:[#allocation116_spill] sm:$0xff] %v17729_v3  ;;  %13873 = vmatprep.mubr.msk.bf16.mxu1 %vm2249_vm9, %v12012_v17  ;;  %v3728_v59 = vmul.bf16 %v20359_v47, %v20307_v58  ;;  %v3729_v34 = vmul.bf16 %v20360_v63, %v20311_v44  ;;  %v3730_v12 = vmul.bf16 %v20361_v32, %v20342_v56  ;;  %v20363_v6 = vld [vmem:[#allocation142_spill] sm:$0xff]  ;;  %v20368_v47 = vld [vmem:[#allocation36_spill] sm:$0xff]  ;;  %v20369_v63 = vld [vmem:[#allocation159_spill] sm:$0xff] }
 0x24c   : > { %20358 = vst [vmem:[#allocation141_spill] sm:$0xff] %v17744_v28  ;;  %v17752_v4 = vcombine.low %v3726_v15, %v3727_v54  ;;  %v3731_v62 = vmul.bf16 %v20363_v6, %v20338_v35  ;;  %v3732_v46 = vmul.bf16 %v20364_v26, %v20343_v2  ;;  %v3733_v14 = vmul.bf16 %v17252_v36, %v20345_v41  ;;  %v20370_v32 = vld [vmem:[#allocation135_spill] sm:$0xff]  ;;  %v20374_v2 = vld [vmem:[#allocation50_spill] sm:$0xff]  ;;  %v20375_v36 = vld [vmem:[#allocation184_spill] sm:$0xff] }
 0x24d   : > { %v17760_v17 = vcombine.low %v3728_v59, %v3729_v34  ;;  %v3734_v16 = vmul.bf16 %v20367_v9, %v20366_v38  ;;  %v3735_v28 = vmul.bf16 %v20369_v63, %v20368_v47  ;;  %v3736_v15 = vmul.bf16 %v17342_v13, %v20370_v32  ;;  %v20378_v9 = vld [vmem:[#allocation178_spill] sm:$0xff]  ;;  %v20379_v35 = vld [vmem:[#allocation52_spill] sm:$0xff]  ;;  %v20380_v56 = vld [vmem:[#allocation47_spill] sm:$0xff] }
 0x24e   : > { %20362 = vst [vmem:[#allocation90_spill] sm:$0xff] %v17752_v4  ;;  %v17768_v54 = vcombine.low %v3730_v12, %v3731_v62  ;;  %v17770_v6 = vcombine.low %v3732_v46, %v3733_v14  ;;  %v20373_v4 = vld [vmem:[#allocation42_spill] sm:$0xff]  ;;  %v3738_v59 = vmul.bf16 %v20375_v36, %v20374_v2  ;;  %v3740_v63 = vmul.bf16 %v17484_v11, %v20379_v35  ;;  %v20384_v14 = vld [vmem:[#allocation81_spill] sm:$0xff]  ;;  %v20431_v3 = vld [vmem:[#allocation20_spill] sm:$0xff] }
 0x24f   : > { %20365 = vst [vmem:[#allocation91_spill] sm:$0xff] %v17760_v17  ;;  %v3737_v26 = vmul.bf16 %v17344_v55, %v20373_v4  ;;  %v17776_v34 = vcombine.low %v3734_v16, %v3735_v28  ;;  %v20377_v17 = vld [vmem:[#allocation134_spill] sm:$0xff]  ;;  %v3741_v13 = vmul.bf16 %v17486_v48, %v20380_v56  ;;  %v20385_v36 = vld [vmem:[#allocation173_spill] sm:$0xff] }
 0x250   : > { %20371 = vst [vmem:[#allocation117_spill] sm:$0xff] %v17768_v54  ;;  %20372 = vst [vmem:[#allocation121_spill] sm:$0xff] %v17770_v6  ;;  %v3739_v41 = vmul.bf16 %v20378_v9, %v20377_v17  ;;  %v20382_v62 = vld [vmem:[#allocation170_spill] sm:$0xff]  ;;  %v3744_v28 = vmul.bf16 %v17602_v31, %v20385_v36  ;;  %v20389_v54 = vld [vmem:[#allocation180_spill] sm:$0xff] }
 0x251   : > { %20376 = vst [vmem:[#allocation123_spill] sm:$0xff] %v17776_v34  ;;  %v17784_v12 = vcombine.low %v3736_v15, %v3737_v26  ;;  %v3742_v46 = vmul.bf16 %v17488_v52, %v20382_v62  ;;  %v20383_v55 = vld [vmem:[#allocation46_spill] sm:$0xff]  ;;  %v17794_v9 = vcombine.low %v3740_v63, %v3741_v13  ;;  %v20388_v34 = vld [vmem:[#allocation51_spill] sm:$0xff]  ;;  %v3746_v48 = vmul.bf16 %v17628_v8, %v20389_v54  ;;  %v20390_v15 = vld [vmem:[#allocation73_spill] sm:$0xff] }
 0x252   : > { %v3743_v6 = vmul.bf16 %v20384_v14, %v20383_v55  ;;  %v17792_v16 = vcombine.low %v3738_v59, %v3739_v41  ;;  %v3745_v11 = vmul.bf16 %v17626_v53, %v20388_v34  ;;  %v20391_v26 = vld [vmem:[#allocation57_spill] sm:$0xff]  ;;  %13874 = vmatmul.mubr.msk.bf16.gmra.mrb[44].mxu1 %vm2249_vm9, %v12013_v30  ;;  %v20394_v41 = vld [vmem:[#allocation64_spill] sm:$0xff]  ;;  %v20397_v13 = vld [vmem:[#allocation162_spill] sm:$0xff] }
 0x253   : > { %20381 = vst [vmem:[#allocation130_spill] sm:$0xff] %v17784_v12  ;;  %20387 = vst [vmem:[#allocation146_spill] sm:$0xff] %v17794_v9  ;;  %v2793_v12 = vrot.slane %v20391_v26, %v20390_v15  ;;  %v20393_v14 = vld [vmem:[#allocation189_spill] sm:$0xff]  ;;  %v2804_v59 = vrot.slane %v20394_v41, %v20390_v15  ;;  %13877 = vmatprep.mubr.msk.bf16.mxu1 %vm2249_vm9, %v12014_v19  ;;  %v1966_v26 = vmul.bf16 %v20368_v47, %v20397_v13  ;;  %v20402_v41 = vld [vmem:[#allocation163_spill] sm:$0xff] }
 0x254   : > { %20386 = vst [vmem:[#allocation137_spill] sm:$0xff] %v17792_v16  ;;  %v17803_v52 = vcombine.low %v3742_v46, %v3743_v6  ;;  %v3747_v31 = vmul.bf16 %v17614_v25, %v20393_v14  ;;  %v17810_v63 = vcombine.low %v3744_v28, %v3745_v11  ;;  %v20396_v53 = vld [vmem:[#allocation69_spill] sm:$0xff]  ;;  %v20401_v25 = vld [vmem:[#allocation70_spill] sm:$0xff]  ;;  %v1967_v19 = vmul.bf16 %v20370_v32, %v20402_v41  ;;  %v20406_v13 = vld [vmem:[#allocation156_spill] sm:$0xff] }
 0x255   : > { %v2815_v8 = vrot.slane %v20396_v53, %v20390_v15  ;;  %v20399_v30 = vld [vmem:[#allocation53_spill] sm:$0xff]  ;;  %v20403_v28 = vld [vmem:[#allocation158_spill] sm:$0xff] }
 0x256   : > { %20392 = vst [vmem:[#allocation150_spill] sm:$0xff] %v17803_v52  ;;  %20395 = vst [vmem:[#allocation142_spill] sm:$0xff] %v17810_v63  ;;  %v17816_v9 = vcombine.low %v3746_v48, %v3747_v31  ;;  %v20400_v6 = vrot.slane %v20399_v30, %v20390_v15  ;;  %v2837_v52 = vrot.slane %v20401_v25, %v20390_v15  ;;  %v3153_v63 = vrot.slane %v2793_v12, 7  ;;  %v20404_v53 = vld [vmem:[#allocation65_spill] sm:$0xff]  ;;  %v20405_v48 = vld [vmem:[#allocation66_spill] sm:$0xff] }
 0x257   : > { %v1968_v11 = vmul.bf16 %v20373_v4, %v20403_v28  ;;  %v2771_v16 = vrot.slane %v20404_v53, %v20390_v15  ;;  %v2826_v31 = vrot.slane %v20405_v48, %v20390_v15  ;;  %v1965_v30 = vmul.bf16 %v20366_v38, %v20406_v13  ;;  %v20417_v37 = vld [vmem:[#allocation181_spill] sm:$0xff] }
 0x258   : > { %20398 = vst [vmem:[#allocation157_spill] sm:$0xff] %v17816_v9  ;;  %v3150_v46 = vrot.slane %v20400_v6, 7  ;;  %v3156_v6 = vrot.slane %v2804_v59, 7  ;;  %v20407_v9 = vld [vmem:[#allocation71_spill] sm:$0xff]  ;;  %v3159_v47 = vrot.slane %v2815_v8, 7  ;;  %v3165_v41 = vrot.slane %v2837_v52, 7 }
 0x259   : > { %v2848_v25 = vrot.slane %v20407_v9, %v20390_v15  ;;  %v12015_v44 = vcombine.low %v1965_v30, %v1966_v26  ;;  %v12016_v32 = vcombine.low %v1967_v19, %v1968_v11  ;;  %v3155_v28 = vrot.slane %v3153_v63, 4  ;;  %v20409_v9 = vld [vmem:[#allocation74_spill] sm:$0xff]  ;;  %v20413_v30 = vld [vmem:[#allocation177_spill] sm:$0xff] }
 0x25a   : > { %v3152_v58 = vrot.slane %v3150_v46, 4  ;;  %v17835_v12 = vrot.slane %v2771_v16, 7  ;;  %v3162_v4 = vrot.slane %v2826_v31, 7  ;;  %v3158_v53 = vrot.slane %v3156_v6, 4  ;;  %v20410_v26 = vld [vmem:[#allocation182_spill] sm:$0xff]  ;;  %v20411_v16 = vld [vmem:[#allocation79_spill] sm:$0xff] }
 0x25b   : > { %13878 = vmatmul.mubr.msk.bf16.gmra.mrb[48].mxu1 %vm2249_vm9, %v12015_v44  ;;  %v17838_v48 = vrot.slane %v2848_v25, 7  ;;  %v3161_v13 = vrot.slane %v3159_v47, 4  ;;  %v2870_v8 = vrot.slane %v20409_v9, %v20390_v15  ;;  %v1970_v52 = vmul.bf16 %v20377_v17, %v20410_v26  ;;  %v20412_v31 = vld [vmem:[#allocation183_spill] sm:$0xff] }
 0x25c   : > { %20408 = vst [vmem:[#allocation164_spill] sm:$0xff] %v17835_v12  ;;  %13881 = vmatprep.mubr.msk.bf16.mxu1 %vm2249_vm9, %v12016_v32  ;;  %v3164_v59 = vrot.slane %v3162_v4, 4  ;;  %v3167_v19 = vrot.slane %v3165_v41, 4  ;;  %v2892_v11 = vrot.slane %v20411_v16, %v20390_v15  ;;  %v1971_v44 = vmul.bf16 %v20379_v35, %v20412_v31  ;;  %v20420_v35 = vld [vmem:[#allocation207_spill] sm:$0xff]  ;;  %v20424_v31 = vld [vmem:[#allocation80_spill] sm:$0xff] }
 0x25d   : > { %v1972_v25 = vmul.bf16 %v20380_v56, %v20413_v30  ;;  %v17853_v32 = vsel %vm17356_vm12, %v3152_v58, %v3153_v63  ;;  %v17857_v9 = vsel %vm17356_vm12, %v3155_v28, %v3156_v6  ;;  %v1969_v26 = vmul.bf16 %v20374_v2, %v20417_v37  ;;  %v20418_v30 = vld [vmem:[#allocation72_spill] sm:$0xff]  ;;  %v20421_v2 = vld [vmem:[#allocation206_spill] sm:$0xff] }
 0x25e   : > { %20415 = vst [vmem:[#allocation159_spill] sm:$0xff] %v17853_v32  ;;  %20416 = vst [vmem:[#allocation184_spill] sm:$0xff] %v17857_v9  ;;  %v3149_v17 = vrot.slane %v17835_v12, 4  ;;  %v17864_v16 = vsel %vm17356_vm12, %v3158_v53, %v3159_v47  ;;  %v2859_v56 = vrot.slane %v20418_v30, %v20390_v15  ;;  %v20419_v58 = vld [vmem:[#allocation76_spill] sm:$0xff]  ;;  %v17873_v6 = vsel %vm17356_vm12, %v3161_v13, %v3162_v4  ;;  %v2760_v4 = vld [vmem:[#allocation2] sm:$0xe] }
 0x25f   : > { %v2881_v63 = vrot.slane %v20419_v58, %v20390_v15  ;;  %v17875_v28 = vrot.slane %v2870_v8, 7  ;;  %v12017_v37 = vcombine.low %v1969_v26, %v1970_v52  ;;  %v12133_v43 = vcombine.low %v20421_v2, %v20420_v35  ;;  %v20422_v13 = vld [vmem:[#allocation204_spill] sm:$0xff]  ;;  %v20423_v52 = vld [vmem:[#allocation205_spill] sm:$0xff] }
 0x260   : > { %v17881_v47 = vsel %vm17356_vm12, %v3164_v59, %v3165_v41  ;;  %v17886_v53 = vsel %vm17356_vm12, %v3167_v19, %v17838_v48  ;;  %v17888_v30 = vrot.slane %v2892_v11, 7  ;;  %v12018_v58 = vcombine.low %v1971_v44, %v1972_v25  ;;  %v20426_v25 = vld [vmem:[#allocation208_spill] sm:$0xff] }
 0x261   : > { %v1974_v8 = vmul.bf16 %v20383_v55, %v20422_v13  ;;  %v1975_v26 = vmul.bf16 %v20385_v36, %v20423_v52  ;;  %v1976_v41 = vmul.bf16 %v20388_v34, %v20424_v31  ;;  %v17899_v59 = vsel %vm17356_vm12, %v3149_v17, %v3150_v46  ;;  %v20428_v55 = vld [vmem:[#allocation58_spill] sm:$0xff]  ;;  %v20429_v31 = vld [vmem:[#allocation24_spill] sm:$0xff]  ;;  %v15309_v17 = vld [vmem:[#allocation2 + $0x4] sm:$0xf] }
 0x262   : > { %20425 = vst [vmem:[#allocation178_spill] sm:$0xff] %v17899_v59  ;;  %v17901_v19 = vrot.slane %v2859_v56, 7  ;;  %v17903_v11 = vrot.slane %v2881_v63, 7  ;;  %v4303_v44 = vshll.u32 %v12133_v43, 16  ;;  %v1973_v52 = vmul.bf16 %v20382_v62, %v20428_v55  ;;  %v20432_v55 = vld [vmem:[#allocation100_spill] sm:$0xff] }
 0x263   : > { %13882 = vmatmul.mubr.msk.bf16.gmra.mrb[52].mxu1 %vm2249_vm9, %v12017_v37  ;;  %v20427_v37 = vld [vmem:[#allocation213_spill] sm:$0xff]  ;;  %v3276_v36 = vmul.bf16 %v17835_v12, %v2760_v4  ;;  %v3279_v34 = vmul.bf16 %v17857_v9, %v20429_v31  ;;  %v12135_v56 = vcombine.low %v17604_v40, %v17630_v0  ;;  %v3277_v46 = vmul.bf16 %v15309_v17, %v17899_v59 }
 0x264   : > { %13885 = vmatprep.mubr.msk.bf16.mxu1 %vm2249_vm9, %v12018_v58  ;;  %v12134_v13 = vcombine.low %v20427_v37, %v20426_v25  ;;  %v17916_v63 = vrot.slane %v4303_v44, 1  ;;  %v4307_v58 = vshrl.u32 %v12133_v43, 16  ;;  %v12019_v20 = vcombine.low %v1973_v52, %v1974_v8  ;;  %v20433_v4 = vld [vmem:[#allocation25_spill] sm:$0xff]  ;;  %v20434_v44 = vld [vmem:[#allocation106_spill] sm:$0xff] }
 0x265   : > { %v12020_v24 = vcombine.low %v1975_v26, %v1976_v41  ;;  %v4319_v27 = vshll.u32 %v12135_v56, 16  ;;  %v12136_v62 = vcombine.low %v20432_v55, %v20431_v3  ;;  %v3278_v12 = vmul.bf16 %v17853_v32, %v20433_v4 }
 0x266   : > { %20430 = vst [vmem:[#allocation81_spill] sm:$0xff] %v17916_v63  ;;  %v4311_v10 = vshll.u32 %v12134_v13, 16  ;;  %v4309_v31 = vor.u32 %v4307_v58, %v17916_v63  ;;  %v4315_v22 = vshrl.u32 %v12134_v13, 16  ;;  %v4323_v1 = vshrl.u32 %v12135_v56, 16  ;;  %v20437_v56 = vld [vmem:[#allocation22_spill] sm:$0xff] }
 0x267   : > { %v4321_v51 = vrot.slane %v4319_v27, 1  ;;  %v4327_v17 = vshll.u32 %v12136_v62, 16  ;;  %v12137_v43 = vcombine.low %v20434_v44, %v20434_v44  ;;  %v12044_v59 = vcombine.low %v3276_v36, %v3277_v46  ;;  %v20436_v27 = vld [vmem:[#allocation82_spill] sm:$0xff] }
 0x268   : > { %v4313_v9 = vrot.slane %v4311_v10, 1  ;;  %v12045_v8 = vcombine.low %v3278_v12, %v3279_v34  ;;  %v4331_v32 = vshrl.u32 %v12136_v62, 16  ;;  %v3173_v10 = vrot.slane %v17901_v19, 4  ;;  %v20441_v12 = vld [vmem:[#allocation31_spill] sm:$0xff] }
 0x269   : > { %v4325_v52 = vor.u32 %v4323_v1, %v4321_v51  ;;  %v4329_v4 = vrot.slane %v4327_v17, 1  ;;  %v4335_v58 = vshll.u32 %v12137_v43, 16  ;;  %v2903_v13 = vrot.slane %v20436_v27, %v20390_v15  ;;  %v20444_v43 = vld [vmem:[#allocation120_spill] sm:$0xff] }
 0x26a   : > { %v17926_v26 = vsel %vm2104_vm8, %v4309_v31, %v4313_v9  ;;  %v4317_v41 = vor.u32 %v4315_v22, %v4313_v9  ;;  %v2925_v63 = vrot.slane %v20437_v56, %v20390_v15  ;;  %v20439_v22 = vld [vmem:[#allocation107_spill] sm:$0xff]  ;;  %v3280_v9 = vmul.bf16 %v17864_v16, %v20441_v12  ;;  %v20442_v31 = vld [vmem:[#allocation32_spill] sm:$0xff] }
 0x26b   : > { %20435 = vst [vmem:[#allocation73_spill] sm:$0xff] %v17926_v26  ;;  %13886 = vmatmul.mubr.msk.bf16.gmra.mrb[56].mxu1 %vm2249_vm9, %v12019_v20  ;;  %v1978_v20 = vmul.bf16 %v20393_v14, %v20439_v22  ;;  %v17941_v1 = vsel %vm2104_vm8, %v4325_v52, %v4329_v4  ;;  %v4333_v62 = vor.u32 %v4331_v32, %v4329_v4  ;;  %v4337_v36 = vrot.slane %v4335_v58, 1  ;;  %v20446_v4 = vld [vmem:[#allocation16_spill] sm:$0xff]  ;;  %v20447_v22 = vld [vmem:[#allocation45_spill] sm:$0xff]  ;;  %v20509_v26 = vld [vmem:[#allocation42_spill] sm:$0xff] }
 0x26c   : > { %13889 = vmatprep.mubr.msk.bf16.mxu1 %vm2249_vm9, %v12020_v24  ;;  %v17936_v34 = vsel %vm2104_vm8, %v4317_v41, %v4321_v51  ;;  %20440 = vst [vmem:[#allocation64_spill] sm:$0xff] %v17941_v1  ;;  %v3179_v46 = vrot.slane %v17903_v11, 4  ;;  %v3281_v17 = vmul.bf16 %v17873_v6, %v20442_v31  ;;  %v20443_v24 = vld [vmem:[#allocation44_spill] sm:$0xff]  ;;  %v1977_v41 = vmul.bf16 %v20389_v54, %v20444_v43  ;;  %v20452_v43 = vld [vmem:[#allocation62_spill] sm:$0xff] }
 0x26d   : > { %20438 = vst [vmem:[#allocation57_spill] sm:$0xff] %v17936_v34  ;;  %v3283_v51 = vmul.bf16 %v17886_v53, %v20443_v24  ;;  %v3398_v27 = vrot.slane %v12044_v59, 1  ;;  %v3399_v56 = vrot.slane %v12045_v8, 1  ;;  %v17953_v52 = vsel %vm2104_vm8, %v4333_v62, %v4337_v36  ;;  %v20450_v36 = vld [vmem:[#allocation48_spill] sm:$0xff]  ;;  %v18182_v54 = vld [vmem:[#allocation2 + $0x40] sm:$0xf] }
 0x26e   : > { %20445 = vst [vmem:[#allocation69_spill] sm:$0xff] %v17953_v52  ;;  %v3183_v32 = vrot.slane %v2903_v13, 7  ;;  %v2914_v58 = vrot.slane %v20446_v4, %v20390_v15  ;;  %v3282_v12 = vmul.bf16 %v17881_v47, %v20447_v22  ;;  %v3176_v31 = vrot.slane %v17875_v28, 4  ;;  %v20453_v4 = vld [vmem:[#allocation63_spill] sm:$0xff] }
 0x26f   : > { %v3189_v14 = vrot.slane %v2925_v63, 7  ;;  %v12021_v1 = vcombine.low %v1977_v41, %v1978_v20  ;;  %v20448_v24 = vrot.slane %v17838_v48, 4  ;;  %v12046_v8 = vcombine.low %v3280_v9, %v3281_v17  ;;  %v20454_v22 = vld [vmem:[#allocation111_spill] sm:$0xff] }
 0x270   : > { %v12047_v62 = vcombine.low %v3282_v12, %v3283_v51  ;;  %v17970_v15 = vsel %vm17356_vm12, %v3173_v10, %v17875_v28  ;;  %v17975_v13 = vsel %vm17356_vm12, %v3179_v46, %v17888_v30  ;;  %v3400_v48 = vsel %vm3397_vm13, %v3398_v27, %v3399_v56  ;;  %v20508_v34 = vld [vmem:[#allocation135_spill] sm:$0xff] }
 0x271   : > { %v17965_v59 = vsel %vm17356_vm12, %v20448_v24, %v17901_v19  ;;  %v3182_v63 = vrot.slane %v17888_v30, 4  ;;  %v3185_v19 = vrot.slane %v3183_v32, 4  ;;  %v3186_v20 = vrot.slane %v2914_v58, 7  ;;  %v20455_v24 = vld [vmem:[#allocation209_spill] sm:$0xff] }
 0x272   : > { %20449 = vst [vmem:[#allocation162_spill] sm:$0xff] %v17965_v59  ;;  %v17984_v28 = vsel %vm17356_vm12, %v3176_v31, %v17903_v11  ;;  %v3191_v10 = vrot.slane %v3189_v14, 4  ;;  %v3284_v9 = vmul.bf16 %v17965_v59, %v20450_v36  ;;  %v3401_v46 = vrot.slane %v12046_v8, 1  ;;  %v15191_v31 = vld [vmem:[%s19744_s3 + $0x38] sm:$0xff]  }
 0x273   : > { %13890 = vmatmul.mubr.msk.bf16.gmra.mrb[60].mxu1 %vm2249_vm9, %v12021_v1  ;;  %v3403_v17 = vrot.slane %v12047_v62, 1  ;;  %v20451_v1 = vld [vmem:[#allocation49_spill] sm:$0xff]  ;;  %v3287_v30 = vmul.bf16 %v17975_v13, %v20452_v43  ;;  %v17994_v41 = vsel %vm17356_vm12, %v3182_v63, %v3183_v32  ;;  %v17998_v11 = vsel %vm17356_vm12, %v3185_v19, %v3186_v20  ;;  %v20456_v8 = vld [vmem:[#allocation210_spill] sm:$0xff] }
 0x274   : > { %13897 = vmatprep.mubr.msk.bf16.mxu1 %vm2249_vm9, %v3400_v48  ;;  %v3285_v51 = vmul.bf16 %v17970_v15, %v20451_v1  ;;  %v3188_v27 = vrot.slane %v3186_v20, 4  ;;  %v3286_v58 = vmul.bf16 %v17984_v28, %v20453_v4  ;;  %v18005_v12 = vsel %vm17356_vm12, %v3191_v10, %v20454_v22 }
 0x275   : > { %v4617_v32 = vmul.bf16 %v20421_v2, %v20455_v24  ;;  %v4618_v62 = vmul.bf16 %v20420_v35, %v20456_v8  ;;  %v4619_v48 = vmul.bf16 %v20427_v37, %v17508_v61  ;;  %v3402_v63 = vsel %vm3397_vm13, %v3399_v56, %v3401_v46  ;;  %v20458_v56 = vld [vmem:[#allocation67_spill] sm:$0xff] }
 0x276   : > { %v3404_v19 = vsel %vm3397_vm13, %v3401_v46, %v3403_v17  ;;  %v12048_v20 = vcombine.low %v3284_v9, %v3285_v51  ;;  %v12049_v10 = vcombine.low %v3286_v58, %v3287_v30  ;;  %v4620_v1 = vmul.bf16 %v20426_v25, %v17513_v23  ;;  %v20459_v51 = vld [vmem:[#allocation68_spill] sm:$0xff]  ;;  %v20460_v30 = vld [vmem:[#allocation75_spill] sm:$0xff] }
 0x277   : > { %v18019_v36 = vcombine.low %v4617_v32, %v4618_v62  ;;  %v4621_v2 = vmul.bf16 %v17604_v40, %v17524_v50  ;;  %v4622_v35 = vmul.bf16 %v17630_v0, %v17528_v29  ;;  %v18029_v37 = vsel %vm17356_vm12, %v3188_v27, %v3189_v14  ;;  %v18040_v40 = vld [vmem:[%s19744_s3 + $0x40] sm:$0xff]  }
 0x278   : > { %v3288_v9 = vmul.bf16 %v17994_v41, %v20458_v56  ;;  %v4623_v25 = vmul.bf16 %v20432_v55, %v17545_v21  ;;  %v12173_v38 = vcombine.low %v4619_v48, %v4620_v1  ;;  %v3405_v46 = vrot.slane %v12048_v20, 1  ;;  %v20461_v48 = vld [vmem:[#allocation77_spill] sm:$0xff] }
 0x279   : > { %20457 = vst [vmem:[#allocation53_spill] sm:$0xff] %v18019_v36  ;;  %v19933_v0 = vrot.slane %v18019_v36, 1  ;;  %v12174_v14 = vcombine.low %v4621_v2, %v4622_v35  ;;  %v3289_v43 = vmul.bf16 %v17998_v11, %v20459_v51  ;;  %v3291_v55 = vmul.bf16 %v18005_v12, %v20460_v30  ;;  %v20504_v36 = vld [vmem:[#allocation27_spill] sm:$0xff] }
 0x27a   : > { %v4625_v27 = vmul.bf16 %v20434_v44, %v17570_v33  ;;  %v3407_v4 = vrot.slane %v12049_v10, 1  ;;  %v4739_v58 = vrot.slane %v12173_v38, 1  ;;  %v3406_v20 = vsel %vm3397_vm13, %v3403_v17, %v3405_v46 }
 0x27b   : > { %13898 = vmatmul.mubr.msk.bf16.vlgmr.msra.gmra.mrb[32].mxu1 %vm2249_vm9, %v3402_v63  ;;  %v4741_v22 = vrot.slane %v12174_v14, 1  ;;  %v3290_v63 = vmul.bf16 %v18029_v37, %v20461_v48  ;;  %v12050_v10 = vcombine.low %v3288_v9, %v3289_v43  ;;  %v20466_v9 = vrot.slane %v17606_v5, 1  ;;  %v20467_v5 = vld [vmem:[#allocation43_spill] sm:$0xff]  ;;  %v20470_v43 = vld [vmem:[#allocation12_spill] sm:$0xff] }
 0x27c   : > { %13930 = vmatpush3.bf16.msra.mxu1 %v17583_v45  ;;  %13901 = vmatprep.mubr.msk.bf16.mxu1 %vm2249_vm9, %v3404_v19  ;;  %v4624_v45 = vmul.bf16 %v20431_v3, %v17549_v39  ;;  %v12176_v62 = vcombine.low %v4625_v27, %v4625_v27  ;;  %v18057_v3 = vsel %vm3397_vm13, %v19933_v0, %v4739_v58  ;;  %v18101_v27 = vld [vmem:[#allocation2 + $0x8] sm:$0xf]  ;;  %v18170_v0 = vld [vmem:[#allocation2 + $0x34] sm:$0xf] }
 0x27d   : > { %13931 = vmatprep.subr.bf16.mxu1 %v15191_v31  ;;  %20462 = vst [vmem:[#allocation70_spill] sm:$0xff] %v18057_v3  ;;  %v18060_v19 = vsel %vm3397_vm13, %v4739_v58, %v4741_v22  ;;  %v12051_v2 = vcombine.low %v3290_v63, %v3291_v55  ;;  %v20477_v48 = vld [vmem:[#allocation119_spill] sm:$0xff]  ;;  %v20500_v3 = vld [vmem:[#allocation18_spill] sm:$0xff] }
 0x27e   : > { %v12175_v32 = vcombine.low %v4623_v25, %v4624_v45  ;;  %20463 = vst [vmem:[#allocation163_spill] sm:$0xff] %v18060_v19  ;;  %v4745_v1 = vrot.slane %v12176_v62, 1  ;;  %v3409_v25 = vrot.slane %v12050_v10, 1  ;;  %v5939_v63 = vmul.bf16 %v20477_v48, %v17545_v21  ;;  %v18180_v48 = vld [vmem:[#allocation2 + $0x3c] sm:$0xf] }
 0x27f   : > { %v3411_v38 = vrot.slane %v12051_v2, 1 }
 0x280   : > { %13932 = vmatpush3.bf16.msra.mxu1 %v15191_v31  ;;  %v4743_v44 = vrot.slane %v12175_v32, 1  ;;  %v3408_v31 = vsel %vm3397_vm13, %v3405_v46, %v3407_v4  ;;  %v3410_v14 = vsel %vm3397_vm13, %v3407_v4, %v3409_v25  ;;  %v20468_v46 = vld [vmem:[#allocation11_spill] sm:$0xff]  ;;  %v20474_v4 = vld [vmem:[#allocation102_spill] sm:$0xff] }
 0x281   : > { %13965 = vmatprep.subr.bf16.mxu1 %v18040_v40  ;;  %v3412_v17 = vsel %vm3397_vm13, %v3409_v25, %v3411_v38  ;;  %v3414_v45 = vsel %vm3397_vm13, %v3411_v38, %v20466_v9  ;;  %v20476_v32 = vld [vmem:[#allocation30_spill] sm:$0xff]  ;;  %v15193_v38 = vld [vmem:[%s19744_s3 + $0x48] sm:$0xff]  }
 0x282   : > { %v18066_v35 = vsel %vm3397_vm13, %v4741_v22, %v4743_v44  ;;  %v18070_v56 = vsel %vm3397_vm13, %v4743_v44, %v4745_v1  ;;  %v20475_v22 = vld [vmem:[#allocation10_spill] sm:$0xff]  ;;  %v18109_v44 = vld [vmem:[#allocation2 + $0xc] sm:$0xf] }
 0x283   : > { %13902 = vmatmul.mubr.msk.bf16.gmra.mrb[36].mxu1 %vm2249_vm9, %v3406_v20  ;;  %20464 = vst [vmem:[#allocation158_spill] sm:$0xff] %v18066_v35  ;;  %20465 = vst [vmem:[#allocation65_spill] sm:$0xff] %v18070_v56  ;;  %v3719_v62 = vmul.bf16 %v20476_v32, %v20475_v22  ;;  %v7393_v2 = vmul.bf16 %v18109_v44, %v20475_v22  ;;  %v7358_v9 = vld [vmem:[#allocation2] sm:$0xf]  ;;  %v20484_v32 = vld [vmem:[#allocation19_spill] sm:$0xff] }
 0x284   : > { %13905 = vmatprep.mubr.msk.bf16.mxu1 %vm2249_vm9, %v3408_v31  ;;  %v20493_v56 = vld [vmem:[#allocation26_spill] sm:$0xff]  ;;  %v20497_v35 = vld [vmem:[#allocation21_spill] sm:$0xff] }
 0x28b   : > { %13906 = vmatmul.mubr.msk.bf16.gmra.mrb[40].mxu1 %vm2249_vm9, %v3410_v14 }
 0x28c   : > { %13909 = vmatprep.mubr.msk.bf16.mxu1 %vm2249_vm9, %v3412_v17 }
 0x293   : > { %13910 = vmatmul.mubr.msk.bf16.gmra.mrb[44].mxu1 %vm2249_vm9, %v3414_v45 }
 0x294   : > { %13913 = vmatprep.mubr.msk.bf16.mxu1 %vm2249_vm9, %v17668_v42  ;;  %v20469_v42 = vld [vmem:[#allocation55_spill] sm:$0xff] }
 0x295   : > { %v3717_v51 = vmul.bf16 %v20469_v42, %v20468_v46  ;;  %v18126_v42 = vld [vmem:[#allocation2 + $0x4] sm:$0xf] }
 0x29b   : > { %13914 = vmatmul.mubr.msk.bf16.gmra.mrb[48].mxu1 %vm2249_vm9, %v17681_v49  ;;  %v20471_v49 = vld [vmem:[#allocation59_spill] sm:$0xff] }
 0x29c   : > { %13917 = vmatprep.mubr.msk.bf16.mxu1 %vm2249_vm9, %v17684_v18  ;;  %v3716_v30 = vmul.bf16 %v20471_v49, %v20470_v43  ;;  %v20472_v18 = vld [vmem:[#allocation136_spill] sm:$0xff] }
 0x29d   : > { %v20480_v49 = vld [vmem:[#allocation116_spill] sm:$0xff] }
 0x29e   : > { %v12083_v55 = vcombine.low %v3716_v30, %v3717_v51  ;;  %v18128_v51 = vld [vmem:[#allocation2 + $0x10] sm:$0xf]  ;;  %v20481_v30 = vld [vmem:[#allocation29_spill] sm:$0xff] }
 0x2a3   : > { %13918 = vmatmul.mubr.msk.bf16.gmra.mrb[52].mxu1 %vm2249_vm9, %v17695_v57  ;;  %v5433_v57 = vld [vmem:[#allocation2 + $0x8c] sm:$0xf] }
 0x2a4   : > { %13921 = vmatprep.mubr.msk.bf16.mxu1 %vm2249_vm9, %v17708_v7  ;;  %v5434_v7 = vld [vmem:[#allocation2 + $0x90] sm:$0x1]  ;;  %v5940_v20 = vmul.bf16 %v5433_v57, %v17549_v39  ;;  %v18135_v57 = vld [vmem:[#allocation2 + $0x14] sm:$0xf] }
 0x2a5   : > { %v5941_v10 = vmul.bf16 %v5434_v7, %v17570_v33  ;;  %v18137_v7 = vld [vmem:[#allocation2 + $0x18] sm:$0xf]  ;;  %v20510_v33 = vld [vmem:[#allocation50_spill] sm:$0xff]  ;;  %v20514_v39 = vld [vmem:[#allocation52_spill] sm:$0xff] }
 0x2a6   : > { %v18115_v31 = vcombine.low %v5939_v63, %v5940_v20  ;;  %v18153_v20 = vld [vmem:[#allocation2 + $0x20] sm:$0xf] }
 0x2a7   : > { %v12292_v14 = vcombine.low %v5941_v10, %v5941_v10  ;;  %v18155_v10 = vld [vmem:[#allocation2 + $0x24] sm:$0xf] }
 0x2a8   : > { %20478 = vst [vmem:[#allocation66_spill] sm:$0xff] %v18115_v31  ;;  %v19932_v17 = vrot.slane %v18115_v31, 1  ;;  %v18178_v31 = vld [vmem:[#allocation2 + $0x38] sm:$0xf] }
 0x2ab   : > { %13922 = vmatmul.mubr.msk.bf16.gmra.mrb[56].mxu1 %vm2249_vm9, %v17711_v60  ;;  %v20473_v60 = vld [vmem:[#allocation78_spill] sm:$0xff] }
 0x2ac   : > { %13925 = vmatprep.mubr.msk.bf16.mxu1 %vm2249_vm9, %v20467_v5  ;;  %v3718_v58 = vmul.bf16 %v20474_v4, %v20473_v60  ;;  %v7392_v1 = vmul.bf16 %v18101_v27, %v20473_v60  ;;  %v6061_v5 = vrot.slane %v12292_v14, 1  ;;  %v18139_v4 = vld [vmem:[#allocation2 + $0x1c] sm:$0xf]  ;;  %v18162_v14 = vld [vmem:[#allocation2 + $0x2c] sm:$0xf] }
 0x2ae   : > { %v12084_v25 = vcombine.low %v3718_v58, %v3719_v62  ;;  %v18123_v45 = vcombine.low %v7392_v1, %v7393_v2  ;;  %v20483_v58 = vld [vmem:[#allocation28_spill] sm:$0xff]  ;;  %v18151_v63 = vsel %vm3397_vm13, %v19932_v17, %v6061_v5  ;;  %v7390_v1 = vmul.bf16 %v7358_v9, %v20470_v43 }
 0x2af   : > { %v3723_v62 = vmul.bf16 %v20484_v32, %v20483_v58  ;;  %20485 = vst [vmem:[#allocation71_spill] sm:$0xff] %v18151_v63  ;;  %v7391_v2 = vmul.bf16 %v18126_v42, %v20468_v46  ;;  %v20487_v32 = vld [vmem:[#allocation35_spill] sm:$0xff]  ;;  %v18168_v17 = vld [vmem:[#allocation2 + $0x30] sm:$0xf]  ;;  %v7396_v9 = vmul.bf16 %v18137_v7, %v20481_v30  ;;  %v7397_v63 = vmul.bf16 %v18139_v4, %v20483_v58  ;;  %v18195_v58 = vld [vmem:[#allocation2 + $0x4c] sm:$0xf] }
 0x2b0   : > { %20479 = vst [vmem:[#allocation156_spill] sm:$0xff] %v18123_v45  ;;  %v7395_v5 = vmul.bf16 %v18135_v57, %v20487_v32  ;;  %v20490_v32 = vld [vmem:[#allocation15_spill] sm:$0xff]  ;;  %v20496_v46 = vld [vmem:[#allocation33_spill] sm:$0xff] }
 0x2b1   : > { %v18172_v45 = vcombine.low %v7390_v1, %v7391_v2  ;;  %v20491_v1 = vld [vmem:[#allocation14_spill] sm:$0xff]  ;;  %v18197_v22 = vcombine.low %v7396_v9, %v7397_v63  ;;  %v7402_v43 = vmul.bf16 %v18168_v17, %v20496_v46  ;;  %v7403_v63 = vmul.bf16 %v18170_v0, %v20497_v35  ;;  %v20502_v46 = vld [vmem:[#allocation141_spill] sm:$0xff]  ;;  %v18230_v35 = vld [vmem:[#allocation2 + $0x64] sm:$0xf] }
 0x2b2   : > { %v7399_v2 = vmul.bf16 %v18155_v10, %v20491_v1  ;;  %v18205_v1 = vld [vmem:[#allocation2 + $0x54] sm:$0xf]  ;;  %v18216_v9 = vld [vmem:[#allocation2 + $0x5c] sm:$0xf] }
 0x2b3   : > { %13926 = vmatmul.mubr.msk.bf16.gmra.mrb[60].mxu1 %vm2249_vm9, %v20472_v18  ;;  %20488 = vst [vmem:[#allocation74_spill] sm:$0xff] %v18172_v45  ;;  %20492 = vst [vmem:[#allocation79_spill] sm:$0xff] %v18197_v22  ;;  %v18218_v22 = vld [vmem:[#allocation2 + $0x60] sm:$0xf] }
 0x2b4   : > { %13933 = vmatprep.mubr.msk.bf16.mxu1 %vm2249_vm9, %v12083_v55  ;;  %v20482_v55 = vld [vmem:[#allocation88_spill] sm:$0xff] }
 0x2b5   : > { %v3722_v18 = vmul.bf16 %v20482_v55, %v20481_v30  ;;  %v18191_v30 = vld [vmem:[#allocation2 + $0x44] sm:$0xf] }
 0x2b7   : > { %v12086_v45 = vcombine.low %v3722_v18, %v3723_v62  ;;  %v18207_v18 = vld [vmem:[#allocation2 + $0x58] sm:$0xf] }
 0x2bb   : > { %13934 = vmatmul.mubr.msk.bf16.vlgmr.msra.gmra.mrb[32].mxu1 %vm2249_vm9, %v12084_v25  ;;  %v18160_v25 = vld [vmem:[#allocation2 + $0x28] sm:$0xf] }
 0x2bc   : > { %13966 = vmatpush3.bf16.msra.mxu1 %v18040_v40  ;;  %13937 = vmatprep.mubr.msk.bf16.mxu1 %vm2249_vm9, %v20480_v49  ;;  %v18146_v40 = vld [vmem:[%s19744_s3 + $0x50] sm:$0xff]  }
 0x2bd   : > { %13967 = vmatprep.subr.bf16.mxu1 %v15193_v38  ;;  %v20486_v49 = vld [vmem:[#allocation13_spill] sm:$0xff] }
 0x2be   : > { %v7394_v55 = vmul.bf16 %v18128_v51, %v20486_v49  ;;  %v7398_v49 = vmul.bf16 %v18153_v20, %v20490_v32  ;;  %v18203_v32 = vld [vmem:[#allocation2 + $0x50] sm:$0xf] }
 0x2c0   : > { %13968 = vmatpush3.bf16.msra.mxu1 %v15193_v38  ;;  %v18184_v60 = vcombine.low %v7394_v55, %v7395_v5  ;;  %v18193_v38 = vld [vmem:[#allocation2 + $0x48] sm:$0xf]  ;;  %v7400_v55 = vmul.bf16 %v18160_v25, %v20493_v56  ;;  %v20494_v5 = vld [vmem:[#allocation37_spill] sm:$0xff]  ;;  %v18209_v62 = vcombine.low %v7398_v49, %v7399_v2  ;;  %v7405_v49 = vmul.bf16 %v18180_v48, %v20500_v3  ;;  %v20501_v2 = vld [vmem:[#allocation110_spill] sm:$0xff] }
 0x2c1   : > { %14001 = vmatprep.subr.bf16.mxu1 %v18146_v40 }
 0x2c2   : > { %20489 = vst [vmem:[#allocation182_spill] sm:$0xff] %v18184_v60  ;;  %v7401_v60 = vmul.bf16 %v18162_v14, %v20494_v5  ;;  %20495 = vst [vmem:[#allocation183_spill] sm:$0xff] %v18209_v62  ;;  %v20499_v5 = vld [vmem:[#allocation34_spill] sm:$0xff]  ;;  %v7406_v62 = vmul.bf16 %v18182_v54, %v20501_v2  ;;  %v7410_v2 = vmul.bf16 %v18203_v32, %v20508_v34  ;;  %v20516_v34 = vld [vmem:[#allocation47_spill] sm:$0xff] }
 0x2c3   : > { %13938 = vmatmul.mubr.msk.bf16.gmra.mrb[36].mxu1 %vm2249_vm9, %v12086_v45  ;;  %v7404_v19 = vmul.bf16 %v18178_v31, %v20499_v5  ;;  %v18232_v45 = vcombine.low %v7402_v43, %v7403_v63  ;;  %v20506_v5 = vld [vmem:[#allocation36_spill] sm:$0xff]  ;;  %v7412_v43 = vmul.bf16 %v18207_v18, %v20510_v33 }
 0x2c4   : > { %v18220_v56 = vcombine.low %v7400_v55, %v7401_v60  ;;  %13941 = vmatprep.mubr.msk.bf16.mxu1 %vm2249_vm9, %v20502_v46  ;;  %v7407_v60 = vmul.bf16 %v18191_v30, %v20504_v36  ;;  %v20505_v55 = vld [vmem:[#allocation127_spill] sm:$0xff]  ;;  %v7409_v52 = vmul.bf16 %v18195_v58, %v20506_v5  ;;  %v7411_v46 = vmul.bf16 %v18205_v1, %v20509_v26  ;;  %v20513_v36 = vld [vmem:[#allocation134_spill] sm:$0xff]  ;;  %v20522_v33 = vld [vmem:[#allocation184_spill] sm:$0xff] }
 0x2c5   : > { %20503 = vst [vmem:[#allocation188_spill] sm:$0xff] %v18232_v45  ;;  %v18240_v3 = vcombine.low %v7404_v19, %v7405_v49  ;;  %v7414_v19 = vmul.bf16 %v18218_v22, %v20514_v39  ;;  %v8168_v49 = vld [vmem:[#allocation2] sm:$0xe]  ;;  %v7415_v5 = vmul.bf16 %v18230_v35, %v20516_v34  ;;  %v8172_v39 = vmul.bf16 %v18109_v44, %v20522_v33 }
 0x2c6   : > { %20498 = vst [vmem:[#allocation177_spill] sm:$0xff] %v18220_v56  ;;  %v7408_v56 = vmul.bf16 %v18193_v38, %v20505_v55  ;;  %v18248_v63 = vcombine.low %v7406_v62, %v7407_v60  ;;  %v7413_v55 = vmul.bf16 %v18216_v9, %v20513_v36  ;;  %v20519_v62 = vld [vmem:[#allocation164_spill] sm:$0xff]  ;;  %v8176_v44 = vmul.bf16 %v18139_v4, %v17886_v53  ;;  %v8982_v36 = vld [vmem:[#allocation2 + $0x20] sm:$0xf] }
 0x2c7   : > { %20507 = vst [vmem:[#allocation181_spill] sm:$0xff] %v18240_v3  ;;  %v18256_v3 = vcombine.low %v7410_v2, %v7411_v46  ;;  %v18262_v21 = vcombine.low %v7414_v19, %v7415_v5  ;;  %v8169_v60 = vmul.bf16 %v8168_v49, %v20519_v62  ;;  %v20523_v2 = vld [vmem:[#allocation90_spill] sm:$0xff]  ;;  %v8174_v5 = vmul.bf16 %v18135_v57, %v17873_v6 }
 0x2c8   : > { %20511 = vst [vmem:[#allocation72_spill] sm:$0xff] %v18248_v63  ;;  %v18250_v45 = vcombine.low %v7408_v56, %v7409_v52  ;;  %v18260_v26 = vcombine.low %v7412_v43, %v7413_v55  ;;  %v20520_v52 = vld [vmem:[#allocation178_spill] sm:$0xff]  ;;  %v8173_v55 = vmul.bf16 %v18128_v51, %v17864_v16  ;;  %v8175_v46 = vmul.bf16 %v18137_v7, %v17881_v47  ;;  %v20524_v43 = vld [vmem:[#allocation91_spill] sm:$0xff] }
 0x2c9   : > { %20515 = vst [vmem:[#allocation207_spill] sm:$0xff] %v18256_v3  ;;  %20518 = vst [vmem:[#allocation204_spill] sm:$0xff] %v18262_v21  ;;  %v8170_v56 = vmul.bf16 %v18126_v42, %v20520_v52  ;;  %v8177_v19 = vmul.bf16 %v18153_v20, %v17965_v59  ;;  %v8178_v51 = vmul.bf16 %v18155_v10, %v17970_v15 }
 0x2ca   : > { %20512 = vst [vmem:[#allocation76_spill] sm:$0xff] %v18250_v45  ;;  %20517 = vst [vmem:[#allocation206_spill] sm:$0xff] %v18260_v26  ;;  %v20521_v45 = vld [vmem:[#allocation159_spill] sm:$0xff]  ;;  %v12474_v49 = vcombine.low %v8173_v55, %v8174_v5  ;;  %v8179_v57 = vmul.bf16 %v18160_v25, %v17984_v28  ;;  %v8180_v7 = vmul.bf16 %v18162_v14, %v17975_v13  ;;  %v8981_v26 = vld [vmem:[#allocation2 + $0x1c] sm:$0xf] }
 0x2cb   : > { %v8171_v63 = vmul.bf16 %v18101_v27, %v20521_v45  ;;  %13942 = vmatmul.mubr.msk.bf16.gmra.mrb[40].mxu1 %vm2249_vm9, %v20523_v2  ;;  %v12472_v42 = vcombine.low %v8169_v60, %v8170_v56  ;;  %v12475_v60 = vcombine.low %v8175_v46, %v8176_v44  ;;  %v8182_v20 = vmul.bf16 %v18170_v0, %v17998_v11  ;;  %v20528_v44 = vld [vmem:[#allocation192_spill] sm:$0xff] }
 0x2cc   : > { %13945 = vmatprep.mubr.msk.bf16.mxu1 %vm2249_vm9, %v20524_v43  ;;  %v8292_v4 = vrot.slane %v12474_v49, 1  ;;  %v12477_v56 = vcombine.low %v8179_v57, %v8180_v7  ;;  %v8183_v25 = vmul.bf16 %v18178_v31, %v18029_v37  ;;  %v8184_v14 = vmul.bf16 %v18180_v48, %v18005_v12  ;;  %v20529_v49 = vld [vmem:[#allocation193_spill] sm:$0xff] }
 0x2cd   : > { %v12473_v27 = vcombine.low %v8171_v63, %v8172_v39  ;;  %v8289_v2 = vrot.slane %v12472_v42, 1  ;;  %v8181_v39 = vmul.bf16 %v18168_v17, %v17994_v41  ;;  %v12476_v63 = vcombine.low %v8177_v19, %v8178_v51  ;;  %v20530_v31 = vld [vmem:[#allocation117_spill] sm:$0xff] }
 0x2ce   : > { %v8294_v55 = vrot.slane %v12475_v60, 1  ;;  %v8298_v46 = vrot.slane %v12477_v56, 1  ;;  %v12479_v0 = vcombine.low %v8183_v25, %v8184_v14  ;;  %v8185_v19 = vmul.bf16 %v18182_v54, %v20528_v44  ;;  %v20534_v60 = vld [vmem:[#allocation121_spill] sm:$0xff]  ;;  %v20539_v14 = vld [vmem:[#allocation54_spill] sm:$0xff] }
 0x2cf   : > { %v8290_v43 = vrot.slane %v12473_v27, 1  ;;  %v8296_v17 = vrot.slane %v12476_v63, 1  ;;  %v12478_v42 = vcombine.low %v8181_v39, %v8182_v20  ;;  %v8186_v51 = vmul.bf16 %v18191_v30, %v20529_v49  ;;  %v20536_v63 = vld [vmem:[#allocation200_spill] sm:$0xff] }
 0x2d0   : > { %v18306_v27 = vsel %vm3397_vm13, %v8292_v4, %v8294_v55  ;;  %v8302_v54 = vrot.slane %v12479_v0, 1  ;;  %v8189_v56 = vmul.bf16 %v18203_v32, %v20536_v63  ;;  %v8193_v32 = vmul.bf16 %v18218_v22, %v20455_v24 }
 0x2d1   : > { %v18296_v10 = vsel %vm3397_vm13, %v8289_v2, %v8290_v43  ;;  %v18303_v5 = vsel %vm3397_vm13, %v8290_v43, %v8292_v4  ;;  %20527 = vst [vmem:[#allocation208_spill] sm:$0xff] %v18306_v27  ;;  %v18315_v48 = vsel %vm3397_vm13, %v8294_v55, %v8296_v17  ;;  %v18318_v57 = vsel %vm3397_vm13, %v8296_v17, %v8298_v46  ;;  %v20533_v2 = vld [vmem:[#allocation194_spill] sm:$0xff]  ;;  %v20535_v4 = vld [vmem:[#allocation195_spill] sm:$0xff]  ;;  %v20538_v55 = vld [vmem:[#allocation201_spill] sm:$0xff] }
 0x2d2   : > { %20525 = vst [vmem:[#allocation205_spill] sm:$0xff] %v18296_v10  ;;  %20526 = vst [vmem:[#allocation80_spill] sm:$0xff] %v18303_v5  ;;  %v8300_v7 = vrot.slane %v12478_v42, 1  ;;  %v8187_v43 = vmul.bf16 %v18193_v38, %v20533_v2  ;;  %v12480_v39 = vcombine.low %v8185_v19, %v8186_v51  ;;  %v8188_v30 = vmul.bf16 %v18195_v58, %v20535_v4  ;;  %v20540_v17 = vld [vmem:[#allocation39_spill] sm:$0xff]  ;;  %v8980_v10 = vld [vmem:[#allocation2 + $0x18] sm:$0xf] }
 0x2d3   : > { %13946 = vmatmul.mubr.msk.bf16.gmra.mrb[44].mxu1 %vm2249_vm9, %v20530_v31  ;;  %20531 = vst [vmem:[#allocation213_spill] sm:$0xff] %v18315_v48  ;;  %20532 = vst [vmem:[#allocation58_spill] sm:$0xff] %v18318_v57  ;;  %v8190_v25 = vmul.bf16 %v18205_v1, %v20538_v55  ;;  %v8191_v38 = vmul.bf16 %v18207_v18, %v20539_v14  ;;  %v8192_v42 = vmul.bf16 %v18216_v9, %v20540_v17  ;;  %v20563_v57 = vld [vmem:[#allocation122_spill] sm:$0xff] }
 0x2d4   : > { %13949 = vmatprep.mubr.msk.bf16.mxu1 %vm2249_vm9, %v20534_v60  ;;  %v18329_v20 = vsel %vm3397_vm13, %v8298_v46, %v8300_v7  ;;  %v18338_v0 = vsel %vm3397_vm13, %v8300_v7, %v8302_v54  ;;  %v8304_v19 = vrot.slane %v12480_v39, 1  ;;  %v12481_v58 = vcombine.low %v8187_v43, %v8188_v30  ;;  %v20545_v43 = vld [vmem:[#allocation123_spill] sm:$0xff]  ;;  %v20564_v48 = vld [vmem:[#allocation118_spill] sm:$0xff] }
 0x2d5   : > { %20537 = vst [vmem:[#allocation24_spill] sm:$0xff] %v18329_v20  ;;  %20541 = vst [vmem:[#allocation20_spill] sm:$0xff] %v18338_v0  ;;  %v12482_v51 = vcombine.low %v8189_v56, %v8190_v25  ;;  %v12483_v46 = vcombine.low %v8191_v38, %v8192_v42  ;;  %v8194_v31 = vmul.bf16 %v18230_v35, %v20456_v8  ;;  %v20550_v56 = vld [vmem:[#allocation137_spill] sm:$0xff]  ;;  %v20551_v25 = vld [vmem:[#allocation56_spill] sm:$0xff] }
 0x2d6   : > { %v18345_v1 = vsel %vm3397_vm13, %v8302_v54, %v8304_v19  ;;  %v8306_v18 = vrot.slane %v12481_v58, 1  ;;  %v20548_v54 = vld [vmem:[#allocation130_spill] sm:$0xff]  ;;  %v20552_v38 = vld [vmem:[#allocation60_spill] sm:$0xff]  ;;  %v20562_v0 = vld [vmem:[#allocation157_spill] sm:$0xff]  ;;  %v12125_v27 = vcombine.low %v20564_v48, %v20563_v57 }
 0x2d7   : > { %20542 = vst [vmem:[#allocation100_spill] sm:$0xff] %v18345_v1  ;;  %v8308_v60 = vrot.slane %v12482_v51, 1  ;;  %v8310_v20 = vrot.slane %v12483_v46, 1  ;;  %v18347_v9 = vcombine.low %v8193_v32, %v8194_v31  ;;  %v12121_v42 = vcombine.low %v20552_v38, %v20551_v25  ;;  %v20554_v32 = vld [vmem:[#allocation84_spill] sm:$0xff]  ;;  %v20555_v51 = vld [vmem:[#allocation103_spill] sm:$0xff]  ;;  %v20556_v31 = vld [vmem:[#allocation150_spill] sm:$0xff] }
 0x2d8   : > { %v18350_v7 = vsel %vm3397_vm13, %v8304_v19, %v8306_v18  ;;  %v20553_v19 = vld [vmem:[#allocation146_spill] sm:$0xff]  ;;  %v12122_v46 = vcombine.low %v20555_v51, %v20554_v32  ;;  %v9481_v1 = vld [vmem:[#allocation2 + $0x8] sm:$0xe]  ;;  %v4239_v34 = vshll.u32 %v12125_v27, 16  ;;  %v8983_v57 = vld [vmem:[#allocation2 + $0x24] sm:$0xf] }
 0x2d9   : > { %20543 = vst [vmem:[#allocation25_spill] sm:$0xff] %v18347_v9  ;;  %20544 = vst [vmem:[#allocation106_spill] sm:$0xff] %v18350_v7  ;;  %v18355_v22 = vsel %vm3397_vm13, %v8306_v18, %v8308_v60  ;;  %v18358_v39 = vsel %vm3397_vm13, %v8308_v60, %v8310_v20  ;;  %v19949_v35 = vrot.slane %v18347_v9, 1  ;;  %v4210_v58 = vshll.u32 %v12121_v42, 16  ;;  %v20557_v60 = vld [vmem:[#allocation92_spill] sm:$0xff] }
 0x2da   : > { %20546 = vst [vmem:[#allocation82_spill] sm:$0xff] %v18355_v22  ;;  %20547 = vst [vmem:[#allocation22_spill] sm:$0xff] %v18358_v39  ;;  %v20561_v39 = vld [vmem:[#allocation93_spill] sm:$0xff]  ;;  %v8977_v7 = vld [vmem:[#allocation2 + $0xc] sm:$0xf]  ;;  %v4219_v21 = vshrl.u32 %v12122_v46, 16 }
 0x2db   : > { %13950 = vmatmul.mubr.msk.bf16.gmra.mrb[48].mxu1 %vm2249_vm9, %v20545_v43  ;;  %v18366_v30 = vsel %vm3397_vm13, %v8310_v20, %v19949_v35  ;;  %v4212_v18 = vrot.slane %v4210_v58, 1  ;;  %v20558_v20 = vld [vmem:[#allocation89_spill] sm:$0xff]  ;;  %v4215_v35 = vshll.u32 %v12122_v46, 16  ;;  %v20567_v46 = vld [vmem:[#allocation147_spill] sm:$0xff] }
 0x2dc   : > { %13953 = vmatprep.mubr.msk.bf16.mxu1 %vm2249_vm9, %v20548_v54  ;;  %20549 = vst [vmem:[#allocation107_spill] sm:$0xff] %v18366_v30  ;;  %v12123_v43 = vcombine.low %v20558_v20, %v20557_v60  ;;  %v20559_v54 = vld [vmem:[#allocation142_spill] sm:$0xff] }
 0x2dd   : > { %v4217_v30 = vrot.slane %v4215_v35, 1  ;;  %v9482_v35 = vmul.bf16 %v9481_v1, %v20519_v62  ;;  %v9486_v1 = vmul.bf16 %v8980_v10, %v17864_v16  ;;  %v20568_v60 = vld [vmem:[#allocation138_spill] sm:$0xff] }
 0x2de   : > { %v4223_v9 = vshll.u32 %v12123_v43, 16 }
 0x2df   : > { %v4221_v48 = vor.u32 %v4219_v21, %v4217_v30  ;;  %v8985_v21 = vld [vmem:[#allocation2 + $0x2c] sm:$0xf] }
 0x2e3   : > { %13954 = vmatmul.mubr.msk.bf16.gmra.mrb[52].mxu1 %vm2249_vm9, %v20550_v56  ;;  %v4208_v56 = vshrl.u32 %v12121_v42, 16  ;;  %v8979_v42 = vld [vmem:[#allocation2 + $0x14] sm:$0xf] }
 0x2e4   : > { %13957 = vmatprep.mubr.msk.bf16.mxu1 %vm2249_vm9, %v20553_v19  ;;  %v20560_v19 = vld [vmem:[#allocation40_spill] sm:$0xff] }
 0x2e5   : > { %v4213_v38 = vor.u32 %v4212_v18, %v4208_v56  ;;  %v12124_v22 = vcombine.low %v20561_v39, %v20560_v19  ;;  %v9483_v18 = vmul.bf16 %v8977_v7, %v20520_v52  ;;  %v4227_v56 = vshrl.u32 %v12123_v43, 16  ;;  %v20565_v43 = vld [vmem:[#allocation131_spill] sm:$0xff]  ;;  %v20566_v19 = vld [vmem:[#allocation124_spill] sm:$0xff] }
 0x2e6   : > { %v18397_v39 = vcombine.low %v20566_v19, %v20565_v43  ;;  %v9489_v43 = vmul.bf16 %v8983_v57, %v17886_v53 }
 0x2e7   : > { %v4218_v58 = vsel %vm2104_vm8, %v4213_v38, %v4217_v30  ;;  %v4231_v5 = vshll.u32 %v12124_v22, 16  ;;  %v4235_v3 = vshrl.u32 %v12124_v22, 16  ;;  %v15204_v22 = vld [vmem:[%s19744_s3 + $0x58] sm:$0xff]   ;;  %v9487_v30 = vmul.bf16 %v8981_v26, %v17873_v6 }
 0x2e8   : > { %v4243_v26 = vshrl.u32 %v12125_v27, 16  ;;  %v8988_v27 = vld [vmem:[#allocation2 + $0x38] sm:$0xf] }
 0x2e9   : > { %v4233_v7 = vrot.slane %v4231_v5, 1 }
 0x2eb   : > { %13958 = vmatmul.mubr.msk.bf16.gmra.mrb[56].mxu1 %vm2249_vm9, %v20556_v31  ;;  %v4225_v31 = vrot.slane %v4223_v9, 1  ;;  %v9485_v9 = vmul.bf16 %v8979_v42, %v20522_v33  ;;  %v8984_v42 = vld [vmem:[#allocation2 + $0x28] sm:$0xf] }
 0x2ec   : > { %13961 = vmatprep.mubr.msk.bf16.mxu1 %vm2249_vm9, %v20559_v54  ;;  %v8978_v54 = vld [vmem:[#allocation2 + $0x10] sm:$0xf] }
 0x2ed   : > { %v4229_v38 = vor.u32 %v4227_v56, %v4225_v31 }
 0x2ef   : > { %v4234_v56 = vsel %vm2104_vm8, %v4229_v38, %v4233_v7 }
 0x2f3   : > { %13962 = vmatmul.mubr.msk.bf16.gmra.mrb[60].mxu1 %vm2249_vm9, %v20562_v0  ;;  %v9484_v0 = vmul.bf16 %v8978_v54, %v20521_v45  ;;  %v18401_v54 = vcombine.low %v20568_v60, %v20567_v46  ;;  %v8987_v60 = vld [vmem:[#allocation2 + $0x34] sm:$0xf]  ;;  %v12590_v46 = vcombine.low %v9486_v1, %v9487_v30 }
 0x2f4   : > { %13969 = vmatprep.mubr.msk.bf16.mxu1 %vm2249_vm9, %v4218_v58  ;;  %v12588_v58 = vcombine.low %v9482_v35, %v9483_v18  ;;  %v4226_v35 = vsel %vm2104_vm8, %v4221_v48, %v4225_v31  ;;  %v9488_v18 = vmul.bf16 %v8982_v36, %v17881_v47  ;;  %v9490_v36 = vmul.bf16 %v8984_v42, %v17965_v59 }
 0x2f5   : > { %v12589_v20 = vcombine.low %v9484_v0, %v9485_v9  ;;  %v4241_v0 = vrot.slane %v4239_v34, 1  ;;  %v8986_v9 = vld [vmem:[#allocation2 + $0x30] sm:$0xf]  ;;  %v4237_v31 = vor.u32 %v4235_v3, %v4233_v7  ;;  %v4247_v34 = vshll.u32 %v18397_v39, 16 }
 0x2f6   : > { %v9602_v10 = vrot.slane %v12588_v58, 1  ;;  %v4255_v38 = vshll.u32 %v18401_v54, 16  ;;  %v9605_v57 = vrot.slane %v12590_v46, 1  ;;  %v12591_v58 = vcombine.low %v9488_v18, %v9489_v43  ;;  %v20571_v18 = vld [vmem:[#allocation143_spill] sm:$0xff] }
 0x2f7   : > { %v9603_v5 = vrot.slane %v12589_v20, 1  ;;  %v9491_v20 = vmul.bf16 %v8985_v21, %v17970_v15  ;;  %v9492_v30 = vmul.bf16 %v8986_v9, %v17984_v28  ;;  %v9493_v42 = vmul.bf16 %v8987_v60, %v17975_v13  ;;  %v8989_v21 = vld [vmem:[#allocation2 + $0x3c] sm:$0xf]  ;;  %v8992_v60 = vld [vmem:[#allocation2 + $0x48] sm:$0xf] }
 0x2f8   : > { %v4242_v3 = vsel %vm2104_vm8, %v4237_v31, %v4241_v0  ;;  %v4245_v7 = vor.u32 %v4243_v26, %v4241_v0  ;;  %v4249_v19 = vrot.slane %v4247_v34, 1  ;;  %v4257_v43 = vrot.slane %v4255_v38, 1  ;;  %v8993_v0 = vld [vmem:[#allocation2 + $0x4c] sm:$0xf]  ;;  %v20575_v38 = vld [vmem:[#allocation165_spill] sm:$0xff] }
 0x2f9   : > { %v18415_v48 = vsel %vm3397_vm13, %v9602_v10, %v9603_v5  ;;  %v12592_v1 = vcombine.low %v9490_v36, %v9491_v20  ;;  %v8991_v10 = vld [vmem:[#allocation2 + $0x44] sm:$0xf]  ;;  %v12593_v46 = vcombine.low %v9492_v30, %v9493_v42  ;;  %v9495_v31 = vmul.bf16 %v8989_v21, %v17998_v11  ;;  %v8994_v30 = vld [vmem:[#allocation2 + $0x50] sm:$0xf]  ;;  %v8995_v42 = vld [vmem:[#allocation2 + $0x54] sm:$0xf] }
 0x2fa   : > { %20569 = vst [vmem:[#allocation31_spill] sm:$0xff] %v18415_v48  ;;  %v9607_v48 = vrot.slane %v12591_v58, 1  ;;  %v20572_v36 = vld [vmem:[#allocation151_spill] sm:$0xff]  ;;  %v4250_v34 = vsel %vm2104_vm8, %v4245_v7, %v4249_v19  ;;  %v20576_v58 = vld [vmem:[#allocation160_spill] sm:$0xff]  ;;  %v9499_v7 = vmul.bf16 %v8993_v0, %v20529_v49  ;;  %v20579_v0 = vld [vmem:[#allocation166_spill] sm:$0xff] }
 0x2fb   : > { %13970 = vmatmul.mubr.msk.bf16.vlgmr.msra.gmra.mrb[32].mxu1 %vm2249_vm9, %v4226_v35  ;;  %v8990_v35 = vld [vmem:[#allocation2 + $0x40] sm:$0xf]  ;;  %v9609_v59 = vrot.slane %v12592_v1, 1  ;;  %v18434_v9 = vcombine.low %v20572_v36, %v20571_v18  ;;  %v9611_v20 = vrot.slane %v12593_v46, 1  ;;  %v18449_v1 = vcombine.low %v20576_v58, %v20575_v38  ;;  %v8999_v38 = vld [vmem:[#allocation2 + $0x64] sm:$0xf] }
 0x2fc   : > { %14002 = vmatpush3.bf16.msra.mxu1 %v18146_v40  ;;  %13973 = vmatprep.mubr.msk.bf16.mxu1 %vm2249_vm9, %v4234_v56  ;;  %v18424_v40 = vld [vmem:[%s19744_s3 + $0x60] sm:$0xff]   ;;  %v18430_v56 = vsel %vm3397_vm13, %v9603_v5, %v9605_v57  ;;  %v18439_v26 = vsel %vm3397_vm13, %v9605_v57, %v9607_v48  ;;  %v9497_v57 = vmul.bf16 %v8991_v10, %v18005_v12  ;;  %v4251_v46 = vshrl.u32 %v18397_v39, 16  ;;  %v8997_v39 = vld [vmem:[#allocation2 + $0x5c] sm:$0xf] }
 0x2fd   : > { %14003 = vmatprep.subr.bf16.mxu1 %v15204_v22  ;;  %20570 = vst [vmem:[#allocation32_spill] sm:$0xff] %v18430_v56  ;;  %20573 = vst [vmem:[#allocation44_spill] sm:$0xff] %v18439_v26  ;;  %v18442_v5 = vsel %vm3397_vm13, %v9607_v48, %v9609_v59  ;;  %v18455_v48 = vsel %vm3397_vm13, %v9609_v59, %v9611_v20  ;;  %v4263_v26 = vshll.u32 %v18434_v9, 16 }
 0x2fe   : > { %20574 = vst [vmem:[#allocation120_spill] sm:$0xff] %v18442_v5  ;;  %20577 = vst [vmem:[#allocation16_spill] sm:$0xff] %v18455_v48  ;;  %v4259_v5 = vshrl.u32 %v18401_v54, 16  ;;  %v9501_v59 = vmul.bf16 %v8995_v42, %v20535_v4  ;;  %v4253_v48 = vor.u32 %v4251_v46, %v4249_v19  ;;  %v8998_v54 = vld [vmem:[#allocation2 + $0x60] sm:$0xf] }
 0x2ff   : > { %v4265_v42 = vrot.slane %v4263_v26, 1  ;;  %v20581_v19 = vld [vmem:[#allocation186_spill] sm:$0xff]  ;;  %v9000_v46 = vld [vmem:[#allocation2 + $0x68] sm:$0xf]  ;;  %v9001_v4 = vld [vmem:[#allocation2 + $0x6c] sm:$0xf] }
 0x300   : > { %14004 = vmatpush3.bf16.msra.mxu1 %v15204_v22  ;;  %v9494_v22 = vmul.bf16 %v8988_v27, %v17994_v41  ;;  %v9496_v27 = vmul.bf16 %v8990_v35, %v18029_v37  ;;  %v8996_v35 = vld [vmem:[#allocation2 + $0x58] sm:$0xf] }
 0x301   : > { %14037 = vmatprep.subr.bf16.mxu1 %v18424_v40 }
 0x302   : > { %v12594_v21 = vcombine.low %v9494_v22, %v9495_v31  ;;  %v12595_v56 = vcombine.low %v9496_v27, %v9497_v57  ;;  %v4261_v22 = vor.u32 %v4259_v5, %v4257_v43  ;;  %v20578_v31 = vld [vmem:[#allocation161_spill] sm:$0xff] }
 0x303   : > { %13974 = vmatmul.mubr.msk.bf16.gmra.mrb[36].mxu1 %vm2249_vm9, %v4242_v3  ;;  %v9498_v3 = vmul.bf16 %v8992_v60, %v20528_v44  ;;  %v4271_v60 = vshll.u32 %v18449_v1, 16  ;;  %v18467_v44 = vcombine.low %v20579_v0, %v20578_v31  ;;  %v20582_v5 = vld [vmem:[#allocation185_spill] sm:$0xff]  ;;  %v9502_v31 = vmul.bf16 %v8996_v35, %v20536_v63 }
 0x304   : > { %13977 = vmatprep.mubr.msk.bf16.mxu1 %vm2249_vm9, %v4250_v34  ;;  %v9613_v58 = vrot.slane %v12594_v21, 1  ;;  %v9500_v34 = vmul.bf16 %v8994_v30, %v20533_v2  ;;  %v9615_v57 = vrot.slane %v12595_v56, 1  ;;  %v4258_v30 = vsel %vm2104_vm8, %v4253_v48, %v4257_v43  ;;  %v9002_v48 = vld [vmem:[#allocation2 + $0x70] sm:$0xf] }
 0x305   : > { %v12596_v10 = vcombine.low %v9498_v3, %v9499_v7  ;;  %v18475_v7 = vcombine.low %v20582_v5, %v20581_v19  ;;  %v4266_v43 = vsel %vm2104_vm8, %v4261_v22, %v4265_v42  ;;  %v4273_v26 = vrot.slane %v4271_v60, 1 }
 0x306   : > { %v18470_v27 = vsel %vm3397_vm13, %v9611_v20, %v9613_v58  ;;  %v12597_v3 = vcombine.low %v9500_v34, %v9501_v59  ;;  %v18479_v0 = vsel %vm3397_vm13, %v9613_v58, %v9615_v57  ;;  %v9003_v34 = vld [vmem:[#allocation2 + $0x74] sm:$0xf]  ;;  %v9504_v59 = vmul.bf16 %v8998_v54, %v20539_v14  ;;  %v9004_v54 = vld [vmem:[#allocation2 + $0x78] sm:$0xf] }
 0x307   : > { %20580 = vst [vmem:[#allocation45_spill] sm:$0xff] %v18470_v27  ;;  %v9617_v21 = vrot.slane %v12596_v10, 1  ;;  %20583 = vst [vmem:[#allocation48_spill] sm:$0xff] %v18479_v0  ;;  %v9503_v10 = vmul.bf16 %v8997_v39, %v20538_v55  ;;  %v9505_v35 = vmul.bf16 %v8999_v38, %v20540_v17  ;;  %v9507_v39 = vmul.bf16 %v9001_v4, %v20456_v8  ;;  %v9006_v4 = vld [vmem:[#allocation2 + $0x80] sm:$0xf] }
 0x308   : > { %v9619_v56 = vrot.slane %v12597_v3, 1  ;;  %v9506_v3 = vmul.bf16 %v9000_v46, %v20455_v24  ;;  %v4275_v22 = vshrl.u32 %v18449_v1, 16  ;;  %v4279_v60 = vshll.u32 %v18467_v44, 16  ;;  %v9007_v27 = vld [vmem:[#allocation2 + $0x84] sm:$0xf] }
 0x309   : > { %v18482_v20 = vsel %vm3397_vm13, %v9615_v57, %v9617_v21  ;;  %v12598_v57 = vcombine.low %v9502_v31, %v9503_v10  ;;  %v4287_v46 = vshll.u32 %v18475_v7, 16  ;;  %v9005_v10 = vld [vmem:[#allocation2 + $0x7c] sm:$0xf] }
 0x30a   : > { %20584 = vst [vmem:[#allocation49_spill] sm:$0xff] %v18482_v20  ;;  %v18491_v58 = vsel %vm3397_vm13, %v9617_v21, %v9619_v56  ;;  %v12599_v20 = vcombine.low %v9504_v59, %v9505_v35  ;;  %v12600_v38 = vcombine.low %v9506_v3, %v9507_v39  ;;  %v9509_v21 = vmul.bf16 %v9003_v34, %v17513_v23  ;;  %v20587_v3 = vld [vmem:[#allocation179_spill] sm:$0xff] }
 0x30b   : > { %13978 = vmatmul.mubr.msk.bf16.gmra.mrb[40].mxu1 %vm2249_vm9, %v4258_v30  ;;  %20585 = vst [vmem:[#allocation62_spill] sm:$0xff] %v18491_v58  ;;  %v4267_v30 = vshrl.u32 %v18434_v9, 16  ;;  %v9621_v0 = vrot.slane %v12598_v57, 1  ;;  %v4277_v31 = vor.u32 %v4275_v22, %v4273_v26  ;;  %v4281_v57 = vrot.slane %v4279_v60, 1  ;;  %v9008_v34 = vld [vmem:[#allocation2 + $0x88] sm:$0x1] }
 0x30c   : > { %13981 = vmatprep.mubr.msk.bf16.mxu1 %vm2249_vm9, %v4266_v43  ;;  %v9508_v43 = vmul.bf16 %v9002_v48, %v17508_v61  ;;  %v9623_v1 = vrot.slane %v12599_v20, 1  ;;  %v9625_v8 = vrot.slane %v12600_v38, 1  ;;  %v20588_v48 = vld [vmem:[#allocation187_spill] sm:$0xff]  ;;  %v9511_v20 = vmul.bf16 %v9005_v10, %v17528_v29  ;;  %v20591_v60 = vld [vmem:[#allocation221_spill] sm:$0xff] }
 0x30d   : > { %v4269_v58 = vor.u32 %v4267_v30, %v4265_v42  ;;  %v18502_v9 = vsel %vm3397_vm13, %v9619_v56, %v9621_v0  ;;  %v12132_v39 = vcombine.low %v20588_v48, %v20587_v3  ;;  %v9510_v42 = vmul.bf16 %v9004_v54, %v17524_v50 }
 0x30e   : > { %20586 = vst [vmem:[#allocation63_spill] sm:$0xff] %v18502_v9  ;;  %v12601_v59 = vcombine.low %v9508_v43, %v9509_v21  ;;  %v18509_v30 = vsel %vm3397_vm13, %v9621_v0, %v9623_v1  ;;  %v18512_v22 = vsel %vm3397_vm13, %v9623_v1, %v9625_v8  ;;  %v9512_v38 = vmul.bf16 %v9006_v4, %v20591_v60  ;;  %v20592_v43 = vld [vmem:[#allocation222_spill] sm:$0xff]  ;;  %v20594_v1 = vld [vmem:[#allocation9_spill] sm:$0xff] }
 0x30f   : > { %v4274_v35 = vsel %vm2104_vm8, %v4269_v58, %v4273_v26  ;;  %20589 = vst [vmem:[#allocation111_spill] sm:$0xff] %v18509_v30  ;;  %20590 = vst [vmem:[#allocation67_spill] sm:$0xff] %v18512_v22  ;;  %v4282_v26 = vsel %vm2104_vm8, %v4277_v31, %v4281_v57  ;;  %v4289_v58 = vrot.slane %v4287_v46, 1  ;;  %v9513_v21 = vmul.bf16 %v9007_v27, %v20592_v43 }
 0x310   : > { %v9627_v56 = vrot.slane %v12601_v59, 1  ;;  %v12602_v54 = vcombine.low %v9510_v42, %v9511_v20  ;;  %v9514_v22 = vmul.bf16 %v9008_v34, %v20594_v1  ;;  %v4291_v59 = vshrl.u32 %v18475_v7, 16  ;;  %v20599_v20 = vld [vmem:[#allocation73_spill] sm:$0xff] }
 0x311   : > { %v4295_v10 = vshll.u32 %v12132_v39, 16  ;;  %v12603_v30 = vcombine.low %v9512_v38, %v9513_v21  ;;  %v4596_v38 = vmul.bf16 %v20554_v32, %v20522_v33  ;;  %v20601_v21 = vld [vmem:[#allocation57_spill] sm:$0xff]  ;;  %v20605_v32 = vld [vmem:[#allocation40_spill] sm:$0xff] }
 0x312   : > { %v18521_v0 = vsel %vm3397_vm13, %v9625_v8, %v9627_v56  ;;  %v9629_v31 = vrot.slane %v12602_v54, 1  ;;  %v4293_v46 = vor.u32 %v4291_v59, %v4289_v58  ;;  %v12604_v9 = vcombine.low %v9514_v22, %v9514_v22 }
 0x313   : > { %13982 = vmatmul.mubr.msk.bf16.gmra.mrb[44].mxu1 %vm2249_vm9, %v4274_v35  ;;  %20593 = vst [vmem:[#allocation68_spill] sm:$0xff] %v18521_v0  ;;  %v4283_v35 = vshrl.u32 %v18467_v44, 16  ;;  %v9631_v43 = vrot.slane %v12603_v30, 1  ;;  %v20677_v0 = vld [vmem:[#allocation27_spill] sm:$0xff] }
 0x314   : > { %13985 = vmatprep.mubr.msk.bf16.mxu1 %vm2249_vm9, %v4282_v26  ;;  %v18527_v27 = vsel %vm3397_vm13, %v9627_v56, %v9629_v31  ;;  %v4297_v26 = vrot.slane %v4295_v10, 1  ;;  %v9633_v42 = vrot.slane %v12604_v9, 1  ;;  %v20598_v56 = vld [vmem:[#allocation81_spill] sm:$0xff]  ;;  %v4595_v9 = vmul.bf16 %v20555_v51, %v20521_v45  ;;  %v20602_v10 = vld [vmem:[#allocation64_spill] sm:$0xff] }
 0x315   : > { %v4285_v4 = vor.u32 %v4283_v35, %v4281_v57  ;;  %20595 = vst [vmem:[#allocation75_spill] sm:$0xff] %v18527_v27  ;;  %v18533_v7 = vsel %vm3397_vm13, %v9629_v31, %v9631_v43  ;;  %v4299_v57 = vshrl.u32 %v12132_v39, 16  ;;  %v20600_v39 = vld [vmem:[#allocation61_spill] sm:$0xff]  ;;  %v20603_v35 = vld [vmem:[#allocation92_spill] sm:$0xff] }
 0x316   : > { %v4298_v34 = vsel %vm2104_vm8, %v4293_v46, %v4297_v26  ;;  %20596 = vst [vmem:[#allocation77_spill] sm:$0xff] %v18533_v7  ;;  %v18537_v44 = vsel %vm3397_vm13, %v9631_v43, %v9633_v42  ;;  %v4593_v43 = vmul.bf16 %v20600_v39, %v20519_v62  ;;  %v12161_v59 = vcombine.low %v4595_v9, %v4596_v38  ;;  %v20604_v51 = vld [vmem:[#allocation93_spill] sm:$0xff]  ;;  %v20609_v38 = vld [vmem:[#allocation124_spill] sm:$0xff]  ;;  %v20671_v7 = vld [vmem:[#allocation26_spill] sm:$0xff] }
 0x317   : > { %v4290_v8 = vsel %vm2104_vm8, %v4285_v4, %v4289_v58  ;;  %20597 = vst [vmem:[#allocation43_spill] sm:$0xff] %v18537_v44  ;;  %v4301_v22 = vor.u32 %v4299_v57, %v4297_v26  ;;  %v4594_v58 = vmul.bf16 %v20551_v25, %v20520_v52  ;;  %v4598_v25 = vmul.bf16 %v20603_v35, %v17873_v6  ;;  %v20607_v57 = vld [vmem:[#allocation69_spill] sm:$0xff]  ;;  %v15213_v35 = vld [vmem:[%s19744_s3 + $0x68] sm:$0xff]  }
 0x318   : > { %v4715_v46 = vrot.slane %v12161_v59, 1  ;;  %v4599_v4 = vmul.bf16 %v20604_v51, %v17881_v47  ;;  %v4600_v26 = vmul.bf16 %v20605_v32, %v17886_v53  ;;  %v4603_v39 = vmul.bf16 %v20609_v38, %v17984_v28  ;;  %v20612_v59 = vld [vmem:[#allocation118_spill] sm:$0xff]  ;;  %v18587_v32 = vld [vmem:[%s19744_s3 + $0x70] sm:$0xff]  }
 0x319   : > { %v4306_v30 = vsel %vm2104_vm8, %v4301_v22, %v20598_v56  ;;  %v12160_v54 = vcombine.low %v4593_v43, %v4594_v58  ;;  %v20610_v43 = vld [vmem:[#allocation131_spill] sm:$0xff]  ;;  %v10794_v38 = vld [vmem:[#allocation2 + $0x10] sm:$0xe] }
 0x31a   : > { %v12163_v56 = vcombine.low %v4599_v4, %v4600_v26 }
 0x31b   : > { %13986 = vmatmul.mubr.msk.bf16.gmra.mrb[48].mxu1 %vm2249_vm9, %v4290_v8  ;;  %v4714_v31 = vrot.slane %v12160_v54, 1  ;;  %v20606_v8 = vld [vmem:[#allocation89_spill] sm:$0xff]  ;;  %v20611_v54 = vld [vmem:[#allocation162_spill] sm:$0xff] }
 0x31c   : > { %13989 = vmatprep.mubr.msk.bf16.mxu1 %vm2249_vm9, %v4298_v34  ;;  %v4597_v34 = vmul.bf16 %v20606_v8, %v17864_v16  ;;  %v4719_v9 = vrot.slane %v12163_v56, 1  ;;  %v20613_v8 = vld [vmem:[#allocation147_spill] sm:$0xff] }
 0x31d   : > { %v4716_v22 = vsel %vm3397_vm13, %v4714_v31, %v4715_v46 }
 0x31e   : > { %v12162_v42 = vcombine.low %v4597_v34, %v4598_v25 }
 0x323   : > { %13990 = vmatmul.mubr.msk.bf16.gmra.mrb[52].mxu1 %vm2249_vm9, %v4306_v30  ;;  %v4717_v30 = vrot.slane %v12162_v42, 1  ;;  %v4607_v42 = vmul.bf16 %v20572_v36, %v18029_v37  ;;  %v20615_v36 = vld [vmem:[#allocation165_spill] sm:$0xff] }
 0x324   : > { %13993 = vmatprep.mubr.msk.bf16.mxu1 %vm2249_vm9, %v20599_v20  ;;  %v20608_v20 = vld [vmem:[#allocation122_spill] sm:$0xff] }
 0x325   : > { %v4602_v58 = vmul.bf16 %v20608_v20, %v17970_v15  ;;  %v4718_v25 = vsel %vm3397_vm13, %v4715_v46, %v4717_v30  ;;  %v4720_v51 = vsel %vm3397_vm13, %v4717_v30, %v4719_v9  ;;  %v4606_v46 = vmul.bf16 %v20613_v8, %v17998_v11  ;;  %v20620_v8 = vld [vmem:[#allocation161_spill] sm:$0xff] }
 0x32b   : > { %13994 = vmatmul.mubr.msk.bf16.gmra.mrb[56].mxu1 %vm2249_vm9, %v20601_v21  ;;  %v4604_v21 = vmul.bf16 %v20610_v43, %v17975_v13 }
 0x32c   : > { %13997 = vmatprep.mubr.msk.bf16.mxu1 %vm2249_vm9, %v20602_v10  ;;  %v4601_v10 = vmul.bf16 %v20612_v59, %v20611_v54  ;;  %v20617_v59 = vld [vmem:[#allocation160_spill] sm:$0xff] }
 0x32d   : > { %v12165_v4 = vcombine.low %v4603_v39, %v4604_v21  ;;  %v10290_v39 = vld [vmem:[#allocation2 + $0x14] sm:$0xf]  ;;  %v20616_v21 = vld [vmem:[#allocation192_spill] sm:$0xff] }
 0x32e   : > { %v12164_v31 = vcombine.low %v4601_v10, %v4602_v58  ;;  %v4609_v10 = vmul.bf16 %v20617_v59, %v20616_v21  ;;  %v10294_v59 = vld [vmem:[#allocation2 + $0x24] sm:$0xf] }
 0x32f   : > { %v4723_v34 = vrot.slane %v12165_v4, 1 }
 0x330   : > { %v4721_v26 = vrot.slane %v12164_v31, 1 }
 0x332   : > { %v4722_v56 = vsel %vm3397_vm13, %v4719_v9, %v4721_v26  ;;  %v4724_v20 = vsel %vm3397_vm13, %v4721_v26, %v4723_v34  ;;  %v10795_v9 = vmul.bf16 %v10794_v38, %v20519_v62  ;;  %v20619_v26 = vld [vmem:[#allocation195_spill] sm:$0xff]  ;;  %v4614_v38 = vmul.bf16 %v20581_v19, %v20538_v55 }
 0x333   : > { %13998 = vmatmul.mubr.msk.bf16.gmra.mrb[60].mxu1 %vm2249_vm9, %v20607_v57  ;;  %v4608_v57 = vmul.bf16 %v20571_v18, %v18005_v12  ;;  %v4610_v18 = vmul.bf16 %v20615_v36, %v20529_v49  ;;  %v10293_v36 = vld [vmem:[#allocation2 + $0x20] sm:$0xf] }
 0x334   : > { %14005 = vmatprep.mubr.msk.bf16.mxu1 %vm2249_vm9, %v4716_v22 }
 0x335   : > { %v12167_v58 = vcombine.low %v4607_v42, %v4608_v57  ;;  %v10796_v42 = vmul.bf16 %v10290_v39, %v20520_v52  ;;  %v12168_v57 = vcombine.low %v4609_v10, %v4610_v18  ;;  %v4615_v10 = vmul.bf16 %v20588_v48, %v20539_v14 }
 0x337   : > { %v4727_v31 = vrot.slane %v12167_v58, 1  ;;  %v4729_v18 = vrot.slane %v12168_v57, 1  ;;  %v10800_v57 = vmul.bf16 %v10294_v59, %v17873_v6 }
 0x33b   : > { %14006 = vmatmul.mubr.msk.bf16.vlgmr.msra.gmra.mrb[32].mxu1 %vm2249_vm9, %v4718_v25  ;;  %v10292_v25 = vld [vmem:[#allocation2 + $0x1c] sm:$0xf] }
 0x33c   : > { %14038 = vmatpush3.bf16.msra.mxu1 %v18424_v40  ;;  %14009 = vmatprep.mubr.msk.bf16.mxu1 %vm2249_vm9, %v4720_v51  ;;  %v20614_v40 = vld [vmem:[#allocation138_spill] sm:$0xff] }
 0x33d   : > { %14039 = vmatprep.subr.bf16.mxu1 %v15213_v35  ;;  %v4605_v22 = vmul.bf16 %v20614_v40, %v17994_v41  ;;  %v20618_v51 = vld [vmem:[#allocation166_spill] sm:$0xff] }
 0x33e   : > { %v4611_v4 = vmul.bf16 %v20618_v51, %v20533_v2 }
 0x33f   : > { %v12166_v30 = vcombine.low %v4605_v22, %v4606_v46  ;;  %v4612_v46 = vmul.bf16 %v20620_v8, %v20619_v26  ;;  %v10798_v22 = vmul.bf16 %v10292_v25, %v20522_v33  ;;  %v10296_v25 = vld [vmem:[#allocation2 + $0x2c] sm:$0xf]  ;;  %v10299_v8 = vld [vmem:[#allocation2 + $0x38] sm:$0xf] }
 0x340   : > { %14040 = vmatpush3.bf16.msra.mxu1 %v15213_v35  ;;  %v10291_v35 = vld [vmem:[#allocation2 + $0x18] sm:$0xf]  ;;  %v10805_v59 = vmul.bf16 %v10299_v8, %v17984_v28  ;;  %v10304_v8 = vld [vmem:[#allocation2 + $0x4c] sm:$0xf] }
 0x341   : > { %14073 = vmatprep.subr.bf16.mxu1 %v18587_v32  ;;  %v4725_v43 = vrot.slane %v12166_v30, 1  ;;  %v10797_v40 = vmul.bf16 %v10291_v35, %v20521_v45  ;;  %v18617_v58 = vcombine.low %v4611_v4, %v4612_v46  ;;  %v10295_v35 = vld [vmem:[#allocation2 + $0x28] sm:$0xf]  ;;  %v10298_v4 = vld [vmem:[#allocation2 + $0x34] sm:$0xf] }
 0x342   : > { %v10300_v46 = vld [vmem:[#allocation2 + $0x3c] sm:$0xf] }
 0x343   : > { %14010 = vmatmul.mubr.msk.bf16.gmra.mrb[36].mxu1 %vm2249_vm9, %v4722_v56  ;;  %v12704_v56 = vcombine.low %v10795_v9, %v10796_v42  ;;  %v4726_v30 = vsel %vm3397_vm13, %v4723_v34, %v4725_v43  ;;  %v12705_v39 = vcombine.low %v10797_v40, %v10798_v22  ;;  %v4616_v34 = vmul.bf16 %v20587_v3, %v20540_v17  ;;  %v10297_v9 = vld [vmem:[#allocation2 + $0x30] sm:$0xf] }
 0x344   : > { %14013 = vmatprep.mubr.msk.bf16.mxu1 %vm2249_vm9, %v4724_v20  ;;  %v4728_v20 = vsel %vm3397_vm13, %v4725_v43, %v4727_v31  ;;  %v4613_v43 = vmul.bf16 %v20582_v5, %v20536_v63  ;;  %v10799_v42 = vmul.bf16 %v10293_v36, %v17864_v16  ;;  %v4731_v48 = vrot.slane %v18617_v58, 1 }
 0x345   : > { %v10915_v51 = vrot.slane %v12704_v56, 1  ;;  %v10916_v19 = vrot.slane %v12705_v39, 1  ;;  %v10801_v22 = vmul.bf16 %v10295_v35, %v17881_v47  ;;  %v18635_v5 = vcombine.low %v4615_v10, %v4616_v34  ;;  %v10301_v39 = vld [vmem:[#allocation2 + $0x40] sm:$0xf]  ;;  %v10302_v34 = vld [vmem:[#allocation2 + $0x44] sm:$0xf] }
 0x346   : > { %v12170_v40 = vcombine.low %v4613_v43, %v4614_v38  ;;  %v10802_v56 = vmul.bf16 %v10296_v25, %v17886_v53  ;;  %v10804_v36 = vmul.bf16 %v10298_v4, %v17970_v15  ;;  %v10806_v58 = vmul.bf16 %v10300_v46, %v17975_v13 }
 0x347   : > { %v18632_v3 = vsel %vm3397_vm13, %v10915_v51, %v10916_v19  ;;  %v4730_v38 = vsel %vm3397_vm13, %v4727_v31, %v4729_v18  ;;  %v4732_v10 = vsel %vm3397_vm13, %v4729_v18, %v4731_v48  ;;  %v4735_v4 = vrot.slane %v18635_v5, 1 }
 0x348   : > { %20621 = vst [vmem:[#allocation55_spill] sm:$0xff] %v18632_v3  ;;  %v12707_v35 = vcombine.low %v10801_v22, %v10802_v56  ;;  %v12709_v25 = vcombine.low %v10805_v59, %v10806_v58  ;;  %v10807_v46 = vmul.bf16 %v10301_v39, %v17994_v41  ;;  %v10306_v3 = vld [vmem:[#allocation2 + $0x54] sm:$0xf]  ;;  %v10307_v22 = vld [vmem:[#allocation2 + $0x58] sm:$0xf] }
 0x349   : > { %v10308_v56 = vld [vmem:[#allocation2 + $0x5c] sm:$0xf]  ;;  %v10310_v59 = vld [vmem:[#allocation2 + $0x64] sm:$0xf] }
 0x34a   : > { %v10924_v18 = vrot.slane %v12709_v25, 1 }
 0x34b   : > { %14014 = vmatmul.mubr.msk.bf16.gmra.mrb[40].mxu1 %vm2249_vm9, %v4726_v30  ;;  %v12706_v30 = vcombine.low %v10799_v42, %v10800_v57  ;;  %v10303_v42 = vld [vmem:[#allocation2 + $0x48] sm:$0xf]  ;;  %v10305_v57 = vld [vmem:[#allocation2 + $0x50] sm:$0xf] }
 0x34c   : > { %14017 = vmatprep.mubr.msk.bf16.mxu1 %vm2249_vm9, %v4728_v20  ;;  %v10803_v20 = vmul.bf16 %v10297_v9, %v20611_v54  ;;  %v4733_v9 = vrot.slane %v12170_v40, 1 }
 0x34d   : > { %v10918_v43 = vrot.slane %v12706_v30, 1  ;;  %v10920_v30 = vrot.slane %v12707_v35, 1  ;;  %v10811_v35 = vmul.bf16 %v10305_v57, %v20616_v21 }
 0x34e   : > { %v12708_v51 = vcombine.low %v10803_v20, %v10804_v36  ;;  %v10808_v20 = vmul.bf16 %v10302_v34, %v17998_v11  ;;  %v10309_v36 = vld [vmem:[#allocation2 + $0x60] sm:$0xf]  ;;  %v10812_v34 = vmul.bf16 %v10306_v3, %v20529_v49  ;;  %v4734_v25 = vsel %vm3397_vm13, %v4731_v48, %v4733_v9 }
 0x34f   : > { %v18649_v31 = vsel %vm3397_vm13, %v10916_v19, %v10918_v43  ;;  %v18653_v40 = vsel %vm3397_vm13, %v10918_v43, %v10920_v30  ;;  %v10809_v19 = vmul.bf16 %v10303_v42, %v18029_v37  ;;  %v10813_v43 = vmul.bf16 %v10307_v22, %v20533_v2  ;;  %v10311_v42 = vld [vmem:[#allocation2 + $0x68] sm:$0xf]  ;;  %v10313_v22 = vld [vmem:[#allocation2 + $0x70] sm:$0xf] }
 0x350   : > { %20622 = vst [vmem:[#allocation59_spill] sm:$0xff] %v18649_v31  ;;  %20623 = vst [vmem:[#allocation136_spill] sm:$0xff] %v18653_v40  ;;  %v12710_v58 = vcombine.low %v10807_v46, %v10808_v20  ;;  %v10312_v46 = vld [vmem:[#allocation2 + $0x6c] sm:$0xf]  ;;  %v12712_v20 = vcombine.low %v10811_v35, %v10812_v34  ;;  %v10815_v57 = vmul.bf16 %v10309_v36, %v20536_v63  ;;  %v10317_v40 = vld [vmem:[#allocation2 + $0x80] sm:$0xf] }
 0x351   : > { %v10816_v3 = vmul.bf16 %v10310_v59, %v20538_v55  ;;  %v10817_v35 = vmul.bf16 %v10311_v42, %v20539_v14  ;;  %v10818_v36 = vmul.bf16 %v10312_v46, %v20540_v17  ;;  %v10318_v34 = vld [vmem:[#allocation2 + $0x84] sm:$0xf]  ;;  %v10319_v59 = vld [vmem:[#allocation2 + $0x88] sm:$0xf]  ;;  %v20630_v42 = vld [vmem:[#allocation210_spill] sm:$0xff] }
 0x353   : > { %14018 = vmatmul.mubr.msk.bf16.gmra.mrb[44].mxu1 %vm2249_vm9, %v4730_v38  ;;  %v10922_v38 = vrot.slane %v12708_v51, 1  ;;  %v10814_v51 = vmul.bf16 %v10308_v56, %v20619_v26  ;;  %v10314_v56 = vld [vmem:[#allocation2 + $0x74] sm:$0xf] }
 0x354   : > { %14021 = vmatprep.mubr.msk.bf16.mxu1 %vm2249_vm9, %v4732_v10  ;;  %v10810_v10 = vmul.bf16 %v10304_v8, %v18005_v12 }
 0x355   : > { %v18656_v5 = vsel %vm3397_vm13, %v10920_v30, %v10922_v38  ;;  %v18659_v39 = vsel %vm3397_vm13, %v10922_v38, %v10924_v18  ;;  %v4736_v30 = vsel %vm3397_vm13, %v4733_v9, %v4735_v4  ;;  %v10926_v38 = vrot.slane %v12710_v58, 1  ;;  %v10315_v9 = vld [vmem:[#allocation2 + $0x78] sm:$0xf] }
 0x356   : > { %20624 = vst [vmem:[#allocation102_spill] sm:$0xff] %v18656_v5  ;;  %20625 = vst [vmem:[#allocation30_spill] sm:$0xff] %v18659_v39  ;;  %v12711_v39 = vcombine.low %v10809_v19, %v10810_v10  ;;  %v12713_v8 = vcombine.low %v10813_v43, %v10814_v51  ;;  %v10930_v19 = vrot.slane %v12712_v20, 1  ;;  %v10316_v5 = vld [vmem:[#allocation2 + $0x7c] sm:$0xf]  ;;  %v10821_v46 = vmul.bf16 %v10315_v9, %v17508_v61 }
 0x357   : > { %v18674_v48 = vsel %vm3397_vm13, %v10924_v18, %v10926_v38  ;;  %v10321_v20 = vld [vmem:[#allocation2 + $0x90] sm:$0x1]  ;;  %v20634_v9 = vld [vmem:[#allocation222_spill] sm:$0xff] }
 0x358   : > { %20626 = vst [vmem:[#allocation116_spill] sm:$0xff] %v18674_v48  ;;  %v10928_v58 = vrot.slane %v12711_v39, 1  ;;  %v10932_v10 = vrot.slane %v12713_v8, 1  ;;  %v12715_v8 = vcombine.low %v10817_v35, %v10818_v36  ;;  %v20631_v48 = vld [vmem:[#allocation53_spill] sm:$0xff]  ;;  %v10824_v35 = vmul.bf16 %v10318_v34, %v17528_v29 }
 0x359   : > { %v20632_v31 = vrot.slane %v20631_v48, 1 }
 0x35a   : > { %v18679_v43 = vsel %vm3397_vm13, %v10926_v38, %v10928_v58  ;;  %v18682_v51 = vsel %vm3397_vm13, %v10928_v58, %v10930_v19  ;;  %v18685_v18 = vsel %vm3397_vm13, %v10930_v19, %v10932_v10  ;;  %v10822_v19 = vmul.bf16 %v10316_v5, %v17513_v23 }
 0x35b   : > { %14022 = vmatmul.mubr.msk.bf16.gmra.mrb[48].mxu1 %vm2249_vm9, %v4734_v25  ;;  %v12714_v25 = vcombine.low %v10815_v57, %v10816_v3  ;;  %20627 = vst [vmem:[#allocation88_spill] sm:$0xff] %v18679_v43  ;;  %20628 = vst [vmem:[#allocation19_spill] sm:$0xff] %v18682_v51  ;;  %v10819_v57 = vmul.bf16 %v10313_v22, %v20455_v24  ;;  %v10820_v3 = vmul.bf16 %v10314_v56, %v20630_v42  ;;  %v20669_v43 = vld [vmem:[#allocation21_spill] sm:$0xff]  ;;  %v20730_v24 = vld [vmem:[#allocation87_spill] sm:$0xff] }
 0x35c   : > { %14025 = vmatprep.mubr.msk.bf16.mxu1 %vm2249_vm9, %v4736_v30  ;;  %20629 = vst [vmem:[#allocation141_spill] sm:$0xff] %v18685_v18  ;;  %v10320_v30 = vld [vmem:[#allocation2 + $0x8c] sm:$0xf]  ;;  %v4738_v38 = vsel %vm3397_vm13, %v4735_v4, %v20632_v31  ;;  %v10936_v18 = vrot.slane %v12715_v8, 1  ;;  %v10825_v22 = vmul.bf16 %v10319_v59, %v20591_v60  ;;  %v12717_v56 = vcombine.low %v10821_v46, %v10822_v19  ;;  %v20635_v31 = vld [vmem:[#allocation70_spill] sm:$0xff] }
 0x35d   : > { %v10934_v39 = vrot.slane %v12714_v25, 1  ;;  %v10823_v25 = vmul.bf16 %v10317_v40, %v17524_v50  ;;  %v12716_v51 = vcombine.low %v10819_v57, %v10820_v3  ;;  %v10826_v48 = vmul.bf16 %v10320_v30, %v20634_v9  ;;  %v20644_v19 = vld [vmem:[#allocation12_spill] sm:$0xff]  ;;  %v20719_v9 = vld [vmem:[#allocation149_spill] sm:$0xff] }
 0x35e   : > { %v10827_v4 = vmul.bf16 %v10321_v20, %v20594_v1  ;;  %v10940_v36 = vrot.slane %v12717_v56, 1  ;;  %v20647_v56 = vld [vmem:[#allocation85_spill] sm:$0xff] }
 0x35f   : > { %v18694_v58 = vsel %vm3397_vm13, %v10932_v10, %v10934_v39  ;;  %v18706_v5 = vsel %vm3397_vm13, %v10934_v39, %v10936_v18  ;;  %v10938_v40 = vrot.slane %v12716_v51, 1  ;;  %v12718_v10 = vcombine.low %v10823_v25, %v10824_v35  ;;  %v20645_v25 = vld [vmem:[#allocation104_spill] sm:$0xff] }
 0x360   : > { %20633 = vst [vmem:[#allocation164_spill] sm:$0xff] %v18694_v58  ;;  %20636 = vst [vmem:[#allocation178_spill] sm:$0xff] %v18706_v5  ;;  %v12719_v8 = vcombine.low %v10825_v22, %v10826_v48  ;;  %v12720_v34 = vcombine.low %v10827_v4, %v10827_v4  ;;  %v5032_v35 = vmul.bf16 %v20645_v25, %v20644_v19  ;;  %v20646_v22 = vld [vmem:[#allocation11_spill] sm:$0xff]  ;;  %v20667_v5 = vld [vmem:[#allocation33_spill] sm:$0xff] }
 0x361   : > { %v18709_v59 = vsel %vm3397_vm13, %v10936_v18, %v10938_v40  ;;  %v10942_v57 = vrot.slane %v12718_v10, 1  ;;  %v18712_v3 = vsel %vm3397_vm13, %v10938_v40, %v10940_v36  ;;  %v20643_v18 = vld [vmem:[#allocation158_spill] sm:$0xff]  ;;  %v5033_v48 = vmul.bf16 %v20647_v56, %v20646_v22  ;;  %v20650_v10 = vld [vmem:[#allocation23_spill] sm:$0xff] }
 0x362   : > { %20637 = vst [vmem:[#allocation159_spill] sm:$0xff] %v18709_v59  ;;  %20638 = vst [vmem:[#allocation184_spill] sm:$0xff] %v18712_v3  ;;  %v10944_v30 = vrot.slane %v12719_v8, 1  ;;  %v10946_v20 = vrot.slane %v12720_v34, 1  ;;  %v20649_v40 = vld [vmem:[#allocation10_spill] sm:$0xff]  ;;  %v20651_v8 = vld [vmem:[#allocation13_spill] sm:$0xff] }
 0x363   : > { %14026 = vmatmul.mubr.msk.bf16.gmra.mrb[52].mxu1 %vm2249_vm9, %v4738_v38  ;;  %v18715_v46 = vsel %vm3397_vm13, %v10940_v36, %v10942_v57  ;;  %v20642_v38 = vld [vmem:[#allocation163_spill] sm:$0xff]  ;;  %v12199_v4 = vcombine.low %v5032_v35, %v5033_v48  ;;  %v5035_v36 = vmul.bf16 %v20650_v10, %v20649_v40  ;;  %v20652_v34 = vld [vmem:[#allocation96_spill] sm:$0xff]  ;;  %v15215_v35 = vld [vmem:[%s19744_s3 + $0x78] sm:$0xff]  }
 0x364   : > { %14029 = vmatprep.mubr.msk.bf16.mxu1 %vm2249_vm9, %v20635_v31  ;;  %20639 = vst [vmem:[#allocation90_spill] sm:$0xff] %v18715_v46  ;;  %v18718_v39 = vsel %vm3397_vm13, %v10942_v57, %v10944_v30  ;;  %v18721_v51 = vsel %vm3397_vm13, %v10944_v30, %v10946_v20  ;;  %v20648_v31 = vld [vmem:[#allocation65_spill] sm:$0xff]  ;;  %v5036_v57 = vmul.bf16 %v20652_v34, %v20651_v8  ;;  %v20653_v30 = vld [vmem:[#allocation35_spill] sm:$0xff]  ;;  %v20657_v48 = vld [vmem:[#allocation28_spill] sm:$0xff] }
 0x365   : > { %20640 = vst [vmem:[#allocation91_spill] sm:$0xff] %v18718_v39  ;;  %20641 = vst [vmem:[#allocation193_spill] sm:$0xff] %v18721_v51  ;;  %v20654_v20 = vld [vmem:[#allocation41_spill] sm:$0xff]  ;;  %v20656_v25 = vld [vmem:[#allocation95_spill] sm:$0xff] }
 0x366   : > { %v18753_v10 = vld [vmem:[%s19744_s3 + $0x80] sm:$0xff]   ;;  %v20665_v46 = vld [vmem:[#allocation37_spill] sm:$0xff]  ;;  %v20666_v3 = vld [vmem:[#allocation148_spill] sm:$0xff] }
 0x367   : > { %v5043_v59 = vmul.bf16 %v20666_v3, %v20665_v46  ;;  %v20676_v3 = vld [vmem:[#allocation174_spill] sm:$0xff]  ;;  %v20712_v8 = vld [vmem:[#allocation109_spill] sm:$0xff] }
 0x368   : > { %v20679_v46 = vld [vmem:[#allocation34_spill] sm:$0xff] }
 0x36b   : > { %14030 = vmatmul.mubr.msk.bf16.gmra.mrb[56].mxu1 %vm2249_vm9, %v20642_v38  ;;  %v5037_v38 = vmul.bf16 %v20654_v20, %v20653_v30  ;;  %v20661_v20 = vld [vmem:[#allocation14_spill] sm:$0xff] }
 0x36c   : > { %14033 = vmatprep.mubr.msk.bf16.mxu1 %vm2249_vm9, %v20643_v18  ;;  %v20655_v18 = vld [vmem:[#allocation78_spill] sm:$0xff] }
 0x36d   : > { %v5034_v51 = vmul.bf16 %v20656_v25, %v20655_v18  ;;  %v12201_v56 = vcombine.low %v5036_v57, %v5037_v38  ;;  %v20662_v57 = vld [vmem:[#allocation139_spill] sm:$0xff]  ;;  %v20664_v25 = vld [vmem:[#allocation125_spill] sm:$0xff] }
 0x36e   : > { %v5041_v38 = vmul.bf16 %v20662_v57, %v20661_v20  ;;  %v20670_v57 = vld [vmem:[#allocation145_spill] sm:$0xff] }
 0x36f   : > { %v12200_v39 = vcombine.low %v5034_v51, %v5035_v36  ;;  %v20659_v51 = vld [vmem:[#allocation15_spill] sm:$0xff]  ;;  %v20660_v36 = vld [vmem:[#allocation132_spill] sm:$0xff]  ;;  %v5045_v44 = vmul.bf16 %v20670_v57, %v20669_v43 }
 0x370   : > { %v5040_v34 = vmul.bf16 %v20660_v36, %v20659_v51  ;;  %v20668_v36 = vld [vmem:[#allocation154_spill] sm:$0xff]  ;;  %v20680_v57 = vld [vmem:[#allocation167_spill] sm:$0xff]  ;;  %v5031_v51 = vld [vmem:[#allocation2 + $0x8c] sm:$0xf] }
 0x371   : > { %v5044_v58 = vmul.bf16 %v20668_v36, %v20667_v5  ;;  %v20678_v36 = vld [vmem:[#allocation168_spill] sm:$0xff]  ;;  %v5046_v43 = vmul.bf16 %v20680_v57, %v20679_v46 }
 0x372   : > { %v5049_v5 = vmul.bf16 %v20678_v36, %v20677_v0  ;;  %v20688_v36 = vld [vmem:[#allocation190_spill] sm:$0xff] }
 0x373   : > { %14034 = vmatmul.mubr.msk.bf16.gmra.mrb[60].mxu1 %vm2249_vm9, %v20648_v31 }
 0x374   : > { %14041 = vmatprep.mubr.msk.bf16.mxu1 %vm2249_vm9, %v12199_v4  ;;  %v20658_v4 = vld [vmem:[#allocation128_spill] sm:$0xff] }
 0x375   : > { %v5039_v31 = vmul.bf16 %v20658_v4, %v20657_v48  ;;  %v12203_v4 = vcombine.low %v5040_v34, %v5041_v38  ;;  %v20673_v34 = vld [vmem:[#allocation18_spill] sm:$0xff]  ;;  %v20674_v38 = vld [vmem:[#allocation171_spill] sm:$0xff] }
 0x37b   : > { %14042 = vmatmul.mubr.msk.bf16.vlgmr.msra.gmra.mrb[32].mxu1 %vm2249_vm9, %v12200_v39  ;;  %v20663_v39 = vld [vmem:[#allocation29_spill] sm:$0xff] }
 0x37c   : > { %14074 = vmatpush3.bf16.msra.mxu1 %v18587_v32  ;;  %14045 = vmatprep.mubr.msk.bf16.mxu1 %vm2249_vm9, %v12201_v56  ;;  %v5038_v32 = vmul.bf16 %v20664_v25, %v20663_v39  ;;  %v20672_v25 = vld [vmem:[#allocation144_spill] sm:$0xff]  ;;  %v20711_v39 = vld [vmem:[#allocation189_spill] sm:$0xff] }
 0x37d   : > { %14075 = vmatprep.subr.bf16.mxu1 %v15215_v35 }
 0x37e   : > { %v12202_v56 = vcombine.low %v5038_v32, %v5039_v31  ;;  %v12205_v32 = vcombine.low %v5044_v58, %v5045_v44  ;;  %v20681_v44 = vld [vmem:[#allocation36_spill] sm:$0xff] }
 0x37f   : > { %v20682_v58 = vld [vmem:[#allocation196_spill] sm:$0xff] }
 0x380   : > { %14076 = vmatpush3.bf16.msra.mxu1 %v15215_v35  ;;  %v5042_v35 = vmul.bf16 %v20672_v25, %v20671_v7 }
 0x381   : > { %14109 = vmatprep.subr.bf16.mxu1 %v18753_v10 }
 0x382   : > { %v12204_v31 = vcombine.low %v5042_v35, %v5043_v59  ;;  %v5051_v59 = vmul.bf16 %v20682_v58, %v20681_v44  ;;  %v20683_v35 = vld [vmem:[#allocation135_spill] sm:$0xff]  ;;  %v20695_v44 = vld [vmem:[#allocation50_spill] sm:$0xff] }
 0x383   : > { %14046 = vmatmul.mubr.msk.bf16.gmra.mrb[36].mxu1 %vm2249_vm9, %v12202_v56  ;;  %v5047_v56 = vmul.bf16 %v20674_v38, %v20673_v34  ;;  %v20685_v38 = vld [vmem:[#allocation42_spill] sm:$0xff]  ;;  %v20687_v34 = vld [vmem:[#allocation127_spill] sm:$0xff] }
 0x384   : > { %14049 = vmatprep.mubr.msk.bf16.mxu1 %vm2249_vm9, %v12203_v4  ;;  %v20675_v4 = vld [vmem:[#allocation110_spill] sm:$0xff]  ;;  %v5050_v0 = vmul.bf16 %v20688_v36, %v20687_v34  ;;  %v20693_v58 = vld [vmem:[#allocation47_spill] sm:$0xff] }
 0x385   : > { %v5048_v27 = vmul.bf16 %v20676_v3, %v20675_v4  ;;  %v12206_v20 = vcombine.low %v5046_v43, %v5047_v56  ;;  %v20686_v3 = vld [vmem:[#allocation191_spill] sm:$0xff]  ;;  %v20690_v43 = vld [vmem:[#allocation218_spill] sm:$0xff] }
 0x386   : > { %v5053_v4 = vmul.bf16 %v20686_v3, %v20685_v38  ;;  %v12208_v7 = vcombine.low %v5050_v0, %v5051_v59  ;;  %v20692_v56 = vld [vmem:[#allocation219_spill] sm:$0xff]  ;;  %v20696_v3 = vld [vmem:[#allocation214_spill] sm:$0xff] }
 0x387   : > { %v12207_v25 = vcombine.low %v5048_v27, %v5049_v5  ;;  %v20689_v27 = vld [vmem:[#allocation134_spill] sm:$0xff]  ;;  %v5054_v38 = vmul.bf16 %v20696_v3, %v20695_v44  ;;  %v20706_v3 = vld [vmem:[#allocation99_spill] sm:$0xff] }
 0x388   : > { %v5055_v5 = vmul.bf16 %v20690_v43, %v20689_v27  ;;  %v20697_v0 = vld [vmem:[#allocation46_spill] sm:$0xff]  ;;  %v20701_v43 = vld [vmem:[#allocation173_spill] sm:$0xff]  ;;  %v20703_v27 = vld [vmem:[#allocation51_spill] sm:$0xff] }
 0x389   : > { %v20699_v59 = vld [vmem:[#allocation94_spill] sm:$0xff] }
 0x38a   : > { %v12210_v46 = vcombine.low %v5054_v38, %v5055_v5  ;;  %v20705_v34 = vld [vmem:[#allocation170_spill] sm:$0xff]  ;;  %v20708_v5 = vld [vmem:[#allocation97_spill] sm:$0xff] }
 0x38b   : > { %14050 = vmatmul.mubr.msk.bf16.gmra.mrb[40].mxu1 %vm2249_vm9, %v12204_v31  ;;  %v20684_v31 = vld [vmem:[#allocation197_spill] sm:$0xff]  ;;  %v5058_v38 = vmul.bf16 %v20706_v3, %v20705_v34  ;;  %v20713_v3 = vld [vmem:[#allocation86_spill] sm:$0xff] }
 0x38c   : > { %14053 = vmatprep.mubr.msk.bf16.mxu1 %vm2249_vm9, %v12205_v32  ;;  %v5052_v32 = vmul.bf16 %v20684_v31, %v20683_v35  ;;  %v20694_v31 = vld [vmem:[#allocation215_spill] sm:$0xff]  ;;  %v12239_v40 = vcombine.low %v20713_v3, %v20712_v8 }
 0x38d   : > { %v5057_v35 = vmul.bf16 %v20694_v31, %v20693_v58  ;;  %v20704_v31 = vld [vmem:[#allocation38_spill] sm:$0xff] }
 0x38e   : > { %v12209_v57 = vcombine.low %v5052_v32, %v5053_v4  ;;  %v20700_v32 = vld [vmem:[#allocation105_spill] sm:$0xff]  ;;  %v5061_v58 = vmul.bf16 %v20704_v31, %v20703_v27  ;;  %v5063_v31 = vmul.bf16 %v5031_v51, %v20711_v39  ;;  %v15234_v51 = vld [vmem:[%s19746_s5] sm:$0xff]  }
 0x38f   : > { %14145 = vmatprep.subr.bf16.mxu0 %v15234_v51 }
 0x390   : > { %14146 = vmatpush3.bf16.msra.mxu0 %v15234_v51  ;;  %v20720_v51 = vld [vmem:[#allocation152_spill] sm:$0xff] }
 0x393   : > { %14054 = vmatmul.mubr.msk.bf16.gmra.mrb[44].mxu1 %vm2249_vm9, %v12206_v20  ;;  %v20691_v20 = vld [vmem:[#allocation52_spill] sm:$0xff] }
 0x394   : > { %14057 = vmatprep.mubr.msk.bf16.mxu1 %vm2249_vm9, %v12207_v25  ;;  %v5056_v25 = vmul.bf16 %v20692_v56, %v20691_v20  ;;  %v20702_v56 = vld [vmem:[#allocation112_spill] sm:$0xff] }
 0x395   : > { %v5060_v20 = vmul.bf16 %v20702_v56, %v20701_v43  ;;  %v20710_v56 = vld [vmem:[#allocation115_spill] sm:$0xff] }
 0x396   : > { %v12211_v36 = vcombine.low %v5056_v25, %v5057_v35  ;;  %v20707_v35 = vld [vmem:[#allocation98_spill] sm:$0xff] }
 0x397   : > { %v12213_v44 = vcombine.low %v5060_v20, %v5061_v58 }
 0x39b   : > { %14058 = vmatmul.mubr.msk.bf16.gmra.mrb[48].mxu1 %vm2249_vm9, %v12208_v7  ;;  %v20698_v7 = vld [vmem:[#allocation101_spill] sm:$0xff] }
 0x39c   : > { %14061 = vmatprep.mubr.msk.bf16.mxu1 %vm2249_vm9, %v12209_v57  ;;  %v5059_v4 = vmul.bf16 %v20698_v7, %v20697_v0  ;;  %v12237_v57 = vcombine.low %v20700_v32, %v20699_v59  ;;  %v20709_v32 = vld [vmem:[#allocation180_spill] sm:$0xff] }
 0x39d   : > { %v5062_v48 = vmul.bf16 %v20710_v56, %v20709_v32 }
 0x39e   : > { %v12212_v25 = vcombine.low %v5058_v38, %v5059_v4  ;;  %v5524_v18 = vshrl.u32 %v12237_v57, 16  ;;  %v20714_v4 = vld [vmem:[#allocation129_spill] sm:$0xff]  ;;  %v20715_v38 = vld [vmem:[#allocation126_spill] sm:$0xff] }
 0x39f   : > { %v12240_v20 = vcombine.low %v20715_v38, %v20714_v4  ;;  %v12214_v58 = vcombine.low %v5062_v48, %v5063_v31  ;;  %v20716_v48 = vld [vmem:[#allocation140_spill] sm:$0xff] }
 0x3a1   : > { %v5547_v1 = vshll.u32 %v12240_v20, 16 }
 0x3a3   : > { %14062 = vmatmul.mubr.msk.bf16.gmra.mrb[52].mxu1 %vm2249_vm9, %v12210_v46  ;;  %v12238_v46 = vcombine.low %v20708_v5, %v20707_v35  ;;  %v5549_v31 = vrot.slane %v5547_v1, 1  ;;  %v5551_v1 = vshrl.u32 %v12240_v20, 16 }
 0x3a4   : > { %14065 = vmatprep.mubr.msk.bf16.mxu1 %vm2249_vm9, %v12211_v36  ;;  %v5526_v36 = vshll.u32 %v12237_v57, 16  ;;  %v15235_v57 = vld [vmem:[%s19746_s5 + $0x8] sm:$0xff]  }
 0x3a5   : > { %v5531_v7 = vshll.u32 %v12238_v46, 16  ;;  %14147 = vmatprep.subr.bf16.mxu0 %v15235_v57  ;;  %v5553_v27 = vor.u32 %v5551_v1, %v5549_v31 }
 0x3a6   : > { %v5528_v30 = vrot.slane %v5526_v36, 1  ;;  %v5535_v36 = vshrl.u32 %v12238_v46, 16  ;;  %v15226_v46 = vld [vmem:[%s19744_s3 + $0x88] sm:$0xff]   ;;  %14148 = vmatpush3.bf16.msra.mxu0 %v15235_v57  ;;  %v20723_v57 = vld [vmem:[#allocation169_spill] sm:$0xff] }
 0x3a7   : > { %v5533_v22 = vrot.slane %v5531_v7, 1 }
 0x3a8   : > { %v5529_v19 = vor.u32 %v5528_v30, %v5524_v18  ;;  %v20717_v30 = vld [vmem:[#allocation133_spill] sm:$0xff] }
 0x3a9   : > { %v12241_v18 = vcombine.low %v20717_v30, %v20716_v48  ;;  %v5537_v56 = vor.u32 %v5535_v36, %v5533_v22  ;;  %v20721_v36 = vld [vmem:[#allocation155_spill] sm:$0xff] }
 0x3ab   : > { %14066 = vmatmul.mubr.msk.bf16.gmra.mrb[56].mxu1 %vm2249_vm9, %v12212_v25  ;;  %v5539_v25 = vshll.u32 %v12239_v40, 16  ;;  %v5555_v39 = vshll.u32 %v12241_v18, 16  ;;  %v5559_v43 = vshrl.u32 %v12241_v18, 16  ;;  %v20725_v18 = vld [vmem:[#allocation176_spill] sm:$0xff] }
 0x3ac   : > { %14069 = vmatprep.mubr.msk.bf16.mxu1 %vm2249_vm9, %v12213_v44  ;;  %v5534_v44 = vsel %vm2104_vm8, %v5529_v19, %v5533_v22  ;;  %v5543_v19 = vshrl.u32 %v12239_v40, 16 }
 0x3ad   : > { %v5541_v7 = vrot.slane %v5539_v25, 1  ;;  %v5557_v40 = vrot.slane %v5555_v39, 1 }
 0x3af   : > { %v5545_v32 = vor.u32 %v5543_v19, %v5541_v7  ;;  %v5542_v25 = vsel %vm2104_vm8, %v5537_v56, %v5541_v7  ;;  %v12243_v19 = vcombine.low %v20721_v36, %v20720_v51  ;;  %v20722_v7 = vld [vmem:[#allocation175_spill] sm:$0xff]  ;;  %v5558_v34 = vsel %vm2104_vm8, %v5553_v27, %v5557_v40 }
 0x3b0   : > { %v12244_v56 = vcombine.low %v20723_v57, %v20722_v7 }
 0x3b1   : > { %v5550_v22 = vsel %vm2104_vm8, %v5545_v32, %v5549_v31  ;;  %v5571_v32 = vshll.u32 %v12243_v19, 16  ;;  %v20724_v31 = vld [vmem:[#allocation172_spill] sm:$0xff]  ;;  %v5575_v29 = vshrl.u32 %v12243_v19, 16 }
 0x3b2   : > { %v5579_v39 = vshll.u32 %v12244_v56, 16 }
 0x3b3   : > { %14070 = vmatmul.mubr.msk.bf16.gmra.mrb[60].mxu1 %vm2249_vm9, %v12214_v58  ;;  %v20718_v58 = vld [vmem:[#allocation153_spill] sm:$0xff] }
 0x3b4   : > { %14077 = vmatprep.mubr.msk.bf16.mxu1 %vm2249_vm9, %v5534_v44  ;;  %v12242_v60 = vcombine.low %v20719_v9, %v20718_v58  ;;  %v5581_v50 = vrot.slane %v5579_v39, 1 }
 0x3b6   : > { %v5563_v44 = vshll.u32 %v12242_v60, 16  ;;  %v5567_v20 = vshrl.u32 %v12242_v60, 16  ;;  %v5583_v60 = vshrl.u32 %v12244_v56, 16 }
 0x3b8   : > { %v5565_v0 = vrot.slane %v5563_v44, 1  ;;  %v12245_v44 = vcombine.low %v20725_v18, %v20724_v31  ;;  %v5585_v39 = vor.u32 %v5583_v60, %v5581_v50 }
 0x3ba   : > { %v5569_v1 = vor.u32 %v5567_v20, %v5565_v0  ;;  %v5587_v27 = vshll.u32 %v12245_v44, 16  ;;  %v5591_v20 = vshrl.u32 %v12245_v44, 16 }
 0x3bb   : > { %14078 = vmatmul.mubr.msk.bf16.vlgmr.msra.gmra.mrb[32].mxu1 %vm2249_vm9, %v5542_v25  ;;  %v5561_v25 = vor.u32 %v5559_v43, %v5557_v40  ;;  %v20727_v43 = vld [vmem:[#allocation198_spill] sm:$0xff] }
 0x3bc   : > { %14110 = vmatpush3.bf16.msra.mxu1 %v18753_v10  ;;  %14081 = vmatprep.mubr.msk.bf16.mxu1 %vm2249_vm9, %v5550_v22  ;;  %v5573_v22 = vrot.slane %v5571_v32, 1  ;;  %v5589_v32 = vrot.slane %v5587_v27, 1 }
 0x3bd   : > { %14111 = vmatprep.subr.bf16.mxu1 %v15226_v46  ;;  %v5566_v10 = vsel %vm2104_vm8, %v5561_v25, %v5565_v0  ;;  %v20729_v0 = vld [vmem:[#allocation203_spill] sm:$0xff] }
 0x3be   : > { %v5577_v23 = vor.u32 %v5575_v29, %v5573_v22  ;;  %v20731_v29 = vld [vmem:[#allocation220_spill] sm:$0xff]  ;;  %v5593_v17 = vor.u32 %v5591_v20, %v5589_v32  ;;  %v20735_v20 = vld [vmem:[#allocation113_spill] sm:$0xff] }
 0x3bf   : > { %v12248_v14 = vcombine.low %v20731_v29, %v20730_v24  ;;  %v20734_v29 = vld [vmem:[#allocation223_spill] sm:$0xff] }
 0x3c0   : > { %14112 = vmatpush3.bf16.msra.mxu1 %v15226_v46  ;;  %v20726_v46 = vld [vmem:[#allocation202_spill] sm:$0xff]  ;;  %v5582_v40 = vsel %vm2104_vm8, %v5577_v23, %v5581_v50  ;;  %v20733_v50 = vld [vmem:[#allocation17_spill] sm:$0xff]  ;;  %v12250_v24 = vcombine.low %v20735_v20, %v20734_v29  ;;  %v15310_v29 = vld [vmem:[#allocation2 + $0x8c] sm:$0xf] }
 0x3c1   : > { %v12246_v61 = vcombine.low %v20727_v43, %v20726_v46 }
 0x3c3   : > { %14082 = vmatmul.mubr.msk.bf16.gmra.mrb[36].mxu1 %vm2249_vm9, %v5558_v34  ;;  %v5574_v34 = vsel %vm2104_vm8, %v5569_v1, %v5573_v22  ;;  %v5595_v25 = vshll.u32 %v12246_v61, 16  ;;  %v5590_v1 = vsel %vm2104_vm8, %v5585_v39, %v5589_v32  ;;  %v5599_v56 = vshrl.u32 %v12246_v61, 16  ;;  %v20736_v61 = vld [vmem:[#allocation114_spill] sm:$0xff] }
 0x3c4   : > { %14085 = vmatprep.mubr.msk.bf16.mxu1 %vm2249_vm9, %v5566_v10  ;;  %v20728_v10 = vld [vmem:[#allocation199_spill] sm:$0xff] }
 0x3c5   : > { %v12247_v19 = vcombine.low %v20729_v0, %v20728_v10  ;;  %v5597_v42 = vrot.slane %v5595_v25, 1 }
 0x3c7   : > { %v5603_v22 = vshll.u32 %v12247_v19, 16  ;;  %v5598_v23 = vsel %vm2104_vm8, %v5593_v17, %v5597_v42  ;;  %v5601_v25 = vor.u32 %v5599_v56, %v5597_v42  ;;  %v5607_v60 = vshrl.u32 %v12247_v19, 16 }
 0x3c8   : > { %v5615_v42 = vshrl.u32 %v12248_v14, 16 }
 0x3c9   : > { %v5605_v27 = vrot.slane %v5603_v22, 1  ;;  %v20737_v22 = vld [vmem:[#allocation224_spill] sm:$0xff] }
 0x3cb   : > { %14086 = vmatmul.mubr.msk.bf16.gmra.mrb[40].mxu1 %vm2249_vm9, %v5574_v34  ;;  %v5611_v34 = vshll.u32 %v12248_v14, 16  ;;  %v5609_v55 = vor.u32 %v5607_v60, %v5605_v27  ;;  %v5606_v39 = vsel %vm2104_vm8, %v5601_v25, %v5605_v27 }
 0x3cc   : > { %14089 = vmatprep.mubr.msk.bf16.mxu1 %vm2249_vm9, %v5582_v40  ;;  %v20732_v40 = vld [vmem:[#allocation83_spill] sm:$0xff] }
 0x3cd   : > { %v12249_v44 = vcombine.low %v20733_v50, %v20732_v40  ;;  %v5613_v10 = vrot.slane %v5611_v34, 1  ;;  %v20738_v50 = vld [vmem:[#allocation119_spill] sm:$0xff] }
 0x3ce   : > { %v12252_v27 = vcombine.low %v20738_v50, %v15310_v29  ;;  %v20739_v50 = vld [vmem:[#allocation108_spill] sm:$0xff] }
 0x3cf   : > { %v5619_v32 = vshll.u32 %v12249_v44, 16  ;;  %v5614_v17 = vsel %vm2104_vm8, %v5609_v55, %v5613_v10  ;;  %v5617_v34 = vor.u32 %v5615_v42, %v5613_v10  ;;  %v5623_v56 = vshrl.u32 %v12249_v44, 16  ;;  %v15311_v44 = vld [vmem:[#allocation2 + $0x90] sm:$0x1] }
 0x3d1   : > { %v5621_v19 = vrot.slane %v5619_v32, 1  ;;  %v5643_v32 = vshll.u32 %v12252_v27, 16 }
 0x3d3   : > { %14090 = vmatmul.mubr.msk.bf16.gmra.mrb[44].mxu1 %vm2249_vm9, %v5590_v1  ;;  %v5627_v1 = vshll.u32 %v12250_v24, 16  ;;  %v5625_v60 = vor.u32 %v5623_v56, %v5621_v19  ;;  %v5622_v25 = vsel %vm2104_vm8, %v5617_v34, %v5621_v19  ;;  %v5912_v56 = vmul.bf16 %v20707_v35, %v20522_v33 }
 0x3d4   : > { %14093 = vmatprep.mubr.msk.bf16.mxu1 %vm2249_vm9, %v5598_v23  ;;  %v12251_v23 = vcombine.low %v20737_v22, %v20736_v61  ;;  %v5645_v29 = vrot.slane %v5643_v32, 1  ;;  %v5909_v19 = vmul.bf16 %v20739_v50, %v20519_v62  ;;  %v5910_v34 = vmul.bf16 %v20699_v59, %v20520_v52  ;;  %v20742_v50 = vld [vmem:[#allocation39_spill] sm:$0xff] }
 0x3d5   : > { %v5629_v40 = vrot.slane %v5627_v1, 1  ;;  %v12253_v1 = vcombine.low %v15311_v44, %v15311_v44  ;;  %v5647_v33 = vshrl.u32 %v12252_v27, 16  ;;  %v5913_v62 = vmul.bf16 %v20713_v3, %v17864_v16 }
 0x3d6   : > { %v5635_v20 = vshll.u32 %v12251_v23, 16  ;;  %v5639_v14 = vshrl.u32 %v12251_v23, 16  ;;  %v12276_v35 = vcombine.low %v5909_v19, %v5910_v34  ;;  %v20744_v19 = vld [vmem:[#allocation54_spill] sm:$0xff]  ;;  %v20745_v34 = vld [vmem:[#allocation220_spill] sm:$0xff] }
 0x3d7   : > { %v5630_v55 = vsel %vm2104_vm8, %v5625_v60, %v5629_v40  ;;  %v5651_v23 = vshll.u32 %v12253_v1, 16 }
 0x3d9   : > { %v5653_v52 = vrot.slane %v5651_v23, 1 }
 0x3db   : > { %14094 = vmatmul.mubr.msk.bf16.gmra.mrb[48].mxu1 %vm2249_vm9, %v5606_v39  ;;  %v5637_v39 = vrot.slane %v5635_v20, 1  ;;  %v5911_v20 = vmul.bf16 %v20708_v5, %v20521_v45  ;;  %v5914_v45 = vmul.bf16 %v20712_v8, %v17873_v6  ;;  %v5916_v5 = vmul.bf16 %v20714_v4, %v17886_v53 }
 0x3dc   : > { %14097 = vmatprep.mubr.msk.bf16.mxu1 %vm2249_vm9, %v5614_v17  ;;  %v5631_v17 = vshrl.u32 %v12250_v24, 16  ;;  %v5917_v6 = vmul.bf16 %v20717_v30, %v20611_v54  ;;  %v5918_v53 = vmul.bf16 %v20716_v48, %v17970_v15  ;;  %v5919_v4 = vmul.bf16 %v20719_v9, %v17984_v28 }
 0x3dd   : > { %v5641_v42 = vor.u32 %v5639_v14, %v5637_v39  ;;  %v12277_v60 = vcombine.low %v5911_v20, %v5912_v56  ;;  %v12278_v27 = vcombine.low %v5913_v62, %v5914_v45  ;;  %v5921_v15 = vmul.bf16 %v20721_v36, %v17994_v41  ;;  %v20748_v62 = vld [vmem:[#allocation210_spill] sm:$0xff] }
 0x3de   : > { %v5633_v10 = vor.u32 %v5631_v17, %v5629_v40  ;;  %v12280_v32 = vcombine.low %v5917_v6, %v5918_v53  ;;  %v5924_v28 = vmul.bf16 %v20722_v7, %v18005_v12  ;;  %v5923_v9 = vmul.bf16 %v20723_v57, %v18029_v37 }
 0x3df   : > { %v5646_v40 = vsel %vm2104_vm8, %v5641_v42, %v5645_v29  ;;  %v6031_v59 = vrot.slane %v12277_v60, 1  ;;  %v6033_v14 = vrot.slane %v12278_v27, 1  ;;  %v5926_v12 = vmul.bf16 %v20724_v31, %v20529_v49  ;;  %v20740_v31 = vld [vmem:[#allocation201_spill] sm:$0xff] }
 0x3e0   : > { %v5638_v24 = vsel %vm2104_vm8, %v5633_v10, %v5637_v39  ;;  %v5915_v39 = vmul.bf16 %v20715_v38, %v17881_v47  ;;  %v5920_v47 = vmul.bf16 %v20718_v58, %v17975_v13  ;;  %v6037_v54 = vrot.slane %v12280_v32, 1 }
 0x3e1   : > { %v6034_v38 = vsel %vm3397_vm13, %v6031_v59, %v6033_v14  ;;  %v5922_v13 = vmul.bf16 %v20720_v51, %v17998_v11  ;;  %v12283_v42 = vcombine.low %v5923_v9, %v5924_v28  ;;  %v5925_v11 = vmul.bf16 %v20725_v18, %v20616_v21  ;;  %v20741_v18 = vld [vmem:[#allocation199_spill] sm:$0xff]  ;;  %v15236_v9 = vld [vmem:[%s19744_s3 + $0x10] sm:$0xff]  }
 0x3e2   : > { %v12279_v3 = vcombine.low %v5915_v39, %v5916_v5  ;;  %v12281_v44 = vcombine.low %v5919_v4, %v5920_v47  ;;  %v5928_v37 = vmul.bf16 %v20726_v46, %v20619_v26  ;;  %v5927_v36 = vmul.bf16 %v20727_v43, %v20533_v2  ;;  %v20743_v2 = vld [vmem:[#allocation87_spill] sm:$0xff]  ;;  %v20755_v4 = vld [vmem:[#allocation217_spill] sm:$0xff]  ;;  %14181 = vmatprep.subr.bf16.mxu0 %v15236_v9 }
 0x3e3   : > { %14098 = vmatmul.mubr.msk.bf16.gmra.mrb[52].mxu1 %vm2249_vm9, %v5622_v25  ;;  %v5649_v25 = vor.u32 %v5647_v33, %v5645_v29  ;;  %v12282_v58 = vcombine.low %v5921_v15, %v5922_v13  ;;  %v6043_v51 = vrot.slane %v12283_v42, 1  ;;  %v12284_v57 = vcombine.low %v5925_v11, %v5926_v12  ;;  %v20747_v33 = vld [vmem:[#allocation17_spill] sm:$0xff]  ;;  %v20751_v5 = vld [vmem:[#allocation223_spill] sm:$0xff] }
 0x3e4   : > { %14101 = vmatprep.mubr.msk.bf16.mxu1 %vm2249_vm9, %v5630_v55  ;;  %v6030_v55 = vrot.slane %v12276_v35, 1  ;;  %v6035_v8 = vrot.slane %v12279_v3, 1  ;;  %v6039_v48 = vrot.slane %v12281_v44, 1  ;;  %v12285_v29 = vcombine.low %v5927_v36, %v5928_v37  ;;  %v20752_v39 = vld [vmem:[#allocation211_spill] sm:$0xff] }
 0x3e5   : > { %v5654_v17 = vsel %vm2104_vm8, %v5649_v25, %v5653_v52  ;;  %v6041_v41 = vrot.slane %v12282_v58, 1  ;;  %v6045_v21 = vrot.slane %v12284_v57, 1  ;;  %v5929_v49 = vmul.bf16 %v20729_v0, %v20536_v63  ;;  %v20746_v0 = vld [vmem:[#allocation209_spill] sm:$0xff]  ;;  %v20749_v25 = vld [vmem:[#allocation83_spill] sm:$0xff] }
 0x3e6   : > { %v6032_v16 = vsel %vm3397_vm13, %v6030_v55, %v6031_v59  ;;  %v6036_v10 = vsel %vm3397_vm13, %v6033_v14, %v6035_v8  ;;  %v6038_v30 = vsel %vm3397_vm13, %v6035_v8, %v6037_v54  ;;  %v6040_v1 = vsel %vm3397_vm13, %v6037_v54, %v6039_v48  ;;  %v20750_v59 = vld [vmem:[#allocation212_spill] sm:$0xff] }
 0x3e7   : > { %v6042_v7 = vsel %vm3397_vm13, %v6039_v48, %v6041_v41  ;;  %v6044_v56 = vsel %vm3397_vm13, %v6041_v41, %v6043_v51  ;;  %v5930_v26 = vmul.bf16 %v20741_v18, %v20740_v31  ;;  %v6047_v46 = vrot.slane %v12285_v29, 1  ;;  %v20754_v8 = vld [vmem:[#allocation216_spill] sm:$0xff]  ;;  %v20756_v48 = vld [vmem:[#allocation66_spill] sm:$0xff] }
 0x3e8   : > { %v5932_v43 = vmul.bf16 %v20743_v2, %v20742_v50  ;;  %v5931_v20 = vmul.bf16 %v20745_v34, %v20744_v19  ;;  %v5933_v35 = vmul.bf16 %v20747_v33, %v20746_v0  ;;  %v5934_v52 = vmul.bf16 %v20749_v25, %v20748_v62 }
 0x3e9   : > { %v12286_v23 = vcombine.low %v5929_v49, %v5930_v26  ;;  %v5936_v55 = vmul.bf16 %v20751_v5, %v20750_v59  ;;  %v5937_v47 = vmul.bf16 %v20737_v22, %v20754_v8  ;;  %v20757_v22 = vrot.slane %v20756_v48, 1  ;;  %v15237_v26 = vld [vmem:[%s19744_s3 + $0x18] sm:$0xff]  }
 0x3ea   : > { %v12287_v60 = vcombine.low %v5931_v20, %v5932_v43  ;;  %v12288_v3 = vcombine.low %v5933_v35, %v5934_v52 }
 0x3eb   : > { %14102 = vmatmul.mubr.msk.bf16.gmra.mrb[56].mxu1 %vm2249_vm9, %v5638_v24  ;;  %v6046_v24 = vsel %vm3397_vm13, %v6043_v51, %v6045_v21  ;;  %v6049_v63 = vrot.slane %v12286_v23, 1 }
 0x3ec   : > { %14105 = vmatprep.mubr.msk.bf16.mxu1 %vm2249_vm9, %v5646_v40  ;;  %v6048_v40 = vsel %vm3397_vm13, %v6045_v21, %v6047_v46  ;;  %v6051_v45 = vrot.slane %v12287_v60, 1  ;;  %v6053_v53 = vrot.slane %v12288_v3, 1 }
 0x3ee   : > { %v6052_v14 = vsel %vm3397_vm13, %v6049_v63, %v6051_v45 }
 0x3f3   : > { %14106 = vmatmul.mubr.msk.bf16.gmra.mrb[60].mxu1 %vm2249_vm9, %v5654_v17  ;;  %v20753_v17 = vld [vmem:[#allocation113_spill] sm:$0xff] }
 0x3f4   : > { %14113 = vmatprep.mubr.msk.bf16.mxu1 %vm2249_vm9, %v6032_v16  ;;  %v5935_v27 = vmul.bf16 %v20753_v17, %v20752_v39  ;;  %v6050_v16 = vsel %vm3397_vm13, %v6047_v46, %v6049_v63 }
 0x3f6   : > { %v12289_v6 = vcombine.low %v5935_v27, %v5936_v55 }
 0x3f8   : > { %v6055_v32 = vrot.slane %v12289_v6, 1 }
 0x3fa   : > { %v6056_v54 = vsel %vm3397_vm13, %v6053_v53, %v6055_v32 }
 0x3fb   : > { %14114 = vmatmul.mubr.msk.bf16.vlgmr.msra.gmra.mrb[32].mxu1 %vm2249_vm9, %v6034_v38  ;;  %v5938_v38 = vmul.bf16 %v20736_v61, %v20755_v4  ;;  %v20758_v61 = vld [vmem:[#allocation71_spill] sm:$0xff] }
 0x3fc   : > { %14117 = vmatprep.mubr.msk.bf16.mxu1 %vm2249_vm9, %v6036_v10  ;;  %v6054_v10 = vsel %vm3397_vm13, %v6051_v45, %v6053_v53 }
 0x3fd   : > { %v12290_v44 = vcombine.low %v5937_v47, %v5938_v38 }
 0x3ff   : > { %v6057_v15 = vrot.slane %v12290_v44, 1 }
 0x401   : > { %v6058_v13 = vsel %vm3397_vm13, %v6055_v32, %v6057_v15  ;;  %v6060_v28 = vsel %vm3397_vm13, %v6057_v15, %v20757_v22 }
 0x403   : > { %14118 = vmatmul.mubr.msk.bf16.gmra.mrb[36].mxu1 %vm2249_vm9, %v6038_v30  ;;  %v18991_v30 = vld [vmem:[%s19745_s4] ss:$0 sm:$0xff] }
 0x404   : > { %14121 = vmatprep.mubr.msk.bf16.mxu1 %vm2249_vm9, %v6040_v1 }
 0x40b   : > { %14122 = vmatmul.mubr.msk.bf16.gmra.mrb[40].mxu1 %vm2249_vm9, %v6042_v7 }
 0x40c   : > { %14125 = vmatprep.mubr.msk.bf16.mxu1 %vm2249_vm9, %v6044_v56 }
 0x413   : > { %14126 = vmatmul.mubr.msk.bf16.gmra.mrb[44].mxu1 %vm2249_vm9, %v6046_v24  ;;  %v19009_v24 = vld [vmem:[%s19744_s3] sm:$0xff]  }
 0x414   : > { %14129 = vmatprep.mubr.msk.bf16.mxu1 %vm2249_vm9, %v6048_v40 }
 0x41b   : > { %14130 = vmatmul.mubr.msk.bf16.gmra.mrb[48].mxu1 %vm2249_vm9, %v6050_v16 }
 0x41c   : > { %14133 = vmatprep.mubr.msk.bf16.mxu1 %vm2249_vm9, %v6052_v14 }
 0x423   : > { %14134 = vmatmul.mubr.msk.bf16.gmra.mrb[52].mxu1 %vm2249_vm9, %v6054_v10 }
 0x424   : > { %14137 = vmatprep.mubr.msk.bf16.mxu1 %vm2249_vm9, %v6056_v54 }
 0x42b   : > { %14138 = vmatmul.mubr.msk.bf16.gmra.mrb[56].mxu1 %vm2249_vm9, %v6058_v13 }
 0x42c   : > { %14141 = vmatprep.mubr.msk.bf16.mxu1 %vm2249_vm9, %v6060_v28 }
 0x433   : > { %14142 = vmatmul.mubr.msk.bf16.gmra.mrb[60].mxu1 %vm2249_vm9, %v20758_v61 }
 0x4ce   : > { %v14115_v58 = vpop.f32.mrb[32].mxu1 }
 0x4cf   : > { %v6324_v1 = vadd.f32 %v14115_v58, %v18991_v30  ;;  %v6157_v42 = vpop.f32.mrb[33].mxu1 }
 0x4d0   : > { %v6322_v41 = vadd.f32 %v18991_v30, %v6157_v42  ;;  %v14116_v11 = vpop.f32.mrb[34].mxu1 }
 0x4d1   : > { %v6325_v12 = vadd.f32 %v14116_v11, %v18991_v30  ;;  %v6160_v51 = vpop.f32.mrb[35].mxu1  ;;  %v6356_v36 = vmax.f32 %v6324_v1, 0.0 }
 0x4d2   : > { %v6323_v37 = vadd.f32 %v18991_v30, %v6160_v51  ;;  %v6354_v57 = vmax.f32 %v6322_v41, 0.0 }
 0x4d3   : > { %v6357_v7 = vmax.f32 %v6325_v12, 0.0 }
 0x4d4   : > { %v6355_v56 = vmax.f32 %v6323_v37, 0.0 }
 0x4d5   : > { %v6387_v29 = vpack.c.bf16 %v6357_v7, %v6356_v36 }
 0x4d6   : > { %v6386_v21 = vpack.c.bf16 %v6355_v56, %v6354_v57  ;;  %v14119_v49 = vpop.f32.mrb[36].mxu1 }
 0x4d7   : > { %v6328_v31 = vadd.f32 %v14119_v49, %v18991_v30  ;;  %v6173_v18 = vpop.f32.mrb[37].mxu1 }
 0x4d8   : > { %v6326_v46 = vadd.f32 %v18991_v30, %v6173_v18  ;;  %v14120_v50 = vpop.f32.mrb[38].mxu1  ;;  %14149 = vmatprep.mubr.msk.bf16.mxu0 %vm2249_vm9, %v6386_v21 }
 0x4d9   : > { %v6329_v2 = vadd.f32 %v14120_v50, %v18991_v30  ;;  %v6176_v43 = vpop.f32.mrb[39].mxu1  ;;  %14150 = vmatmul.mubr.msk.bf16.vlgmr.msra.gmra.mrb[32].mxu0 %vm2249_vm9, %v6387_v29  ;;  %v6360_v34 = vmax.f32 %v6328_v31, 0.0 }
 0x4da   : > { %v6327_v19 = vadd.f32 %v18991_v30, %v6176_v43  ;;  %14182 = vmatpush3.bf16.msra.mxu0 %v15236_v9  ;;  %v6358_v23 = vmax.f32 %v6326_v46, 0.0 }
 0x4db   : > { %v6361_v20 = vmax.f32 %v6329_v2, 0.0  ;;  %14183 = vmatprep.subr.bf16.mxu0 %v15237_v26 }
 0x4dc   : > { %v6359_v40 = vmax.f32 %v6327_v19, 0.0 }
 0x4dd   : > { %v6389_v60 = vpack.c.bf16 %v6361_v20, %v6360_v34 }
 0x4de   : > { %v6388_v63 = vpack.c.bf16 %v6359_v40, %v6358_v23  ;;  %v14123_v0 = vpop.f32.mrb[40].mxu1  ;;  %14184 = vmatpush3.bf16.msra.mxu0 %v15237_v26 }
 0x4df   : > { %v6332_v33 = vadd.f32 %v14123_v0, %v18991_v30  ;;  %v6189_v35 = vpop.f32.mrb[41].mxu1  ;;  %14217 = vmatprep.subr.bf16.mxu0 %v19009_v24 }
 0x4e0   : > { %v6330_v62 = vadd.f32 %v18991_v30, %v6189_v35  ;;  %v14124_v25 = vpop.f32.mrb[42].mxu1  ;;  %14153 = vmatprep.mubr.msk.bf16.mxu0 %vm2249_vm9, %v6388_v63 }
 0x4e1   : > { %v6333_v52 = vadd.f32 %v14124_v25, %v18991_v30  ;;  %v6192_v45 = vpop.f32.mrb[43].mxu1  ;;  %14154 = vmatmul.mubr.msk.bf16.gmra.mrb[36].mxu0 %vm2249_vm9, %v6389_v60  ;;  %v6364_v55 = vmax.f32 %v6332_v33, 0.0 }
 0x4e2   : > { %v6331_v5 = vadd.f32 %v18991_v30, %v6192_v45  ;;  %v6362_v27 = vmax.f32 %v6330_v62, 0.0  ;;  %v15313_v45 = vld [vmem:[#allocation2 + $0x4] sm:$0xf] }
 0x4e3   : > { %v6365_v17 = vmax.f32 %v6333_v52, 0.0  ;;  %v15312_v52 = vld [vmem:[#allocation2] sm:$0xf] }
 0x4e4   : > { %v6363_v16 = vmax.f32 %v6331_v5, 0.0  ;;  %v12399_v5 = vcombine.low %v15312_v52, %v15313_v45 }
 0x4e5   : > { %v6391_v3 = vpack.c.bf16 %v6365_v17, %v6364_v55 }
 0x4e6   : > { %v6390_v14 = vpack.c.bf16 %v6363_v16, %v6362_v27  ;;  %v14127_v6 = vpop.f32.mrb[44].mxu1 }
 0x4e7   : > { %v6336_v53 = vadd.f32 %v14127_v6, %v18991_v30  ;;  %v6205_v47 = vpop.f32.mrb[45].mxu1  ;;  %v15314_v6 = vld [vmem:[#allocation2 + $0x8] sm:$0xf] }
 0x4e8   : > { %v6334_v38 = vadd.f32 %v18991_v30, %v6205_v47  ;;  %v14128_v32 = vpop.f32.mrb[46].mxu1  ;;  %14157 = vmatprep.mubr.msk.bf16.mxu0 %vm2249_vm9, %v6390_v14 }
 0x4e9   : > { %v6337_v10 = vadd.f32 %v14128_v32, %v18991_v30  ;;  %v6208_v44 = vpop.f32.mrb[47].mxu1  ;;  %14158 = vmatmul.mubr.msk.bf16.gmra.mrb[40].mxu0 %vm2249_vm9, %v6391_v3  ;;  %v6368_v15 = vmax.f32 %v6336_v53, 0.0  ;;  %v15315_v53 = vld [vmem:[#allocation2 + $0xc] sm:$0xf] }
 0x4ea   : > { %v6335_v54 = vadd.f32 %v18991_v30, %v6208_v44  ;;  %v6366_v48 = vmax.f32 %v6334_v38, 0.0  ;;  %v12400_v47 = vcombine.low %v15314_v6, %v15315_v53  ;;  %v7517_v38 = vshll.u32 %v12399_v5, 16  ;;  %v15326_v53 = vld [vmem:[#allocation2 + $0x38] sm:$0xf] }
 0x4eb   : > { %v6369_v13 = vmax.f32 %v6337_v10, 0.0 }
 0x4ec   : > { %v6367_v22 = vmax.f32 %v6335_v54, 0.0 }
 0x4ed   : > { %v6393_v28 = vpack.c.bf16 %v6369_v13, %v6368_v15 }
 0x4ee   : > { %v6392_v61 = vpack.c.bf16 %v6367_v22, %v6366_v48  ;;  %v14131_v9 = vpop.f32.mrb[48].mxu1 }
 0x4ef   : > { %v6340_v58 = vadd.f32 %v14131_v9, %v18991_v30  ;;  %v6221_v1 = vpop.f32.mrb[49].mxu1  ;;  %v7522_v9 = vshll.u32 %v12400_v47, 16 }
 0x4f0   : > { %v6338_v42 = vadd.f32 %v18991_v30, %v6221_v1  ;;  %v14132_v41 = vpop.f32.mrb[50].mxu1  ;;  %14161 = vmatprep.mubr.msk.bf16.mxu0 %vm2249_vm9, %v6392_v61  ;;  %v7519_v61 = vrot.slane %v7517_v38, 1 }
 0x4f1   : > { %v6341_v11 = vadd.f32 %v14132_v41, %v18991_v30  ;;  %v6224_v12 = vpop.f32.mrb[51].mxu1  ;;  %14162 = vmatmul.mubr.msk.bf16.gmra.mrb[44].mxu0 %vm2249_vm9, %v6393_v28  ;;  %v6372_v37 = vmax.f32 %v6340_v58, 0.0  ;;  %v7515_v28 = vshrl.u32 %v12399_v5, 16  ;;  %v15316_v41 = vld [vmem:[#allocation2 + $0x10] sm:$0xf] }
 0x4f2   : > { %v6339_v51 = vadd.f32 %v18991_v30, %v6224_v12  ;;  %v6370_v7 = vmax.f32 %v6338_v42, 0.0 }
 0x4f3   : > { %v6373_v36 = vmax.f32 %v6341_v11, 0.0  ;;  %v15317_v11 = vld [vmem:[#allocation2 + $0x14] sm:$0xf] }
 0x4f4   : > { %v6371_v57 = vmax.f32 %v6339_v51, 0.0  ;;  %v12401_v12 = vcombine.low %v15316_v41, %v15317_v11 }
 0x4f5   : > { %v6395_v56 = vpack.c.bf16 %v6373_v36, %v6372_v37 }
 0x4f6   : > { %v6394_v29 = vpack.c.bf16 %v6371_v57, %v6370_v7  ;;  %v14135_v21 = vpop.f32.mrb[52].mxu1  ;;  %v7520_v7 = vor.u32 %v7519_v61, %v7515_v28  ;;  %v7524_v57 = vrot.slane %v7522_v9, 1 }
 0x4f7   : > { %v6344_v49 = vadd.f32 %v14135_v21, %v18991_v30  ;;  %v6237_v31 = vpop.f32.mrb[53].mxu1 }
 0x4f8   : > { %v6342_v18 = vadd.f32 %v18991_v30, %v6237_v31  ;;  %v14136_v26 = vpop.f32.mrb[54].mxu1  ;;  %14165 = vmatprep.mubr.msk.bf16.mxu0 %vm2249_vm9, %v6394_v29  ;;  %v15319_v29 = vld [vmem:[#allocation2 + $0x1c] sm:$0xf]  ;;  %v7530_v31 = vshll.u32 %v12401_v12, 16 }
 0x4f9   : > { %v6345_v46 = vadd.f32 %v14136_v26, %v18991_v30  ;;  %v6240_v50 = vpop.f32.mrb[55].mxu1  ;;  %14166 = vmatmul.mubr.msk.bf16.gmra.mrb[48].mxu0 %vm2249_vm9, %v6395_v56  ;;  %v6376_v43 = vmax.f32 %v6344_v49, 0.0  ;;  %v15318_v56 = vld [vmem:[#allocation2 + $0x18] sm:$0xf] }
 0x4fa   : > { %v6343_v2 = vadd.f32 %v18991_v30, %v6240_v50  ;;  %v6374_v34 = vmax.f32 %v6342_v18, 0.0  ;;  %v12402_v21 = vcombine.low %v15318_v56, %v15319_v29  ;;  %v7534_v18 = vshrl.u32 %v12401_v12, 16  ;;  %v15332_v56 = vld [vmem:[#allocation2 + $0x50] sm:$0xf]  ;;  %v15333_v29 = vld [vmem:[#allocation2 + $0x54] sm:$0xf] }
 0x4fb   : > { %v6377_v19 = vmax.f32 %v6345_v46, 0.0  ;;  %v7526_v46 = vshrl.u32 %v12400_v47, 16  ;;  %v7532_v50 = vrot.slane %v7530_v31, 1  ;;  %v15327_v47 = vld [vmem:[#allocation2 + $0x3c] sm:$0xf] }
 0x4fc   : > { %v6375_v20 = vmax.f32 %v6343_v2, 0.0  ;;  %v7538_v26 = vshll.u32 %v12402_v21, 16  ;;  %v15320_v2 = vld [vmem:[#allocation2 + $0x20] sm:$0xf]  ;;  %v12406_v38 = vcombine.low %v15326_v53, %v15327_v47 }
 0x4fd   : > { %v6397_v23 = vpack.c.bf16 %v6377_v19, %v6376_v43  ;;  %v15321_v43 = vld [vmem:[#allocation2 + $0x24] sm:$0xf] }
 0x4fe   : > { %v6396_v40 = vpack.c.bf16 %v6375_v20, %v6374_v34  ;;  %v14139_v60 = vpop.f32.mrb[56].mxu1  ;;  %v12403_v19 = vcombine.low %v15320_v2, %v15321_v43  ;;  %v7528_v34 = vor.u32 %v7526_v46, %v7524_v57  ;;  %v7536_v20 = vor.u32 %v7534_v18, %v7532_v50  ;;  %v15334_v18 = vld [vmem:[#allocation2 + $0x58] sm:$0xf] }
 0x4ff   : > { %v6348_v63 = vadd.f32 %v14139_v60, %v18991_v30  ;;  %v6253_v0 = vpop.f32.mrb[57].mxu1  ;;  %v15323_v60 = vld [vmem:[#allocation2 + $0x2c] sm:$0xf] }
 0x500   : > { %v6346_v33 = vadd.f32 %v18991_v30, %v6253_v0  ;;  %v14140_v35 = vpop.f32.mrb[58].mxu1  ;;  %14169 = vmatprep.mubr.msk.bf16.mxu0 %vm2249_vm9, %v6396_v40  ;;  %v15322_v40 = vld [vmem:[#allocation2 + $0x28] sm:$0xf]  ;;  %v7546_v0 = vshll.u32 %v12403_v19, 16  ;;  %v7550_v52 = vshrl.u32 %v12403_v19, 16 }
 0x501   : > { %v6349_v62 = vadd.f32 %v14140_v35, %v18991_v30  ;;  %v6256_v25 = vpop.f32.mrb[59].mxu1  ;;  %14170 = vmatmul.mubr.msk.bf16.gmra.mrb[52].mxu0 %vm2249_vm9, %v6397_v23  ;;  %v6380_v17 = vmax.f32 %v6348_v63, 0.0  ;;  %v7540_v23 = vrot.slane %v7538_v26, 1  ;;  %v12404_v63 = vcombine.low %v15322_v40, %v15323_v60  ;;  %v15335_v26 = vld [vmem:[#allocation2 + $0x5c] sm:$0xf] }
 0x502   : > { %v6347_v55 = vadd.f32 %v18991_v30, %v6256_v25  ;;  %v6378_v16 = vmax.f32 %v6346_v33, 0.0  ;;  %v15249_v33 = vld [vmem:[%s19744_s3 + $0x8] sm:$0xff]   ;;  %v7533_v35 = vsel %vm2104_vm8, %v7528_v34, %v7532_v50  ;;  %v7548_v5 = vrot.slane %v7546_v0, 1  ;;  %v15336_v40 = vld [vmem:[#allocation2 + $0x60] sm:$0xf] }
 0x503   : > { %v6381_v27 = vmax.f32 %v6349_v62, 0.0  ;;  %v7542_v62 = vshrl.u32 %v12402_v21, 16  ;;  %v7541_v25 = vsel %vm2104_vm8, %v7536_v20, %v7540_v23  ;;  %v7554_v45 = vshll.u32 %v12404_v63, 16  ;;  %v15337_v60 = vld [vmem:[#allocation2 + $0x64] sm:$0xf] }
 0x504   : > { %v6379_v3 = vmax.f32 %v6347_v55, 0.0  ;;  %v15324_v55 = vld [vmem:[#allocation2 + $0x30] sm:$0xf]  ;;  %v12409_v21 = vcombine.low %v15332_v56, %v15333_v29  ;;  %v12410_v46 = vcombine.low %v15334_v18, %v15335_v26  ;;  %v20759_v29 = vld [vmem:[#allocation74_spill] sm:$0xff]  ;;  %v20762_v18 = vld [vmem:[#allocation79_spill] sm:$0xff] }
 0x505   : > { %v6399_v14 = vpack.c.bf16 %v6381_v27, %v6380_v17  ;;  %v15325_v17 = vld [vmem:[#allocation2 + $0x34] sm:$0xf]  ;;  %v7556_v6 = vrot.slane %v7554_v45, 1  ;;  %v20763_v26 = vld [vmem:[#allocation183_spill] sm:$0xff] }
 0x506   : > { %v6398_v32 = vpack.c.bf16 %v6379_v3, %v6378_v16  ;;  %v14143_v10 = vpop.f32.mrb[60].mxu1  ;;  %v12405_v27 = vcombine.low %v15324_v55, %v15325_v17  ;;  %v19063_v16 = vld [vmem:[%s19744_s3 + $0x20] sm:$0xff]   ;;  %v7544_v3 = vor.u32 %v7542_v62, %v7540_v23  ;;  %v7594_v50 = vshll.u32 %v12409_v21, 16 }
 0x507   : > { %v6352_v44 = vadd.f32 %v14143_v10, %v18991_v30  ;;  %v6269_v54 = vpop.f32.mrb[61].mxu1  ;;  %v7558_v10 = vshrl.u32 %v12404_v63, 16  ;;  %v7598_v34 = vshrl.u32 %v12409_v21, 16  ;;  %v7602_v20 = vshll.u32 %v12410_v46, 16  ;;  %v15258_v21 = vld [vmem:[%s19744_s3 + $0x28] sm:$0xff]  }
 0x508   : > { %v6350_v15 = vadd.f32 %v18991_v30, %v6269_v54  ;;  %v14144_v13 = vpop.f32.mrb[62].mxu1  ;;  %14173 = vmatprep.mubr.msk.bf16.mxu0 %vm2249_vm9, %v6398_v32  ;;  %v7549_v32 = vsel %vm2104_vm8, %v7544_v3, %v7548_v5  ;;  %v7566_v54 = vshrl.u32 %v12405_v27, 16  ;;  %v7596_v23 = vrot.slane %v7594_v50, 1  ;;  %v20766_v50 = vld [vmem:[#allocation181_spill] sm:$0xff] }
 0x509   : > { %v6353_v48 = vadd.f32 %v14144_v13, %v18991_v30  ;;  %v6272_v22 = vpop.f32.mrb[63].mxu1  ;;  %14174 = vmatmul.mubr.msk.bf16.gmra.mrb[56].mxu0 %vm2249_vm9, %v6399_v14  ;;  %v6384_v1 = vmax.f32 %v6352_v44, 0.0  ;;  %v7552_v14 = vor.u32 %v7550_v52, %v7548_v5  ;;  %v7560_v61 = vor.u32 %v7558_v10, %v7556_v6 }
 0x50a   : > { %v6351_v58 = vadd.f32 %v18991_v30, %v6272_v22  ;;  %v6382_v51 = vmax.f32 %v6350_v15, 0.0  ;;  %v7525_v30 = vsel %vm2104_vm8, %v7520_v7, %v7524_v57  ;;  %v7570_v15 = vshll.u32 %v12406_v38, 16  ;;  %v15329_v22 = vld [vmem:[#allocation2 + $0x44] sm:$0xf] }
 0x50b   : > { %v6385_v42 = vmax.f32 %v6353_v48, 0.0  ;;  %v7557_v44 = vsel %vm2104_vm8, %v7552_v14, %v7556_v6  ;;  %v15328_v48 = vld [vmem:[#allocation2 + $0x40] sm:$0xf]  ;;  %v12411_v63 = vcombine.low %v15336_v40, %v15337_v60  ;;  %v7600_v62 = vor.u32 %v7598_v34, %v7596_v23  ;;  %v19088_v14 = vld [vmem:[#allocation2 + $0x70] sm:$0xf] }
 0x50c   : > { %v6383_v37 = vmax.f32 %v6351_v58, 0.0  ;;  %v12407_v28 = vcombine.low %v15328_v48, %v15329_v22  ;;  %v7572_v58 = vrot.slane %v7570_v15, 1  ;;  %v7606_v55 = vshrl.u32 %v12410_v46, 16  ;;  %v19090_v6 = vld [vmem:[#allocation2 + $0x74] sm:$0xf]  ;;  %v20770_v34 = vld [vmem:[#allocation206_spill] sm:$0xff] }
 0x50d   : > { %v6401_v36 = vpack.c.bf16 %v6385_v42, %v6384_v1  ;;  %v15330_v1 = vld [vmem:[#allocation2 + $0x48] sm:$0xf]  ;;  %v15331_v42 = vld [vmem:[#allocation2 + $0x4c] sm:$0xf]  ;;  %v7610_v45 = vshll.u32 %v12411_v63, 16  ;;  %v12413_v47 = vcombine.low %v19088_v14, %v19090_v6  ;;  %v20764_v46 = vld [vmem:[#allocation177_spill] sm:$0xff] }
 0x50e   : > { %v6400_v49 = vpack.c.bf16 %v6383_v37, %v6382_v51  ;;  %v12408_v41 = vcombine.low %v15330_v1, %v15331_v42  ;;  %v7578_v11 = vshll.u32 %v12407_v28, 16  ;;  %v7574_v51 = vshrl.u32 %v12406_v38, 16  ;;  %v20773_v60 = vld [vmem:[#allocation46_spill] sm:$0xff] }
 0x50f   : > { %v7612_v53 = vrot.slane %v7610_v45, 1  ;;  %v7626_v15 = vshll.u32 %v12413_v47, 16 }
 0x510   : > { %14177 = vmatprep.mubr.msk.bf16.mxu0 %vm2249_vm9, %v6400_v49  ;;  %v7586_v7 = vshll.u32 %v12408_v41, 16  ;;  %v7580_v57 = vrot.slane %v7578_v11, 1  ;;  %v7576_v49 = vor.u32 %v7574_v51, %v7572_v58  ;;  %v7590_v43 = vshrl.u32 %v12408_v41, 16 }
 0x511   : > { %14178 = vmatmul.mubr.msk.bf16.gmra.mrb[60].mxu0 %vm2249_vm9, %v6401_v36  ;;  %v7582_v36 = vshrl.u32 %v12407_v28, 16  ;;  %v7630_v28 = vshrl.u32 %v12413_v47, 16  ;;  %v20778_v47 = vld [vmem:[#allocation205_spill] sm:$0xff] }
 0x512   : > { %14185 = vmatprep.mubr.msk.bf16.mxu0 %vm2249_vm9, %v7525_v30  ;;  %v7588_v30 = vrot.slane %v7586_v7, 1  ;;  %v7581_v2 = vsel %vm2104_vm8, %v7576_v49, %v7580_v57  ;;  %v20760_v49 = vld [vmem:[#allocation156_spill] sm:$0xff] }
 0x513   : > { %v7584_v31 = vor.u32 %v7582_v36, %v7580_v57 }
 0x514   : > { %v7592_v0 = vor.u32 %v7590_v43, %v7588_v30  ;;  %v20768_v43 = vld [vmem:[#allocation76_spill] sm:$0xff] }
 0x515   : > { %v7589_v19 = vsel %vm2104_vm8, %v7584_v31, %v7588_v30  ;;  %v20761_v31 = vld [vmem:[#allocation182_spill] sm:$0xff]  ;;  %v15259_v30 = vld [vmem:[%s19744_s3 + $0x30] sm:$0xff]  }
 0x516   : > { %v7597_v5 = vsel %vm2104_vm8, %v7592_v0, %v7596_v23  ;;  %v20772_v23 = vld [vmem:[#allocation170_spill] sm:$0xff]  ;;  %v20774_v0 = vld [vmem:[#allocation173_spill] sm:$0xff] }
 0x519   : > { %14186 = vmatmul.mubr.msk.bf16.vlgmr.msra.gmra.mrb[64].mxu0 %vm2249_vm9, %v7533_v35  ;;  %v19080_v35 = vld [vmem:[#allocation2 + $0x6c] sm:$0xf] }
 0x51a   : > { %14218 = vmatpush3.bf16.msra.mxu0 %v19009_v24  ;;  %14189 = vmatprep.mubr.msk.bf16.mxu0 %vm2249_vm9, %v7541_v25  ;;  %v7562_v24 = vshll.u32 %v12405_v27, 16  ;;  %v7604_v25 = vrot.slane %v7602_v20, 1  ;;  %v7614_v27 = vshrl.u32 %v12411_v63, 16  ;;  %v20771_v20 = vld [vmem:[#allocation204_spill] sm:$0xff]  ;;  %v7417_v63 = vmul.bf16 %v19080_v35, %v20773_v60 }
 0x51b   : > { %14219 = vmatprep.subr.bf16.mxu0 %v15249_v33 }
 0x51c   : > { %v7564_v13 = vrot.slane %v7562_v24, 1  ;;  %v7605_v17 = vsel %vm2104_vm8, %v7600_v62, %v7604_v25  ;;  %v7608_v38 = vor.u32 %v7606_v55, %v7604_v25  ;;  %v19094_v24 = vld [vmem:[#allocation2 + $0x78] sm:$0xf]  ;;  %v7616_v10 = vor.u32 %v7614_v27, %v7612_v53  ;;  %v20775_v25 = vld [vmem:[#allocation51_spill] sm:$0xff]  ;;  %v20777_v27 = vld [vmem:[#allocation180_spill] sm:$0xff] }
 0x51d   : > { %v7418_v62 = vmul.bf16 %v19088_v14, %v20774_v0  ;;  %v20776_v55 = vld [vmem:[#allocation189_spill] sm:$0xff] }
 0x51e   : > { %14220 = vmatpush3.bf16.msra.mxu0 %v15249_v33  ;;  %v7568_v9 = vor.u32 %v7566_v54, %v7564_v13  ;;  %v7565_v12 = vsel %vm2104_vm8, %v7560_v61, %v7564_v13  ;;  %v19078_v33 = vld [vmem:[#allocation2 + $0x68] sm:$0xf]  ;;  %v7613_v13 = vsel %vm2104_vm8, %v7608_v38, %v7612_v53  ;;  %v15260_v38 = vld [vmem:[%s19744_s3 + $0x38] sm:$0xff]  }
 0x51f   : > { %14253 = vmatprep.subr.bf16.mxu0 %v19063_v16  ;;  %v12412_v52 = vcombine.low %v19078_v33, %v19080_v35  ;;  %v7416_v40 = vmul.bf16 %v19078_v33, %v20772_v23 }
 0x520   : > { %v7573_v37 = vsel %vm2104_vm8, %v7568_v9, %v7572_v58  ;;  %v7628_v9 = vrot.slane %v7626_v15, 1  ;;  %v19104_v58 = vld [vmem:[#allocation2 + $0x80] sm:$0x1]  ;;  %v20781_v15 = vld [vmem:[#allocation213_spill] sm:$0xff] }
 0x521   : > { %14190 = vmatmul.mubr.msk.bf16.gmra.mrb[68].mxu0 %vm2249_vm9, %v7549_v32  ;;  %v7618_v3 = vshll.u32 %v12412_v52, 16  ;;  %v19096_v32 = vld [vmem:[#allocation2 + $0x7c] sm:$0xf]  ;;  %v7622_v48 = vshrl.u32 %v12412_v52, 16  ;;  %v12415_v42 = vcombine.low %v19104_v58, %v19104_v58  ;;  %v7419_v52 = vmul.bf16 %v19090_v6, %v20775_v25 }
 0x522   : > { %14193 = vmatprep.mubr.msk.bf16.mxu0 %vm2249_vm9, %v7557_v44  ;;  %v12414_v54 = vcombine.low %v19094_v24, %v19096_v32  ;;  %v7632_v41 = vor.u32 %v7630_v28, %v7628_v9  ;;  %v12447_v45 = vcombine.low %v7416_v40, %v7417_v63  ;;  %v12992_v28 = vld [vmem:[%s15666_s25] sm:$0xff]   ;;  %v8195_v63 = vmul.bf16 %v19078_v33, %v20752_v39 }
 0x523   : > { %v7620_v44 = vrot.slane %v7618_v3, 1  ;;  %v7420_v3 = vmul.bf16 %v19094_v24, %v20777_v27 }
 0x524   : > { %v7634_v61 = vshll.u32 %v12414_v54, 16  ;;  %v7638_v51 = vshrl.u32 %v12414_v54, 16  ;;  %v19174_v54 = vld [vmem:[%s19744_s3 + $0x40] sm:$0xff]  }
 0x525   : > { %v7621_v22 = vsel %vm2104_vm8, %v7616_v10, %v7620_v44  ;;  %v7624_v1 = vor.u32 %v7622_v48, %v7620_v44  ;;  %v20779_v10 = vld [vmem:[#allocation80_spill] sm:$0xff]  ;;  %v13279_v48 = vld [vmem:[%s15666_s25 + $0x8] sm:$0xff]  }
 0x526   : > { %v7636_v11 = vrot.slane %v7634_v61, 1  ;;  %v20780_v44 = vld [vmem:[#allocation208_spill] sm:$0xff] }
 0x527   : > { %v20784_v61 = vld [vmem:[#allocation20_spill] sm:$0xff] }
 0x528   : > { %v7637_v36 = vsel %vm2104_vm8, %v7632_v41, %v7636_v11  ;;  %v7640_v7 = vor.u32 %v7638_v51, %v7636_v11  ;;  %v12993_v41 = vunpack.c.l.bf16 %v12992_v28  ;;  %v12998_v51 = vunpack.c.h.bf16 %v13279_v48 }
 0x529   : > { %14194 = vmatmul.mubr.msk.bf16.gmra.mrb[72].mxu0 %vm2249_vm9, %v7565_v12  ;;  %v7629_v12 = vsel %vm2104_vm8, %v7624_v1, %v7628_v9  ;;  %v19190_v9 = vld [vmem:[%s19747_s6] ss:$0 sm:$0xff]  ;;  %v12997_v1 = vunpack.c.l.bf16 %v13279_v48  ;;  %v13282_v48 = vld [vmem:[%s15666_s25 + $0x20] sm:$0xff]  }
 0x52a   : > { %14197 = vmatprep.mubr.msk.bf16.mxu0 %vm2249_vm9, %v7573_v37  ;;  %v7642_v37 = vshll.u32 %v12415_v42, 16 }
 0x52c   : > { %v7644_v57 = vrot.slane %v7642_v37, 1 }
 0x52e   : > { %v7645_v56 = vsel %vm2104_vm8, %v7640_v7, %v7644_v57  ;;  %v12994_v7 = vunpack.c.h.bf16 %v12992_v28 }
 0x531   : > { %14198 = vmatmul.mubr.msk.bf16.gmra.mrb[76].mxu0 %vm2249_vm9, %v7581_v2  ;;  %v20767_v2 = vld [vmem:[#allocation72_spill] sm:$0xff] }
 0x532   : > { %14201 = vmatprep.mubr.msk.bf16.mxu0 %vm2249_vm9, %v7589_v19  ;;  %v20769_v19 = vld [vmem:[#allocation207_spill] sm:$0xff] }
 0x539   : > { %14202 = vmatmul.mubr.msk.bf16.gmra.mrb[80].mxu0 %vm2249_vm9, %v7597_v5  ;;  %v12448_v5 = vcombine.low %v7418_v62, %v7419_v52 }
 0x53a   : > { %14205 = vmatprep.mubr.msk.bf16.mxu0 %vm2249_vm9, %v7605_v17  ;;  %v7421_v17 = vmul.bf16 %v19096_v32, %v20776_v55 }
 0x53c   : > { %v12449_v53 = vcombine.low %v7420_v3, %v7421_v17  ;;  %v8196_v17 = vmul.bf16 %v19080_v35, %v20750_v59  ;;  %v13283_v35 = vld [vmem:[%s15666_s25 + $0x28] sm:$0xff]  }
 0x541   : > { %14206 = vmatmul.mubr.msk.bf16.gmra.mrb[84].mxu0 %vm2249_vm9, %v7613_v13  ;;  %v20782_v13 = vld [vmem:[#allocation58_spill] sm:$0xff] }
 0x542   : > { %14209 = vmatprep.mubr.msk.bf16.mxu0 %vm2249_vm9, %v7621_v22  ;;  %v20783_v22 = vld [vmem:[#allocation24_spill] sm:$0xff] }
 0x549   : > { %14210 = vmatmul.mubr.msk.bf16.gmra.mrb[88].mxu0 %vm2249_vm9, %v7629_v12 }
 0x54a   : > { %14213 = vmatprep.mubr.msk.bf16.mxu0 %vm2249_vm9, %v7637_v36 }
 0x551   : > { %14214 = vmatmul.mubr.msk.bf16.gmra.mrb[92].mxu0 %vm2249_vm9, %v7645_v56 }
 0x552   : > { %14221 = vmatprep.mubr.msk.bf16.mxu0 %vm2249_vm9, %v20759_v29 }
 0x559   : > { %14222 = vmatmul.mubr.msk.bf16.vlgmr.msra.gmra.mrb[64].mxu0 %vm2249_vm9, %v20760_v49 }
 0x55a   : > { %14254 = vmatpush3.bf16.msra.mxu0 %v19063_v16  ;;  %14225 = vmatprep.mubr.msk.bf16.mxu0 %vm2249_vm9, %v20761_v31  ;;  %v20765_v16 = vld [vmem:[#allocation188_spill] sm:$0xff] }
 0x55b   : > { %14255 = vmatprep.subr.bf16.mxu0 %v15258_v21  ;;  %v13281_v31 = vld [vmem:[%s15666_s25 + $0x18] sm:$0xff]  }
 0x55e   : > { %14256 = vmatpush3.bf16.msra.mxu0 %v15258_v21 }
 0x55f   : > { %14289 = vmatprep.subr.bf16.mxu0 %v15259_v30 }
 0x561   : > { %14226 = vmatmul.mubr.msk.bf16.gmra.mrb[68].mxu0 %vm2249_vm9, %v20762_v18  ;;  %v20785_v18 = vld [vmem:[#allocation100_spill] sm:$0xff] }
 0x562   : > { %14229 = vmatprep.mubr.msk.bf16.mxu0 %vm2249_vm9, %v20763_v26  ;;  %v13280_v26 = vld [vmem:[%s15666_s25 + $0x10] sm:$0xff]  }
 0x563   : > { %v13001_v40 = vunpack.c.l.bf16 %v13280_v26 }
 0x569   : > { %14230 = vmatmul.mubr.msk.bf16.gmra.mrb[72].mxu0 %vm2249_vm9, %v20764_v46 }
 0x56a   : > { %14233 = vmatprep.mubr.msk.bf16.mxu0 %vm2249_vm9, %v20765_v16  ;;  %v20786_v16 = vld [vmem:[#allocation106_spill] sm:$0xff] }
 0x571   : > { %14234 = vmatmul.mubr.msk.bf16.gmra.mrb[76].mxu0 %vm2249_vm9, %v20766_v50 }
 0x572   : > { %14237 = vmatprep.mubr.msk.bf16.mxu0 %vm2249_vm9, %v20767_v2 }
 0x579   : > { %14238 = vmatmul.mubr.msk.bf16.gmra.mrb[80].mxu0 %vm2249_vm9, %v20768_v43  ;;  %v13005_v43 = vunpack.c.l.bf16 %v13281_v31 }
 0x57a   : > { %14241 = vmatprep.mubr.msk.bf16.mxu0 %vm2249_vm9, %v20769_v19 }
 0x581   : > { %14242 = vmatmul.mubr.msk.bf16.gmra.mrb[84].mxu0 %vm2249_vm9, %v20770_v34 }
 0x582   : > { %14245 = vmatprep.mubr.msk.bf16.mxu0 %vm2249_vm9, %v20771_v20 }
 0x589   : > { %14246 = vmatmul.mubr.msk.bf16.gmra.mrb[88].mxu0 %vm2249_vm9, %v12447_v45 }
 0x58a   : > { %14249 = vmatprep.mubr.msk.bf16.mxu0 %vm2249_vm9, %v12448_v5  ;;  %v13006_v5 = vunpack.c.h.bf16 %v13281_v31 }
 0x591   : > { %14250 = vmatmul.mubr.msk.bf16.gmra.mrb[92].mxu0 %vm2249_vm9, %v12449_v53 }
 0x592   : > { %14257 = vmatprep.mubr.msk.bf16.mxu0 %vm2249_vm9, %v20778_v47 }
 0x599   : > { %14258 = vmatmul.mubr.msk.bf16.vlgmr.msra.gmra.mrb[64].mxu0 %vm2249_vm9, %v20779_v10 }
 0x59a   : > { %14290 = vmatpush3.bf16.msra.mxu0 %v15259_v30  ;;  %14261 = vmatprep.mubr.msk.bf16.mxu0 %vm2249_vm9, %v20780_v44 }
 0x59b   : > { %14291 = vmatprep.subr.bf16.mxu0 %v15260_v38 }
 0x59e   : > { %14292 = vmatpush3.bf16.msra.mxu0 %v15260_v38  ;;  %v13002_v38 = vunpack.c.h.bf16 %v13280_v26 }
 0x59f   : > { %14325 = vmatprep.subr.bf16.mxu0 %v19174_v54 }
 0x5a1   : > { %14262 = vmatmul.mubr.msk.bf16.gmra.mrb[68].mxu0 %vm2249_vm9, %v20781_v15 }
 0x5a2   : > { %14265 = vmatprep.mubr.msk.bf16.mxu0 %vm2249_vm9, %v20782_v13  ;;  %v20787_v13 = vld [vmem:[#allocation82_spill] sm:$0xff] }
 0x5a9   : > { %14266 = vmatmul.mubr.msk.bf16.gmra.mrb[72].mxu0 %vm2249_vm9, %v20783_v22  ;;  %v19220_v22 = vcombine.low %v8195_v63, %v8196_v17 }
 0x5aa   : > { %14269 = vmatprep.mubr.msk.bf16.mxu0 %vm2249_vm9, %v20784_v61  ;;  %v20788_v61 = vld [vmem:[#allocation22_spill] sm:$0xff] }
 0x5ac   : > { %v14151_v42 = vpop.f32.mrb[32].mxu0 }
 0x5ad   : > { %v6515_v11 = vadd.f32 %v14151_v42, %v19190_v9  ;;  %v6506_v12 = vpop.f32.mrb[33].mxu0  ;;  %v8198_v42 = vmul.bf16 %v19090_v6, %v20755_v4  ;;  %v8314_v6 = vrot.slane %v19220_v22, 1 }
 0x5ae   : > { %v6507_v37 = vadd.f32 %v19190_v9, %v6506_v12  ;;  %v14152_v36 = vpop.f32.mrb[34].mxu0  ;;  %v13013_v12 = vunpack.c.l.bf16 %v13283_v35 }
 0x5af   : > { %v6699_v57 = vadd.f32 %v12997_v1, %v6515_v11  ;;  %v6518_v56 = vadd.f32 %v14152_v36, %v19190_v9  ;;  %v6509_v29 = vpop.f32.mrb[35].mxu0  ;;  %v8197_v1 = vmul.bf16 %v19088_v14, %v20754_v8  ;;  %v13014_v14 = vunpack.c.h.bf16 %v13283_v35 }
 0x5b0   : > { %v6697_v21 = vadd.f32 %v12993_v41, %v6507_v37  ;;  %v6510_v49 = vadd.f32 %v19190_v9, %v6509_v29  ;;  %v20790_v29 = vld [vmem:[#allocation222_spill] sm:$0xff] }
 0x5b1   : > { %v6700_v30 = vadd.f32 %v12998_v51, %v6518_v56  ;;  %14270 = vmatmul.mubr.msk.bf16.gmra.mrb[76].mxu0 %vm2249_vm9, %v20785_v18  ;;  %v6731_v50 = vmax.f32 %v6699_v57, 0.0  ;;  %v20789_v51 = vld [vmem:[#allocation221_spill] sm:$0xff]  ;;  %v13009_v56 = vunpack.c.l.bf16 %v13282_v48  ;;  %v13010_v18 = vunpack.c.h.bf16 %v13282_v48 }
 0x5b2   : > { %v6698_v46 = vadd.f32 %v12994_v7, %v6510_v49  ;;  %14273 = vmatprep.mubr.msk.bf16.mxu0 %vm2249_vm9, %v20786_v16  ;;  %v6729_v19 = vmax.f32 %v6697_v21, 0.0  ;;  %v8199_v37 = vmul.bf16 %v19094_v24, %v20789_v51  ;;  %v8200_v21 = vmul.bf16 %v19096_v32, %v20790_v29 }
 0x5b3   : > { %v6732_v2 = vmax.f32 %v6700_v30, 0.0 }
 0x5b4   : > { %v6730_v34 = vmax.f32 %v6698_v46, 0.0  ;;  %v14155_v20 = vpop.f32.mrb[36].mxu0 }
 0x5b5   : > { %v13063_v62 = vpack.c.bf16 %v6732_v2, %v6731_v50  ;;  %v6531_v52 = vadd.f32 %v14155_v20, %v19190_v9  ;;  %v6522_v45 = vpop.f32.mrb[37].mxu0  ;;  %v13285_v2 = vld [vmem:[%s15666_s25 + $0x38] sm:$0xff]   ;;  %v20792_v20 = vld [vmem:[#allocation25_spill] sm:$0xff] }
 0x5b6   : > { %v13058_v3 = vpack.c.bf16 %v6730_v34, %v6729_v19  ;;  %v6523_v53 = vadd.f32 %v19190_v9, %v6522_v45  ;;  %v14156_v47 = vpop.f32.mrb[38].mxu0  ;;  %v20791_v34 = vld [vmem:[#allocation107_spill] sm:$0xff] }
 0x5b7   : > { %13294 = vst [vmem:[%s19210_s21 + $0x8] sm:$0xff] %v13063_v62   ;;  %v6703_v39 = vadd.f32 %v13005_v43, %v6531_v52  ;;  %v6534_v33 = vadd.f32 %v14156_v47, %v19190_v9  ;;  %v6525_v10 = vpop.f32.mrb[39].mxu0  ;;  %v12486_v43 = vcombine.low %v8197_v1, %v8198_v42  ;;  %v13284_v62 = vld [vmem:[%s15666_s25 + $0x30] sm:$0xff]   ;;  %v19246_v52 = vcombine.low %v8199_v37, %v8200_v21  ;;  %v13286_v21 = vld [vmem:[%s15666_s25 + $0x40] sm:$0xff]  }
 0x5b8   : > { %13059 = vst [vmem:[%s19210_s21] sm:$0xff] %v13058_v3   ;;  %v6701_v44 = vadd.f32 %v13001_v40, %v6523_v53  ;;  %v6526_v59 = vadd.f32 %v19190_v9, %v6525_v10  ;;  %v20793_v40 = vrot.slane %v20792_v20, 1  ;;  %v13021_v3 = vunpack.c.l.bf16 %v13285_v2  ;;  %v20794_v53 = vld [vmem:[#allocation9_spill] sm:$0xff] }
 0x5b9   : > { %v6704_v15 = vadd.f32 %v13006_v5, %v6534_v33  ;;  %14274 = vmatmul.mubr.msk.bf16.gmra.mrb[80].mxu0 %vm2249_vm9, %v20787_v13  ;;  %v6735_v41 = vmax.f32 %v6703_v39, 0.0  ;;  %v8201_v47 = vmul.bf16 %v19104_v58, %v20794_v53  ;;  %v13017_v10 = vunpack.c.l.bf16 %v13284_v62 }
 0x5ba   : > { %v6702_v28 = vadd.f32 %v13002_v38, %v6526_v59  ;;  %14277 = vmatprep.mubr.msk.bf16.mxu0 %vm2249_vm9, %v20788_v61  ;;  %v6733_v36 = vmax.f32 %v6701_v44, 0.0  ;;  %v8315_v63 = vsel %vm3397_vm13, %v20793_v40, %v8314_v6  ;;  %v8316_v44 = vrot.slane %v12486_v43, 1 }
 0x5bb   : > { %v6736_v11 = vmax.f32 %v6704_v15, 0.0  ;;  %v13022_v13 = vunpack.c.h.bf16 %v13285_v2  ;;  %v8318_v48 = vrot.slane %v19246_v52, 1  ;;  %v13018_v1 = vunpack.c.h.bf16 %v13284_v62 }
 0x5bc   : > { %v6734_v7 = vmax.f32 %v6702_v28, 0.0  ;;  %v14159_v57 = vpop.f32.mrb[40].mxu0  ;;  %v8317_v37 = vsel %vm3397_vm13, %v8314_v6, %v8316_v44 }
 0x5bd   : > { %v13073_v49 = vpack.c.bf16 %v6736_v11, %v6735_v41  ;;  %v6547_v8 = vadd.f32 %v14159_v57, %v19190_v9  ;;  %v6538_v4 = vpop.f32.mrb[41].mxu0  ;;  %v8575_v11 = vld [vmem:[#allocation2 + $0x8] sm:$0xf]  ;;  %v8576_v57 = vld [vmem:[#allocation2 + $0xc] sm:$0xf]  ;;  %v8319_v29 = vsel %vm3397_vm13, %v8316_v44, %v8318_v48 }
 0x5be   : > { %v13068_v31 = vpack.c.bf16 %v6734_v7, %v6733_v36  ;;  %v6539_v24 = vadd.f32 %v19190_v9, %v6538_v4  ;;  %v14160_v30 = vpop.f32.mrb[42].mxu0  ;;  %v13287_v36 = vld [vmem:[%s15666_s25 + $0x48] sm:$0xff]   ;;  %v12488_v7 = vcombine.low %v8201_v47, %v8201_v47  ;;  %v13288_v44 = vld [vmem:[%s15666_s25 + $0x50] sm:$0xff]  }
 0x5bf   : > { %13296 = vst [vmem:[%s19210_s21 + $0x18] sm:$0xff] %v13073_v49   ;;  %v6707_v26 = vadd.f32 %v13013_v12, %v6547_v8  ;;  %v6550_v46 = vadd.f32 %v14160_v30, %v19190_v9  ;;  %v6541_v16 = vpop.f32.mrb[43].mxu0  ;;  %v20795_v8 = vld [vmem:[#allocation12_spill] sm:$0xff]  ;;  %v20796_v30 = vld [vmem:[#allocation11_spill] sm:$0xff] }
 0x5c0   : > { %13295 = vst [vmem:[%s19210_s21 + $0x10] sm:$0xff] %v13068_v31   ;;  %v6705_v32 = vadd.f32 %v13009_v56, %v6539_v24  ;;  %v6542_v50 = vadd.f32 %v19190_v9, %v6541_v16  ;;  %v8607_v4 = vmul.bf16 %v8575_v11, %v20795_v8  ;;  %v13029_v24 = vunpack.c.l.bf16 %v13287_v36 }
 0x5c1   : > { %v6708_v19 = vadd.f32 %v13014_v14, %v6550_v46  ;;  %14278 = vmatmul.mubr.msk.bf16.gmra.mrb[84].mxu0 %vm2249_vm9, %v20791_v34  ;;  %v6739_v5 = vmax.f32 %v6707_v26, 0.0  ;;  %v8608_v6 = vmul.bf16 %v8576_v57, %v20796_v30  ;;  %v13025_v16 = vunpack.c.l.bf16 %v13286_v21 }
 0x5c2   : > { %v6706_v45 = vadd.f32 %v13010_v18, %v6542_v50  ;;  %14281 = vmatprep.mubr.msk.bf16.mxu0 %vm2249_vm9, %v8315_v63  ;;  %v6737_v38 = vmax.f32 %v6705_v32, 0.0  ;;  %v8320_v32 = vrot.slane %v12488_v7, 1  ;;  %v13026_v63 = vunpack.c.h.bf16 %v13286_v21 }
 0x5c3   : > { %v6740_v17 = vmax.f32 %v6708_v19, 0.0  ;;  %v13030_v19 = vunpack.c.h.bf16 %v13287_v36 }
 0x5c4   : > { %v6738_v39 = vmax.f32 %v6706_v45, 0.0  ;;  %v14163_v33 = vpop.f32.mrb[44].mxu0  ;;  %v8321_v47 = vsel %vm3397_vm13, %v8318_v48, %v8320_v32  ;;  %v20799_v48 = vld [vmem:[#allocation13_spill] sm:$0xff] }
 0x5c5   : > { %v13083_v59 = vpack.c.bf16 %v6740_v17, %v6739_v5  ;;  %v6563_v35 = vadd.f32 %v14163_v33, %v19190_v9  ;;  %v6554_v15 = vpop.f32.mrb[45].mxu0  ;;  %v8577_v5 = vld [vmem:[#allocation2 + $0x10] sm:$0xf]  ;;  %v8578_v17 = vld [vmem:[#allocation2 + $0x14] sm:$0xf] }
 0x5c6   : > { %v13078_v22 = vpack.c.bf16 %v6738_v39, %v6737_v38  ;;  %v6555_v28 = vadd.f32 %v19190_v9, %v6554_v15  ;;  %v14164_v61 = vpop.f32.mrb[46].mxu0  ;;  %v12511_v38 = vcombine.low %v8607_v4, %v8608_v6  ;;  %v13289_v39 = vld [vmem:[%s15666_s25 + $0x58] sm:$0xff]   ;;  %v8579_v33 = vld [vmem:[#allocation2 + $0x18] sm:$0xf]  ;;  %v20797_v15 = vld [vmem:[#allocation78_spill] sm:$0xff] }
 0x5c7   : > { %13298 = vst [vmem:[%s19210_s21 + $0x28] sm:$0xff] %v13083_v59   ;;  %v6711_v58 = vadd.f32 %v13021_v3, %v6563_v35  ;;  %v6566_v42 = vadd.f32 %v14164_v61, %v19190_v9  ;;  %v6557_v41 = vpop.f32.mrb[47].mxu0  ;;  %v8580_v59 = vld [vmem:[#allocation2 + $0x1c] sm:$0xf] }
 0x5c8   : > { %13297 = vst [vmem:[%s19210_s21 + $0x20] sm:$0xff] %v13078_v22   ;;  %v6709_v12 = vadd.f32 %v13017_v10, %v6555_v28  ;;  %v6558_v51 = vadd.f32 %v19190_v9, %v6557_v41  ;;  %v20798_v22 = vld [vmem:[#allocation10_spill] sm:$0xff] }
 0x5c9   : > { %v6712_v56 = vadd.f32 %v13022_v13, %v6566_v42  ;;  %14282 = vmatmul.mubr.msk.bf16.gmra.mrb[88].mxu0 %vm2249_vm9, %v8317_v37  ;;  %v6743_v14 = vmax.f32 %v6711_v58, 0.0  ;;  %v8609_v13 = vmul.bf16 %v8577_v5, %v20797_v15  ;;  %v8610_v28 = vmul.bf16 %v8578_v17, %v20798_v22  ;;  %v20800_v37 = vld [vmem:[#allocation35_spill] sm:$0xff] }
 0x5ca   : > { %v6710_v49 = vadd.f32 %v13018_v1, %v6558_v51  ;;  %14285 = vmatprep.mubr.msk.bf16.mxu0 %vm2249_vm9, %v8319_v29  ;;  %v6741_v18 = vmax.f32 %v6709_v12, 0.0  ;;  %v13037_v58 = vunpack.c.l.bf16 %v13289_v39  ;;  %v8611_v42 = vmul.bf16 %v8579_v33, %v20799_v48 }
 0x5cb   : > { %v6744_v31 = vmax.f32 %v6712_v56, 0.0  ;;  %v13033_v51 = vunpack.c.l.bf16 %v13288_v44  ;;  %v8612_v36 = vmul.bf16 %v8580_v59, %v20800_v37  ;;  %v13038_v29 = vunpack.c.h.bf16 %v13289_v39  ;;  %v19301_v39 = vld [vmem:[%s19744_s3 + $0x50] sm:$0xff]   ;;  %v20804_v59 = vld [vmem:[#allocation14_spill] sm:$0xff] }
 0x5cc   : > { %v6742_v26 = vmax.f32 %v6710_v49, 0.0  ;;  %v14167_v46 = vpop.f32.mrb[48].mxu0 }
 0x5cd   : > { %v13093_v50 = vpack.c.bf16 %v6744_v31, %v6743_v14  ;;  %v6579_v2 = vadd.f32 %v14167_v46, %v19190_v9  ;;  %v6570_v43 = vpop.f32.mrb[49].mxu0  ;;  %v13034_v14 = vunpack.c.h.bf16 %v13288_v44  ;;  %v8582_v46 = vld [vmem:[#allocation2 + $0x24] sm:$0xf] }
 0x5ce   : > { %v13088_v34 = vpack.c.bf16 %v6742_v26, %v6741_v18  ;;  %v6571_v20 = vadd.f32 %v19190_v9, %v6570_v43  ;;  %v14168_v40 = vpop.f32.mrb[50].mxu0  ;;  %v12512_v18 = vcombine.low %v8609_v13, %v8610_v28  ;;  %v8581_v26 = vld [vmem:[#allocation2 + $0x20] sm:$0xf] }
 0x5cf   : > { %13300 = vst [vmem:[%s19210_s21 + $0x38] sm:$0xff] %v13093_v50   ;;  %v6715_v62 = vadd.f32 %v13029_v24, %v6579_v2  ;;  %v6582_v52 = vadd.f32 %v14168_v40, %v19190_v9  ;;  %v6573_v45 = vpop.f32.mrb[51].mxu0  ;;  %v12513_v2 = vcombine.low %v8611_v42, %v8612_v36  ;;  %v13291_v43 = vld [vmem:[%s15666_s25 + $0x68] sm:$0xff]   ;;  %v8584_v40 = vld [vmem:[#allocation2 + $0x2c] sm:$0xf] }
 0x5d0   : > { %13299 = vst [vmem:[%s19210_s21 + $0x30] sm:$0xff] %v13088_v34   ;;  %v6713_v3 = vadd.f32 %v13025_v16, %v6571_v20  ;;  %v6574_v53 = vadd.f32 %v19190_v9, %v6573_v45  ;;  %v15262_v16 = vld [vmem:[%s19744_s3 + $0x48] sm:$0xff]   ;;  %v13290_v20 = vld [vmem:[%s15666_s25 + $0x60] sm:$0xff]  }
 0x5d1   : > { %v6716_v10 = vadd.f32 %v13030_v19, %v6582_v52  ;;  %14286 = vmatmul.mubr.msk.bf16.gmra.mrb[92].mxu0 %vm2249_vm9, %v8321_v47  ;;  %v6747_v61 = vmax.f32 %v6715_v62, 0.0  ;;  %v8583_v19 = vld [vmem:[#allocation2 + $0x28] sm:$0xf]  ;;  %v20801_v62 = vld [vmem:[#allocation29_spill] sm:$0xff]  ;;  %v20802_v45 = vld [vmem:[#allocation28_spill] sm:$0xff]  ;;  %v13041_v44 = vunpack.c.l.bf16 %v13290_v20 }
 0x5d2   : > { %v6714_v35 = vadd.f32 %v13026_v63, %v6574_v53  ;;  %14293 = vmatprep.mubr.msk.bf16.mxu0 %vm2249_vm9, %v12511_v38  ;;  %v6745_v41 = vmax.f32 %v6713_v3, 0.0  ;;  %v8613_v52 = vmul.bf16 %v8581_v26, %v20801_v62  ;;  %v8614_v5 = vmul.bf16 %v8582_v46, %v20802_v45  ;;  %v20803_v47 = vld [vmem:[#allocation15_spill] sm:$0xff]  ;;  %v20805_v26 = vld [vmem:[#allocation26_spill] sm:$0xff] }
 0x5d3   : > { %v6748_v1 = vmax.f32 %v6716_v10, 0.0  ;;  %v13045_v53 = vunpack.c.l.bf16 %v13291_v43  ;;  %v8615_v38 = vmul.bf16 %v8583_v19, %v20803_v47  ;;  %v20807_v19 = vld [vmem:[#allocation33_spill] sm:$0xff] }
 0x5d4   : > { %v6746_v11 = vmax.f32 %v6714_v35, 0.0  ;;  %v14171_v12 = vpop.f32.mrb[52].mxu0  ;;  %v8616_v35 = vmul.bf16 %v8584_v40, %v20804_v59 }
 0x5d5   : > { %v13103_v7 = vpack.c.bf16 %v6748_v1, %v6747_v61  ;;  %v6595_v57 = vadd.f32 %v14171_v12, %v19190_v9  ;;  %v6586_v56 = vpop.f32.mrb[53].mxu0  ;;  %v13046_v1 = vunpack.c.h.bf16 %v13291_v43 }
 0x5d6   : > { %v13098_v21 = vpack.c.bf16 %v6746_v11, %v6745_v41  ;;  %v6587_v49 = vadd.f32 %v19190_v9, %v6586_v56  ;;  %v14172_v4 = vpop.f32.mrb[54].mxu0  ;;  %v13042_v11 = vunpack.c.h.bf16 %v13290_v20  ;;  %v8586_v56 = vld [vmem:[#allocation2 + $0x34] sm:$0xf] }
 0x5d7   : > { %13302 = vst [vmem:[%s19210_s21 + $0x48] sm:$0xff] %v13103_v7   ;;  %v6719_v31 = vadd.f32 %v13037_v58, %v6595_v57  ;;  %v6598_v24 = vadd.f32 %v14172_v4, %v19190_v9  ;;  %v6589_v6 = vpop.f32.mrb[55].mxu0  ;;  %v12514_v7 = vcombine.low %v8613_v52, %v8614_v5  ;;  %v8585_v57 = vld [vmem:[#allocation2 + $0x30] sm:$0xf]  ;;  %v20808_v5 = vld [vmem:[#allocation21_spill] sm:$0xff] }
 0x5d8   : > { %13301 = vst [vmem:[%s19210_s21 + $0x40] sm:$0xff] %v13098_v21   ;;  %v6717_v32 = vadd.f32 %v13033_v51, %v6587_v49  ;;  %v6590_v50 = vadd.f32 %v19190_v9, %v6589_v6  ;;  %v12515_v49 = vcombine.low %v8615_v38, %v8616_v35  ;;  %v13293_v4 = vld [vmem:[%s15666_s25 + $0x78] sm:$0xff]   ;;  %v8588_v6 = vld [vmem:[#allocation2 + $0x3c] sm:$0xf]  ;;  %v8617_v46 = vmul.bf16 %v8585_v57, %v20805_v26 }
 0x5d9   : > { %v6720_v34 = vadd.f32 %v13038_v29, %v6598_v24  ;;  %14294 = vmatmul.mubr.msk.bf16.vlgmr.msra.gmra.mrb[64].mxu0 %vm2249_vm9, %v12512_v18  ;;  %v6751_v17 = vmax.f32 %v6719_v31, 0.0  ;;  %v13292_v24 = vld [vmem:[%s15666_s25 + $0x70] sm:$0xff]   ;;  %v13053_v43 = vunpack.c.l.bf16 %v13293_v4 }
 0x5da   : > { %v6718_v63 = vadd.f32 %v13034_v14, %v6590_v50  ;;  %14326 = vmatpush3.bf16.msra.mxu0 %v19174_v54  ;;  %14297 = vmatprep.mubr.msk.bf16.mxu0 %vm2249_vm9, %v12513_v2  ;;  %v6749_v33 = vmax.f32 %v6717_v32, 0.0  ;;  %v8587_v14 = vld [vmem:[#allocation2 + $0x38] sm:$0xf]  ;;  %v13049_v52 = vunpack.c.l.bf16 %v13292_v24  ;;  %v13050_v35 = vunpack.c.h.bf16 %v13292_v24  ;;  %v20811_v24 = vld [vmem:[#allocation110_spill] sm:$0xff] }
 0x5db   : > { %v6752_v3 = vmax.f32 %v6720_v34, 0.0  ;;  %14327 = vmatprep.subr.bf16.mxu0 %v15262_v16  ;;  %v8619_v34 = vmul.bf16 %v8587_v14, %v20807_v19 }
 0x5dc   : > { %v6750_v54 = vmax.f32 %v6718_v63, 0.0  ;;  %v14175_v10 = vpop.f32.mrb[56].mxu0 }
 0x5dd   : > { %v13113_v13 = vpack.c.bf16 %v6752_v3, %v6751_v17  ;;  %v6611_v28 = vadd.f32 %v14175_v10, %v19190_v9  ;;  %v6602_v61 = vpop.f32.mrb[57].mxu0  ;;  %v8620_v17 = vmul.bf16 %v8588_v6, %v20808_v5 }
 0x5de   : > { %v13108_v58 = vpack.c.bf16 %v6750_v54, %v6749_v33  ;;  %v6603_v42 = vadd.f32 %v19190_v9, %v6602_v61  ;;  %v14176_v41 = vpop.f32.mrb[58].mxu0  ;;  %14328 = vmatpush3.bf16.msra.mxu0 %v15262_v16  ;;  %v20806_v16 = vld [vmem:[#allocation37_spill] sm:$0xff]  ;;  %v13054_v33 = vunpack.c.h.bf16 %v13293_v4  ;;  %v20810_v4 = vld [vmem:[#allocation18_spill] sm:$0xff] }
 0x5df   : > { %13304 = vst [vmem:[%s19210_s21 + $0x58] sm:$0xff] %v13113_v13   ;;  %v6723_v12 = vadd.f32 %v13045_v53, %v6611_v28  ;;  %v6614_v51 = vadd.f32 %v14176_v41, %v19190_v9  ;;  %v6605_v36 = vpop.f32.mrb[59].mxu0  ;;  %14361 = vmatprep.subr.bf16.mxu0 %v19301_v39  ;;  %v8618_v32 = vmul.bf16 %v8586_v56, %v20806_v16 }
 0x5e0   : > { %13303 = vst [vmem:[%s19210_s21 + $0x50] sm:$0xff] %v13108_v58   ;;  %v6721_v29 = vadd.f32 %v13041_v44, %v6603_v42  ;;  %v6606_v21 = vadd.f32 %v19190_v9, %v6605_v36  ;;  %v12517_v41 = vcombine.low %v8619_v34, %v8620_v17  ;;  %v8591_v36 = vld [vmem:[#allocation2 + $0x48] sm:$0xf]  ;;  %v8593_v34 = vld [vmem:[#allocation2 + $0x50] sm:$0xf] }
 0x5e1   : > { %v6724_v31 = vadd.f32 %v13046_v1, %v6614_v51  ;;  %14298 = vmatmul.mubr.msk.bf16.gmra.mrb[68].mxu0 %vm2249_vm9, %v12514_v7  ;;  %v6755_v50 = vmax.f32 %v6723_v12, 0.0  ;;  %v12516_v1 = vcombine.low %v8617_v46, %v8618_v32  ;;  %v8590_v12 = vld [vmem:[#allocation2 + $0x44] sm:$0xf]  ;;  %v8592_v7 = vld [vmem:[#allocation2 + $0x4c] sm:$0xf]  ;;  %v8623_v6 = vmul.bf16 %v8591_v36, %v20811_v24 }
 0x5e2   : > { %v6722_v18 = vadd.f32 %v13042_v11, %v6606_v21  ;;  %14301 = vmatprep.mubr.msk.bf16.mxu0 %vm2249_vm9, %v12515_v49  ;;  %v6753_v20 = vmax.f32 %v6721_v29, 0.0  ;;  %v8589_v11 = vld [vmem:[#allocation2 + $0x40] sm:$0xf]  ;;  %v8622_v14 = vmul.bf16 %v8590_v12, %v20810_v4  ;;  %v20819_v12 = vld [vmem:[#allocation52_spill] sm:$0xff]  ;;  %v20820_v36 = vld [vmem:[#allocation47_spill] sm:$0xff] }
 0x5e3   : > { %v6756_v2 = vmax.f32 %v6724_v31, 0.0  ;;  %v20809_v21 = vld [vmem:[#allocation34_spill] sm:$0xff] }
 0x5e4   : > { %v6754_v40 = vmax.f32 %v6722_v18, 0.0  ;;  %v14179_v63 = vpop.f32.mrb[60].mxu0  ;;  %v8621_v49 = vmul.bf16 %v8589_v11, %v20809_v21  ;;  %v20812_v18 = vld [vmem:[#allocation27_spill] sm:$0xff] }
 0x5e5   : > { %v13123_v3 = vpack.c.bf16 %v6756_v2, %v6755_v50  ;;  %v6627_v53 = vadd.f32 %v14179_v63, %v19190_v9  ;;  %v6618_v38 = vpop.f32.mrb[61].mxu0  ;;  %v8624_v46 = vmul.bf16 %v8592_v7, %v20812_v18  ;;  %v8596_v63 = vld [vmem:[#allocation2 + $0x5c] sm:$0xf] }
 0x5e6   : > { %v13118_v54 = vpack.c.bf16 %v6754_v40, %v6753_v20  ;;  %v6619_v10 = vadd.f32 %v19190_v9, %v6618_v38  ;;  %v14180_v44 = vpop.f32.mrb[62].mxu0  ;;  %v12518_v2 = vcombine.low %v8621_v49, %v8622_v14  ;;  %v8594_v20 = vld [vmem:[#allocation2 + $0x54] sm:$0xf]  ;;  %v8595_v40 = vld [vmem:[#allocation2 + $0x58] sm:$0xf]  ;;  %v20815_v38 = vld [vmem:[#allocation135_spill] sm:$0xff] }
 0x5e7   : > { %13306 = vst [vmem:[%s19210_s21 + $0x68] sm:$0xff] %v13123_v3   ;;  %v6727_v13 = vadd.f32 %v13053_v43, %v6627_v53  ;;  %v6630_v28 = vadd.f32 %v14180_v44, %v19190_v9  ;;  %v6621_v61 = vpop.f32.mrb[63].mxu0  ;;  %v12519_v43 = vcombine.low %v8623_v6, %v8624_v46  ;;  %v20814_v3 = vld [vmem:[#allocation36_spill] sm:$0xff]  ;;  %v8602_v14 = vld [vmem:[#allocation2 + $0x74] sm:$0xf] }
 0x5e8   : > { %13305 = vst [vmem:[%s19210_s21 + $0x60] sm:$0xff] %v13118_v54   ;;  %v6725_v58 = vadd.f32 %v13049_v52, %v6619_v10  ;;  %v6622_v42 = vadd.f32 %v19190_v9, %v6621_v61  ;;  %v20813_v52 = vld [vmem:[#allocation127_spill] sm:$0xff]  ;;  %v8626_v53 = vmul.bf16 %v8594_v20, %v20814_v3  ;;  %v20816_v54 = vld [vmem:[#allocation42_spill] sm:$0xff]  ;;  %v8601_v49 = vld [vmem:[#allocation2 + $0x70] sm:$0xf] }
 0x5e9   : > { %v6728_v51 = vadd.f32 %v13054_v33, %v6630_v28  ;;  %14302 = vmatmul.mubr.msk.bf16.gmra.mrb[72].mxu0 %vm2249_vm9, %v12516_v1  ;;  %v6759_v56 = vmax.f32 %v6727_v13, 0.0  ;;  %v8625_v17 = vmul.bf16 %v8593_v34, %v20813_v52  ;;  %v8627_v33 = vmul.bf16 %v8595_v40, %v20815_v38  ;;  %v8597_v13 = vld [vmem:[#allocation2 + $0x60] sm:$0xf]  ;;  %v8598_v28 = vld [vmem:[#allocation2 + $0x64] sm:$0xf] }
 0x5ea   : > { %v6726_v57 = vadd.f32 %v13050_v35, %v6622_v42  ;;  %14305 = vmatprep.mubr.msk.bf16.mxu0 %vm2249_vm9, %v12517_v41  ;;  %v6757_v9 = vmax.f32 %v6725_v58, 0.0  ;;  %v8628_v10 = vmul.bf16 %v8596_v63, %v20816_v54  ;;  %v8599_v61 = vld [vmem:[#allocation2 + $0x68] sm:$0xf]  ;;  %v8600_v1 = vld [vmem:[#allocation2 + $0x6c] sm:$0xf]  ;;  %v20817_v58 = vld [vmem:[#allocation50_spill] sm:$0xff]  ;;  %v8633_v46 = vmul.bf16 %v8601_v49, %v20772_v23 }
 0x5eb   : > { %v6760_v29 = vmax.f32 %v6728_v51, 0.0  ;;  %v12520_v44 = vcombine.low %v8625_v17, %v8626_v53  ;;  %v8629_v42 = vmul.bf16 %v8597_v13, %v20817_v58  ;;  %v20818_v41 = vld [vmem:[#allocation134_spill] sm:$0xff]  ;;  %v8631_v51 = vmul.bf16 %v8599_v61, %v20819_v12  ;;  %v15340_v34 = vld [vmem:[#allocation2 + $0x14] sm:$0xf]  ;;  %v15341_v13 = vld [vmem:[#allocation2 + $0x18] sm:$0xf] }
 0x5ec   : > { %v6758_v31 = vmax.f32 %v6726_v57, 0.0  ;;  %v12521_v35 = vcombine.low %v8627_v33, %v8628_v10  ;;  %v8630_v11 = vmul.bf16 %v8598_v28, %v20818_v41  ;;  %v8632_v7 = vmul.bf16 %v8600_v1, %v20820_v36  ;;  %v8976_v57 = vld [vmem:[#allocation2 + $0x8] sm:$0xf]  ;;  %v8605_v33 = vld [vmem:[#allocation2 + $0x80] sm:$0xf] }
 0x5ed   : > { %v13133_v32 = vpack.c.bf16 %v6760_v29, %v6759_v56  ;;  %v8606_v10 = vld [vmem:[#allocation2 + $0x84] sm:$0xf]  ;;  %v15342_v28 = vld [vmem:[#allocation2 + $0x1c] sm:$0xf]  ;;  %v8637_v1 = vmul.bf16 %v8605_v33, %v20777_v27 }
 0x5ee   : > { %v13128_v50 = vpack.c.bf16 %v6758_v31, %v6757_v9  ;;  %v12522_v56 = vcombine.low %v8629_v42, %v8630_v11  ;;  %v12523_v29 = vcombine.low %v8631_v51, %v8632_v7  ;;  %v8604_v9 = vld [vmem:[#allocation2 + $0x7c] sm:$0xf]  ;;  %v15338_v31 = vld [vmem:[#allocation2 + $0xc] sm:$0xf]  ;;  %v12551_v61 = vcombine.low %v15341_v13, %v15342_v28 }
 0x5ef   : > { %13308 = vst [vmem:[%s19210_s21 + $0x78] sm:$0xff] %v13133_v32   ;;  %v12549_v6 = vcombine.low %v8976_v57, %v15338_v31  ;;  %v8634_v32 = vmul.bf16 %v8602_v14, %v20773_v60  ;;  %v8638_v42 = vmul.bf16 %v8606_v10, %v20776_v55  ;;  %v15345_v31 = vld [vmem:[#allocation2 + $0x28] sm:$0xf] }
 0x5f0   : > { %13307 = vst [vmem:[%s19210_s21 + $0x70] sm:$0xff] %v13128_v50   ;;  %v8603_v50 = vld [vmem:[#allocation2 + $0x78] sm:$0xf]  ;;  %v9112_v57 = vshll.u32 %v12551_v61, 16 }
 0x5f1   : > { %14306 = vmatmul.mubr.msk.bf16.gmra.mrb[76].mxu0 %vm2249_vm9, %v12518_v2  ;;  %v8636_v2 = vmul.bf16 %v8604_v9, %v20775_v25  ;;  %v9099_v40 = vshll.u32 %v12549_v6, 16  ;;  %v8635_v63 = vmul.bf16 %v8603_v50, %v20774_v0  ;;  %v12524_v17 = vcombine.low %v8633_v46, %v8634_v32  ;;  %v15346_v46 = vld [vmem:[#allocation2 + $0x2c] sm:$0xf] }
 0x5f2   : > { %14309 = vmatprep.mubr.msk.bf16.mxu0 %vm2249_vm9, %v12519_v43  ;;  %v15339_v43 = vld [vmem:[#allocation2 + $0x10] sm:$0xf]  ;;  %v9097_v11 = vshrl.u32 %v12549_v6, 16  ;;  %v12526_v14 = vcombine.low %v8637_v1, %v8638_v42  ;;  %v12553_v32 = vcombine.low %v15345_v31, %v15346_v46  ;;  %v15349_v42 = vld [vmem:[#allocation2 + $0x38] sm:$0xf] }
 0x5f3   : > { %v12550_v20 = vcombine.low %v15339_v43, %v15340_v34  ;;  %v12525_v53 = vcombine.low %v8635_v63, %v8636_v2  ;;  %v9114_v2 = vrot.slane %v9112_v57, 1  ;;  %v9116_v43 = vshrl.u32 %v12551_v61, 16  ;;  %v15347_v63 = vld [vmem:[#allocation2 + $0x30] sm:$0xf] }
 0x5f4   : > { %v9132_v28 = vshrl.u32 %v12553_v32, 16 }
 0x5f5   : > { %v9108_v9 = vshrl.u32 %v12550_v20, 16  ;;  %v9118_v33 = vor.u32 %v9116_v43, %v9114_v2 }
 0x5f9   : > { %14310 = vmatmul.mubr.msk.bf16.gmra.mrb[80].mxu0 %vm2249_vm9, %v12520_v44  ;;  %v9101_v44 = vrot.slane %v9099_v40, 1  ;;  %v9128_v40 = vshll.u32 %v12553_v32, 16 }
 0x5fa   : > { %14313 = vmatprep.mubr.msk.bf16.mxu0 %vm2249_vm9, %v12521_v35  ;;  %v9104_v35 = vshll.u32 %v12550_v20, 16 }
 0x5fb   : > { %v9102_v51 = vor.u32 %v9101_v44, %v9097_v11  ;;  %v15274_v44 = vld [vmem:[%s19744_s3 + $0x58] sm:$0xff]   ;;  %v9130_v13 = vrot.slane %v9128_v40, 1 }
 0x5fc   : > { %v9106_v7 = vrot.slane %v9104_v35, 1  ;;  %v15350_v11 = vld [vmem:[#allocation2 + $0x3c] sm:$0xf] }
 0x5fe   : > { %v9107_v50 = vsel %vm2104_vm8, %v9102_v51, %v9106_v7  ;;  %v9110_v6 = vor.u32 %v9108_v9, %v9106_v7  ;;  %v12555_v51 = vcombine.low %v15349_v42, %v15350_v11  ;;  %v19369_v7 = vld [vmem:[%s19744_s3 + $0x60] sm:$0xff]  }
 0x5ff   : > { %v15352_v9 = vld [vmem:[#allocation2 + $0x44] sm:$0xf] }
 0x600   : > { %v9115_v20 = vsel %vm2104_vm8, %v9110_v6, %v9114_v2  ;;  %v9148_v2 = vshrl.u32 %v12555_v51, 16  ;;  %v15354_v6 = vld [vmem:[#allocation2 + $0x4c] sm:$0xf] }
 0x601   : > { %14314 = vmatmul.mubr.msk.bf16.gmra.mrb[84].mxu0 %vm2249_vm9, %v12522_v56  ;;  %v15343_v56 = vld [vmem:[#allocation2 + $0x20] sm:$0xf] }
 0x602   : > { %14317 = vmatprep.mubr.msk.bf16.mxu0 %vm2249_vm9, %v12523_v29  ;;  %v15344_v29 = vld [vmem:[#allocation2 + $0x24] sm:$0xf] }
 0x603   : > { %v12552_v49 = vcombine.low %v15343_v56, %v15344_v29  ;;  %v9134_v56 = vor.u32 %v9132_v28, %v9130_v13  ;;  %v15357_v28 = vld [vmem:[#allocation2 + $0x58] sm:$0xf] }
 0x605   : > { %v9120_v34 = vshll.u32 %v12552_v49, 16  ;;  %v9124_v35 = vshrl.u32 %v12552_v49, 16  ;;  %v9144_v49 = vshll.u32 %v12555_v51, 16 }
 0x607   : > { %v9122_v10 = vrot.slane %v9120_v34, 1  ;;  %v15353_v34 = vld [vmem:[#allocation2 + $0x48] sm:$0xf] }
 0x608   : > { %v12557_v40 = vcombine.low %v15353_v34, %v15354_v6  ;;  %v15361_v6 = vld [vmem:[#allocation2 + $0x68] sm:$0xf] }
 0x609   : > { %14318 = vmatmul.mubr.msk.bf16.gmra.mrb[88].mxu0 %vm2249_vm9, %v12524_v17  ;;  %v15348_v17 = vld [vmem:[#allocation2 + $0x34] sm:$0xf]  ;;  %v9123_v1 = vsel %vm2104_vm8, %v9118_v33, %v9122_v10  ;;  %v9126_v57 = vor.u32 %v9124_v35, %v9122_v10 }
 0x60a   : > { %14321 = vmatprep.mubr.msk.bf16.mxu0 %vm2249_vm9, %v12525_v53  ;;  %v12554_v53 = vcombine.low %v15347_v63, %v15348_v17  ;;  %v9160_v10 = vshll.u32 %v12557_v40, 16  ;;  %v9164_v51 = vshrl.u32 %v12557_v40, 16  ;;  %v15362_v40 = vld [vmem:[#allocation2 + $0x6c] sm:$0xf] }
 0x60c   : > { %v9136_v61 = vshll.u32 %v12554_v53, 16  ;;  %v9140_v32 = vshrl.u32 %v12554_v53, 16  ;;  %v9162_v11 = vrot.slane %v9160_v10, 1 }
 0x60e   : > { %v9138_v29 = vrot.slane %v9136_v61, 1  ;;  %v15358_v61 = vld [vmem:[#allocation2 + $0x5c] sm:$0xf] }
 0x610   : > { %v9139_v46 = vsel %vm2104_vm8, %v9134_v56, %v9138_v29  ;;  %v9142_v63 = vor.u32 %v9140_v32, %v9138_v29 }
 0x611   : > { %14322 = vmatmul.mubr.msk.bf16.gmra.mrb[92].mxu0 %vm2249_vm9, %v12526_v14  ;;  %v15351_v14 = vld [vmem:[#allocation2 + $0x40] sm:$0xf] }
 0x612   : > { %14329 = vmatprep.mubr.msk.bf16.mxu0 %vm2249_vm9, %v9107_v50  ;;  %v12556_v31 = vcombine.low %v15351_v14, %v15352_v9  ;;  %v9146_v50 = vrot.slane %v9144_v49, 1  ;;  %v15359_v49 = vld [vmem:[#allocation2 + $0x60] sm:$0xf]  ;;  %v15360_v14 = vld [vmem:[#allocation2 + $0x64] sm:$0xf] }
 0x613   : > { %v12560_v9 = vcombine.low %v15359_v49, %v15360_v14 }
 0x614   : > { %v9152_v43 = vshll.u32 %v12556_v31, 16  ;;  %v9150_v17 = vor.u32 %v9148_v2, %v9146_v50  ;;  %v9147_v53 = vsel %vm2104_vm8, %v9142_v63, %v9146_v50  ;;  %v12561_v63 = vcombine.low %v15361_v6, %v15362_v40 }
 0x616   : > { %v9154_v33 = vrot.slane %v9152_v43, 1  ;;  %v9184_v43 = vshll.u32 %v12560_v9, 16 }
 0x618   : > { %v9155_v42 = vsel %vm2104_vm8, %v9150_v17, %v9154_v33  ;;  %v9186_v10 = vrot.slane %v9184_v43, 1 }
 0x619   : > { %14330 = vmatmul.mubr.msk.bf16.vlgmr.msra.gmra.mrb[64].mxu0 %vm2249_vm9, %v9115_v20  ;;  %v15355_v20 = vld [vmem:[#allocation2 + $0x50] sm:$0xf] }
 0x61a   : > { %14362 = vmatpush3.bf16.msra.mxu0 %v19301_v39  ;;  %14333 = vmatprep.mubr.msk.bf16.mxu0 %vm2249_vm9, %v9123_v1  ;;  %v9131_v39 = vsel %vm2104_vm8, %v9126_v57, %v9130_v13  ;;  %v9156_v13 = vshrl.u32 %v12556_v31, 16  ;;  %v12559_v1 = vcombine.low %v15357_v28, %v15358_v61  ;;  %v9166_v31 = vor.u32 %v9164_v51, %v9162_v11  ;;  %v15365_v51 = vld [vmem:[#allocation2 + $0x78] sm:$0xf] }
 0x61b   : > { %14363 = vmatprep.subr.bf16.mxu0 %v15274_v44  ;;  %v9188_v61 = vshrl.u32 %v12560_v9, 16 }
 0x61c   : > { %v9158_v56 = vor.u32 %v9156_v13, %v9154_v33  ;;  %v9176_v29 = vshll.u32 %v12559_v1, 16  ;;  %v9180_v2 = vshrl.u32 %v12559_v1, 16  ;;  %v15364_v13 = vld [vmem:[#allocation2 + $0x74] sm:$0xf] }
 0x61e   : > { %14364 = vmatpush3.bf16.msra.mxu0 %v15274_v44  ;;  %v15356_v44 = vld [vmem:[#allocation2 + $0x54] sm:$0xf]  ;;  %v9178_v50 = vrot.slane %v9176_v29, 1  ;;  %v9190_v29 = vor.u32 %v9188_v61, %v9186_v10 }
 0x61f   : > { %14397 = vmatprep.subr.bf16.mxu0 %v19369_v7  ;;  %v12558_v35 = vcombine.low %v15355_v20, %v15356_v44  ;;  %v9192_v20 = vshll.u32 %v12561_v63, 16  ;;  %v15363_v44 = vld [vmem:[#allocation2 + $0x70] sm:$0xf] }
 0x620   : > { %v9182_v33 = vor.u32 %v9180_v2, %v9178_v50 }
 0x621   : > { %14334 = vmatmul.mubr.msk.bf16.gmra.mrb[68].mxu0 %vm2249_vm9, %v9131_v39  ;;  %v9168_v57 = vshll.u32 %v12558_v35, 16  ;;  %v9172_v32 = vshrl.u32 %v12558_v35, 16  ;;  %v9194_v1 = vrot.slane %v9192_v20, 1 }
 0x622   : > { %14337 = vmatprep.mubr.msk.bf16.mxu0 %vm2249_vm9, %v9139_v46  ;;  %v9163_v46 = vsel %vm2104_vm8, %v9158_v56, %v9162_v11  ;;  %v9187_v28 = vsel %vm2104_vm8, %v9182_v33, %v9186_v10 }
 0x623   : > { %v9170_v39 = vrot.slane %v9168_v57, 1  ;;  %v15366_v57 = vld [vmem:[#allocation2 + $0x7c] sm:$0xf] }
 0x624   : > { %v12563_v56 = vcombine.low %v15365_v51, %v15366_v57  ;;  %v20823_v51 = vld [vmem:[#allocation44_spill] sm:$0xff] }
 0x625   : > { %v9171_v34 = vsel %vm2104_vm8, %v9166_v31, %v9170_v39  ;;  %v9174_v17 = vor.u32 %v9172_v32, %v9170_v39  ;;  %v15367_v39 = vld [vmem:[#allocation2 + $0x80] sm:$0xf]  ;;  %v15284_v57 = vld [vmem:[%s19744_s3 + $0x70] sm:$0xff]  }
 0x626   : > { %v9208_v31 = vshll.u32 %v12563_v56, 16 }
 0x627   : > { %v9179_v35 = vsel %vm2104_vm8, %v9174_v17, %v9178_v50  ;;  %v9195_v50 = vsel %vm2104_vm8, %v9190_v29, %v9194_v1  ;;  %v15369_v17 = vld [vmem:[#allocation2 + $0x88] sm:$0x1]  ;;  %v20825_v29 = vld [vmem:[#allocation16_spill] sm:$0xff] }
 0x628   : > { %v9210_v43 = vrot.slane %v9208_v31, 1  ;;  %v12565_v33 = vcombine.low %v15369_v17, %v15369_v17  ;;  %v20829_v31 = vld [vmem:[#allocation62_spill] sm:$0xff]  ;;  %v9890_v17 = vld [vmem:[#allocation2 + $0x18] sm:$0xf] }
 0x629   : > { %14338 = vmatmul.mubr.msk.bf16.gmra.mrb[72].mxu0 %vm2249_vm9, %v9147_v53  ;;  %v12562_v53 = vcombine.low %v15363_v44, %v15364_v13 }
 0x62a   : > { %14341 = vmatprep.mubr.msk.bf16.mxu0 %vm2249_vm9, %v9155_v42  ;;  %v9196_v42 = vshrl.u32 %v12561_v63, 16 }
 0x62b   : > { %v9200_v11 = vshll.u32 %v12562_v53, 16  ;;  %v9204_v9 = vshrl.u32 %v12562_v53, 16  ;;  %v9224_v53 = vshll.u32 %v12565_v33, 16  ;;  %v9891_v33 = vld [vmem:[#allocation2 + $0x1c] sm:$0xf] }
 0x62c   : > { %v9198_v49 = vor.u32 %v9196_v42, %v9194_v1  ;;  %v20821_v1 = vld [vmem:[#allocation31_spill] sm:$0xff] }
 0x62d   : > { %v9202_v14 = vrot.slane %v9200_v11, 1  ;;  %v15283_v42 = vld [vmem:[%s19744_s3 + $0x68] sm:$0xff]  }
 0x62e   : > { %v20822_v11 = vld [vmem:[#allocation32_spill] sm:$0xff] }
 0x62f   : > { %v9203_v2 = vsel %vm2104_vm8, %v9198_v49, %v9202_v14  ;;  %v9206_v40 = vor.u32 %v9204_v9, %v9202_v14  ;;  %v20826_v49 = vld [vmem:[#allocation45_spill] sm:$0xff]  ;;  %v20834_v9 = vld [vmem:[#allocation75_spill] sm:$0xff] }
 0x630   : > { %v20828_v14 = vld [vmem:[#allocation49_spill] sm:$0xff] }
 0x631   : > { %14342 = vmatmul.mubr.msk.bf16.gmra.mrb[76].mxu0 %vm2249_vm9, %v9163_v46  ;;  %v15368_v46 = vld [vmem:[#allocation2 + $0x84] sm:$0xf]  ;;  %v9211_v20 = vsel %vm2104_vm8, %v9206_v40, %v9210_v43 }
 0x632   : > { %14345 = vmatprep.mubr.msk.bf16.mxu0 %vm2249_vm9, %v9171_v34  ;;  %v12564_v32 = vcombine.low %v15367_v39, %v15368_v46  ;;  %v9212_v34 = vshrl.u32 %v12563_v56, 16  ;;  %v20824_v56 = vld [vmem:[#allocation120_spill] sm:$0xff]  ;;  %v20830_v39 = vld [vmem:[#allocation63_spill] sm:$0xff] }
 0x633   : > { %v20831_v46 = vld [vmem:[#allocation111_spill] sm:$0xff] }
 0x634   : > { %v9216_v6 = vshll.u32 %v12564_v32, 16  ;;  %v9214_v63 = vor.u32 %v9212_v34, %v9210_v43  ;;  %v9220_v44 = vshrl.u32 %v12564_v32, 16  ;;  %v20832_v32 = vld [vmem:[#allocation67_spill] sm:$0xff]  ;;  %v9889_v43 = vld [vmem:[#allocation2 + $0x14] sm:$0xf] }
 0x635   : > { %v20835_v34 = vld [vmem:[#allocation77_spill] sm:$0xff]  ;;  %v9921_v40 = vmul.bf16 %v9889_v43, %v20796_v30 }
 0x636   : > { %v9218_v10 = vrot.slane %v9216_v6, 1  ;;  %v15285_v30 = vld [vmem:[%s19744_s3 + $0x78] sm:$0xff]  }
 0x638   : > { %v9219_v13 = vsel %vm2104_vm8, %v9214_v63, %v9218_v10 }
 0x639   : > { %14346 = vmatmul.mubr.msk.bf16.gmra.mrb[80].mxu0 %vm2249_vm9, %v9179_v35  ;;  %v9222_v35 = vor.u32 %v9220_v44, %v9218_v10  ;;  %v20836_v10 = vld [vmem:[#allocation43_spill] sm:$0xff] }
 0x63a   : > { %14349 = vmatprep.mubr.msk.bf16.mxu0 %vm2249_vm9, %v9187_v28  ;;  %v9226_v28 = vrot.slane %v9224_v53, 1  ;;  %v9893_v44 = vld [vmem:[#allocation2 + $0x24] sm:$0xf]  ;;  %v9923_v53 = vmul.bf16 %v9891_v33, %v20798_v22 }
 0x63c   : > { %v9227_v61 = vsel %vm2104_vm8, %v9222_v35, %v9226_v28 }
 0x641   : > { %14350 = vmatmul.mubr.msk.bf16.gmra.mrb[84].mxu0 %vm2249_vm9, %v9195_v50  ;;  %v20833_v50 = vld [vmem:[#allocation68_spill] sm:$0xff] }
 0x642   : > { %14353 = vmatprep.mubr.msk.bf16.mxu0 %vm2249_vm9, %v9203_v2  ;;  %v9888_v2 = vld [vmem:[#allocation2 + $0x10] sm:$0xf] }
 0x643   : > { %v9920_v6 = vmul.bf16 %v9888_v2, %v20795_v8  ;;  %v9925_v8 = vmul.bf16 %v9893_v44, %v20800_v37  ;;  %v9905_v2 = vld [vmem:[#allocation2 + $0x54] sm:$0xf]  ;;  %v9911_v44 = vld [vmem:[#allocation2 + $0x6c] sm:$0xf] }
 0x645   : > { %v12627_v63 = vcombine.low %v9920_v6, %v9921_v40  ;;  %v9906_v6 = vld [vmem:[#allocation2 + $0x58] sm:$0xf]  ;;  %v9907_v40 = vld [vmem:[#allocation2 + $0x5c] sm:$0xf] }
 0x646   : > { %v9938_v33 = vmul.bf16 %v9906_v6, %v20813_v52  ;;  %v9943_v52 = vmul.bf16 %v9911_v44, %v20818_v41 }
 0x649   : > { %14354 = vmatmul.mubr.msk.bf16.gmra.mrb[88].mxu0 %vm2249_vm9, %v9211_v20  ;;  %v9892_v20 = vld [vmem:[#allocation2 + $0x20] sm:$0xf] }
 0x64a   : > { %14357 = vmatprep.mubr.msk.bf16.mxu0 %vm2249_vm9, %v9219_v13  ;;  %v9922_v13 = vmul.bf16 %v9890_v17, %v20797_v15  ;;  %v9924_v35 = vmul.bf16 %v9892_v20, %v20799_v48  ;;  %v19454_v48 = vld [vmem:[%s19744_s3 + $0x80] sm:$0xff]   ;;  %v9910_v20 = vld [vmem:[#allocation2 + $0x68] sm:$0xf] }
 0x64b   : > { %v9909_v17 = vld [vmem:[#allocation2 + $0x64] sm:$0xf] }
 0x64c   : > { %v12628_v28 = vcombine.low %v9922_v13, %v9923_v53  ;;  %v9912_v13 = vld [vmem:[#allocation2 + $0x70] sm:$0xf]  ;;  %v9913_v53 = vld [vmem:[#allocation2 + $0x74] sm:$0xf] }
 0x651   : > { %14358 = vmatmul.mubr.msk.bf16.gmra.mrb[92].mxu0 %vm2249_vm9, %v9227_v61  ;;  %v12629_v61 = vcombine.low %v9924_v35, %v9925_v8  ;;  %v9942_v35 = vmul.bf16 %v9910_v20, %v20817_v58  ;;  %v10289_v8 = vld [vmem:[#allocation2 + $0x10] sm:$0xf] }
 0x652   : > { %14365 = vmatprep.mubr.msk.bf16.mxu0 %vm2249_vm9, %v20821_v1  ;;  %v9894_v1 = vld [vmem:[#allocation2 + $0x28] sm:$0xf] }
 0x653   : > { %v9926_v15 = vmul.bf16 %v9894_v1, %v20801_v62  ;;  %v9900_v62 = vld [vmem:[#allocation2 + $0x40] sm:$0xf]  ;;  %v9917_v1 = vld [vmem:[#allocation2 + $0x84] sm:$0xf] }
 0x659   : > { %14366 = vmatmul.mubr.msk.bf16.vlgmr.msra.gmra.mrb[64].mxu0 %vm2249_vm9, %v20822_v11  ;;  %v9896_v11 = vld [vmem:[#allocation2 + $0x30] sm:$0xf] }
 0x65a   : > { %14398 = vmatpush3.bf16.msra.mxu0 %v19369_v7  ;;  %14369 = vmatprep.mubr.msk.bf16.mxu0 %vm2249_vm9, %v20823_v51  ;;  %v20827_v7 = vld [vmem:[#allocation48_spill] sm:$0xff]  ;;  %v9897_v51 = vld [vmem:[#allocation2 + $0x34] sm:$0xf]  ;;  %v9928_v37 = vmul.bf16 %v9896_v11, %v20803_v47  ;;  %v9932_v47 = vmul.bf16 %v9900_v62, %v20807_v19  ;;  %v9937_v19 = vmul.bf16 %v9905_v2, %v20812_v18 }
 0x65b   : > { %14399 = vmatprep.subr.bf16.mxu0 %v15283_v42 }
 0x65e   : > { %14400 = vmatpush3.bf16.msra.mxu0 %v15283_v42  ;;  %v9895_v42 = vld [vmem:[#allocation2 + $0x2c] sm:$0xf] }
 0x65f   : > { %14433 = vmatprep.subr.bf16.mxu0 %v15284_v57  ;;  %v9927_v22 = vmul.bf16 %v9895_v42, %v20802_v45  ;;  %v9901_v45 = vld [vmem:[#allocation2 + $0x44] sm:$0xf]  ;;  %v15370_v42 = vld [vmem:[#allocation2 + $0x14] sm:$0xf] }
 0x660   : > { %v12665_v11 = vcombine.low %v10289_v8, %v15370_v42 }
 0x661   : > { %14370 = vmatmul.mubr.msk.bf16.gmra.mrb[68].mxu0 %vm2249_vm9, %v20824_v56  ;;  %v9929_v56 = vmul.bf16 %v9897_v51, %v20804_v59  ;;  %v9933_v59 = vmul.bf16 %v9901_v45, %v20808_v5  ;;  %v9914_v51 = vld [vmem:[#allocation2 + $0x78] sm:$0xf] }
 0x662   : > { %14373 = vmatprep.mubr.msk.bf16.mxu0 %vm2249_vm9, %v20825_v29  ;;  %v12630_v29 = vcombine.low %v9926_v15, %v9927_v22  ;;  %v15371_v15 = vld [vmem:[#allocation2 + $0x18] sm:$0xf]  ;;  %v15372_v22 = vld [vmem:[#allocation2 + $0x1c] sm:$0xf]  ;;  %v10410_v62 = vshrl.u32 %v12665_v11, 16 }
 0x669   : > { %14374 = vmatmul.mubr.msk.bf16.gmra.mrb[72].mxu0 %vm2249_vm9, %v20826_v49  ;;  %v9898_v49 = vld [vmem:[#allocation2 + $0x38] sm:$0xf] }
 0x66a   : > { %14377 = vmatprep.mubr.msk.bf16.mxu0 %vm2249_vm9, %v20827_v7  ;;  %v9899_v7 = vld [vmem:[#allocation2 + $0x3c] sm:$0xf] }
 0x671   : > { %14378 = vmatmul.mubr.msk.bf16.gmra.mrb[76].mxu0 %vm2249_vm9, %v20828_v14  ;;  %v9930_v14 = vmul.bf16 %v9898_v49, %v20805_v26  ;;  %v9918_v49 = vld [vmem:[#allocation2 + $0x88] sm:$0xf] }
 0x672   : > { %14381 = vmatprep.mubr.msk.bf16.mxu0 %vm2249_vm9, %v20829_v31  ;;  %v9931_v31 = vmul.bf16 %v9899_v7, %v20806_v16  ;;  %v9919_v7 = vld [vmem:[#allocation2 + $0x8c] sm:$0xf] }
 0x679   : > { %14382 = vmatmul.mubr.msk.bf16.gmra.mrb[80].mxu0 %vm2249_vm9, %v20830_v39  ;;  %v12632_v39 = vcombine.low %v9930_v14, %v9931_v31 }
 0x67a   : > { %14385 = vmatprep.mubr.msk.bf16.mxu0 %vm2249_vm9, %v20831_v46  ;;  %v12633_v46 = vcombine.low %v9932_v47, %v9933_v59 }
 0x681   : > { %14386 = vmatmul.mubr.msk.bf16.gmra.mrb[84].mxu0 %vm2249_vm9, %v20832_v32  ;;  %v9902_v32 = vld [vmem:[#allocation2 + $0x48] sm:$0xf] }
 0x682   : > { %14389 = vmatprep.mubr.msk.bf16.mxu0 %vm2249_vm9, %v20833_v50  ;;  %v9903_v50 = vld [vmem:[#allocation2 + $0x4c] sm:$0xf]  ;;  %v9934_v43 = vmul.bf16 %v9902_v32, %v20809_v21  ;;  %v9939_v21 = vmul.bf16 %v9907_v40, %v20814_v3  ;;  %v9944_v3 = vmul.bf16 %v9912_v13, %v20819_v12  ;;  %v9949_v12 = vmul.bf16 %v9917_v1, %v20775_v25  ;;  %v15374_v25 = vld [vmem:[#allocation2 + $0x24] sm:$0xf] }
 0x683   : > { %v9935_v26 = vmul.bf16 %v9903_v50, %v20810_v4 }
 0x689   : > { %14390 = vmatmul.mubr.msk.bf16.gmra.mrb[88].mxu0 %vm2249_vm9, %v20834_v9  ;;  %v9904_v9 = vld [vmem:[#allocation2 + $0x50] sm:$0xf] }
 0x68a   : > { %14393 = vmatprep.mubr.msk.bf16.mxu0 %vm2249_vm9, %v20835_v34  ;;  %v9936_v16 = vmul.bf16 %v9904_v9, %v20811_v24  ;;  %v12634_v34 = vcombine.low %v9934_v43, %v9935_v26  ;;  %v9941_v24 = vmul.bf16 %v9909_v17, %v20816_v54  ;;  %v12638_v54 = vcombine.low %v9942_v35, %v9943_v52  ;;  %v15381_v52 = vld [vmem:[#allocation2 + $0x40] sm:$0xf] }
 0x68c   : > { %v12635_v5 = vcombine.low %v9936_v16, %v9937_v19 }
 0x691   : > { %14394 = vmatmul.mubr.msk.bf16.gmra.mrb[92].mxu0 %vm2249_vm9, %v20836_v10  ;;  %v12636_v10 = vcombine.low %v9938_v33, %v9939_v21  ;;  %v15379_v33 = vld [vmem:[#allocation2 + $0x38] sm:$0xf]  ;;  %v15380_v21 = vld [vmem:[#allocation2 + $0x3c] sm:$0xf] }
 0x692   : > { %14401 = vmatprep.mubr.msk.bf16.mxu0 %vm2249_vm9, %v12627_v63  ;;  %v9908_v63 = vld [vmem:[#allocation2 + $0x60] sm:$0xf] }
 0x693   : > { %v9940_v4 = vmul.bf16 %v9908_v63, %v20815_v38  ;;  %v9945_v38 = vmul.bf16 %v9913_v53, %v20820_v36  ;;  %v9946_v36 = vmul.bf16 %v9914_v51, %v20772_v23  ;;  %v15373_v23 = vld [vmem:[#allocation2 + $0x20] sm:$0xf] }
 0x694   : > { %v12667_v31 = vcombine.low %v15373_v23, %v15374_v25 }
 0x695   : > { %v12637_v18 = vcombine.low %v9940_v4, %v9941_v24  ;;  %v12670_v4 = vcombine.low %v15379_v33, %v15380_v21  ;;  %v15395_v21 = vld [vmem:[#allocation2 + $0x78] sm:$0xf] }
 0x696   : > { %v10425_v9 = vshll.u32 %v12667_v31, 16  ;;  %v10429_v26 = vshrl.u32 %v12667_v31, 16  ;;  %v15389_v31 = vld [vmem:[#allocation2 + $0x60] sm:$0xf] }
 0x697   : > { %v10449_v53 = vshll.u32 %v12670_v4, 16  ;;  %v10453_v51 = vshrl.u32 %v12670_v4, 16  ;;  %v15396_v4 = vld [vmem:[#allocation2 + $0x7c] sm:$0xf] }
 0x698   : > { %v10427_v19 = vrot.slane %v10425_v9, 1  ;;  %v15392_v9 = vld [vmem:[#allocation2 + $0x6c] sm:$0xf] }
 0x699   : > { %14402 = vmatmul.mubr.msk.bf16.vlgmr.msra.gmra.mrb[64].mxu0 %vm2249_vm9, %v12628_v28  ;;  %v12639_v28 = vcombine.low %v9944_v3, %v9945_v38  ;;  %v15382_v3 = vld [vmem:[#allocation2 + $0x44] sm:$0xf] }
 0x69a   : > { %14434 = vmatpush3.bf16.msra.mxu0 %v15284_v57  ;;  %14405 = vmatprep.mubr.msk.bf16.mxu0 %vm2249_vm9, %v12629_v61  ;;  %v12631_v57 = vcombine.low %v9928_v37, %v9929_v56  ;;  %v9916_v61 = vld [vmem:[#allocation2 + $0x80] sm:$0xf]  ;;  %v12666_v37 = vcombine.low %v15371_v15, %v15372_v22  ;;  %v10412_v56 = vshll.u32 %v12665_v11, 16  ;;  %v10431_v63 = vor.u32 %v10429_v26, %v10427_v19  ;;  %v15386_v15 = vld [vmem:[#allocation2 + $0x54] sm:$0xf] }
 0x69b   : > { %14435 = vmatprep.subr.bf16.mxu0 %v15285_v30  ;;  %v9948_v41 = vmul.bf16 %v9916_v61, %v20774_v0  ;;  %v9951_v0 = vmul.bf16 %v9919_v7, %v20776_v55  ;;  %v15305_v55 = vld [vmem:[%s19746_s5] sm:$0xff]   ;;  %v12671_v38 = vcombine.low %v15381_v52, %v15382_v3  ;;  %v15384_v61 = vld [vmem:[#allocation2 + $0x4c] sm:$0xf] }
 0x69c   : > { %v10414_v45 = vrot.slane %v10412_v56, 1  ;;  %v10417_v14 = vshll.u32 %v12666_v37, 16  ;;  %v10421_v2 = vshrl.u32 %v12666_v37, 16  ;;  %14505 = vmatprep.subr.bf16.mxu1 %v15305_v55  ;;  %v15398_v52 = vld [vmem:[#allocation2 + $0x84] sm:$0xf] }
 0x69d   : > { %14506 = vmatpush3.bf16.msra.mxu1 %v15305_v55  ;;  %v10457_v42 = vshll.u32 %v12671_v38, 16 }
 0x69e   : > { %14436 = vmatpush3.bf16.msra.mxu0 %v15285_v30  ;;  %v9915_v30 = vld [vmem:[#allocation2 + $0x7c] sm:$0xf]  ;;  %v10415_v47 = vor.u32 %v10414_v45, %v10410_v62  ;;  %v10419_v59 = vrot.slane %v10417_v14, 1 }
 0x69f   : > { %14469 = vmatprep.subr.bf16.mxu0 %v19454_v48  ;;  %v9947_v58 = vmul.bf16 %v9915_v30, %v20773_v60  ;;  %v9950_v60 = vmul.bf16 %v9918_v49, %v20777_v27  ;;  %v15306_v27 = vld [vmem:[%s19746_s5 + $0x8] sm:$0xff]   ;;  %v15388_v49 = vld [vmem:[#allocation2 + $0x5c] sm:$0xf] }
 0x6a0   : > { %v10420_v43 = vsel %vm2104_vm8, %v10415_v47, %v10419_v59  ;;  %v10423_v40 = vor.u32 %v10421_v2, %v10419_v59  ;;  %14507 = vmatprep.subr.bf16.mxu1 %v15306_v27  ;;  %v15383_v30 = vld [vmem:[#allocation2 + $0x48] sm:$0xf]  ;;  %v15390_v47 = vld [vmem:[#allocation2 + $0x64] sm:$0xf] }
 0x6a1   : > { %14406 = vmatmul.mubr.msk.bf16.gmra.mrb[68].mxu0 %vm2249_vm9, %v12630_v29  ;;  %v12640_v29 = vcombine.low %v9946_v36, %v9947_v58  ;;  %v12642_v50 = vcombine.low %v9950_v60, %v9951_v0  ;;  %14508 = vmatpush3.bf16.msra.mxu1 %v15306_v27  ;;  %v12672_v1 = vcombine.low %v15383_v30, %v15384_v61  ;;  %v10461_v58 = vshrl.u32 %v12671_v38, 16  ;;  %v15385_v36 = vld [vmem:[#allocation2 + $0x50] sm:$0xf]  ;;  %v15399_v61 = vld [vmem:[#allocation2 + $0x88] sm:$0xf] }
 0x6a2   : > { %14409 = vmatprep.mubr.msk.bf16.mxu0 %vm2249_vm9, %v12631_v57  ;;  %v12641_v57 = vcombine.low %v9948_v41, %v9949_v12  ;;  %v10459_v12 = vrot.slane %v10457_v42, 1  ;;  %v12673_v22 = vcombine.low %v15385_v36, %v15386_v15  ;;  %v12675_v59 = vcombine.low %v15389_v31, %v15390_v47  ;;  %v15401_v15 = vld [vmem:[#allocation2 + $0x90] sm:$0x1]  ;;  %v20841_v31 = vld [vmem:[#allocation30_spill] sm:$0xff] }
 0x6a3   : > { %v10465_v41 = vshll.u32 %v12672_v1, 16  ;;  %v10469_v14 = vshrl.u32 %v12672_v1, 16  ;;  %v15400_v1 = vld [vmem:[#allocation2 + $0x8c] sm:$0xf] }
 0x6a4   : > { %v10463_v56 = vor.u32 %v10461_v58, %v10459_v12  ;;  %v10473_v62 = vshll.u32 %v12673_v22, 16  ;;  %v10477_v0 = vshrl.u32 %v12673_v22, 16  ;;  %v10493_v27 = vshrl.u32 %v12675_v59, 16  ;;  %v20842_v47 = vld [vmem:[#allocation116_spill] sm:$0xff] }
 0x6a5   : > { %v12680_v42 = vcombine.low %v15399_v61, %v15400_v1  ;;  %v12681_v22 = vcombine.low %v15401_v15, %v15401_v15 }
 0x6a6   : > { %v10475_v25 = vrot.slane %v10473_v62, 1 }
 0x6a9   : > { %14410 = vmatmul.mubr.msk.bf16.gmra.mrb[72].mxu0 %vm2249_vm9, %v12632_v39  ;;  %v15375_v39 = vld [vmem:[#allocation2 + $0x28] sm:$0xf] }
 0x6aa   : > { %14413 = vmatprep.mubr.msk.bf16.mxu0 %vm2249_vm9, %v12633_v46  ;;  %v15376_v46 = vld [vmem:[#allocation2 + $0x2c] sm:$0xf] }
 0x6ab   : > { %v12668_v32 = vcombine.low %v15375_v39, %v15376_v46  ;;  %v10479_v46 = vor.u32 %v10477_v0, %v10475_v25  ;;  %v20838_v0 = vld [vmem:[#allocation59_spill] sm:$0xff] }
 0x6ad   : > { %v10433_v16 = vshll.u32 %v12668_v32, 16  ;;  %v10437_v20 = vshrl.u32 %v12668_v32, 16 }
 0x6af   : > { %v10435_v17 = vrot.slane %v10433_v16, 1 }
 0x6b1   : > { %14414 = vmatmul.mubr.msk.bf16.gmra.mrb[76].mxu0 %vm2249_vm9, %v12634_v34  ;;  %v15377_v34 = vld [vmem:[#allocation2 + $0x30] sm:$0xf]  ;;  %v10436_v44 = vsel %vm2104_vm8, %v10431_v63, %v10435_v17  ;;  %v10439_v8 = vor.u32 %v10437_v20, %v10435_v17 }
 0x6b2   : > { %14417 = vmatprep.mubr.msk.bf16.mxu0 %vm2249_vm9, %v12635_v5  ;;  %v15378_v5 = vld [vmem:[#allocation2 + $0x34] sm:$0xf] }
 0x6b3   : > { %v12669_v6 = vcombine.low %v15377_v34, %v15378_v5  ;;  %v15393_v5 = vld [vmem:[#allocation2 + $0x70] sm:$0xf] }
 0x6b5   : > { %v10441_v24 = vshll.u32 %v12669_v6, 16  ;;  %v10445_v13 = vshrl.u32 %v12669_v6, 16  ;;  %v15394_v6 = vld [vmem:[#allocation2 + $0x74] sm:$0xf] }
 0x6b7   : > { %v10443_v35 = vrot.slane %v10441_v24, 1  ;;  %v12678_v24 = vcombine.low %v15395_v21, %v15396_v4 }
 0x6b9   : > { %14418 = vmatmul.mubr.msk.bf16.gmra.mrb[80].mxu0 %vm2249_vm9, %v12636_v10  ;;  %v15297_v10 = vld [vmem:[%s19744_s3 + $0x88] sm:$0xff]   ;;  %v10444_v11 = vsel %vm2104_vm8, %v10439_v8, %v10443_v35 }
 0x6ba   : > { %14421 = vmatprep.mubr.msk.bf16.mxu0 %vm2249_vm9, %v12637_v18  ;;  %v10428_v18 = vsel %vm2104_vm8, %v10423_v40, %v10427_v19  ;;  %v12677_v40 = vcombine.low %v15393_v5, %v15394_v6 }
 0x6c1   : > { %14422 = vmatmul.mubr.msk.bf16.gmra.mrb[84].mxu0 %vm2249_vm9, %v12638_v54  ;;  %v10447_v54 = vor.u32 %v10445_v13, %v10443_v35  ;;  %v10509_v13 = vshrl.u32 %v12677_v40, 16  ;;  %v15397_v35 = vld [vmem:[#allocation2 + $0x80] sm:$0xf] }
 0x6c2   : > { %14425 = vmatprep.mubr.msk.bf16.mxu0 %vm2249_vm9, %v12639_v28  ;;  %v10451_v28 = vrot.slane %v10449_v53, 1  ;;  %v10513_v53 = vshll.u32 %v12678_v24, 16  ;;  %v12679_v3 = vcombine.low %v15397_v35, %v15398_v52 }
 0x6c4   : > { %v10455_v37 = vor.u32 %v10453_v51, %v10451_v28  ;;  %v10521_v30 = vshll.u32 %v12679_v3, 16  ;;  %v10517_v51 = vshrl.u32 %v12678_v24, 16 }
 0x6c6   : > { %v10460_v45 = vsel %vm2104_vm8, %v10455_v37, %v10459_v12  ;;  %v10523_v58 = vrot.slane %v10521_v30, 1  ;;  %v10529_v12 = vshll.u32 %v12680_v42, 16 }
 0x6c9   : > { %14426 = vmatmul.mubr.msk.bf16.gmra.mrb[88].mxu0 %vm2249_vm9, %v12640_v29  ;;  %v10467_v29 = vrot.slane %v10465_v41, 1  ;;  %v10525_v41 = vshrl.u32 %v12679_v3, 16 }
 0x6ca   : > { %14429 = vmatprep.mubr.msk.bf16.mxu0 %vm2249_vm9, %v12641_v57  ;;  %v15387_v57 = vld [vmem:[#allocation2 + $0x58] sm:$0xf] }
 0x6cb   : > { %v12674_v7 = vcombine.low %v15387_v57, %v15388_v49  ;;  %v10468_v60 = vsel %vm2104_vm8, %v10463_v56, %v10467_v29  ;;  %v10471_v39 = vor.u32 %v10469_v14, %v10467_v29  ;;  %v10527_v37 = vor.u32 %v10525_v41, %v10523_v58 }
 0x6cc   : > { %v10531_v56 = vrot.slane %v10529_v12, 1  ;;  %v10537_v57 = vshll.u32 %v12681_v22, 16 }
 0x6cd   : > { %v10481_v23 = vshll.u32 %v12674_v7, 16  ;;  %v10476_v26 = vsel %vm2104_vm8, %v10471_v39, %v10475_v25  ;;  %v10485_v16 = vshrl.u32 %v12674_v7, 16  ;;  %v10533_v7 = vshrl.u32 %v12680_v42, 16  ;;  %v20840_v25 = vld [vmem:[#allocation102_spill] sm:$0xff]  ;;  %v20844_v39 = vld [vmem:[#allocation19_spill] sm:$0xff] }
 0x6ce   : > { %v10532_v49 = vsel %vm2104_vm8, %v10527_v37, %v10531_v56 }
 0x6cf   : > { %v10483_v32 = vrot.slane %v10481_v23, 1  ;;  %v10535_v62 = vor.u32 %v10533_v7, %v10531_v56  ;;  %v20839_v23 = vld [vmem:[#allocation136_spill] sm:$0xff] }
 0x6d1   : > { %14430 = vmatmul.mubr.msk.bf16.gmra.mrb[92].mxu0 %vm2249_vm9, %v12642_v50  ;;  %v15391_v50 = vld [vmem:[#allocation2 + $0x68] sm:$0xf]  ;;  %v10484_v55 = vsel %vm2104_vm8, %v10479_v46, %v10483_v32  ;;  %v10487_v63 = vor.u32 %v10485_v16, %v10483_v32  ;;  %v20845_v46 = vld [vmem:[#allocation141_spill] sm:$0xff]  ;;  %v20846_v32 = vld [vmem:[#allocation164_spill] sm:$0xff] }
 0x6d2   : > { %14437 = vmatprep.mubr.msk.bf16.mxu0 %vm2249_vm9, %v10420_v43  ;;  %v12676_v2 = vcombine.low %v15391_v50, %v15392_v9  ;;  %v10489_v43 = vshll.u32 %v12675_v59, 16  ;;  %v20843_v59 = vld [vmem:[#allocation88_spill] sm:$0xff]  ;;  %v20847_v50 = vld [vmem:[#allocation178_spill] sm:$0xff]  ;;  %v20848_v9 = vld [vmem:[#allocation159_spill] sm:$0xff] }
 0x6d3   : > { %v20852_v16 = vld [vmem:[#allocation193_spill] sm:$0xff] }
 0x6d4   : > { %v10497_v19 = vshll.u32 %v12676_v2, 16  ;;  %v10491_v34 = vrot.slane %v10489_v43, 1  ;;  %v10501_v20 = vshrl.u32 %v12676_v2, 16  ;;  %v20849_v2 = vld [vmem:[#allocation184_spill] sm:$0xff]  ;;  %v20850_v43 = vld [vmem:[#allocation90_spill] sm:$0xff] }
 0x6d6   : > { %v10495_v17 = vor.u32 %v10493_v27, %v10491_v34  ;;  %v10499_v33 = vrot.slane %v10497_v19, 1  ;;  %v19571_v27 = vld [vmem:[%s19745_s4] ss:$0 sm:$0xff] }
 0x6d8   : > { %v10503_v8 = vor.u32 %v10501_v20, %v10499_v33 }
 0x6d9   : > { %14438 = vmatmul.mubr.msk.bf16.vlgmr.msra.gmra.mrb[64].mxu0 %vm2249_vm9, %v10428_v18  ;;  %v10492_v18 = vsel %vm2104_vm8, %v10487_v63, %v10491_v34 }
 0x6da   : > { %14470 = vmatpush3.bf16.msra.mxu0 %v19454_v48  ;;  %14441 = vmatprep.mubr.msk.bf16.mxu0 %vm2249_vm9, %v10436_v44  ;;  %v10452_v48 = vsel %vm2104_vm8, %v10447_v54, %v10451_v28  ;;  %v10500_v44 = vsel %vm2104_vm8, %v10495_v17, %v10499_v33  ;;  %v10515_v28 = vrot.slane %v10513_v53, 1 }
 0x6db   : > { %14471 = vmatprep.subr.bf16.mxu0 %v15297_v10 }
 0x6dc   : > { %v10519_v36 = vor.u32 %v10517_v51, %v10515_v28 }
 0x6de   : > { %14472 = vmatpush3.bf16.msra.mxu0 %v15297_v10  ;;  %v10505_v10 = vshll.u32 %v12677_v40, 16  ;;  %v10524_v29 = vsel %vm2104_vm8, %v10519_v36, %v10523_v58 }
 0x6e0   : > { %v10507_v38 = vrot.slane %v10505_v10, 1 }
 0x6e1   : > { %14442 = vmatmul.mubr.msk.bf16.gmra.mrb[68].mxu0 %vm2249_vm9, %v10444_v11 }
 0x6e2   : > { %14445 = vmatprep.mubr.msk.bf16.mxu0 %vm2249_vm9, %v10452_v48  ;;  %v10511_v54 = vor.u32 %v10509_v13, %v10507_v38  ;;  %v10508_v11 = vsel %vm2104_vm8, %v10503_v8, %v10507_v38 }
 0x6e4   : > { %v10516_v48 = vsel %vm2104_vm8, %v10511_v54, %v10515_v28 }
 0x6e9   : > { %14446 = vmatmul.mubr.msk.bf16.gmra.mrb[72].mxu0 %vm2249_vm9, %v10460_v45  ;;  %v10539_v45 = vrot.slane %v10537_v57, 1 }
 0x6ea   : > { %14449 = vmatprep.mubr.msk.bf16.mxu0 %vm2249_vm9, %v10468_v60  ;;  %v20837_v60 = vld [vmem:[#allocation55_spill] sm:$0xff] }
 0x6eb   : > { %v10540_v14 = vsel %vm2104_vm8, %v10535_v62, %v10539_v45 }
 0x6f1   : > { %14450 = vmatmul.mubr.msk.bf16.gmra.mrb[76].mxu0 %vm2249_vm9, %v10476_v26  ;;  %v20851_v26 = vld [vmem:[#allocation91_spill] sm:$0xff] }
 0x6f2   : > { %14453 = vmatprep.mubr.msk.bf16.mxu0 %vm2249_vm9, %v10484_v55 }
 0x6f9   : > { %14454 = vmatmul.mubr.msk.bf16.gmra.mrb[80].mxu0 %vm2249_vm9, %v10492_v18 }
 0x6fa   : > { %14457 = vmatprep.mubr.msk.bf16.mxu0 %vm2249_vm9, %v10500_v44 }
 0x701   : > { %14458 = vmatmul.mubr.msk.bf16.gmra.mrb[84].mxu0 %vm2249_vm9, %v10508_v11 }
 0x702   : > { %14461 = vmatprep.mubr.msk.bf16.mxu0 %vm2249_vm9, %v10516_v48 }
 0x709   : > { %14462 = vmatmul.mubr.msk.bf16.gmra.mrb[88].mxu0 %vm2249_vm9, %v10524_v29 }
 0x70a   : > { %14465 = vmatprep.mubr.msk.bf16.mxu0 %vm2249_vm9, %v10532_v49 }
 0x711   : > { %14466 = vmatmul.mubr.msk.bf16.gmra.mrb[92].mxu0 %vm2249_vm9, %v10540_v14 }
 0x712   : > { %14473 = vmatprep.mubr.msk.bf16.mxu0 %vm2249_vm9, %v20837_v60 }
 0x719   : > { %14474 = vmatmul.mubr.msk.bf16.vlgmr.msra.gmra.mrb[64].mxu0 %vm2249_vm9, %v20838_v0 }
 0x71a   : > { %14477 = vmatprep.mubr.msk.bf16.mxu0 %vm2249_vm9, %v20839_v23 }
 0x721   : > { %14478 = vmatmul.mubr.msk.bf16.gmra.mrb[68].mxu0 %vm2249_vm9, %v20840_v25 }
 0x722   : > { %14481 = vmatprep.mubr.msk.bf16.mxu0 %vm2249_vm9, %v20841_v31 }
 0x729   : > { %14482 = vmatmul.mubr.msk.bf16.gmra.mrb[72].mxu0 %vm2249_vm9, %v20842_v47 }
 0x72a   : > { %14485 = vmatprep.mubr.msk.bf16.mxu0 %vm2249_vm9, %v20843_v59 }
 0x731   : > { %14486 = vmatmul.mubr.msk.bf16.gmra.mrb[76].mxu0 %vm2249_vm9, %v20844_v39 }
 0x732   : > { %14489 = vmatprep.mubr.msk.bf16.mxu0 %vm2249_vm9, %v20845_v46 }
 0x739   : > { %14490 = vmatmul.mubr.msk.bf16.gmra.mrb[80].mxu0 %vm2249_vm9, %v20846_v32 }
 0x73a   : > { %14493 = vmatprep.mubr.msk.bf16.mxu0 %vm2249_vm9, %v20847_v50 }
 0x741   : > { %14494 = vmatmul.mubr.msk.bf16.gmra.mrb[84].mxu0 %vm2249_vm9, %v20848_v9 }
 0x742   : > { %14497 = vmatprep.mubr.msk.bf16.mxu0 %vm2249_vm9, %v20849_v2 }
 0x749   : > { %14498 = vmatmul.mubr.msk.bf16.gmra.mrb[88].mxu0 %vm2249_vm9, %v20850_v43 }
 0x74a   : > { %14501 = vmatprep.mubr.msk.bf16.mxu0 %vm2249_vm9, %v20851_v26 }
 0x751   : > { %14502 = vmatmul.mubr.msk.bf16.gmra.mrb[92].mxu0 %vm2249_vm9, %v20852_v16 }
 0x7ec   : > { %v14475_v55 = vpop.f32.mrb[64].mxu0 }
 0x7ed   : > { %v11203_v19 = vadd.f32 %v19571_v27, %v14475_v55  ;;  %v11042_v34 = vpop.f32.mrb[65].mxu0 }
 0x7ee   : > { %v11201_v5 = vadd.f32 %v19571_v27, %v11042_v34  ;;  %v14476_v6 = vpop.f32.mrb[66].mxu0 }
 0x7ef   : > { %v11204_v40 = vadd.f32 %v19571_v27, %v14476_v6  ;;  %v11045_v63 = vpop.f32.mrb[67].mxu0  ;;  %v11235_v33 = vmax.f32 %v11203_v19, 0.0 }
 0x7f0   : > { %v11202_v17 = vadd.f32 %v19571_v27, %v11045_v63  ;;  %v11233_v4 = vmax.f32 %v11201_v5, 0.0 }
 0x7f1   : > { %v11236_v21 = vmax.f32 %v11204_v40, 0.0 }
 0x7f2   : > { %v11234_v24 = vmax.f32 %v11202_v17, 0.0 }
 0x7f3   : > { %v11266_v10 = vpack.c.bf16 %v11236_v21, %v11235_v33 }
 0x7f4   : > { %v11265_v18 = vpack.c.bf16 %v11234_v24, %v11233_v4  ;;  %v14479_v20 = vpop.f32.mrb[68].mxu0 }
 0x7f5   : > { %v11207_v44 = vadd.f32 %v19571_v27, %v14479_v20  ;;  %v11058_v13 = vpop.f32.mrb[69].mxu0 }
 0x7f6   : > { %v11205_v53 = vadd.f32 %v19571_v27, %v11058_v13  ;;  %v14480_v35 = vpop.f32.mrb[70].mxu0  ;;  %14509 = vmatprep.mubr.msk.bf16.mxu1 %vm2249_vm9, %v11265_v18 }
 0x7f7   : > { %v11208_v52 = vadd.f32 %v19571_v27, %v14480_v35  ;;  %v11061_v3 = vpop.f32.mrb[71].mxu0  ;;  %14510 = vmatmul.mubr.msk.bf16.vlgmr.msra.gmra.mrb[64].mxu1 %vm2249_vm9, %v11266_v10  ;;  %v11239_v8 = vmax.f32 %v11207_v44, 0.0 }
 0x7f8   : > { %v11206_v38 = vadd.f32 %v19571_v27, %v11061_v3  ;;  %v11237_v28 = vmax.f32 %v11205_v53, 0.0 }
 0x7f9   : > { %v11240_v54 = vmax.f32 %v11208_v52, 0.0 }
 0x7fa   : > { %v11238_v30 = vmax.f32 %v11206_v38, 0.0 }
 0x7fb   : > { %v11268_v61 = vpack.c.bf16 %v11240_v54, %v11239_v8 }
 0x7fc   : > { %v11267_v1 = vpack.c.bf16 %v11238_v30, %v11237_v28  ;;  %v14483_v42 = vpop.f32.mrb[72].mxu0 }
 0x7fd   : > { %v11211_v11 = vadd.f32 %v19571_v27, %v14483_v42  ;;  %v11074_v51 = vpop.f32.mrb[73].mxu0 }
 0x7fe   : > { %v11209_v48 = vadd.f32 %v19571_v27, %v11074_v51  ;;  %v14484_v58 = vpop.f32.mrb[74].mxu0  ;;  %14513 = vmatprep.mubr.msk.bf16.mxu1 %vm2249_vm9, %v11267_v1 }
 0x7ff   : > { %v11212_v41 = vadd.f32 %v19571_v27, %v14484_v58  ;;  %v11077_v12 = vpop.f32.mrb[75].mxu0  ;;  %14514 = vmatmul.mubr.msk.bf16.gmra.mrb[68].mxu1 %vm2249_vm9, %v11268_v61  ;;  %v11243_v15 = vmax.f32 %v11211_v11, 0.0 }
 0x800   : > { %v11210_v36 = vadd.f32 %v19571_v27, %v11077_v12  ;;  %v11241_v37 = vmax.f32 %v11209_v48, 0.0 }
 0x801   : > { %v11244_v22 = vmax.f32 %v11212_v41, 0.0 }
 0x802   : > { %v11242_v56 = vmax.f32 %v11210_v36, 0.0 }
 0x803   : > { %v11270_v29 = vpack.c.bf16 %v11244_v22, %v11243_v15 }
 0x804   : > { %v11269_v57 = vpack.c.bf16 %v11242_v56, %v11241_v37  ;;  %v14487_v49 = vpop.f32.mrb[76].mxu0 }
 0x805   : > { %v11215_v7 = vadd.f32 %v19571_v27, %v14487_v49  ;;  %v11090_v62 = vpop.f32.mrb[77].mxu0 }
 0x806   : > { %v11213_v45 = vadd.f32 %v19571_v27, %v11090_v62  ;;  %v14488_v14 = vpop.f32.mrb[78].mxu0  ;;  %14517 = vmatprep.mubr.msk.bf16.mxu1 %vm2249_vm9, %v11269_v57 }
 0x807   : > { %v11216_v60 = vadd.f32 %v19571_v27, %v14488_v14  ;;  %v11093_v0 = vpop.f32.mrb[79].mxu0  ;;  %14518 = vmatmul.mubr.msk.bf16.gmra.mrb[72].mxu1 %vm2249_vm9, %v11270_v29  ;;  %v11247_v25 = vmax.f32 %v11215_v7, 0.0 }
 0x808   : > { %v11214_v23 = vadd.f32 %v19571_v27, %v11093_v0  ;;  %v11245_v47 = vmax.f32 %v11213_v45, 0.0 }
 0x809   : > { %v11248_v31 = vmax.f32 %v11216_v60, 0.0 }
 0x80a   : > { %v11246_v59 = vmax.f32 %v11214_v23, 0.0  ;;  %v13310_v23 = vld [vmem:[%s15666_s25 + $0x88] sm:$0xff]  }
 0x80b   : > { %v11272_v39 = vpack.c.bf16 %v11248_v31, %v11247_v25  ;;  %v13309_v25 = vld [vmem:[%s15666_s25 + $0x80] sm:$0xff]   ;;  %v13141_v31 = vunpack.c.l.bf16 %v13310_v23 }
 0x80c   : > { %v11271_v46 = vpack.c.bf16 %v11246_v59, %v11245_v47  ;;  %v14491_v32 = vpop.f32.mrb[80].mxu0  ;;  %v13137_v59 = vunpack.c.l.bf16 %v13309_v25 }
 0x80d   : > { %v11219_v50 = vadd.f32 %v19571_v27, %v14491_v32  ;;  %v11106_v9 = vpop.f32.mrb[81].mxu0  ;;  %v13142_v32 = vunpack.c.h.bf16 %v13310_v23 }
 0x80e   : > { %v11217_v2 = vadd.f32 %v19571_v27, %v11106_v9  ;;  %v14492_v43 = vpop.f32.mrb[82].mxu0  ;;  %14521 = vmatprep.mubr.msk.bf16.mxu1 %vm2249_vm9, %v11271_v46 }
 0x80f   : > { %v11220_v26 = vadd.f32 %v19571_v27, %v14492_v43  ;;  %v11109_v16 = vpop.f32.mrb[83].mxu0  ;;  %14522 = vmatmul.mubr.msk.bf16.gmra.mrb[76].mxu1 %vm2249_vm9, %v11272_v39  ;;  %v11251_v19 = vmax.f32 %v11219_v50, 0.0 }
 0x810   : > { %v11218_v55 = vadd.f32 %v19571_v27, %v11109_v16  ;;  %v11249_v5 = vmax.f32 %v11217_v2, 0.0  ;;  %v13138_v2 = vunpack.c.h.bf16 %v13309_v25  ;;  %v13316_v25 = vld [vmem:[%s15666_s25 + $0xb8] sm:$0xff]  }
 0x811   : > { %v11252_v34 = vmax.f32 %v11220_v26, 0.0 }
 0x812   : > { %v11250_v6 = vmax.f32 %v11218_v55, 0.0 }
 0x813   : > { %v11274_v40 = vpack.c.bf16 %v11252_v34, %v11251_v19  ;;  %v13312_v34 = vld [vmem:[%s15666_s25 + $0x98] sm:$0xff]  }
 0x814   : > { %v11273_v63 = vpack.c.bf16 %v11250_v6, %v11249_v5  ;;  %v14495_v17 = vpop.f32.mrb[84].mxu0  ;;  %v13311_v6 = vld [vmem:[%s15666_s25 + $0x90] sm:$0xff]  }
 0x815   : > { %v11223_v33 = vadd.f32 %v19571_v27, %v14495_v17  ;;  %v11122_v21 = vpop.f32.mrb[85].mxu0 }
 0x816   : > { %v11221_v4 = vadd.f32 %v19571_v27, %v11122_v21  ;;  %v14496_v24 = vpop.f32.mrb[86].mxu0  ;;  %14525 = vmatprep.mubr.msk.bf16.mxu1 %vm2249_vm9, %v11273_v63 }
 0x817   : > { %v11224_v10 = vadd.f32 %v19571_v27, %v14496_v24  ;;  %v11125_v18 = vpop.f32.mrb[87].mxu0  ;;  %14526 = vmatmul.mubr.msk.bf16.gmra.mrb[80].mxu1 %vm2249_vm9, %v11274_v40  ;;  %v11255_v44 = vmax.f32 %v11223_v33, 0.0  ;;  %v13149_v33 = vunpack.c.l.bf16 %v13312_v34 }
 0x818   : > { %v11222_v20 = vadd.f32 %v19571_v27, %v11125_v18  ;;  %v11253_v53 = vmax.f32 %v11221_v4, 0.0 }
 0x819   : > { %v11256_v13 = vmax.f32 %v11224_v10, 0.0  ;;  %v13145_v10 = vunpack.c.l.bf16 %v13311_v6 }
 0x81a   : > { %v11254_v35 = vmax.f32 %v11222_v20, 0.0 }
 0x81b   : > { %v11276_v52 = vpack.c.bf16 %v11256_v13, %v11255_v44  ;;  %v13150_v13 = vunpack.c.h.bf16 %v13312_v34 }
 0x81c   : > { %v11275_v3 = vpack.c.bf16 %v11254_v35, %v11253_v53  ;;  %v14499_v38 = vpop.f32.mrb[88].mxu0 }
 0x81d   : > { %v11227_v8 = vadd.f32 %v19571_v27, %v14499_v38  ;;  %v11138_v54 = vpop.f32.mrb[89].mxu0 }
 0x81e   : > { %v11225_v28 = vadd.f32 %v19571_v27, %v11138_v54  ;;  %v14500_v30 = vpop.f32.mrb[90].mxu0  ;;  %14529 = vmatprep.mubr.msk.bf16.mxu1 %vm2249_vm9, %v11275_v3  ;;  %v13146_v3 = vunpack.c.h.bf16 %v13311_v6 }
 0x81f   : > { %v11228_v61 = vadd.f32 %v19571_v27, %v14500_v30  ;;  %v11141_v1 = vpop.f32.mrb[91].mxu0  ;;  %14530 = vmatmul.mubr.msk.bf16.gmra.mrb[84].mxu1 %vm2249_vm9, %v11276_v52  ;;  %v11259_v11 = vmax.f32 %v11227_v8, 0.0 }
 0x820   : > { %v11226_v42 = vadd.f32 %v19571_v27, %v11141_v1  ;;  %v11257_v48 = vmax.f32 %v11225_v28, 0.0 }
 0x821   : > { %v11260_v51 = vmax.f32 %v11228_v61, 0.0  ;;  %v13314_v61 = vld [vmem:[%s15666_s25 + $0xa8] sm:$0xff]  }
 0x822   : > { %v11258_v58 = vmax.f32 %v11226_v42, 0.0  ;;  %v13313_v42 = vld [vmem:[%s15666_s25 + $0xa0] sm:$0xff]  }
 0x823   : > { %v11278_v41 = vpack.c.bf16 %v11260_v51, %v11259_v11 }
 0x824   : > { %v11277_v12 = vpack.c.bf16 %v11258_v58, %v11257_v48  ;;  %v14503_v36 = vpop.f32.mrb[92].mxu0  ;;  %v13157_v58 = vunpack.c.l.bf16 %v13314_v61 }
 0x825   : > { %v11231_v15 = vadd.f32 %v19571_v27, %v14503_v36  ;;  %v11154_v22 = vpop.f32.mrb[93].mxu0 }
 0x826   : > { %v11229_v37 = vadd.f32 %v19571_v27, %v11154_v22  ;;  %v14504_v56 = vpop.f32.mrb[94].mxu0  ;;  %14533 = vmatprep.mubr.msk.bf16.mxu1 %vm2249_vm9, %v11277_v12 }
 0x827   : > { %v11232_v29 = vadd.f32 %v19571_v27, %v14504_v56  ;;  %v11157_v57 = vpop.f32.mrb[95].mxu0  ;;  %14534 = vmatmul.mubr.msk.bf16.gmra.mrb[88].mxu1 %vm2249_vm9, %v11278_v41  ;;  %v11263_v7 = vmax.f32 %v11231_v15, 0.0  ;;  %v13153_v15 = vunpack.c.l.bf16 %v13313_v42 }
 0x828   : > { %v11230_v49 = vadd.f32 %v19571_v27, %v11157_v57  ;;  %v11261_v45 = vmax.f32 %v11229_v37, 0.0  ;;  %v19626_v27 = vld [vmem:[%s19747_s6] ss:$0 sm:$0xff] }
 0x829   : > { %v11264_v62 = vmax.f32 %v11232_v29, 0.0  ;;  %v13158_v29 = vunpack.c.h.bf16 %v13314_v61 }
 0x82a   : > { %v11262_v14 = vmax.f32 %v11230_v49, 0.0 }
 0x82b   : > { %v11280_v60 = vpack.c.bf16 %v11264_v62, %v11263_v7  ;;  %v13154_v62 = vunpack.c.h.bf16 %v13313_v42 }
 0x82c   : > { %v11279_v0 = vpack.c.bf16 %v11262_v14, %v11261_v45 }
 0x82e   : > { %14537 = vmatprep.mubr.msk.bf16.mxu1 %vm2249_vm9, %v11279_v0 }
 0x82f   : > { %14538 = vmatmul.mubr.msk.bf16.gmra.mrb[92].mxu1 %vm2249_vm9, %v11280_v60 }
 0x8ca   : > { %v14511_v47 = vpop.f32.mrb[64].mxu1 }
 0x8cb   : > { %v11388_v39 = vadd.f32 %v19626_v27, %v14511_v47  ;;  %v11379_v46 = vpop.f32.mrb[65].mxu1  ;;  %v13315_v47 = vld [vmem:[%s15666_s25 + $0xb0] sm:$0xff]  }
 0x8cc   : > { %v11380_v50 = vadd.f32 %v19626_v27, %v11379_v46  ;;  %v14512_v9 = vpop.f32.mrb[66].mxu1 }
 0x8cd   : > { %v11573_v43 = vadd.f32 %v13141_v31, %v11388_v39  ;;  %v11391_v26 = vadd.f32 %v19626_v27, %v14512_v9  ;;  %v11382_v16 = vpop.f32.mrb[67].mxu1 }
 0x8ce   : > { %v11571_v55 = vadd.f32 %v13137_v59, %v11380_v50  ;;  %v11383_v19 = vadd.f32 %v19626_v27, %v11382_v16 }
 0x8cf   : > { %v11574_v5 = vadd.f32 %v13142_v32, %v11391_v26  ;;  %v11605_v63 = vmax.f32 %v11573_v43, 0.0  ;;  %v13165_v32 = vunpack.c.l.bf16 %v13316_v25  ;;  %v13161_v43 = vunpack.c.l.bf16 %v13315_v47 }
 0x8d0   : > { %v11572_v40 = vadd.f32 %v13138_v2, %v11383_v19  ;;  %v11603_v21 = vmax.f32 %v11571_v55, 0.0  ;;  %v13166_v19 = vunpack.c.h.bf16 %v13316_v25 }
 0x8d1   : > { %v11606_v17 = vmax.f32 %v11574_v5, 0.0 }
 0x8d2   : > { %v11604_v4 = vmax.f32 %v11572_v40, 0.0  ;;  %v14515_v24 = vpop.f32.mrb[68].mxu1  ;;  %v13162_v40 = vunpack.c.h.bf16 %v13315_v47 }
 0x8d3   : > { %v13207_v18 = vpack.c.bf16 %v11606_v17, %v11605_v63  ;;  %v11404_v20 = vadd.f32 %v19626_v27, %v14515_v24  ;;  %v11395_v44 = vpop.f32.mrb[69].mxu1  ;;  %v13318_v24 = vld [vmem:[%s15666_s25 + $0xc8] sm:$0xff]  }
 0x8d4   : > { %v13202_v53 = vpack.c.bf16 %v11604_v4, %v11603_v21  ;;  %v11396_v35 = vadd.f32 %v19626_v27, %v11395_v44  ;;  %v14516_v52 = vpop.f32.mrb[70].mxu1 }
 0x8d5   : > { %13326 = vst [vmem:[%s19210_s21 + $0x88] sm:$0xff] %v13207_v18   ;;  %v11577_v38 = vadd.f32 %v13149_v33, %v11404_v20  ;;  %v11407_v8 = vadd.f32 %v19626_v27, %v14516_v52  ;;  %v11398_v54 = vpop.f32.mrb[71].mxu1  ;;  %v13317_v18 = vld [vmem:[%s15666_s25 + $0xc0] sm:$0xff]  }
 0x8d6   : > { %13325 = vst [vmem:[%s19210_s21 + $0x80] sm:$0xff] %v13202_v53   ;;  %v11575_v28 = vadd.f32 %v13145_v10, %v11396_v35  ;;  %v11399_v30 = vadd.f32 %v19626_v27, %v11398_v54  ;;  %v13173_v53 = vunpack.c.l.bf16 %v13318_v24 }
 0x8d7   : > { %v11578_v1 = vadd.f32 %v13150_v13, %v11407_v8  ;;  %v11609_v51 = vmax.f32 %v11577_v38, 0.0  ;;  %v13169_v38 = vunpack.c.l.bf16 %v13317_v18 }
 0x8d8   : > { %v11576_v11 = vadd.f32 %v13146_v3, %v11399_v30  ;;  %v11607_v41 = vmax.f32 %v11575_v28, 0.0  ;;  %v13174_v30 = vunpack.c.h.bf16 %v13318_v24 }
 0x8d9   : > { %v11610_v48 = vmax.f32 %v11578_v1, 0.0 }
 0x8da   : > { %v11608_v12 = vmax.f32 %v11576_v11, 0.0  ;;  %v14519_v36 = vpop.f32.mrb[72].mxu1  ;;  %v13170_v11 = vunpack.c.h.bf16 %v13317_v18 }
 0x8db   : > { %v13217_v22 = vpack.c.bf16 %v11610_v48, %v11609_v51  ;;  %v11420_v37 = vadd.f32 %v19626_v27, %v14519_v36  ;;  %v11411_v56 = vpop.f32.mrb[73].mxu1  ;;  %v13320_v36 = vld [vmem:[%s15666_s25 + $0xd8] sm:$0xff]  }
 0x8dc   : > { %v13212_v57 = vpack.c.bf16 %v11608_v12, %v11607_v41  ;;  %v11412_v49 = vadd.f32 %v19626_v27, %v11411_v56  ;;  %v14520_v7 = vpop.f32.mrb[74].mxu1 }
 0x8dd   : > { %13328 = vst [vmem:[%s19210_s21 + $0x98] sm:$0xff] %v13217_v22   ;;  %v11581_v45 = vadd.f32 %v13157_v58, %v11420_v37  ;;  %v11423_v14 = vadd.f32 %v19626_v27, %v14520_v7  ;;  %v11414_v60 = vpop.f32.mrb[75].mxu1  ;;  %v13319_v22 = vld [vmem:[%s15666_s25 + $0xd0] sm:$0xff]  }
 0x8de   : > { %13327 = vst [vmem:[%s19210_s21 + $0x90] sm:$0xff] %v13212_v57   ;;  %v11579_v0 = vadd.f32 %v13153_v15, %v11412_v49  ;;  %v11415_v23 = vadd.f32 %v19626_v27, %v11414_v60  ;;  %v13181_v57 = vunpack.c.l.bf16 %v13320_v36 }
 0x8df   : > { %v11582_v31 = vadd.f32 %v13158_v29, %v11423_v14  ;;  %v11613_v39 = vmax.f32 %v11581_v45, 0.0  ;;  %v13177_v45 = vunpack.c.l.bf16 %v13319_v22 }
 0x8e0   : > { %v11580_v59 = vadd.f32 %v13154_v62, %v11415_v23  ;;  %v11611_v50 = vmax.f32 %v11579_v0, 0.0  ;;  %v13182_v23 = vunpack.c.h.bf16 %v13320_v36 }
 0x8e1   : > { %v11614_v46 = vmax.f32 %v11582_v31, 0.0 }
 0x8e2   : > { %v11612_v9 = vmax.f32 %v11580_v59, 0.0  ;;  %v14523_v2 = vpop.f32.mrb[76].mxu1  ;;  %v13178_v59 = vunpack.c.h.bf16 %v13319_v22 }
 0x8e3   : > { %v13227_v26 = vpack.c.bf16 %v11614_v46, %v11613_v39  ;;  %v11436_v16 = vadd.f32 %v19626_v27, %v14523_v2  ;;  %v11427_v55 = vpop.f32.mrb[77].mxu1  ;;  %v13322_v2 = vld [vmem:[%s15666_s25 + $0xe8] sm:$0xff]  }
 0x8e4   : > { %v13222_v34 = vpack.c.bf16 %v11612_v9, %v11611_v50  ;;  %v11428_v5 = vadd.f32 %v19626_v27, %v11427_v55  ;;  %v14524_v6 = vpop.f32.mrb[78].mxu1 }
 0x8e5   : > { %13330 = vst [vmem:[%s19210_s21 + $0xa8] sm:$0xff] %v13227_v26   ;;  %v11585_v63 = vadd.f32 %v13165_v32, %v11436_v16  ;;  %v11439_v17 = vadd.f32 %v19626_v27, %v14524_v6  ;;  %v11430_v33 = vpop.f32.mrb[79].mxu1  ;;  %v13321_v26 = vld [vmem:[%s15666_s25 + $0xe0] sm:$0xff]  }
 0x8e6   : > { %13329 = vst [vmem:[%s19210_s21 + $0xa0] sm:$0xff] %v13222_v34   ;;  %v11583_v21 = vadd.f32 %v13161_v43, %v11428_v5  ;;  %v11431_v4 = vadd.f32 %v19626_v27, %v11430_v33  ;;  %v13189_v34 = vunpack.c.l.bf16 %v13322_v2 }
 0x8e7   : > { %v11586_v10 = vadd.f32 %v13166_v19, %v11439_v17  ;;  %v11617_v44 = vmax.f32 %v11585_v63, 0.0  ;;  %v13185_v63 = vunpack.c.l.bf16 %v13321_v26 }
 0x8e8   : > { %v11584_v20 = vadd.f32 %v13162_v40, %v11431_v4  ;;  %v11615_v35 = vmax.f32 %v11583_v21, 0.0  ;;  %v13190_v4 = vunpack.c.h.bf16 %v13322_v2 }
 0x8e9   : > { %v11618_v13 = vmax.f32 %v11586_v10, 0.0 }
 0x8ea   : > { %v11616_v52 = vmax.f32 %v11584_v20, 0.0  ;;  %v14527_v3 = vpop.f32.mrb[80].mxu1  ;;  %v13186_v20 = vunpack.c.h.bf16 %v13321_v26 }
 0x8eb   : > { %v13237_v8 = vpack.c.bf16 %v11618_v13, %v11617_v44  ;;  %v11452_v54 = vadd.f32 %v19626_v27, %v14527_v3  ;;  %v11443_v28 = vpop.f32.mrb[81].mxu1  ;;  %v13324_v3 = vld [vmem:[%s15666_s25 + $0xf8] sm:$0xff]  }
 0x8ec   : > { %v13232_v61 = vpack.c.bf16 %v11616_v52, %v11615_v35  ;;  %v11444_v1 = vadd.f32 %v19626_v27, %v11443_v28  ;;  %v14528_v42 = vpop.f32.mrb[82].mxu1 }
 0x8ed   : > { %13332 = vst [vmem:[%s19210_s21 + $0xb8] sm:$0xff] %v13237_v8   ;;  %v11589_v51 = vadd.f32 %v13173_v53, %v11452_v54  ;;  %v11455_v48 = vadd.f32 %v19626_v27, %v14528_v42  ;;  %v11446_v58 = vpop.f32.mrb[83].mxu1  ;;  %v13323_v8 = vld [vmem:[%s15666_s25 + $0xf0] sm:$0xff]   ;;  %s12990_s25 = sshll.u32 %s15577_s9, 12  ;;  %s11797_s9 = scalar_lea.sflag [#allocation5], %s15660_s22 }
 0x8ee   : > { %13331 = vst [vmem:[%s19210_s21 + $0xb0] sm:$0xff] %v13232_v61   ;;  %v11587_v41 = vadd.f32 %v13169_v38, %v11444_v1  ;;  %v11447_v12 = vadd.f32 %v19626_v27, %v11446_v58  ;;  %v13197_v61 = vunpack.c.l.bf16 %v13324_v3  ;;  %s19693_s13 = scalar_lea.hbm %s19749_s8, %s12990_s25 }
 0x8ef   : > { %v11590_v15 = vadd.f32 %v13174_v30, %v11455_v48  ;;  %v11621_v56 = vmax.f32 %v11589_v51, 0.0  ;;  %v13193_v51 = vunpack.c.l.bf16 %v13323_v8 }
 0x8f0   : > { %v11588_v37 = vadd.f32 %v13170_v11, %v11447_v12  ;;  %v11619_v49 = vmax.f32 %v11587_v41, 0.0  ;;  %v13198_v12 = vunpack.c.h.bf16 %v13324_v3 }
 0x8f1   : > { %v11622_v29 = vmax.f32 %v11590_v15, 0.0 }
 0x8f2   : > { %v11620_v7 = vmax.f32 %v11588_v37, 0.0  ;;  %v14531_v62 = vpop.f32.mrb[84].mxu1  ;;  %v13194_v37 = vunpack.c.h.bf16 %v13323_v8 }
 0x8f3   : > { %v13247_v14 = vpack.c.bf16 %v11622_v29, %v11621_v56  ;;  %v11468_v60 = vadd.f32 %v19626_v27, %v14531_v62  ;;  %v11459_v0 = vpop.f32.mrb[85].mxu1 }
 0x8f4   : > { %v13242_v25 = vpack.c.bf16 %v11620_v7, %v11619_v49  ;;  %v11460_v31 = vadd.f32 %v19626_v27, %v11459_v0  ;;  %v14532_v47 = vpop.f32.mrb[86].mxu1 }
 0x8f5   : > { %13334 = vst [vmem:[%s19210_s21 + $0xc8] sm:$0xff] %v13247_v14   ;;  %v11593_v39 = vadd.f32 %v13181_v57, %v11468_v60  ;;  %v11471_v46 = vadd.f32 %v19626_v27, %v14532_v47  ;;  %v11462_v32 = vpop.f32.mrb[87].mxu1 }
 0x8f6   : > { %13333 = vst [vmem:[%s19210_s21 + $0xc0] sm:$0xff] %v13242_v25   ;;  %v11591_v50 = vadd.f32 %v13177_v45, %v11460_v31  ;;  %v11463_v9 = vadd.f32 %v19626_v27, %v11462_v32 }
 0x8f7   : > { %v11594_v43 = vadd.f32 %v13182_v23, %v11471_v46  ;;  %v11625_v55 = vmax.f32 %v11593_v39, 0.0 }
 0x8f8   : > { %v11592_v16 = vadd.f32 %v13178_v59, %v11463_v9  ;;  %v11623_v5 = vmax.f32 %v11591_v50, 0.0 }
 0x8f9   : > { %v11626_v19 = vmax.f32 %v11594_v43, 0.0 }
 0x8fa   : > { %v11624_v6 = vmax.f32 %v11592_v16, 0.0  ;;  %v14535_v40 = vpop.f32.mrb[88].mxu1 }
 0x8fb   : > { %v13257_v17 = vpack.c.bf16 %v11626_v19, %v11625_v55  ;;  %v11484_v33 = vadd.f32 %v19626_v27, %v14535_v40  ;;  %v11475_v21 = vpop.f32.mrb[89].mxu1 }
 0x8fc   : > { %v13252_v24 = vpack.c.bf16 %v11624_v6, %v11623_v5  ;;  %v11476_v10 = vadd.f32 %v19626_v27, %v11475_v21  ;;  %v14536_v18 = vpop.f32.mrb[90].mxu1 }
 0x8fd   : > { %13336 = vst [vmem:[%s19210_s21 + $0xd8] sm:$0xff] %v13257_v17   ;;  %v11597_v44 = vadd.f32 %v13189_v34, %v11484_v33  ;;  %v11487_v13 = vadd.f32 %v19626_v27, %v14536_v18  ;;  %v11478_v53 = vpop.f32.mrb[91].mxu1 }
 0x8fe   : > { %13335 = vst [vmem:[%s19210_s21 + $0xd0] sm:$0xff] %v13252_v24   ;;  %v11595_v35 = vadd.f32 %v13185_v63, %v11476_v10  ;;  %v11479_v52 = vadd.f32 %v19626_v27, %v11478_v53 }
 0x8ff   : > { %v11598_v38 = vadd.f32 %v13190_v4, %v11487_v13  ;;  %v11629_v28 = vmax.f32 %v11597_v44, 0.0 }
 0x900   : > { %v11596_v54 = vadd.f32 %v13186_v20, %v11479_v52  ;;  %v11627_v1 = vmax.f32 %v11595_v35, 0.0 }
 0x901   : > { %v11630_v30 = vmax.f32 %v11598_v38, 0.0 }
 0x902   : > { %v11628_v42 = vmax.f32 %v11596_v54, 0.0  ;;  %v14539_v11 = vpop.f32.mrb[92].mxu1 }
 0x903   : > { %v13267_v48 = vpack.c.bf16 %v11630_v30, %v11629_v28  ;;  %v11500_v58 = vadd.f32 %v19626_v27, %v14539_v11  ;;  %v11491_v41 = vpop.f32.mrb[93].mxu1 }
 0x904   : > { %v13262_v36 = vpack.c.bf16 %v11628_v42, %v11627_v1  ;;  %v11492_v15 = vadd.f32 %v19626_v27, %v11491_v41  ;;  %v14540_v22 = vpop.f32.mrb[94].mxu1 }
 0x905   : > { %13338 = vst [vmem:[%s19210_s21 + $0xe8] sm:$0xff] %v13267_v48   ;;  %v11601_v56 = vadd.f32 %v13197_v61, %v11500_v58  ;;  %v11503_v29 = vadd.f32 %v19626_v27, %v14540_v22  ;;  %v11494_v57 = vpop.f32.mrb[95].mxu1 }
 0x906   : > { %13337 = vst [vmem:[%s19210_s21 + $0xe0] sm:$0xff] %v13262_v36   ;;  %v11599_v49 = vadd.f32 %v13193_v51, %v11492_v15  ;;  %v11495_v7 = vadd.f32 %v19626_v27, %v11494_v57 }
 0x907   : > { %v11602_v62 = vadd.f32 %v13198_v12, %v11503_v29  ;;  %v11633_v14 = vmax.f32 %v11601_v56, 0.0 }
 0x908   : > { %v11600_v45 = vadd.f32 %v13194_v37, %v11495_v7  ;;  %v11631_v0 = vmax.f32 %v11599_v49, 0.0 }
 0x909   : > { %v11634_v60 = vmax.f32 %v11602_v62, 0.0 }
 0x90a   : > { %v11632_v23 = vmax.f32 %v11600_v45, 0.0 }
 0x90b   : > { %v13277_v25 = vpack.c.bf16 %v11634_v60, %v11633_v14 }
 0x90c   : > { %v13272_v27 = vpack.c.bf16 %v11632_v23, %v11631_v0 }
 0x90d   : > { %13340 = vst [vmem:[%s19210_s21 + $0xf8] sm:$0xff] %v13277_v25  }
 0x90e   : > { %13339 = vst [vmem:[%s19210_s21 + $0xf0] sm:$0xff] %v13272_v27  }
 0x90f   : > { %15447 = shalt.err (!%p15444_p2)
}
 0x910   : > { %s15448_s21 = scalar_lea.hbm %s19693_s13, 4096  ;;  %s15452_s25 = scalar_lea.hbm %s19749_s8, 8192 }
 0x911   : > { %p15449_p4 = scmp.ne.s32.totalorder %s19693_s13, %s15448_s21  ;;  %p15453_p9 = scmp.lt.u32.totalorder %s19693_s13, %s19749_s8 }
 0x912   : > { %p15454_p1 = scmp.lt.u32.totalorder %s15452_s25, %s15448_s21  ;;  %p15456_p6 = scmp.lt.u32.totalorder %s15448_s21, %s19693_s13 }
 0x913   : > { %p15450_p5 = pnand %p15449_p4, %p20853_p11 }
 0x914   : > { %p15455_p3 = por %p15454_p1, %p15453_p9 }
 0x915   : > { %p15451_p7 = pneg %p15450_p5 }
 0x916   : > { %p15457_p12 = por %p15456_p6, %p15455_p3 }
 0x918   : > { %p15458_p13 = pnand %p15457_p12, %p15451_p7 }
 0x91a   : > { %15461 = shalt.err (!%p15458_p13)
}
 0x91b   : > { %s15509_s23 = smov 64   ;;  %s15510_s19 = smov 4  }
 0x91c   : > { %15071 = dma.vmem_to_hbm [thread:$0]  (%p20853_p11), %s19695_s12, 4096, %s19693_s13, %s11797_s9, %s15509_s23, %s15509_s23, %s15510_s19  }
 0x91d PF: > { %s11826_s16 = sand.u32 1, %s15488_s27   ;;  %p20854_p8 = scmp.ne.s32.totalorder %s19973_s18, 0 }
 0x91e   : > { %p20855_p10 = scmp.ge.s32.totalorder %s15500_s30, 2  ;;  %s11827_s24 = scalar_lea.sflag [#allocation5], %s11826_s16 }
 0x920   : > { %p15078_p0 = pnand %p20855_p10, %p20854_p8 }
 0x922   : > { %15483 = dma.done.wait (!%p15078_p0), %s11827_s24, 4096  }
 0x923   : > { %15485 = vsyncadd (!%p15078_p0), %s11827_s24, 4294963200  ;;  %p21_p2 = scmp.ge.s32.totalorder %s15581_s11, 4   ;;  %s20856_s27 = smov %s15492_s28 }
 0x924   : > { %s20857_s28 = smov %s15496_s29  ;;  %s20858_s29 = smov %s15593_s14 }
 0x925   : > { %s20859_s30 = smov %s15581_s11  ;;  %23 = sbr.rel (!%p21_p2) target bundleno = 5 (0x5), region = 107 }
 0x92c   :  { %11832 = vsyncpa [#allocation4], 1 }
 0x92d   :  { %11834 = vsyncpa [#allocation4 + $0x1], 1 }
 0x92e   :  { %11835 = vsyncpa [#allocation5], 1 }
 0x92f   :  { %11837 = vsyncpa [#allocation5 + $0x1], 1 }

</bundles_post_ra>
